<compile_context>
chip_gen: v7x
topology: tpu7x:2x2x1
jax: 0.10.0
libtpu: 0.0.40
codegen_flags: <defaults>
</compile_context>

<pallas_src>
from types import SimpleNamespace

import jax
import jax.numpy as jnp
from jax.experimental import pallas as pl
from jax.experimental.pallas import tpu as pltpu


# ----------------------------- Pallas kernel ------------------------------ #

def _make_conv_kernel(offsets, tm):
    """Conv3d(k=3, pad=1, stride=1) + bias + ReLU + boundary mask, one lane tile.

    Per grid step i:
      w_ref       : (Cout, 27*Cin) bf16  tap-major weight matrix (resident)
      b_ref       : (Cout, 1)      f32   bias column (resident)
      m_ref       : (1, tm)        f32   interior mask for this tile
      xl/xc/xr    : (Cin, tm)      bf16  flat activation blocks i, i+1, i+2
      o_ref       : (Cout, tm)           relu(W @ cols + b) * mask
    """

    def kernel(w_ref, b_ref, m_ref, xl_ref, xc_ref, xr_ref, o_ref):
        # Halo tile: columns [i*tm, (i+3)*tm) of the guarded flat activation.
        hx = jnp.concatenate([xl_ref[...], xc_ref[...], xr_ref[...]], axis=1)
        # In-VMEM im2col: 27 statically-shifted (Cin, tm) slices stacked on the
        # sublane axis -> (27*Cin, tm).  Shifts are compile-time constants.
        cols = jnp.concatenate(
            [hx[:, tm + o:2 * tm + o] for o in offsets], axis=0)
        acc = jnp.dot(w_ref[...], cols, preferred_element_type=jnp.float32)
        acc = acc + b_ref[...]                      # bias broadcast over lanes
        acc = jnp.maximum(acc, 0.0) * m_ref[...]    # zero padded/ghost positions
        o_ref[...] = acc.astype(o_ref.dtype)

    return kernel


def _conv_taps_pallas(x_g, w_mat, b_col, geom, out_dtype):
    """x_g: (Cin, (nb+2)*tm) bf16 guarded-flat activation -> (Cout, nb*tm)."""
    C = x_g.shape[0]
    tm, nb = geom.tm, geom.nb
    Cout, K = w_mat.shape
    kernel = _make_conv_kernel(geom.offsets, tm)
    return pl.pallas_call(
        kernel,
        out_shape=jax.ShapeDtypeStruct((Cout, nb * tm), out_dtype),
        grid_spec=pltpu.PrefetchScalarGridSpec(
            num_scalar_prefetch=0,
            grid=(nb,),
            in_specs=[
                pl.BlockSpec((Cout, K), lambda i: (0, 0)),   # weights (resident)
                pl.BlockSpec((Cout, 1), lambda i: (0, 0)),   # bias    (resident)
                pl.BlockSpec((1, tm), lambda i: (0, i)),     # interior mask
                pl.BlockSpec((C, tm), lambda i: (0, i)),     # halo: left block
                pl.BlockSpec((C, tm), lambda i: (0, i + 1)), # halo: center block
                pl.BlockSpec((C, tm), lambda i: (0, i + 2)), # halo: right block
            ],
            out_specs=pl.BlockSpec((Cout, tm), lambda i: (0, i)),
        ),
        compiler_params=pltpu.CompilerParams(
            dimension_semantics=("parallel",),
            vmem_limit_bytes=48 * 1024 * 1024),
    )(w_mat, b_col, geom.mask, x_g, x_g, x_g)


# --------------------------- geometry / layout ----------------------------- #

def _round_up(a, m):
    return ((a + m - 1) // m) * m


def _make_geom(N, D, H, W, k=3, tm=512):
    pad = k // 2
    Dp, Hp, Wp = D + 2 * pad, H + 2 * pad, W + 2 * pad
    Nq = N * Dp * Hp * Wp                       # flattened padded-volume size
    halo = pad * (Hp * Wp + Wp + 1)             # max |flat tap offset|
    tm = _round_up(max(tm, halo), 128)          # halo must fit in one guard block
    nb = max(1, (Nq + tm - 1) // tm)            # cdiv grid over lane tiles
    L = (nb + 2) * tm                           # guarded flat length
    offsets = tuple((kd - pad) * Hp * Wp + (kh - pad) * Wp + (kw - pad)
                    for kd in range(k) for kh in range(k) for kw in range(k))
    # Mask of "real interior output" positions in the flat padded volume.
    d_ok = (jnp.arange(Dp) >= pad) & (jnp.arange(Dp) < pad + D)
    h_ok = (jnp.arange(Hp) >= pad) & (jnp.arange(Hp) < pad + H)
    w_ok = (jnp.arange(Wp) >= pad) & (jnp.arange(Wp) < pad + W)
    m3 = d_ok[:, None, None] & h_ok[None, :, None] & w_ok[None, None, :]
    m = jnp.broadcast_to(m3[None], (N, Dp, Hp, Wp)).reshape(-1)
    m = jnp.pad(m.astype(jnp.float32), (0, nb * tm - Nq)).reshape(1, nb * tm)
    return SimpleNamespace(N=N, D=D, H=H, W=W, k=k, pad=pad,
                           Dp=Dp, Hp=Hp, Wp=Wp, Nq=Nq,
                           tm=tm, nb=nb, L=L, offsets=offsets, mask=m)


def _to_flat(x_ncdhw, geom):
    """NCDHW f32 -> (C, L) bf16 zero-padded, flattened, guarded layout."""
    N, C, D, H, W = x_ncdhw.shape
    p = geom.pad
    x = jnp.transpose(x_ncdhw, (1, 0, 2, 3, 4))
    x = jnp.pad(x, ((0, 0), (0, 0), (p, p), (p, p), (p, p)))
    x = x.reshape(C, geom.Nq)
    x = jnp.pad(x, ((0, 0), (geom.tm, geom.nb * geom.tm + geom.tm - geom.Nq)))
    return x.astype(jnp.bfloat16)


def _add_guards(y_flat, geom):
    """(C, nb*tm) -> (C, L): re-attach zero guard blocks (boundary is already 0)."""
    return jnp.pad(y_flat.astype(jnp.bfloat16), ((0, 0), (geom.tm, geom.tm)))


def _from_flat(y_flat, geom):
    """(Cout, nb*tm) -> NCDHW."""
    Cout = y_flat.shape[0]
    p = geom.pad
    y = y_flat[:, :geom.Nq].reshape(Cout, geom.N, geom.Dp, geom.Hp, geom.Wp)
    y = y[:, :, p:p + geom.D, p:p + geom.H, p:p + geom.W]
    return jnp.transpose(y, (1, 0, 2, 3, 4))


def _conv_layer(x_g, weight, bias, geom, out_dtype):
    """nn.Conv3d(kernel=3, padding=1, stride=1) + ReLU on the guarded flat layout."""
    Cout, Cin, k = weight.shape[0], weight.shape[1], weight.shape[2]
    # (Cout, Cin, kd, kh, kw) -> (Cout, kd, kh, kw, Cin) -> (Cout, k^3*Cin)
    w_mat = jnp.transpose(weight, (0, 2, 3, 4, 1)).reshape(Cout, k ** 3 * Cin)
    w_mat = w_mat.astype(jnp.bfloat16)
    b_col = bias.astype(jnp.float32).reshape(Cout, 1)
    return _conv_taps_pallas(x_g, w_mat, b_col, geom, out_dtype)


# -------------------------- Autoencoder structure -------------------------- #

def compute_filters(n_inputs, conv_filters):
    conv_in = [n_inputs] + conv_filters[:-2]
    conv_out = conv_filters[:-1]
    down_out = conv_filters[-2::-1]
    up_out = conv_filters[:0:-1]
    deconv_in = [a + b for a, b in zip(down_out, up_out)]
    deconv_out = down_out
    return conv_in, conv_out, deconv_in, deconv_out


def init_autoencoder_params(key, conv_filters, n_inputs=1, k=3):
    conv_in, conv_out, deconv_in, deconv_out = compute_filters(n_inputs, conv_filters)

    def init_conv(kk, cin, cout, transpose=False):
        kw_key, kb_key = jax.random.split(kk)
        bound = 1.0 / float(jnp.sqrt(cin * k ** 3))
        shape = (cin, cout, k, k, k) if transpose else (cout, cin, k, k, k)
        w = jax.random.uniform(kw_key, shape, jnp.float32, -bound, bound)
        b = jax.random.uniform(kb_key, (cout,), jnp.float32, -bound, bound)
        return w, b

    n_layers = len(conv_in) + 1 + len(deconv_in)
    keys = jax.random.split(key, n_layers)
    ki = 0
    params = {"down": [], "up": []}
    for cin, cout in zip(conv_in, conv_out):
        params["down"].append(init_conv(keys[ki], cin, cout)); ki += 1
    params["u"] = init_conv(keys[ki], conv_filters[-2], conv_filters[-1]); ki += 1
    for cin, cout in zip(deconv_in, deconv_out):
        params["up"].append(init_conv(keys[ki], cin, cout, transpose=True)); ki += 1
    return params


def autoencoder_forward(x, params, tm=512):
    # module defaults: pooling=False, dropout=0, norm=Identity, activation=ReLU
    N, _, D, H, W = x.shape
    geom = _make_geom(N, D, H, W, k=3, tm=tm)
    cur = _to_flat(x, geom)
    down_outputs = []
    for w, b in params["down"]:
        y = _conv_layer(cur, w, b, geom, jnp.bfloat16)
        down_outputs.append(y)
        cur = _add_guards(y, geom)
    w, b = params["u"]
    y = _conv_layer(cur, w, b, geom, jnp.bfloat16)
    cur = _add_guards(y, geom)
    n_up = len(params["up"])
    for li, ((w_ct, b_ct), skip) in enumerate(zip(params["up"], down_outputs[::-1])):
        # torch.cat((x, skip), dim=1) == row-stack in channels-first flat layout
        cat = jnp.concatenate([cur, _add_guards(skip, geom)], axis=0)
        # stride-1 ConvTranspose3d == Conv3d with flipped, in/out-swapped weights
        w_eq = jnp.transpose(jnp.flip(w_ct, axis=(2, 3, 4)), (1, 0, 2, 3, 4))
        out_dtype = jnp.float32 if li == n_up - 1 else jnp.bfloat16
        y = _conv_layer(cat, w_eq, b_ct, geom, out_dtype)
        if li != n_up - 1:
            cur = _add_guards(y, geom)
    return _from_flat(y, geom)
    # TODO(synk): `keepfeat`, the pooling branch (max_pool3d/interpolate) and
    # dropout3d are unused under the default module config (pooling=False,
    # dropout=0) and are omitted.


# -------------------------- pure-JAX reference ----------------------------- #

def _ref_conv3d_relu(x, w, b, pad=1):
    y = jax.lax.conv_general_dilated(
        x, w, window_strides=(1, 1, 1), padding=[(pad, pad)] * 3,
        dimension_numbers=("NCDHW", "OIDHW", "NCDHW"),
        precision=jax.lax.Precision.HIGHEST)
    return jnp.maximum(y + b.reshape(1, -1, 1, 1, 1), 0.0)


def _ref_forward(x, params):
    down_inputs = []
    for w, b in params["down"]:
        x = _ref_conv3d_relu(x, w, b)
        down_inputs.append(x)
    w, b = params["u"]
    x = _ref_conv3d_relu(x, w, b)
    for (w_ct, b_ct), skip in zip(params["up"], down_inputs[::-1]):
        x = jnp.concatenate([x, skip], axis=1)
        w_eq = jnp.transpose(jnp.flip(w_ct, axis=(2, 3, 4)), (1, 0, 2, 3, 4))
        x = _ref_conv3d_relu(x, w_eq, b_ct)
    return x


# ---------------------------------- main ----------------------------------- #

if __name__ == "__main__":
    key = jax.random.PRNGKey(0)
    k_x, k_p = jax.random.split(key)

    conv_filters = [4, 8, 16]
    n_inputs = 1
    N, D, H, W = 2, 8, 8, 8                                   # small NCDHW input
    x = jax.random.normal(k_x, (N, n_inputs, D, H, W), jnp.float32)

    params = init_autoencoder_params(k_p, conv_filters, n_inputs=n_inputs)

    fwd = jax.jit(autoencoder_forward)
    out = jax.block_until_ready(fwd(x, params))

    ref = jax.block_until_ready(_ref_forward(x, params))
    max_diff = float(jnp.max(jnp.abs(out - ref)))
    assert out.shape == (N, conv_filters[0], D, H, W), out.shape
    # bf16 streamed operands vs f32 reference: allow bf16-level error.
    assert max_diff < 1e-1, f"mismatch vs reference: {max_diff}"

    print("KERNEL_OK")
</pallas_src>

<mosaic_0001>
module attributes {stable_mosaic.version = 11 : i64} {
  func.func @kernel(%arg0: i32, %arg1: memref<4x27xbf16, #tpu.memory_space<vmem>>, %arg2: memref<4x1xf32, #tpu.memory_space<vmem>>, %arg3: memref<1x512xf32, #tpu.memory_space<vmem>>, %arg4: memref<1x512xbf16, #tpu.memory_space<vmem>>, %arg5: memref<1x512xbf16, #tpu.memory_space<vmem>>, %arg6: memref<1x512xbf16, #tpu.memory_space<vmem>>, %arg7: memref<4x512xbf16, #tpu.memory_space<vmem>>) attributes {dimension_semantics = [#tpu.dimension_semantics<parallel>], iteration_bounds = array<i64: 4>, scalar_prefetch = 0 : i64, scratch_operands = 0 : i64, tpu.core_type = #tpu.core_type<tc>, window_params = [{pipeline_mode = #tpu.pipeline_mode<synchronous>, transform_indices = @transform_0, window_bounds = array<i64: 4, 27>}, {pipeline_mode = #tpu.pipeline_mode<synchronous>, transform_indices = @transform_1, window_bounds = array<i64: 4, 1>}, {transform_indices = @transform_2, window_bounds = array<i64: 1, 512>}, {transform_indices = @transform_3, window_bounds = array<i64: 1, 512>}, {transform_indices = @transform_4, window_bounds = array<i64: 1, 512>}, {transform_indices = @transform_5, window_bounds = array<i64: 1, 512>}, {transform_indices = @transform_6, window_bounds = array<i64: 4, 512>}]} {
    %c0 = arith.constant 0 : index
    %c0_0 = arith.constant 0 : index
    %0 = vector.load %arg4[%c0, %c0_0] : memref<1x512xbf16, #tpu.memory_space<vmem>>, vector<1x512xbf16>
    %c0_1 = arith.constant 0 : index
    %c0_2 = arith.constant 0 : index
    %1 = vector.load %arg5[%c0_1, %c0_2] : memref<1x512xbf16, #tpu.memory_space<vmem>>, vector<1x512xbf16>
    %c0_3 = arith.constant 0 : index
    %c0_4 = arith.constant 0 : index
    %2 = vector.load %arg6[%c0_3, %c0_4] : memref<1x512xbf16, #tpu.memory_space<vmem>>, vector<1x512xbf16>
    %3 = tpu.concatenate %0, %1, %2 in 1 : vector<1x512xbf16>, vector<1x512xbf16>, vector<1x512xbf16> -> vector<1x1536xbf16>
    %4 = vector.extract_strided_slice %3 {offsets = [0, 401], sizes = [1, 512], strides = [1, 1]} : vector<1x1536xbf16> to vector<1x512xbf16>
    %5 = vector.extract_strided_slice %3 {offsets = [0, 402], sizes = [1, 512], strides = [1, 1]} : vector<1x1536xbf16> to vector<1x512xbf16>
    %6 = vector.extract_strided_slice %3 {offsets = [0, 403], sizes = [1, 512], strides = [1, 1]} : vector<1x1536xbf16> to vector<1x512xbf16>
    %7 = vector.extract_strided_slice %3 {offsets = [0, 411], sizes = [1, 512], strides = [1, 1]} : vector<1x1536xbf16> to vector<1x512xbf16>
    %8 = vector.extract_strided_slice %3 {offsets = [0, 412], sizes = [1, 512], strides = [1, 1]} : vector<1x1536xbf16> to vector<1x512xbf16>
    %9 = vector.extract_strided_slice %3 {offsets = [0, 413], sizes = [1, 512], strides = [1, 1]} : vector<1x1536xbf16> to vector<1x512xbf16>
    %10 = vector.extract_strided_slice %3 {offsets = [0, 421], sizes = [1, 512], strides = [1, 1]} : vector<1x1536xbf16> to vector<1x512xbf16>
    %11 = vector.extract_strided_slice %3 {offsets = [0, 422], sizes = [1, 512], strides = [1, 1]} : vector<1x1536xbf16> to vector<1x512xbf16>
    %12 = vector.extract_strided_slice %3 {offsets = [0, 423], sizes = [1, 512], strides = [1, 1]} : vector<1x1536xbf16> to vector<1x512xbf16>
    %13 = vector.extract_strided_slice %3 {offsets = [0, 501], sizes = [1, 512], strides = [1, 1]} : vector<1x1536xbf16> to vector<1x512xbf16>
    %14 = vector.extract_strided_slice %3 {offsets = [0, 502], sizes = [1, 512], strides = [1, 1]} : vector<1x1536xbf16> to vector<1x512xbf16>
    %15 = vector.extract_strided_slice %3 {offsets = [0, 503], sizes = [1, 512], strides = [1, 1]} : vector<1x1536xbf16> to vector<1x512xbf16>
    %16 = vector.extract_strided_slice %3 {offsets = [0, 511], sizes = [1, 512], strides = [1, 1]} : vector<1x1536xbf16> to vector<1x512xbf16>
    %17 = vector.extract_strided_slice %3 {offsets = [0, 512], sizes = [1, 512], strides = [1, 1]} : vector<1x1536xbf16> to vector<1x512xbf16>
    %18 = vector.extract_strided_slice %3 {offsets = [0, 513], sizes = [1, 512], strides = [1, 1]} : vector<1x1536xbf16> to vector<1x512xbf16>
    %19 = vector.extract_strided_slice %3 {offsets = [0, 521], sizes = [1, 512], strides = [1, 1]} : vector<1x1536xbf16> to vector<1x512xbf16>
    %20 = vector.extract_strided_slice %3 {offsets = [0, 522], sizes = [1, 512], strides = [1, 1]} : vector<1x1536xbf16> to vector<1x512xbf16>
    %21 = vector.extract_strided_slice %3 {offsets = [0, 523], sizes = [1, 512], strides = [1, 1]} : vector<1x1536xbf16> to vector<1x512xbf16>
    %22 = vector.extract_strided_slice %3 {offsets = [0, 601], sizes = [1, 512], strides = [1, 1]} : vector<1x1536xbf16> to vector<1x512xbf16>
    %23 = vector.extract_strided_slice %3 {offsets = [0, 602], sizes = [1, 512], strides = [1, 1]} : vector<1x1536xbf16> to vector<1x512xbf16>
    %24 = vector.extract_strided_slice %3 {offsets = [0, 603], sizes = [1, 512], strides = [1, 1]} : vector<1x1536xbf16> to vector<1x512xbf16>
    %25 = vector.extract_strided_slice %3 {offsets = [0, 611], sizes = [1, 512], strides = [1, 1]} : vector<1x1536xbf16> to vector<1x512xbf16>
    %26 = vector.extract_strided_slice %3 {offsets = [0, 612], sizes = [1, 512], strides = [1, 1]} : vector<1x1536xbf16> to vector<1x512xbf16>
    %27 = vector.extract_strided_slice %3 {offsets = [0, 613], sizes = [1, 512], strides = [1, 1]} : vector<1x1536xbf16> to vector<1x512xbf16>
    %28 = vector.extract_strided_slice %3 {offsets = [0, 621], sizes = [1, 512], strides = [1, 1]} : vector<1x1536xbf16> to vector<1x512xbf16>
    %29 = vector.extract_strided_slice %3 {offsets = [0, 622], sizes = [1, 512], strides = [1, 1]} : vector<1x1536xbf16> to vector<1x512xbf16>
    %30 = vector.extract_strided_slice %3 {offsets = [0, 623], sizes = [1, 512], strides = [1, 1]} : vector<1x1536xbf16> to vector<1x512xbf16>
    %31 = tpu.concatenate %4, %5, %6, %7, %8, %9, %10, %11, %12, %13, %14, %15, %16, %17, %18, %19 in 0 : vector<1x512xbf16>, vector<1x512xbf16>, vector<1x512xbf16>, vector<1x512xbf16>, vector<1x512xbf16>, vector<1x512xbf16>, vector<1x512xbf16>, vector<1x512xbf16>, vector<1x512xbf16>, vector<1x512xbf16>, vector<1x512xbf16>, vector<1x512xbf16>, vector<1x512xbf16>, vector<1x512xbf16>, vector<1x512xbf16>, vector<1x512xbf16> -> vector<16x512xbf16>
    %32 = tpu.concatenate %20, %21, %22, %23, %24, %25, %26, %27, %28, %29, %30 in 0 : vector<1x512xbf16>, vector<1x512xbf16>, vector<1x512xbf16>, vector<1x512xbf16>, vector<1x512xbf16>, vector<1x512xbf16>, vector<1x512xbf16>, vector<1x512xbf16>, vector<1x512xbf16>, vector<1x512xbf16>, vector<1x512xbf16> -> vector<11x512xbf16>
    %33 = tpu.concatenate %31, %32 in 0 : vector<16x512xbf16>, vector<11x512xbf16> -> vector<27x512xbf16>
    %c0_5 = arith.constant 0 : index
    %c0_6 = arith.constant 0 : index
    %34 = vector.load %arg1[%c0_5, %c0_6] : memref<4x27xbf16, #tpu.memory_space<vmem>>, vector<4x27xbf16>
    %cst = arith.constant dense<0.000000e+00> : vector<4x512xf32>
    %35 = tpu.matmul %34, %33, %cst {dimension_numbers = #tpu.dot_dimension_numbers<[1], [0], [0], [1], [0, 0, 1, 1], [], []>} : vector<4x27xbf16>, vector<27x512xbf16>, vector<4x512xf32> -> vector<4x512xf32>
    %c0_7 = arith.constant 0 : index
    %c0_8 = arith.constant 0 : index
    %36 = vector.load %arg2[%c0_7, %c0_8] : memref<4x1xf32, #tpu.memory_space<vmem>>, vector<4x1xf32>
    %37 = vector.broadcast %36 : vector<4x1xf32> to vector<4x512xf32>
    %38 = arith.addf %35, %37 : vector<4x512xf32>
    %cst_9 = arith.constant 0.000000e+00 : f32
    %39 = vector.broadcast %cst_9 : f32 to vector<4x512xf32>
    %40 = arith.maximumf %38, %39 : vector<4x512xf32>
    %c0_10 = arith.constant 0 : index
    %c0_11 = arith.constant 0 : index
    %41 = vector.load %arg3[%c0_10, %c0_11] : memref<1x512xf32, #tpu.memory_space<vmem>>, vector<1x512xf32>
    %42 = vector.broadcast %41 : vector<1x512xf32> to vector<4x512xf32>
    %43 = arith.mulf %40, %42 : vector<4x512xf32>
    %44 = arith.truncf %43 : vector<4x512xf32> to vector<4x512xbf16>
    %c0_12 = arith.constant 0 : index
    %c0_13 = arith.constant 0 : index
    %45 = vector.load %arg7[%c0_12, %c0_13] : memref<4x512xbf16, #tpu.memory_space<vmem>>, vector<4x512xbf16>
    tpu.vector_store %arg7[%c0_12, %c0_13], %44 {strides = array<i32>} : memref<4x512xbf16, #tpu.memory_space<vmem>>, vector<4x512xbf16>,
    return
  }
  func.func @transform_0(%arg0: i32) -> (i32, i32) {
    %c0_i32 = arith.constant 0 : i32
    %c0_i32_0 = arith.constant 0 : i32
    %c0_i32_1 = arith.constant 0 : i32
    return %c0_i32, %c0_i32_0 : i32, i32
  }
  func.func @transform_1(%arg0: i32) -> (i32, i32) {
    %c0_i32 = arith.constant 0 : i32
    %c0_i32_0 = arith.constant 0 : i32
    %c0_i32_1 = arith.constant 0 : i32
    return %c0_i32, %c0_i32_0 : i32, i32
  }
  func.func @transform_2(%arg0: i32) -> (i32, i32) {
    %c0_i32 = arith.constant 0 : i32
    %c0_i32_0 = arith.constant 0 : i32
    return %c0_i32, %arg0 : i32, i32
  }
  func.func @transform_3(%arg0: i32) -> (i32, i32) {
    %c0_i32 = arith.constant 0 : i32
    %c0_i32_0 = arith.constant 0 : i32
    return %c0_i32, %arg0 : i32, i32
  }
  func.func @transform_4(%arg0: i32) -> (i32, i32) {
    %c1_i32 = arith.constant 1 : i32
    %0 = arith.addi %arg0, %c1_i32 : i32
    %c0_i32 = arith.constant 0 : i32
    %c0_i32_0 = arith.constant 0 : i32
    return %c0_i32, %0 : i32, i32
  }
  func.func @transform_5(%arg0: i32) -> (i32, i32) {
    %c2_i32 = arith.constant 2 : i32
    %0 = arith.addi %arg0, %c2_i32 : i32
    %c0_i32 = arith.constant 0 : i32
    %c0_i32_0 = arith.constant 0 : i32
    return %c0_i32, %0 : i32, i32
  }
  func.func @transform_6(%arg0: i32) -> (i32, i32) {
    %c0_i32 = arith.constant 0 : i32
    %c0_i32_0 = arith.constant 0 : i32
    return %c0_i32, %arg0 : i32, i32
  }
}

module attributes {stable_mosaic.version = 11 : i64} {
  func.func @kernel(%arg0: i32, %arg1: memref<16x216xbf16, #tpu.memory_space<vmem>>, %arg2: memref<16x1xf32, #tpu.memory_space<vmem>>, %arg3: memref<1x512xf32, #tpu.memory_space<vmem>>, %arg4: memref<8x512xbf16, #tpu.memory_space<vmem>>, %arg5: memref<8x512xbf16, #tpu.memory_space<vmem>>, %arg6: memref<8x512xbf16, #tpu.memory_space<vmem>>, %arg7: memref<16x512xbf16, #tpu.memory_space<vmem>>) attributes {dimension_semantics = [#tpu.dimension_semantics<parallel>], iteration_bounds = array<i64: 4>, scalar_prefetch = 0 : i64, scratch_operands = 0 : i64, tpu.core_type = #tpu.core_type<tc>, window_params = [{pipeline_mode = #tpu.pipeline_mode<synchronous>, transform_indices = @transform_0, window_bounds = array<i64: 16, 216>}, {pipeline_mode = #tpu.pipeline_mode<synchronous>, transform_indices = @transform_1, window_bounds = array<i64: 16, 1>}, {transform_indices = @transform_2, window_bounds = array<i64: 1, 512>}, {transform_indices = @transform_3, window_bounds = array<i64: 8, 512>}, {transform_indices = @transform_4, window_bounds = array<i64: 8, 512>}, {transform_indices = @transform_5, window_bounds = array<i64: 8, 512>}, {transform_indices = @transform_6, window_bounds = array<i64: 16, 512>}]} {
    %c0 = arith.constant 0 : index
    %c0_0 = arith.constant 0 : index
    %0 = vector.load %arg4[%c0, %c0_0] : memref<8x512xbf16, #tpu.memory_space<vmem>>, vector<8x512xbf16>
    %c0_1 = arith.constant 0 : index
    %c0_2 = arith.constant 0 : index
    %1 = vector.load %arg5[%c0_1, %c0_2] : memref<8x512xbf16, #tpu.memory_space<vmem>>, vector<8x512xbf16>
    %c0_3 = arith.constant 0 : index
    %c0_4 = arith.constant 0 : index
    %2 = vector.load %arg6[%c0_3, %c0_4] : memref<8x512xbf16, #tpu.memory_space<vmem>>, vector<8x512xbf16>
    %3 = tpu.concatenate %0, %1, %2 in 1 : vector<8x512xbf16>, vector<8x512xbf16>, vector<8x512xbf16> -> vector<8x1536xbf16>
    %4 = vector.extract_strided_slice %3 {offsets = [0, 401], sizes = [8, 512], strides = [1, 1]} : vector<8x1536xbf16> to vector<8x512xbf16>
    %5 = vector.extract_strided_slice %3 {offsets = [0, 402], sizes = [8, 512], strides = [1, 1]} : vector<8x1536xbf16> to vector<8x512xbf16>
    %6 = vector.extract_strided_slice %3 {offsets = [0, 403], sizes = [8, 512], strides = [1, 1]} : vector<8x1536xbf16> to vector<8x512xbf16>
    %7 = vector.extract_strided_slice %3 {offsets = [0, 411], sizes = [8, 512], strides = [1, 1]} : vector<8x1536xbf16> to vector<8x512xbf16>
    %8 = vector.extract_strided_slice %3 {offsets = [0, 412], sizes = [8, 512], strides = [1, 1]} : vector<8x1536xbf16> to vector<8x512xbf16>
    %9 = vector.extract_strided_slice %3 {offsets = [0, 413], sizes = [8, 512], strides = [1, 1]} : vector<8x1536xbf16> to vector<8x512xbf16>
    %10 = vector.extract_strided_slice %3 {offsets = [0, 421], sizes = [8, 512], strides = [1, 1]} : vector<8x1536xbf16> to vector<8x512xbf16>
    %11 = vector.extract_strided_slice %3 {offsets = [0, 422], sizes = [8, 512], strides = [1, 1]} : vector<8x1536xbf16> to vector<8x512xbf16>
    %12 = vector.extract_strided_slice %3 {offsets = [0, 423], sizes = [8, 512], strides = [1, 1]} : vector<8x1536xbf16> to vector<8x512xbf16>
    %13 = vector.extract_strided_slice %3 {offsets = [0, 501], sizes = [8, 512], strides = [1, 1]} : vector<8x1536xbf16> to vector<8x512xbf16>
    %14 = vector.extract_strided_slice %3 {offsets = [0, 502], sizes = [8, 512], strides = [1, 1]} : vector<8x1536xbf16> to vector<8x512xbf16>
    %15 = vector.extract_strided_slice %3 {offsets = [0, 503], sizes = [8, 512], strides = [1, 1]} : vector<8x1536xbf16> to vector<8x512xbf16>
    %16 = vector.extract_strided_slice %3 {offsets = [0, 511], sizes = [8, 512], strides = [1, 1]} : vector<8x1536xbf16> to vector<8x512xbf16>
    %17 = vector.extract_strided_slice %3 {offsets = [0, 512], sizes = [8, 512], strides = [1, 1]} : vector<8x1536xbf16> to vector<8x512xbf16>
    %18 = vector.extract_strided_slice %3 {offsets = [0, 513], sizes = [8, 512], strides = [1, 1]} : vector<8x1536xbf16> to vector<8x512xbf16>
    %19 = vector.extract_strided_slice %3 {offsets = [0, 521], sizes = [8, 512], strides = [1, 1]} : vector<8x1536xbf16> to vector<8x512xbf16>
    %20 = vector.extract_strided_slice %3 {offsets = [0, 522], sizes = [8, 512], strides = [1, 1]} : vector<8x1536xbf16> to vector<8x512xbf16>
    %21 = vector.extract_strided_slice %3 {offsets = [0, 523], sizes = [8, 512], strides = [1, 1]} : vector<8x1536xbf16> to vector<8x512xbf16>
    %22 = vector.extract_strided_slice %3 {offsets = [0, 601], sizes = [8, 512], strides = [1, 1]} : vector<8x1536xbf16> to vector<8x512xbf16>
    %23 = vector.extract_strided_slice %3 {offsets = [0, 602], sizes = [8, 512], strides = [1, 1]} : vector<8x1536xbf16> to vector<8x512xbf16>
    %24 = vector.extract_strided_slice %3 {offsets = [0, 603], sizes = [8, 512], strides = [1, 1]} : vector<8x1536xbf16> to vector<8x512xbf16>
    %25 = vector.extract_strided_slice %3 {offsets = [0, 611], sizes = [8, 512], strides = [1, 1]} : vector<8x1536xbf16> to vector<8x512xbf16>
    %26 = vector.extract_strided_slice %3 {offsets = [0, 612], sizes = [8, 512], strides = [1, 1]} : vector<8x1536xbf16> to vector<8x512xbf16>
    %27 = vector.extract_strided_slice %3 {offsets = [0, 613], sizes = [8, 512], strides = [1, 1]} : vector<8x1536xbf16> to vector<8x512xbf16>
    %28 = vector.extract_strided_slice %3 {offsets = [0, 621], sizes = [8, 512], strides = [1, 1]} : vector<8x1536xbf16> to vector<8x512xbf16>
    %29 = vector.extract_strided_slice %3 {offsets = [0, 622], sizes = [8, 512], strides = [1, 1]} : vector<8x1536xbf16> to vector<8x512xbf16>
    %30 = vector.extract_strided_slice %3 {offsets = [0, 623], sizes = [8, 512], strides = [1, 1]} : vector<8x1536xbf16> to vector<8x512xbf16>
    %31 = tpu.concatenate %4, %5, %6, %7, %8, %9, %10, %11, %12, %13, %14, %15, %16, %17, %18, %19 in 0 : vector<8x512xbf16>, vector<8x512xbf16>, vector<8x512xbf16>, vector<8x512xbf16>, vector<8x512xbf16>, vector<8x512xbf16>, vector<8x512xbf16>, vector<8x512xbf16>, vector<8x512xbf16>, vector<8x512xbf16>, vector<8x512xbf16>, vector<8x512xbf16>, vector<8x512xbf16>, vector<8x512xbf16>, vector<8x512xbf16>, vector<8x512xbf16> -> vector<128x512xbf16>
    %32 = tpu.concatenate %20, %21, %22, %23, %24, %25, %26, %27, %28, %29, %30 in 0 : vector<8x512xbf16>, vector<8x512xbf16>, vector<8x512xbf16>, vector<8x512xbf16>, vector<8x512xbf16>, vector<8x512xbf16>, vector<8x512xbf16>, vector<8x512xbf16>, vector<8x512xbf16>, vector<8x512xbf16>, vector<8x512xbf16> -> vector<88x512xbf16>
    %33 = tpu.concatenate %31, %32 in 0 : vector<128x512xbf16>, vector<88x512xbf16> -> vector<216x512xbf16>
    %c0_5 = arith.constant 0 : index
    %c0_6 = arith.constant 0 : index
    %34 = vector.load %arg1[%c0_5, %c0_6] : memref<16x216xbf16, #tpu.memory_space<vmem>>, vector<16x216xbf16>
    %cst = arith.constant dense<0.000000e+00> : vector<16x512xf32>
    %35 = tpu.matmul %34, %33, %cst {dimension_numbers = #tpu.dot_dimension_numbers<[1], [0], [0], [1], [0, 0, 1, 1], [], []>} : vector<16x216xbf16>, vector<216x512xbf16>, vector<16x512xf32> -> vector<16x512xf32>
    %c0_7 = arith.constant 0 : index
    %c0_8 = arith.constant 0 : index
    %36 = vector.load %arg2[%c0_7, %c0_8] : memref<16x1xf32, #tpu.memory_space<vmem>>, vector<16x1xf32>
    %37 = vector.broadcast %36 : vector<16x1xf32> to vector<16x512xf32>
    %38 = arith.addf %35, %37 : vector<16x512xf32>
    %cst_9 = arith.constant 0.000000e+00 : f32
    %39 = vector.broadcast %cst_9 : f32 to vector<16x512xf32>
    %40 = arith.maximumf %38, %39 : vector<16x512xf32>
    %c0_10 = arith.constant 0 : index
    %c0_11 = arith.constant 0 : index
    %41 = vector.load %arg3[%c0_10, %c0_11] : memref<1x512xf32, #tpu.memory_space<vmem>>, vector<1x512xf32>
    %42 = vector.broadcast %41 : vector<1x512xf32> to vector<16x512xf32>
    %43 = arith.mulf %40, %42 : vector<16x512xf32>
    %44 = arith.truncf %43 : vector<16x512xf32> to vector<16x512xbf16>
    %c0_12 = arith.constant 0 : index
    %c0_13 = arith.constant 0 : index
    %45 = vector.load %arg7[%c0_12, %c0_13] : memref<16x512xbf16, #tpu.memory_space<vmem>>, vector<16x512xbf16>
    tpu.vector_store %arg7[%c0_12, %c0_13], %44 {strides = array<i32>} : memref<16x512xbf16, #tpu.memory_space<vmem>>, vector<16x512xbf16>,
    return
  }
  func.func @transform_0(%arg0: i32) -> (i32, i32) {
    %c0_i32 = arith.constant 0 : i32
    %c0_i32_0 = arith.constant 0 : i32
    %c0_i32_1 = arith.constant 0 : i32
    return %c0_i32, %c0_i32_0 : i32, i32
  }
  func.func @transform_1(%arg0: i32) -> (i32, i32) {
    %c0_i32 = arith.constant 0 : i32
    %c0_i32_0 = arith.constant 0 : i32
    %c0_i32_1 = arith.constant 0 : i32
    return %c0_i32, %c0_i32_0 : i32, i32
  }
  func.func @transform_2(%arg0: i32) -> (i32, i32) {
    %c0_i32 = arith.constant 0 : i32
    %c0_i32_0 = arith.constant 0 : i32
    return %c0_i32, %arg0 : i32, i32
  }
  func.func @transform_3(%arg0: i32) -> (i32, i32) {
    %c0_i32 = arith.constant 0 : i32
    %c0_i32_0 = arith.constant 0 : i32
    return %c0_i32, %arg0 : i32, i32
  }
  func.func @transform_4(%arg0: i32) -> (i32, i32) {
    %c1_i32 = arith.constant 1 : i32
    %0 = arith.addi %arg0, %c1_i32 : i32
    %c0_i32 = arith.constant 0 : i32
    %c0_i32_0 = arith.constant 0 : i32
    return %c0_i32, %0 : i32, i32
  }
  func.func @transform_5(%arg0: i32) -> (i32, i32) {
    %c2_i32 = arith.constant 2 : i32
    %0 = arith.addi %arg0, %c2_i32 : i32
    %c0_i32 = arith.constant 0 : i32
    %c0_i32_0 = arith.constant 0 : i32
    return %c0_i32, %0 : i32, i32
  }
  func.func @transform_6(%arg0: i32) -> (i32, i32) {
    %c0_i32 = arith.constant 0 : i32
    %c0_i32_0 = arith.constant 0 : i32
    return %c0_i32, %arg0 : i32, i32
  }
}

module attributes {stable_mosaic.version = 11 : i64} {
  func.func @kernel(%arg0: i32, %arg1: memref<8x108xbf16, #tpu.memory_space<vmem>>, %arg2: memref<8x1xf32, #tpu.memory_space<vmem>>, %arg3: memref<1x512xf32, #tpu.memory_space<vmem>>, %arg4: memref<4x512xbf16, #tpu.memory_space<vmem>>, %arg5: memref<4x512xbf16, #tpu.memory_space<vmem>>, %arg6: memref<4x512xbf16, #tpu.memory_space<vmem>>, %arg7: memref<8x512xbf16, #tpu.memory_space<vmem>>) attributes {dimension_semantics = [#tpu.dimension_semantics<parallel>], iteration_bounds = array<i64: 4>, scalar_prefetch = 0 : i64, scratch_operands = 0 : i64, tpu.core_type = #tpu.core_type<tc>, window_params = [{pipeline_mode = #tpu.pipeline_mode<synchronous>, transform_indices = @transform_0, window_bounds = array<i64: 8, 108>}, {pipeline_mode = #tpu.pipeline_mode<synchronous>, transform_indices = @transform_1, window_bounds = array<i64: 8, 1>}, {transform_indices = @transform_2, window_bounds = array<i64: 1, 512>}, {transform_indices = @transform_3, window_bounds = array<i64: 4, 512>}, {transform_indices = @transform_4, window_bounds = array<i64: 4, 512>}, {transform_indices = @transform_5, window_bounds = array<i64: 4, 512>}, {transform_indices = @transform_6, window_bounds = array<i64: 8, 512>}]} {
    %c0 = arith.constant 0 : index
    %c0_0 = arith.constant 0 : index
    %0 = vector.load %arg4[%c0, %c0_0] : memref<4x512xbf16, #tpu.memory_space<vmem>>, vector<4x512xbf16>
    %c0_1 = arith.constant 0 : index
    %c0_2 = arith.constant 0 : index
    %1 = vector.load %arg5[%c0_1, %c0_2] : memref<4x512xbf16, #tpu.memory_space<vmem>>, vector<4x512xbf16>
    %c0_3 = arith.constant 0 : index
    %c0_4 = arith.constant 0 : index
    %2 = vector.load %arg6[%c0_3, %c0_4] : memref<4x512xbf16, #tpu.memory_space<vmem>>, vector<4x512xbf16>
    %3 = tpu.concatenate %0, %1, %2 in 1 : vector<4x512xbf16>, vector<4x512xbf16>, vector<4x512xbf16> -> vector<4x1536xbf16>
    %4 = vector.extract_strided_slice %3 {offsets = [0, 401], sizes = [4, 512], strides = [1, 1]} : vector<4x1536xbf16> to vector<4x512xbf16>
    %5 = vector.extract_strided_slice %3 {offsets = [0, 402], sizes = [4, 512], strides = [1, 1]} : vector<4x1536xbf16> to vector<4x512xbf16>
    %6 = vector.extract_strided_slice %3 {offsets = [0, 403], sizes = [4, 512], strides = [1, 1]} : vector<4x1536xbf16> to vector<4x512xbf16>
    %7 = vector.extract_strided_slice %3 {offsets = [0, 411], sizes = [4, 512], strides = [1, 1]} : vector<4x1536xbf16> to vector<4x512xbf16>
    %8 = vector.extract_strided_slice %3 {offsets = [0, 412], sizes = [4, 512], strides = [1, 1]} : vector<4x1536xbf16> to vector<4x512xbf16>
    %9 = vector.extract_strided_slice %3 {offsets = [0, 413], sizes = [4, 512], strides = [1, 1]} : vector<4x1536xbf16> to vector<4x512xbf16>
    %10 = vector.extract_strided_slice %3 {offsets = [0, 421], sizes = [4, 512], strides = [1, 1]} : vector<4x1536xbf16> to vector<4x512xbf16>
    %11 = vector.extract_strided_slice %3 {offsets = [0, 422], sizes = [4, 512], strides = [1, 1]} : vector<4x1536xbf16> to vector<4x512xbf16>
    %12 = vector.extract_strided_slice %3 {offsets = [0, 423], sizes = [4, 512], strides = [1, 1]} : vector<4x1536xbf16> to vector<4x512xbf16>
    %13 = vector.extract_strided_slice %3 {offsets = [0, 501], sizes = [4, 512], strides = [1, 1]} : vector<4x1536xbf16> to vector<4x512xbf16>
    %14 = vector.extract_strided_slice %3 {offsets = [0, 502], sizes = [4, 512], strides = [1, 1]} : vector<4x1536xbf16> to vector<4x512xbf16>
    %15 = vector.extract_strided_slice %3 {offsets = [0, 503], sizes = [4, 512], strides = [1, 1]} : vector<4x1536xbf16> to vector<4x512xbf16>
    %16 = vector.extract_strided_slice %3 {offsets = [0, 511], sizes = [4, 512], strides = [1, 1]} : vector<4x1536xbf16> to vector<4x512xbf16>
    %17 = vector.extract_strided_slice %3 {offsets = [0, 512], sizes = [4, 512], strides = [1, 1]} : vector<4x1536xbf16> to vector<4x512xbf16>
    %18 = vector.extract_strided_slice %3 {offsets = [0, 513], sizes = [4, 512], strides = [1, 1]} : vector<4x1536xbf16> to vector<4x512xbf16>
    %19 = vector.extract_strided_slice %3 {offsets = [0, 521], sizes = [4, 512], strides = [1, 1]} : vector<4x1536xbf16> to vector<4x512xbf16>
    %20 = vector.extract_strided_slice %3 {offsets = [0, 522], sizes = [4, 512], strides = [1, 1]} : vector<4x1536xbf16> to vector<4x512xbf16>
    %21 = vector.extract_strided_slice %3 {offsets = [0, 523], sizes = [4, 512], strides = [1, 1]} : vector<4x1536xbf16> to vector<4x512xbf16>
    %22 = vector.extract_strided_slice %3 {offsets = [0, 601], sizes = [4, 512], strides = [1, 1]} : vector<4x1536xbf16> to vector<4x512xbf16>
    %23 = vector.extract_strided_slice %3 {offsets = [0, 602], sizes = [4, 512], strides = [1, 1]} : vector<4x1536xbf16> to vector<4x512xbf16>
    %24 = vector.extract_strided_slice %3 {offsets = [0, 603], sizes = [4, 512], strides = [1, 1]} : vector<4x1536xbf16> to vector<4x512xbf16>
    %25 = vector.extract_strided_slice %3 {offsets = [0, 611], sizes = [4, 512], strides = [1, 1]} : vector<4x1536xbf16> to vector<4x512xbf16>
    %26 = vector.extract_strided_slice %3 {offsets = [0, 612], sizes = [4, 512], strides = [1, 1]} : vector<4x1536xbf16> to vector<4x512xbf16>
    %27 = vector.extract_strided_slice %3 {offsets = [0, 613], sizes = [4, 512], strides = [1, 1]} : vector<4x1536xbf16> to vector<4x512xbf16>
    %28 = vector.extract_strided_slice %3 {offsets = [0, 621], sizes = [4, 512], strides = [1, 1]} : vector<4x1536xbf16> to vector<4x512xbf16>
    %29 = vector.extract_strided_slice %3 {offsets = [0, 622], sizes = [4, 512], strides = [1, 1]} : vector<4x1536xbf16> to vector<4x512xbf16>
    %30 = vector.extract_strided_slice %3 {offsets = [0, 623], sizes = [4, 512], strides = [1, 1]} : vector<4x1536xbf16> to vector<4x512xbf16>
    %31 = tpu.concatenate %4, %5, %6, %7, %8, %9, %10, %11, %12, %13, %14, %15, %16, %17, %18, %19 in 0 : vector<4x512xbf16>, vector<4x512xbf16>, vector<4x512xbf16>, vector<4x512xbf16>, vector<4x512xbf16>, vector<4x512xbf16>, vector<4x512xbf16>, vector<4x512xbf16>, vector<4x512xbf16>, vector<4x512xbf16>, vector<4x512xbf16>, vector<4x512xbf16>, vector<4x512xbf16>, vector<4x512xbf16>, vector<4x512xbf16>, vector<4x512xbf16> -> vector<64x512xbf16>
    %32 = tpu.concatenate %20, %21, %22, %23, %24, %25, %26, %27, %28, %29, %30 in 0 : vector<4x512xbf16>, vector<4x512xbf16>, vector<4x512xbf16>, vector<4x512xbf16>, vector<4x512xbf16>, vector<4x512xbf16>, vector<4x512xbf16>, vector<4x512xbf16>, vector<4x512xbf16>, vector<4x512xbf16>, vector<4x512xbf16> -> vector<44x512xbf16>
    %33 = tpu.concatenate %31, %32 in 0 : vector<64x512xbf16>, vector<44x512xbf16> -> vector<108x512xbf16>
    %c0_5 = arith.constant 0 : index
    %c0_6 = arith.constant 0 : index
    %34 = vector.load %arg1[%c0_5, %c0_6] : memref<8x108xbf16, #tpu.memory_space<vmem>>, vector<8x108xbf16>
    %cst = arith.constant dense<0.000000e+00> : vector<8x512xf32>
    %35 = tpu.matmul %34, %33, %cst {dimension_numbers = #tpu.dot_dimension_numbers<[1], [0], [0], [1], [0, 0, 1, 1], [], []>} : vector<8x108xbf16>, vector<108x512xbf16>, vector<8x512xf32> -> vector<8x512xf32>
    %c0_7 = arith.constant 0 : index
    %c0_8 = arith.constant 0 : index
    %36 = vector.load %arg2[%c0_7, %c0_8] : memref<8x1xf32, #tpu.memory_space<vmem>>, vector<8x1xf32>
    %37 = vector.broadcast %36 : vector<8x1xf32> to vector<8x512xf32>
    %38 = arith.addf %35, %37 : vector<8x512xf32>
    %cst_9 = arith.constant 0.000000e+00 : f32
    %39 = vector.broadcast %cst_9 : f32 to vector<8x512xf32>
    %40 = arith.maximumf %38, %39 : vector<8x512xf32>
    %c0_10 = arith.constant 0 : index
    %c0_11 = arith.constant 0 : index
    %41 = vector.load %arg3[%c0_10, %c0_11] : memref<1x512xf32, #tpu.memory_space<vmem>>, vector<1x512xf32>
    %42 = vector.broadcast %41 : vector<1x512xf32> to vector<8x512xf32>
    %43 = arith.mulf %40, %42 : vector<8x512xf32>
    %44 = arith.truncf %43 : vector<8x512xf32> to vector<8x512xbf16>
    %c0_12 = arith.constant 0 : index
    %c0_13 = arith.constant 0 : index
    %45 = vector.load %arg7[%c0_12, %c0_13] : memref<8x512xbf16, #tpu.memory_space<vmem>>, vector<8x512xbf16>
    tpu.vector_store %arg7[%c0_12, %c0_13], %44 {strides = array<i32>} : memref<8x512xbf16, #tpu.memory_space<vmem>>, vector<8x512xbf16>,
    return
  }
  func.func @transform_0(%arg0: i32) -> (i32, i32) {
    %c0_i32 = arith.constant 0 : i32
    %c0_i32_0 = arith.constant 0 : i32
    %c0_i32_1 = arith.constant 0 : i32
    return %c0_i32, %c0_i32_0 : i32, i32
  }
  func.func @transform_1(%arg0: i32) -> (i32, i32) {
    %c0_i32 = arith.constant 0 : i32
    %c0_i32_0 = arith.constant 0 : i32
    %c0_i32_1 = arith.constant 0 : i32
    return %c0_i32, %c0_i32_0 : i32, i32
  }
  func.func @transform_2(%arg0: i32) -> (i32, i32) {
    %c0_i32 = arith.constant 0 : i32
    %c0_i32_0 = arith.constant 0 : i32
    return %c0_i32, %arg0 : i32, i32
  }
  func.func @transform_3(%arg0: i32) -> (i32, i32) {
    %c0_i32 = arith.constant 0 : i32
    %c0_i32_0 = arith.constant 0 : i32
    return %c0_i32, %arg0 : i32, i32
  }
  func.func @transform_4(%arg0: i32) -> (i32, i32) {
    %c1_i32 = arith.constant 1 : i32
    %0 = arith.addi %arg0, %c1_i32 : i32
    %c0_i32 = arith.constant 0 : i32
    %c0_i32_0 = arith.constant 0 : i32
    return %c0_i32, %0 : i32, i32
  }
  func.func @transform_5(%arg0: i32) -> (i32, i32) {
    %c2_i32 = arith.constant 2 : i32
    %0 = arith.addi %arg0, %c2_i32 : i32
    %c0_i32 = arith.constant 0 : i32
    %c0_i32_0 = arith.constant 0 : i32
    return %c0_i32, %0 : i32, i32
  }
  func.func @transform_6(%arg0: i32) -> (i32, i32) {
    %c0_i32 = arith.constant 0 : i32
    %c0_i32_0 = arith.constant 0 : i32
    return %c0_i32, %arg0 : i32, i32
  }
}

module attributes {stable_mosaic.version = 11 : i64} {
  func.func @kernel(%arg0: i32, %arg1: memref<8x648xbf16, #tpu.memory_space<vmem>>, %arg2: memref<8x1xf32, #tpu.memory_space<vmem>>, %arg3: memref<1x512xf32, #tpu.memory_space<vmem>>, %arg4: memref<24x512xbf16, #tpu.memory_space<vmem>>, %arg5: memref<24x512xbf16, #tpu.memory_space<vmem>>, %arg6: memref<24x512xbf16, #tpu.memory_space<vmem>>, %arg7: memref<8x512xbf16, #tpu.memory_space<vmem>>) attributes {dimension_semantics = [#tpu.dimension_semantics<parallel>], iteration_bounds = array<i64: 4>, scalar_prefetch = 0 : i64, scratch_operands = 0 : i64, tpu.core_type = #tpu.core_type<tc>, window_params = [{pipeline_mode = #tpu.pipeline_mode<synchronous>, transform_indices = @transform_0, window_bounds = array<i64: 8, 648>}, {pipeline_mode = #tpu.pipeline_mode<synchronous>, transform_indices = @transform_1, window_bounds = array<i64: 8, 1>}, {transform_indices = @transform_2, window_bounds = array<i64: 1, 512>}, {transform_indices = @transform_3, window_bounds = array<i64: 24, 512>}, {transform_indices = @transform_4, window_bounds = array<i64: 24, 512>}, {transform_indices = @transform_5, window_bounds = array<i64: 24, 512>}, {transform_indices = @transform_6, window_bounds = array<i64: 8, 512>}]} {
    %c0 = arith.constant 0 : index
    %c0_0 = arith.constant 0 : index
    %0 = vector.load %arg4[%c0, %c0_0] : memref<24x512xbf16, #tpu.memory_space<vmem>>, vector<24x512xbf16>
    %c0_1 = arith.constant 0 : index
    %c0_2 = arith.constant 0 : index
    %1 = vector.load %arg5[%c0_1, %c0_2] : memref<24x512xbf16, #tpu.memory_space<vmem>>, vector<24x512xbf16>
    %c0_3 = arith.constant 0 : index
    %c0_4 = arith.constant 0 : index
    %2 = vector.load %arg6[%c0_3, %c0_4] : memref<24x512xbf16, #tpu.memory_space<vmem>>, vector<24x512xbf16>
    %3 = tpu.concatenate %0, %1, %2 in 1 : vector<24x512xbf16>, vector<24x512xbf16>, vector<24x512xbf16> -> vector<24x1536xbf16>
    %4 = vector.extract_strided_slice %3 {offsets = [0, 401], sizes = [24, 512], strides = [1, 1]} : vector<24x1536xbf16> to vector<24x512xbf16>
    %5 = vector.extract_strided_slice %3 {offsets = [0, 402], sizes = [24, 512], strides = [1, 1]} : vector<24x1536xbf16> to vector<24x512xbf16>
    %6 = vector.extract_strided_slice %3 {offsets = [0, 403], sizes = [24, 512], strides = [1, 1]} : vector<24x1536xbf16> to vector<24x512xbf16>
    %7 = vector.extract_strided_slice %3 {offsets = [0, 411], sizes = [24, 512], strides = [1, 1]} : vector<24x1536xbf16> to vector<24x512xbf16>
    %8 = vector.extract_strided_slice %3 {offsets = [0, 412], sizes = [24, 512], strides = [1, 1]} : vector<24x1536xbf16> to vector<24x512xbf16>
    %9 = vector.extract_strided_slice %3 {offsets = [0, 413], sizes = [24, 512], strides = [1, 1]} : vector<24x1536xbf16> to vector<24x512xbf16>
    %10 = vector.extract_strided_slice %3 {offsets = [0, 421], sizes = [24, 512], strides = [1, 1]} : vector<24x1536xbf16> to vector<24x512xbf16>
    %11 = vector.extract_strided_slice %3 {offsets = [0, 422], sizes = [24, 512], strides = [1, 1]} : vector<24x1536xbf16> to vector<24x512xbf16>
    %12 = vector.extract_strided_slice %3 {offsets = [0, 423], sizes = [24, 512], strides = [1, 1]} : vector<24x1536xbf16> to vector<24x512xbf16>
    %13 = vector.extract_strided_slice %3 {offsets = [0, 501], sizes = [24, 512], strides = [1, 1]} : vector<24x1536xbf16> to vector<24x512xbf16>
    %14 = vector.extract_strided_slice %3 {offsets = [0, 502], sizes = [24, 512], strides = [1, 1]} : vector<24x1536xbf16> to vector<24x512xbf16>
    %15 = vector.extract_strided_slice %3 {offsets = [0, 503], sizes = [24, 512], strides = [1, 1]} : vector<24x1536xbf16> to vector<24x512xbf16>
    %16 = vector.extract_strided_slice %3 {offsets = [0, 511], sizes = [24, 512], strides = [1, 1]} : vector<24x1536xbf16> to vector<24x512xbf16>
    %17 = vector.extract_strided_slice %3 {offsets = [0, 512], sizes = [24, 512], strides = [1, 1]} : vector<24x1536xbf16> to vector<24x512xbf16>
    %18 = vector.extract_strided_slice %3 {offsets = [0, 513], sizes = [24, 512], strides = [1, 1]} : vector<24x1536xbf16> to vector<24x512xbf16>
    %19 = vector.extract_strided_slice %3 {offsets = [0, 521], sizes = [24, 512], strides = [1, 1]} : vector<24x1536xbf16> to vector<24x512xbf16>
    %20 = vector.extract_strided_slice %3 {offsets = [0, 522], sizes = [24, 512], strides = [1, 1]} : vector<24x1536xbf16> to vector<24x512xbf16>
    %21 = vector.extract_strided_slice %3 {offsets = [0, 523], sizes = [24, 512], strides = [1, 1]} : vector<24x1536xbf16> to vector<24x512xbf16>
    %22 = vector.extract_strided_slice %3 {offsets = [0, 601], sizes = [24, 512], strides = [1, 1]} : vector<24x1536xbf16> to vector<24x512xbf16>
    %23 = vector.extract_strided_slice %3 {offsets = [0, 602], sizes = [24, 512], strides = [1, 1]} : vector<24x1536xbf16> to vector<24x512xbf16>
    %24 = vector.extract_strided_slice %3 {offsets = [0, 603], sizes = [24, 512], strides = [1, 1]} : vector<24x1536xbf16> to vector<24x512xbf16>
    %25 = vector.extract_strided_slice %3 {offsets = [0, 611], sizes = [24, 512], strides = [1, 1]} : vector<24x1536xbf16> to vector<24x512xbf16>
    %26 = vector.extract_strided_slice %3 {offsets = [0, 612], sizes = [24, 512], strides = [1, 1]} : vector<24x1536xbf16> to vector<24x512xbf16>
    %27 = vector.extract_strided_slice %3 {offsets = [0, 613], sizes = [24, 512], strides = [1, 1]} : vector<24x1536xbf16> to vector<24x512xbf16>
    %28 = vector.extract_strided_slice %3 {offsets = [0, 621], sizes = [24, 512], strides = [1, 1]} : vector<24x1536xbf16> to vector<24x512xbf16>
    %29 = vector.extract_strided_slice %3 {offsets = [0, 622], sizes = [24, 512], strides = [1, 1]} : vector<24x1536xbf16> to vector<24x512xbf16>
    %30 = vector.extract_strided_slice %3 {offsets = [0, 623], sizes = [24, 512], strides = [1, 1]} : vector<24x1536xbf16> to vector<24x512xbf16>
    %31 = tpu.concatenate %4, %5, %6, %7, %8, %9, %10, %11, %12, %13, %14, %15, %16, %17, %18, %19 in 0 : vector<24x512xbf16>, vector<24x512xbf16>, vector<24x512xbf16>, vector<24x512xbf16>, vector<24x512xbf16>, vector<24x512xbf16>, vector<24x512xbf16>, vector<24x512xbf16>, vector<24x512xbf16>, vector<24x512xbf16>, vector<24x512xbf16>, vector<24x512xbf16>, vector<24x512xbf16>, vector<24x512xbf16>, vector<24x512xbf16>, vector<24x512xbf16> -> vector<384x512xbf16>
    %32 = tpu.concatenate %20, %21, %22, %23, %24, %25, %26, %27, %28, %29, %30 in 0 : vector<24x512xbf16>, vector<24x512xbf16>, vector<24x512xbf16>, vector<24x512xbf16>, vector<24x512xbf16>, vector<24x512xbf16>, vector<24x512xbf16>, vector<24x512xbf16>, vector<24x512xbf16>, vector<24x512xbf16>, vector<24x512xbf16> -> vector<264x512xbf16>
    %33 = tpu.concatenate %31, %32 in 0 : vector<384x512xbf16>, vector<264x512xbf16> -> vector<648x512xbf16>
    %c0_5 = arith.constant 0 : index
    %c0_6 = arith.constant 0 : index
    %34 = vector.load %arg1[%c0_5, %c0_6] : memref<8x648xbf16, #tpu.memory_space<vmem>>, vector<8x648xbf16>
    %cst = arith.constant dense<0.000000e+00> : vector<8x512xf32>
    %35 = tpu.matmul %34, %33, %cst {dimension_numbers = #tpu.dot_dimension_numbers<[1], [0], [0], [1], [0, 0, 1, 1], [], []>} : vector<8x648xbf16>, vector<648x512xbf16>, vector<8x512xf32> -> vector<8x512xf32>
    %c0_7 = arith.constant 0 : index
    %c0_8 = arith.constant 0 : index
    %36 = vector.load %arg2[%c0_7, %c0_8] : memref<8x1xf32, #tpu.memory_space<vmem>>, vector<8x1xf32>
    %37 = vector.broadcast %36 : vector<8x1xf32> to vector<8x512xf32>
    %38 = arith.addf %35, %37 : vector<8x512xf32>
    %cst_9 = arith.constant 0.000000e+00 : f32
    %39 = vector.broadcast %cst_9 : f32 to vector<8x512xf32>
    %40 = arith.maximumf %38, %39 : vector<8x512xf32>
    %c0_10 = arith.constant 0 : index
    %c0_11 = arith.constant 0 : index
    %41 = vector.load %arg3[%c0_10, %c0_11] : memref<1x512xf32, #tpu.memory_space<vmem>>, vector<1x512xf32>
    %42 = vector.broadcast %41 : vector<1x512xf32> to vector<8x512xf32>
    %43 = arith.mulf %40, %42 : vector<8x512xf32>
    %44 = arith.truncf %43 : vector<8x512xf32> to vector<8x512xbf16>
    %c0_12 = arith.constant 0 : index
    %c0_13 = arith.constant 0 : index
    %45 = vector.load %arg7[%c0_12, %c0_13] : memref<8x512xbf16, #tpu.memory_space<vmem>>, vector<8x512xbf16>
    tpu.vector_store %arg7[%c0_12, %c0_13], %44 {strides = array<i32>} : memref<8x512xbf16, #tpu.memory_space<vmem>>, vector<8x512xbf16>,
    return
  }
  func.func @transform_0(%arg0: i32) -> (i32, i32) {
    %c0_i32 = arith.constant 0 : i32
    %c0_i32_0 = arith.constant 0 : i32
    %c0_i32_1 = arith.constant 0 : i32
    return %c0_i32, %c0_i32_0 : i32, i32
  }
  func.func @transform_1(%arg0: i32) -> (i32, i32) {
    %c0_i32 = arith.constant 0 : i32
    %c0_i32_0 = arith.constant 0 : i32
    %c0_i32_1 = arith.constant 0 : i32
    return %c0_i32, %c0_i32_0 : i32, i32
  }
  func.func @transform_2(%arg0: i32) -> (i32, i32) {
    %c0_i32 = arith.constant 0 : i32
    %c0_i32_0 = arith.constant 0 : i32
    return %c0_i32, %arg0 : i32, i32
  }
  func.func @transform_3(%arg0: i32) -> (i32, i32) {
    %c0_i32 = arith.constant 0 : i32
    %c0_i32_0 = arith.constant 0 : i32
    return %c0_i32, %arg0 : i32, i32
  }
  func.func @transform_4(%arg0: i32) -> (i32, i32) {
    %c1_i32 = arith.constant 1 : i32
    %0 = arith.addi %arg0, %c1_i32 : i32
    %c0_i32 = arith.constant 0 : i32
    %c0_i32_0 = arith.constant 0 : i32
    return %c0_i32, %0 : i32, i32
  }
  func.func @transform_5(%arg0: i32) -> (i32, i32) {
    %c2_i32 = arith.constant 2 : i32
    %0 = arith.addi %arg0, %c2_i32 : i32
    %c0_i32 = arith.constant 0 : i32
    %c0_i32_0 = arith.constant 0 : i32
    return %c0_i32, %0 : i32, i32
  }
  func.func @transform_6(%arg0: i32) -> (i32, i32) {
    %c0_i32 = arith.constant 0 : i32
    %c0_i32_0 = arith.constant 0 : i32
    return %c0_i32, %arg0 : i32, i32
  }
}

module attributes {stable_mosaic.version = 11 : i64} {
  func.func @kernel(%arg0: i32, %arg1: memref<4x324xbf16, #tpu.memory_space<vmem>>, %arg2: memref<4x1xf32, #tpu.memory_space<vmem>>, %arg3: memref<1x512xf32, #tpu.memory_space<vmem>>, %arg4: memref<12x512xbf16, #tpu.memory_space<vmem>>, %arg5: memref<12x512xbf16, #tpu.memory_space<vmem>>, %arg6: memref<12x512xbf16, #tpu.memory_space<vmem>>, %arg7: memref<4x512xf32, #tpu.memory_space<vmem>>) attributes {dimension_semantics = [#tpu.dimension_semantics<parallel>], iteration_bounds = array<i64: 4>, scalar_prefetch = 0 : i64, scratch_operands = 0 : i64, tpu.core_type = #tpu.core_type<tc>, window_params = [{pipeline_mode = #tpu.pipeline_mode<synchronous>, transform_indices = @transform_0, window_bounds = array<i64: 4, 324>}, {pipeline_mode = #tpu.pipeline_mode<synchronous>, transform_indices = @transform_1, window_bounds = array<i64: 4, 1>}, {transform_indices = @transform_2, window_bounds = array<i64: 1, 512>}, {transform_indices = @transform_3, window_bounds = array<i64: 12, 512>}, {transform_indices = @transform_4, window_bounds = array<i64: 12, 512>}, {transform_indices = @transform_5, window_bounds = array<i64: 12, 512>}, {transform_indices = @transform_6, window_bounds = array<i64: 4, 512>}]} {
    %c0 = arith.constant 0 : index
    %c0_0 = arith.constant 0 : index
    %0 = vector.load %arg4[%c0, %c0_0] : memref<12x512xbf16, #tpu.memory_space<vmem>>, vector<12x512xbf16>
    %c0_1 = arith.constant 0 : index
    %c0_2 = arith.constant 0 : index
    %1 = vector.load %arg5[%c0_1, %c0_2] : memref<12x512xbf16, #tpu.memory_space<vmem>>, vector<12x512xbf16>
    %c0_3 = arith.constant 0 : index
    %c0_4 = arith.constant 0 : index
    %2 = vector.load %arg6[%c0_3, %c0_4] : memref<12x512xbf16, #tpu.memory_space<vmem>>, vector<12x512xbf16>
    %3 = tpu.concatenate %0, %1, %2 in 1 : vector<12x512xbf16>, vector<12x512xbf16>, vector<12x512xbf16> -> vector<12x1536xbf16>
    %4 = vector.extract_strided_slice %3 {offsets = [0, 401], sizes = [12, 512], strides = [1, 1]} : vector<12x1536xbf16> to vector<12x512xbf16>
    %5 = vector.extract_strided_slice %3 {offsets = [0, 402], sizes = [12, 512], strides = [1, 1]} : vector<12x1536xbf16> to vector<12x512xbf16>
    %6 = vector.extract_strided_slice %3 {offsets = [0, 403], sizes = [12, 512], strides = [1, 1]} : vector<12x1536xbf16> to vector<12x512xbf16>
    %7 = vector.extract_strided_slice %3 {offsets = [0, 411], sizes = [12, 512], strides = [1, 1]} : vector<12x1536xbf16> to vector<12x512xbf16>
    %8 = vector.extract_strided_slice %3 {offsets = [0, 412], sizes = [12, 512], strides = [1, 1]} : vector<12x1536xbf16> to vector<12x512xbf16>
    %9 = vector.extract_strided_slice %3 {offsets = [0, 413], sizes = [12, 512], strides = [1, 1]} : vector<12x1536xbf16> to vector<12x512xbf16>
    %10 = vector.extract_strided_slice %3 {offsets = [0, 421], sizes = [12, 512], strides = [1, 1]} : vector<12x1536xbf16> to vector<12x512xbf16>
    %11 = vector.extract_strided_slice %3 {offsets = [0, 422], sizes = [12, 512], strides = [1, 1]} : vector<12x1536xbf16> to vector<12x512xbf16>
    %12 = vector.extract_strided_slice %3 {offsets = [0, 423], sizes = [12, 512], strides = [1, 1]} : vector<12x1536xbf16> to vector<12x512xbf16>
    %13 = vector.extract_strided_slice %3 {offsets = [0, 501], sizes = [12, 512], strides = [1, 1]} : vector<12x1536xbf16> to vector<12x512xbf16>
    %14 = vector.extract_strided_slice %3 {offsets = [0, 502], sizes = [12, 512], strides = [1, 1]} : vector<12x1536xbf16> to vector<12x512xbf16>
    %15 = vector.extract_strided_slice %3 {offsets = [0, 503], sizes = [12, 512], strides = [1, 1]} : vector<12x1536xbf16> to vector<12x512xbf16>
    %16 = vector.extract_strided_slice %3 {offsets = [0, 511], sizes = [12, 512], strides = [1, 1]} : vector<12x1536xbf16> to vector<12x512xbf16>
    %17 = vector.extract_strided_slice %3 {offsets = [0, 512], sizes = [12, 512], strides = [1, 1]} : vector<12x1536xbf16> to vector<12x512xbf16>
    %18 = vector.extract_strided_slice %3 {offsets = [0, 513], sizes = [12, 512], strides = [1, 1]} : vector<12x1536xbf16> to vector<12x512xbf16>
    %19 = vector.extract_strided_slice %3 {offsets = [0, 521], sizes = [12, 512], strides = [1, 1]} : vector<12x1536xbf16> to vector<12x512xbf16>
    %20 = vector.extract_strided_slice %3 {offsets = [0, 522], sizes = [12, 512], strides = [1, 1]} : vector<12x1536xbf16> to vector<12x512xbf16>
    %21 = vector.extract_strided_slice %3 {offsets = [0, 523], sizes = [12, 512], strides = [1, 1]} : vector<12x1536xbf16> to vector<12x512xbf16>
    %22 = vector.extract_strided_slice %3 {offsets = [0, 601], sizes = [12, 512], strides = [1, 1]} : vector<12x1536xbf16> to vector<12x512xbf16>
    %23 = vector.extract_strided_slice %3 {offsets = [0, 602], sizes = [12, 512], strides = [1, 1]} : vector<12x1536xbf16> to vector<12x512xbf16>
    %24 = vector.extract_strided_slice %3 {offsets = [0, 603], sizes = [12, 512], strides = [1, 1]} : vector<12x1536xbf16> to vector<12x512xbf16>
    %25 = vector.extract_strided_slice %3 {offsets = [0, 611], sizes = [12, 512], strides = [1, 1]} : vector<12x1536xbf16> to vector<12x512xbf16>
    %26 = vector.extract_strided_slice %3 {offsets = [0, 612], sizes = [12, 512], strides = [1, 1]} : vector<12x1536xbf16> to vector<12x512xbf16>
    %27 = vector.extract_strided_slice %3 {offsets = [0, 613], sizes = [12, 512], strides = [1, 1]} : vector<12x1536xbf16> to vector<12x512xbf16>
    %28 = vector.extract_strided_slice %3 {offsets = [0, 621], sizes = [12, 512], strides = [1, 1]} : vector<12x1536xbf16> to vector<12x512xbf16>
    %29 = vector.extract_strided_slice %3 {offsets = [0, 622], sizes = [12, 512], strides = [1, 1]} : vector<12x1536xbf16> to vector<12x512xbf16>
    %30 = vector.extract_strided_slice %3 {offsets = [0, 623], sizes = [12, 512], strides = [1, 1]} : vector<12x1536xbf16> to vector<12x512xbf16>
    %31 = tpu.concatenate %4, %5, %6, %7, %8, %9, %10, %11, %12, %13, %14, %15, %16, %17, %18, %19 in 0 : vector<12x512xbf16>, vector<12x512xbf16>, vector<12x512xbf16>, vector<12x512xbf16>, vector<12x512xbf16>, vector<12x512xbf16>, vector<12x512xbf16>, vector<12x512xbf16>, vector<12x512xbf16>, vector<12x512xbf16>, vector<12x512xbf16>, vector<12x512xbf16>, vector<12x512xbf16>, vector<12x512xbf16>, vector<12x512xbf16>, vector<12x512xbf16> -> vector<192x512xbf16>
    %32 = tpu.concatenate %20, %21, %22, %23, %24, %25, %26, %27, %28, %29, %30 in 0 : vector<12x512xbf16>, vector<12x512xbf16>, vector<12x512xbf16>, vector<12x512xbf16>, vector<12x512xbf16>, vector<12x512xbf16>, vector<12x512xbf16>, vector<12x512xbf16>, vector<12x512xbf16>, vector<12x512xbf16>, vector<12x512xbf16> -> vector<132x512xbf16>
    %33 = tpu.concatenate %31, %32 in 0 : vector<192x512xbf16>, vector<132x512xbf16> -> vector<324x512xbf16>
    %c0_5 = arith.constant 0 : index
    %c0_6 = arith.constant 0 : index
    %34 = vector.load %arg1[%c0_5, %c0_6] : memref<4x324xbf16, #tpu.memory_space<vmem>>, vector<4x324xbf16>
    %cst = arith.constant dense<0.000000e+00> : vector<4x512xf32>
    %35 = tpu.matmul %34, %33, %cst {dimension_numbers = #tpu.dot_dimension_numbers<[1], [0], [0], [1], [0, 0, 1, 1], [], []>} : vector<4x324xbf16>, vector<324x512xbf16>, vector<4x512xf32> -> vector<4x512xf32>
    %c0_7 = arith.constant 0 : index
    %c0_8 = arith.constant 0 : index
    %36 = vector.load %arg2[%c0_7, %c0_8] : memref<4x1xf32, #tpu.memory_space<vmem>>, vector<4x1xf32>
    %37 = vector.broadcast %36 : vector<4x1xf32> to vector<4x512xf32>
    %38 = arith.addf %35, %37 : vector<4x512xf32>
    %cst_9 = arith.constant 0.000000e+00 : f32
    %39 = vector.broadcast %cst_9 : f32 to vector<4x512xf32>
    %40 = arith.maximumf %38, %39 : vector<4x512xf32>
    %c0_10 = arith.constant 0 : index
    %c0_11 = arith.constant 0 : index
    %41 = vector.load %arg3[%c0_10, %c0_11] : memref<1x512xf32, #tpu.memory_space<vmem>>, vector<1x512xf32>
    %42 = vector.broadcast %41 : vector<1x512xf32> to vector<4x512xf32>
    %43 = arith.mulf %40, %42 : vector<4x512xf32>
    %c0_12 = arith.constant 0 : index
    %c0_13 = arith.constant 0 : index
    %44 = vector.load %arg7[%c0_12, %c0_13] : memref<4x512xf32, #tpu.memory_space<vmem>>, vector<4x512xf32>
    tpu.vector_store %arg7[%c0_12, %c0_13], %43 {strides = array<i32>} : memref<4x512xf32, #tpu.memory_space<vmem>>, vector<4x512xf32>,
    return
  }
  func.func @transform_0(%arg0: i32) -> (i32, i32) {
    %c0_i32 = arith.constant 0 : i32
    %c0_i32_0 = arith.constant 0 : i32
    %c0_i32_1 = arith.constant 0 : i32
    return %c0_i32, %c0_i32_0 : i32, i32
  }
  func.func @transform_1(%arg0: i32) -> (i32, i32) {
    %c0_i32 = arith.constant 0 : i32
    %c0_i32_0 = arith.constant 0 : i32
    %c0_i32_1 = arith.constant 0 : i32
    return %c0_i32, %c0_i32_0 : i32, i32
  }
  func.func @transform_2(%arg0: i32) -> (i32, i32) {
    %c0_i32 = arith.constant 0 : i32
    %c0_i32_0 = arith.constant 0 : i32
    return %c0_i32, %arg0 : i32, i32
  }
  func.func @transform_3(%arg0: i32) -> (i32, i32) {
    %c0_i32 = arith.constant 0 : i32
    %c0_i32_0 = arith.constant 0 : i32
    return %c0_i32, %arg0 : i32, i32
  }
  func.func @transform_4(%arg0: i32) -> (i32, i32) {
    %c1_i32 = arith.constant 1 : i32
    %0 = arith.addi %arg0, %c1_i32 : i32
    %c0_i32 = arith.constant 0 : i32
    %c0_i32_0 = arith.constant 0 : i32
    return %c0_i32, %0 : i32, i32
  }
  func.func @transform_5(%arg0: i32) -> (i32, i32) {
    %c2_i32 = arith.constant 2 : i32
    %0 = arith.addi %arg0, %c2_i32 : i32
    %c0_i32 = arith.constant 0 : i32
    %c0_i32_0 = arith.constant 0 : i32
    return %c0_i32, %0 : i32, i32
  }
  func.func @transform_6(%arg0: i32) -> (i32, i32) {
    %c0_i32 = arith.constant 0 : i32
    %c0_i32_0 = arith.constant 0 : i32
    return %c0_i32, %arg0 : i32, i32
  }
}

</mosaic_0001>

<bundles_post_ra>
// kernel: autoencoder_forward.6
= control target key start
LH: loop header
LB: loop body
LE: loop exit
PB: predicated region body
PF: predicated region fallthrough
CT: control target
= control target key end

     0   :  { %s1526_s21 = smov 0   ;;  %s2359_s0 = inlined_call_operand.vmem [shape: bf16[8,108], index: 0, kind: input, shape index: {}]   ;;  %s2360_s1 = inlined_call_operand.vmem [shape: f32[8,1], index: 1, kind: input, shape index: {}]   ;;  %s2361_s2 = inlined_call_operand.vmem [shape: f32[1,2048], index: 2, kind: input, shape index: {}]   ;;  %s2362_s3 = inlined_call_operand.vmem [shape: bf16[4,3072], index: 3, kind: input, shape index: {}, may-alias: {3,4,5}]   ;;  %s2363_s4 = inlined_call_operand.vmem [shape: bf16[4,3072], index: 4, kind: input, shape index: {}, may-alias: {3,4,5}]   ;;  %s2364_s5 = inlined_call_operand.vmem [shape: bf16[4,3072], index: 5, kind: input, shape index: {}, may-alias: {3,4,5}]   ;;  %s2365_s6 = inlined_call_operand.vmem [shape: bf16[8,2048], index: 6, kind: output, shape index: {}]  }
   0x1 LB: > { %s1391_s22 = sadd.s32 4294967295, %s1463_s21   ;;  %p1395_p0 = scmp.ge.s32.totalorder %s1463_s21, 1  ;;  %s1463_s21 = sphi %s1526_s21, %s16_s21  }
   0x2   : > { %p253_p1 = scmp.lt.s32.totalorder %s1463_s21, 5 }
   0x4   : > { %p254_p2 = pnand %p1395_p0, %p253_p1 }
   0x6   : > { %257 = sbr.rel (%p254_p2) target bundleno = 739 (0x2e3), region = 44 }
   0xd   : > { %s1534_s23 = sshll.u32 %s1391_s22, 2  ;;  %v341_v0 = vlaneseq  ;;  %v1465_v1 = vmov 1983009808   ;;  %s1466_s12 = smov 127   ;;  %vm387_vm0 = vcmask 1039360   ;;  %vm783_vm1 = vcmask 392192  }
   0xe   : > { %s1417_s24 = sadd.s32 8, %s1534_s23  ;;  %v339_v2 = vunpack.c.l.s4 %v1465_v1  ;;  %p305_p3 = scmp.lt.s32.totalorder %s1534_s23, 23  ;;  %vm611_vm2 = vcmask 1041408   ;;  %vm768_vm3 = vcmask 400384   ;;  %vm627_vm4 = vcmask 1043456  }
   0xf   : > { %p320_p4 = scmp.lt.s32.totalorder %s1417_s24, 23  ;;  %s1415_s25 = sadd.s32 4, %s1534_s23  ;;  %v1539_v4 = vshrl.u32 %v341_v0, 7  ;;  %vm638_vm5 = vcmask 1045504   ;;  %vm813_vm6 = vcmask 318464   ;;  %vm798_vm7 = vcmask 384000  }
  0x10   : > { %v340_v3 = vunpack.c.0.s8 %v339_v2  ;;  %s306_s26 = scalar_select %p305_p3, %s1534_s23, 23  ;;  %vm828_vm8 = vcmask 310272   ;;  %vm843_vm9 = vcmask 302080   ;;  %vm858_vm10 = vcmask 236544  }
  0x11   : > { %2371 = vst [vmem:[#allocation2_spill] sm:$0xff] %v1539_v4  ;;  %s2382_s24 = smov (!%p320_p4, %s1417_s24), 23  ;;  %p312_p5 = scmp.lt.s32.totalorder %s1415_s25, 23  ;;  %vm532_vm11 = vcmask 220160   ;;  %vm517_vm12 = vcmask 228352   ;;  %vm407_vm13 = vcmask 1031168  }
  0x12   : > { %s1398_s27 = sshll.u32 %s306_s26, 1  ;;  %s1402_s28 = sshll.u32 %s2382_s24, 1  ;;  %v343_v5 = vsub.s32 %v340_v3, %v1539_v4  ;;  %vm427_vm14 = vcmask 965632   ;;  %vm457_vm15 = vcmask 949248  }
  0x13   : > { %s308_s7 = scalar_lea.vmem %s2362_s3, %s1398_s27  ;;  %s323_s10 = scalar_lea.vmem %s2364_s5, %s1402_s28 }
  0x14   : > { %v1455_v6 = vld [vmem:[%s308_s7 + $0x4] ss:$0 sps:$4 sm:$0xff]   ;;  %s2384_s25 = smov (!%p312_p5, %s1415_s25), 23  ;;  %s1467_s16 = smov 49  }
  0x15   : > { %v1549_v7 = vld.sshfl [vmem:[%s323_s10] sm:$0xff pattern:$0x76325410]  ;;  %v1554_v9 = vrot.slane %v1455_v6, %v343_v5  ;;  %s1400_s11 = sshll.u32 %s2384_s25, 1  ;;  %s1468_s17 = smov 48  }
  0x16   : > { %v1552_v8 = vrot.slane %v1549_v7, 6  ;;  %s315_s15 = scalar_lea.vmem %s2363_s4, %s1400_s11  ;;  %v1598_v21 = vrot.slane %v1549_v7, 4  ;;  %v1623_v27 = vrot.slane %v1549_v7, 2  ;;  %s1469_s18 = smov 47  }
  0x17   : > { %v334_v10 = vld [vmem:[%s315_s15] sm:$0xff]  ;;  %s1470_s19 = smov 39   ;;  %s1471_s20 = smov 38   ;;  %v1664_v28 = vcombine.high %v1554_v9, %v1554_v9 }
  0x18   : > { %755 = vrot.lane.b32.xlu0 %v1552_v8, %s1466_s12  ;;  %v347_v11 = vcombine.high %v334_v10, %v334_v10  ;;  %v1561_v12 = vrot.slane %v334_v10, %v343_v5  ;;  %s1472_s22 = smov 37   ;;  %s1473_s24 = smov 28  }
  0x19   : > { %s1474_s25 = smov 29   ;;  %2372 = vst [vmem:[#allocation3_spill] sm:$0xff] %v1664_v28  ;;  %s1475_s26 = smov 27   ;;  %v1675_v29 = vrot.slane %v1664_v28, 6  ;;  %v1692_v31 = vrot.slane %v1664_v28, 2 }
  0x1a   : > { %v1563_v13 = vrot.slane %v347_v11, %v343_v5  ;;  %v1566_v14 = vrot.slane %v1561_v12, 4  ;;  %v1569_v15 = vrot.slane %v1561_v12, 6  ;;  %v1573_v16 = vcombine.high %v1561_v12, %v1561_v12  ;;  %s1476_s27 = smov 126   ;;  %s1477_s28 = smov 118  }
  0x1b   : > { %v1606_v23 = vrot.slane %v1561_v12, 2  ;;  %s1478_s29 = smov 117   ;;  %s1479_s30 = smov 116  }
  0x1c   : > { %758 = vrot.lane.b32.xlu1 %v1566_v14, %s1467_s16  ;;  %379 = vrot.lane.b32.xlu0 %v1569_v15, %s1466_s12  ;;  %v1579_v17 = vrot.slane %v1563_v13, 6  ;;  %v1585_v18 = vrot.slane %v1563_v13, 4  ;;  %v1588_v19 = vrot.slane %v1573_v16, 6  ;;  %v1592_v20 = vcombine.high %v1563_v13, %v1563_v13  ;;  %s1480_s7 = smov 108   ;;  %s1481_s8 = smov 107  }
  0x1d   : > { %v1612_v24 = vrot.slane %v1573_v16, 2  ;;  %v1615_v25 = vrot.slane %v1563_v13, 2  ;;  %s1482_s9 = smov 106   ;;  %s1483_s10 = smov 26  }
  0x1e   : > { %v1603_v22 = vrot.slane %v1592_v20, 6  ;;  %v1620_v26 = vrot.slane %v1592_v20, 2  ;;  %s1484_s11 = smov 18   ;;  %s1486_s13 = smov 16  }
  0x1f   : > { %s1487_s14 = smov 8   ;;  %s1488_s15 = smov 7  }
  0x20   : > { %383 = vrot.lane.b32.xlu1 %v1579_v17, %s1466_s12  ;;  %760 = vrot.lane.b32.xlu0 %v1573_v16, %s1467_s16  ;;  %p300_p6 = scmp.lt.s32.totalorder %s1534_s23, 15 }
  0x22   : > { %s2386_s23 = smov (!%p300_p6, %s1534_s23), 15 }
  0x24   : > { %762 = vrot.lane.b32.xlu1 %v1585_v18, %s1467_s16  ;;  %381 = vrot.lane.b32.xlu0 %v1588_v19, %s1466_s12 }
  0x28   : > { %766 = vrot.lane.b32.xlu1 %v1598_v21, %s1467_s16  ;;  %764 = vrot.lane.b32.xlu0 %v1592_v20, %s1467_s16  ;;  %s1489_s16 = smov 111  }
  0x2c   : > { %385 = vrot.lane.b32.xlu1 %v1603_v22, %s1466_s12  ;;  %773 = vrot.lane.b32.xlu0 %v1606_v23, %s1468_s17 }
  0x30   : > { %775 = vrot.lane.b32.xlu1 %v1612_v24, %s1468_s17  ;;  %777 = vrot.lane.b32.xlu0 %v1615_v25, %s1468_s17 }
  0x34   : > { %779 = vrot.lane.b32.xlu1 %v1620_v26, %s1468_s17  ;;  %781 = vrot.lane.b32.xlu0 %v1623_v27, %s1468_s17 }
  0x38   : > { %788 = vrot.lane.b32.xlu1 %v1561_v12, %s1469_s18  ;;  %790 = vrot.lane.b32.xlu0 %v1573_v16, %s1469_s18 }
  0x3c   : > { %792 = vrot.lane.b32.xlu1 %v1563_v13, %s1469_s18  ;;  %794 = vrot.lane.b32.xlu0 %v1592_v20, %s1469_s18 }
  0x40   : > { %796 = vrot.lane.b32.xlu1 %v1549_v7, %s1469_s18  ;;  %803 = vrot.lane.b32.xlu0 %v1569_v15, %s1470_s19 }
  0x44   : > { %805 = vrot.lane.b32.xlu1 %v1588_v19, %s1470_s19  ;;  %807 = vrot.lane.b32.xlu0 %v1579_v17, %s1470_s19 }
  0x48   : > { %809 = vrot.lane.b32.xlu1 %v1603_v22, %s1470_s19  ;;  %811 = vrot.lane.b32.xlu0 %v1552_v8, %s1470_s19 }
  0x4c   : > { %818 = vrot.lane.b32.xlu1 %v1566_v14, %s1471_s20  ;;  %820 = vrot.lane.b32.xlu0 %v1573_v16, %s1471_s20 }
  0x50   : > { %822 = vrot.lane.b32.xlu1 %v1585_v18, %s1471_s20  ;;  %824 = vrot.lane.b32.xlu0 %v1592_v20, %s1471_s20 }
  0x54   : > { %826 = vrot.lane.b32.xlu1 %v1598_v21, %s1471_s20  ;;  %833 = vrot.lane.b32.xlu0 %v1606_v23, %s1472_s22 }
  0x58   : > { %835 = vrot.lane.b32.xlu1 %v1612_v24, %s1472_s22  ;;  %837 = vrot.lane.b32.xlu0 %v1615_v25, %s1472_s22 }
  0x5c   : > { %839 = vrot.lane.b32.xlu1 %v1620_v26, %s1472_s22  ;;  %841 = vrot.lane.b32.xlu0 %v1623_v27, %s1472_s22 }
  0x60   : > { %509 = vrot.lane.b32.xlu1 %v1569_v15, %s1473_s24  ;;  %511 = vrot.lane.b32.xlu0 %v1588_v19, %s1473_s24 }
  0x64   : > { %513 = vrot.lane.b32.xlu1 %v1579_v17, %s1473_s24  ;;  %515 = vrot.lane.b32.xlu0 %v1603_v22, %s1473_s24 }
  0x68   : > { %848 = vrot.lane.b32.xlu1 %v1561_v12, %s1474_s25  ;;  %850 = vrot.lane.b32.xlu0 %v1573_v16, %s1474_s25 }
  0x6c   : > { %852 = vrot.lane.b32.xlu1 %v1563_v13, %s1474_s25  ;;  %854 = vrot.lane.b32.xlu0 %v1592_v20, %s1474_s25 }
  0x70   : > { %856 = vrot.lane.b32.xlu1 %v1549_v7, %s1474_s25  ;;  %863 = vrot.lane.b32.xlu0 %v1552_v8, %s1473_s24  ;;  %s302_s25 = scalar_lea.vmem %s2361_s2, %s2386_s23 }
  0x74   : > { %524 = vrot.lane.b32.xlu1 %v1566_v14, %s1475_s26  ;;  %526 = vrot.lane.b32.xlu0 %v1573_v16, %s1475_s26 }
  0x78   : > { %528 = vrot.lane.b32.xlu1 %v1585_v18, %s1475_s26  ;;  %530 = vrot.lane.b32.xlu0 %v1592_v20, %s1475_s26 }
  0x7c   : > { %866 = vrot.lane.b32.xlu1 %v1598_v21, %s1475_s26  ;;  %377 = vrot.lane.b32.xlu0 %v1675_v29, %s1466_s12  ;;  %s1485_s12 = smov 17  }
  0x80   : > { %399 = vrot.lane.b32.xlu1 %v1566_v14, %s1476_s27  ;;  %401 = vrot.lane.b32.xlu0 %v1573_v16, %s1476_s27 }
  0x84   : > { %403 = vrot.lane.b32.xlu1 %v1585_v18, %s1476_s27  ;;  %405 = vrot.lane.b32.xlu0 %v1592_v20, %s1476_s27 }
  0x88   : > { %397 = vrot.lane.b32.xlu1 %v1664_v28, %s1476_s27  ;;  %419 = vrot.lane.b32.xlu0 %v1606_v23, %s1477_s28 }
  0x8a   : > { %v1687_v30 = vpop.permute.xlu0 %755 }
  0x8c   : > { %421 = vrot.lane.b32.xlu1 %v1612_v24, %s1477_s28  ;;  %423 = vrot.lane.b32.xlu0 %v1615_v25, %s1477_s28 }
  0x8e   : > { %v1694_v32 = vpop.permute.xlu1 %758  ;;  %v1696_v33 = vpop.permute.xlu0 %379 }
  0x8f   : > { %2373 = vst [vmem:[#allocation4_spill] sm:$0xff] %v1696_v33 }
  0x90   : > { %425 = vrot.lane.b32.xlu1 %v1620_v26, %s1477_s28  ;;  %417 = vrot.lane.b32.xlu0 %v1692_v31, %s1477_s28 }
  0x92   : > { %v1700_v34 = vpop.permute.xlu1 %383  ;;  %v1702_v35 = vpop.permute.xlu0 %760 }
  0x94   : > { %434 = vrot.lane.b32.xlu1 %v1561_v12, %s1478_s29  ;;  %436 = vrot.lane.b32.xlu0 %v1573_v16, %s1478_s29 }
  0x96   : > { %v1706_v36 = vpop.permute.xlu1 %762  ;;  %v1708_v37 = vpop.permute.xlu0 %381 }
  0x98   : > { %438 = vrot.lane.b32.xlu1 %v1563_v13, %s1478_s29  ;;  %440 = vrot.lane.b32.xlu0 %v1592_v20, %s1478_s29 }
  0x9a   : > { %v1712_v38 = vpop.permute.xlu1 %766  ;;  %v1714_v39 = vpop.permute.xlu0 %764 }
  0x9c   : > { %449 = vrot.lane.b32.xlu1 %v1569_v15, %s1479_s30  ;;  %451 = vrot.lane.b32.xlu0 %v1588_v19, %s1479_s30 }
  0x9e   : > { %v1718_v40 = vpop.permute.xlu1 %385  ;;  %v1720_v41 = vpop.permute.xlu0 %773 }
  0xa0   : > { %453 = vrot.lane.b32.xlu1 %v1579_v17, %s1479_s30  ;;  %455 = vrot.lane.b32.xlu0 %v1603_v22, %s1479_s30 }
  0xa2   : > { %v1724_v42 = vpop.permute.xlu1 %775  ;;  %v1726_v43 = vpop.permute.xlu0 %777 }
  0xa4   : > { %432 = vrot.lane.b32.xlu1 %v1664_v28, %s1478_s29  ;;  %447 = vrot.lane.b32.xlu0 %v1675_v29, %s1479_s30 }
  0xa6   : > { %v1730_v44 = vpop.permute.xlu1 %779  ;;  %v1732_v45 = vpop.permute.xlu0 %781 }
  0xa8   : > { %464 = vrot.lane.b32.xlu1 %v1566_v14, %s1480_s7  ;;  %466 = vrot.lane.b32.xlu0 %v1573_v16, %s1480_s7 }
  0xaa   : > { %v1736_v46 = vpop.permute.xlu1 %788  ;;  %v1738_v47 = vpop.permute.xlu0 %790 }
  0xac   : > { %468 = vrot.lane.b32.xlu1 %v1585_v18, %s1480_s7  ;;  %470 = vrot.lane.b32.xlu0 %v1592_v20, %s1480_s7 }
  0xae   : > { %v1742_v48 = vpop.permute.xlu1 %792  ;;  %v1744_v49 = vpop.permute.xlu0 %794 }
  0xb0   : > { %462 = vrot.lane.b32.xlu1 %v1664_v28, %s1480_s7  ;;  %479 = vrot.lane.b32.xlu0 %v1606_v23, %s1481_s8 }
  0xb2   : > { %v1748_v50 = vpop.permute.xlu1 %796  ;;  %v1750_v51 = vpop.permute.xlu0 %803 }
  0xb4   : > { %481 = vrot.lane.b32.xlu1 %v1612_v24, %s1481_s8  ;;  %483 = vrot.lane.b32.xlu0 %v1615_v25, %s1481_s8 }
  0xb6   : > { %v1754_v52 = vpop.permute.xlu1 %805  ;;  %v1756_v53 = vpop.permute.xlu0 %807 }
  0xb8   : > { %485 = vrot.lane.b32.xlu1 %v1620_v26, %s1481_s8  ;;  %477 = vrot.lane.b32.xlu0 %v1692_v31, %s1481_s8 }
  0xba   : > { %v1760_v54 = vpop.permute.xlu1 %809  ;;  %v1762_v55 = vpop.permute.xlu0 %811 }
  0xbc   : > { %494 = vrot.lane.b32.xlu1 %v1561_v12, %s1482_s9  ;;  %496 = vrot.lane.b32.xlu0 %v1573_v16, %s1482_s9 }
  0xbe   : > { %v1766_v56 = vpop.permute.xlu1 %818  ;;  %v1768_v57 = vpop.permute.xlu0 %820 }
  0xc0   : > { %498 = vrot.lane.b32.xlu1 %v1563_v13, %s1482_s9  ;;  %500 = vrot.lane.b32.xlu0 %v1592_v20, %s1482_s9 }
  0xc2   : > { %v1772_v58 = vpop.permute.xlu1 %822  ;;  %v1774_v59 = vpop.permute.xlu0 %824 }
  0xc4   : > { %492 = vrot.lane.b32.xlu1 %v1664_v28, %s1482_s9  ;;  %507 = vrot.lane.b32.xlu0 %v1675_v29, %s1473_s24 }
  0xc6   : > { %v1779_v60 = vpop.permute.xlu1 %826  ;;  %v1781_v61 = vpop.permute.xlu0 %833 }
  0xc8   : > { %522 = vrot.lane.b32.xlu1 %v1664_v28, %s1475_s26  ;;  %539 = vrot.lane.b32.xlu0 %v1606_v23, %s1483_s10  ;;  %s1404_s26 = sshll.u32 %s2386_s23, 2 }
  0xc9   : > { %s330_s29 = scalar_lea.vmem %s2365_s6, %s1404_s26 }
  0xca   : > { %v1786_v62 = vpop.permute.xlu1 %835  ;;  %v1788_v63 = vpop.permute.xlu0 %837 }
  0xcc   : > { %541 = vrot.lane.b32.xlu1 %v1612_v24, %s1483_s10  ;;  %543 = vrot.lane.b32.xlu0 %v1615_v25, %s1483_s10 }
  0xce   : > { %v1792_v0 = vpop.permute.xlu1 %839  ;;  %v1794_v1 = vpop.permute.xlu0 %841 }
  0xd0   : > { %545 = vrot.lane.b32.xlu1 %v1620_v26, %s1483_s10  ;;  %537 = vrot.lane.b32.xlu0 %v1692_v31, %s1483_s10 }
  0xd2   : > { %v1798_v2 = vpop.permute.xlu1 %509  ;;  %v1800_v3 = vpop.permute.xlu0 %511 }
  0xd4   : > { %554 = vrot.lane.b32.xlu1 %v1561_v12, %s1484_s11  ;;  %556 = vrot.lane.b32.xlu0 %v1573_v16, %s1484_s11 }
  0xd6   : > { %v1804_v5 = vpop.permute.xlu1 %513  ;;  %v1806_v6 = vpop.permute.xlu0 %515 }
  0xd8   : > { %558 = vrot.lane.b32.xlu1 %v1563_v13, %s1484_s11  ;;  %560 = vrot.lane.b32.xlu0 %v1592_v20, %s1484_s11 }
  0xda   : > { %v1810_v8 = vpop.permute.xlu1 %848  ;;  %v1812_v9 = vpop.permute.xlu0 %850 }
  0xdc   : > { %567 = vrot.lane.b32.xlu1 %v1569_v15, %s1485_s12  ;;  %569 = vrot.lane.b32.xlu0 %v1588_v19, %s1485_s12 }
  0xde   : > { %v1816_v10 = vpop.permute.xlu1 %852  ;;  %v1818_v11 = vpop.permute.xlu0 %854 }
  0xe0   : > { %571 = vrot.lane.b32.xlu1 %v1579_v17, %s1485_s12  ;;  %573 = vrot.lane.b32.xlu0 %v1603_v22, %s1485_s12 }
  0xe2   : > { %v1822_v29 = vpop.permute.xlu1 %856  ;;  %v1824_v31 = vpop.permute.xlu0 %863 }
  0xe3   : > { %2374 = vst [vmem:[#allocation5_spill] sm:$0xff] %v1822_v29 }
  0xe4   : > { %552 = vrot.lane.b32.xlu1 %v1664_v28, %s1484_s11  ;;  %580 = vrot.lane.b32.xlu0 %v1566_v14, %s1486_s13  ;;  %v389_v28 = vsel %vm387_vm0, %v1696_v33, %v1708_v37 }
  0xe5   : > { %v1855_v29 = vsel %vm611_vm2, %v1561_v12, %v389_v28  ;;  %v769_v12 = vsel %vm768_vm3, %v1694_v32, %v1702_v35  ;;  %v757_v32 = vsel %vm387_vm0, %v1718_v40, %v1687_v30 }
  0xe6   : > { %v1828_v15 = vpop.permute.xlu1 %524  ;;  %v1830_v19 = vpop.permute.xlu0 %526 }
  0xe8   : > { %582 = vrot.lane.b32.xlu1 %v1573_v16, %s1486_s13  ;;  %584 = vrot.lane.b32.xlu0 %v1585_v18, %s1486_s13 }
  0xea   : > { %v1834_v17 = vpop.permute.xlu1 %528  ;;  %v1836_v22 = vpop.permute.xlu0 %530 }
  0xec   : > { %586 = vrot.lane.b32.xlu1 %v1592_v20, %s1486_s13  ;;  %588 = vrot.lane.b32.xlu0 %v1598_v21, %s1486_s13 }
  0xee   : > { %v1840_v4 = vpop.permute.xlu1 %866  ;;  %v1842_v14 = vpop.permute.xlu0 %377 }
  0xef   : > { %2375 = vst [vmem:[#allocation6_spill] sm:$0xff] %v1842_v14  ;;  %v390_v14 = vsel %vm387_vm0, %v1708_v37, %v1700_v34 }
  0xf0   : > { %596 = vrot.lane.b32.xlu1 %v1606_v23, %s1487_s14  ;;  %598 = vrot.lane.b32.xlu0 %v1612_v24, %s1487_s14  ;;  %v391_v23 = vsel %vm387_vm0, %v1700_v34, %v1718_v40  ;;  %v784_v24 = vsel %vm783_vm1, %v1720_v41, %v1724_v42  ;;  %v875_v34 = vsel %vm627_vm4, %v1855_v29, %v769_v12 }
  0xf1   : > { %v1879_v33 = vsel %vm611_vm2, %v1573_v16, %v390_v14  ;;  %v785_v41 = vsel %vm783_vm1, %v1724_v42, %v1726_v43  ;;  %v786_v12 = vsel %vm783_vm1, %v1726_v43, %v1730_v44  ;;  %v771_v16 = vsel %vm768_vm3, %v1706_v36, %v1714_v39 }
  0xf2   : > { %v1849_v18 = vpop.permute.xlu1 %399  ;;  %v1851_v21 = vpop.permute.xlu0 %401 }
  0xf4   : > { %600 = vrot.lane.b32.xlu1 %v1615_v25, %s1487_s14  ;;  %602 = vrot.lane.b32.xlu0 %v1620_v26, %s1487_s14  ;;  %v885_v25 = vsel %vm638_vm5, %v875_v34, %v784_v24  ;;  %v1884_v26 = vsel %vm611_vm2, %v1563_v13, %v391_v23  ;;  %v770_v13 = vsel %vm768_vm3, %v1702_v35, %v1706_v36 }
  0xf5   : > { %v877_v42 = vsel %vm627_vm4, %v1879_v33, %v770_v13  ;;  %v870_v35 = vsel %vm611_vm2, %v1592_v20, %v757_v32  ;;  %v873_v36 = vsel %vm611_vm2, %v1549_v7, %v1687_v30  ;;  %v787_v34 = vsel %vm783_vm1, %v1730_v44, %v1732_v45 }
  0xf6   : > { %v1871_v28 = vpop.permute.xlu1 %403  ;;  %v1873_v37 = vpop.permute.xlu0 %405  ;;  %v887_v43 = vsel %vm638_vm5, %v877_v42, %v785_v41  ;;  %v772_v32 = vsel %vm768_vm3, %v1714_v39, %v1712_v38  ;;  %v814_v7 = vsel %vm813_vm6, %v1750_v51, %v1754_v52  ;;  %v815_v30 = vsel %vm813_vm6, %v1754_v52, %v1756_v53 }
  0xf7   : > { %v881_v41 = vsel %vm627_vm4, %v870_v35, %v772_v32  ;;  %v829_v39 = vsel %vm828_vm8, %v1766_v56, %v1768_v57  ;;  %v830_v51 = vsel %vm828_vm8, %v1768_v57, %v1772_v58  ;;  %v801_v56 = vsel %vm798_vm7, %v1742_v48, %v1744_v49 }
  0xf8   : > { %604 = vrot.lane.b32.xlu1 %v1623_v27, %s1487_s14  ;;  %963 = vrot.lane.b32.xlu0 %v885_v25, %s1488_s15  ;;  %v879_v27 = vsel %vm627_vm4, %v1884_v26, %v771_v16  ;;  %v883_v25 = vsel %vm627_vm4, %v873_v36, %v1712_v38  ;;  %v799_v38 = vsel %vm798_vm7, %v1736_v46, %v1738_v47  ;;  %vm442_vm1 = vcmask 957440  }
  0xf9   : > { %v889_v24 = vsel %vm638_vm5, %v879_v27, %v786_v12  ;;  %v893_v13 = vsel %vm638_vm5, %v883_v25, %v1732_v45  ;;  %v891_v52 = vsel %vm638_vm5, %v881_v41, %v787_v34  ;;  %v800_v16 = vsel %vm798_vm7, %v1738_v47, %v1742_v48 }
  0xfa   : > { %v1903_v14 = vpop.permute.xlu1 %397  ;;  %v1907_v23 = vpop.permute.xlu0 %419  ;;  %v844_v45 = vsel %vm843_vm9, %v1781_v61, %v1786_v62  ;;  %v845_v46 = vsel %vm843_vm9, %v1786_v62, %v1788_v63  ;;  %v896_v57 = vsel %vm611_vm2, %v799_v38, %v814_v7  ;;  %v899_v47 = vsel %vm611_vm2, %v800_v16, %v815_v30 }
  0xfb   : > { %v816_v61 = vsel %vm813_vm6, %v1756_v53, %v1760_v54  ;;  %v817_v62 = vsel %vm813_vm6, %v1760_v54, %v1762_v55  ;;  %v910_v27 = vsel %vm627_vm4, %v896_v57, %v829_v39  ;;  %v912_v48 = vsel %vm627_vm4, %v899_v47, %v830_v51 }
  0xfc   : > { %965 = vrot.lane.b32.xlu1 %v887_v43, %s1488_s15  ;;  %967 = vrot.lane.b32.xlu0 %v889_v24, %s1488_s15  ;;  %v831_v24 = vsel %vm828_vm8, %v1772_v58, %v1774_v59  ;;  %v832_v53 = vsel %vm828_vm8, %v1774_v59, %v1779_v60  ;;  %v920_v35 = vsel %vm638_vm5, %v910_v27, %v844_v45  ;;  %vm487_vm3 = vcmask 875520  }
  0xfd   : > { %v922_v54 = vsel %vm638_vm5, %v912_v48, %v845_v46  ;;  %v802_v36 = vsel %vm798_vm7, %v1744_v49, %v1748_v50  ;;  %v846_v34 = vsel %vm843_vm9, %v1788_v63, %v1792_v0  ;;  %v847_v58 = vsel %vm843_vm9, %v1792_v0, %v1794_v1 }
  0xfe   : > { %v1934_v44 = vpop.permute.xlu1 %421  ;;  %v1937_v12 = vpop.permute.xlu0 %423  ;;  %v902_v59 = vsel %vm611_vm2, %v801_v56, %v816_v61  ;;  %v905_v25 = vsel %vm611_vm2, %v802_v36, %v817_v62  ;;  %v859_v0 = vsel %vm858_vm10, %v1810_v8, %v1812_v9  ;;  %v908_v38 = vsel %vm611_vm2, %v1748_v50, %v1762_v55  ;;  %v2376_v62 = vld [vmem:[#allocation5_spill] sm:$0xff] }
  0xff   : > { %v914_v32 = vsel %vm627_vm4, %v902_v59, %v831_v24  ;;  %v916_v7 = vsel %vm627_vm4, %v905_v25, %v832_v53  ;;  %v2024_v8 = vsel %vm517_vm12, %v1798_v2, %v1800_v3  ;;  %v918_v39 = vsel %vm627_vm4, %v908_v38, %v1779_v60 }
 0x100   : > { %969 = vrot.lane.b32.xlu1 %v891_v52, %s1488_s15  ;;  %971 = vrot.lane.b32.xlu0 %v893_v13, %s1488_s15  ;;  %v924_v30 = vsel %vm638_vm5, %v914_v32, %v846_v34  ;;  %v926_v41 = vsel %vm638_vm5, %v916_v7, %v847_v58  ;;  %v2014_v13 = vsel %vm532_vm11, %v1828_v15, %v1830_v19  ;;  %vm502_vm6 = vcmask 867328  }
 0x101   : > { %v930_v16 = vsel %vm611_vm2, %v859_v0, %v2024_v8  ;;  %v860_v45 = vsel %vm858_vm10, %v1812_v9, %v1816_v10  ;;  %v861_v50 = vsel %vm858_vm10, %v1816_v10, %v1818_v11  ;;  %v928_v55 = vsel %vm638_vm5, %v918_v39, %v1794_v1 }
 0x102   : > { %v1973_v42 = vpop.permute.xlu1 %425  ;;  %v1976_v43 = vpop.permute.xlu0 %417  ;;  %v941_v60 = vsel %vm627_vm4, %v930_v16, %v2014_v13  ;;  %v2047_v46 = vsel %vm532_vm11, %v1830_v19, %v1834_v17  ;;  %v2054_v9 = vsel %vm532_vm11, %v1834_v17, %v1836_v22  ;;  %v2059_v1 = vsel %vm517_vm12, %v1800_v3, %v1804_v5 }
 0x103   : > { %v2064_v10 = vsel %vm517_vm12, %v1804_v5, %v1806_v6  ;;  %v932_v56 = vsel %vm611_vm2, %v860_v45, %v2059_v1  ;;  %v865_v47 = vsel %vm517_vm12, %v1806_v6, %v1824_v31  ;;  %v868_v61 = vsel %vm532_vm11, %v1836_v22, %v1840_v4 }
 0x104   : > { %973 = vrot.lane.b32.xlu1 %v920_v35, %s1488_s15  ;;  %975 = vrot.lane.b32.xlu0 %v922_v54, %s1488_s15  ;;  %v934_v17 = vsel %vm611_vm2, %v861_v50, %v2064_v10  ;;  %v942_v3 = vsel %vm627_vm4, %v932_v56, %v2047_v46  ;;  %v862_v27 = vsel %vm858_vm10, %v1818_v11, %v2376_v62  ;;  %vm547_vm7 = vcmask 211968  }
 0x105   : > { %v943_v5 = vsel %vm627_vm4, %v934_v17, %v2054_v9  ;;  %v940_v48 = vsel %vm611_vm2, %v2376_v62, %v1824_v31  ;;  %v937_v53 = vsel %vm611_vm2, %v862_v27, %v865_v47  ;;  %v409_v54 = vsel %vm407_vm13, %v1849_v18, %v1851_v21 }
 0x106   : > { %v2000_v49 = vpop.permute.xlu1 %434  ;;  %v2003_v63 = vpop.permute.xlu0 %436  ;;  %v410_v36 = vsel %vm407_vm13, %v1851_v21, %v1871_v28  ;;  %v945_v11 = vsel %vm627_vm4, %v937_v53, %v868_v61  ;;  %v947_v34 = vsel %vm627_vm4, %v940_v48, %v1840_v4  ;;  %v429_v31 = vsel %vm427_vm14, %v1907_v23, %v1934_v44 }
 0x107   : > { %v430_v58 = vsel %vm427_vm14, %v1934_v44, %v1937_v12  ;;  %v631_v21 = vsel %vm627_vm4, %v1855_v29, %v409_v54  ;;  %v633_v4 = vsel %vm627_vm4, %v1879_v33, %v410_v36  ;;  %v411_v32 = vsel %vm407_vm13, %v1871_v28, %v1873_v37  ;;  %v2377_v29 = vld [vmem:[#allocation4_spill] sm:$0xff] }
 0x108   : > { %977 = vrot.lane.b32.xlu1 %v924_v30, %s1488_s15  ;;  %979 = vrot.lane.b32.xlu0 %v926_v41, %s1488_s15  ;;  %v642_v7 = vsel %vm638_vm5, %v631_v21, %v429_v31  ;;  %v644_v44 = vsel %vm638_vm5, %v633_v4, %v430_v58  ;;  %v431_v0 = vsel %vm427_vm14, %v1937_v12, %v1973_v42  ;;  %v2378_v30 = vld [vmem:[#allocation6_spill] sm:$0xff]  ;;  %vm575_vm8 = vcmask 138240  }
 0x109   : > { %v626_v33 = vsel %vm611_vm2, %v1592_v20, %v1718_v40  ;;  %v388_v28 = vsel %vm387_vm0, %v2378_v30, %v2377_v29  ;;  %v635_v12 = vsel %vm627_vm4, %v1884_v26, %v411_v32  ;;  %v408_v16 = vsel %vm407_vm13, %v1903_v14, %v1849_v18 }
 0x10a   : > { %v2028_v51 = vpop.permute.xlu1 %438  ;;  %v2030_v52 = vpop.permute.xlu0 %440  ;;  %v637_v41 = vsel %vm627_vm4, %v626_v33, %v1873_v37  ;;  %v646_v45 = vsel %vm638_vm5, %v635_v12, %v431_v0  ;;  %v428_v40 = vsel %vm427_vm14, %v1976_v43, %v1907_v23  ;;  %v2379_v37 = vld [vmem:[#allocation3_spill] sm:$0xff]  ;;  %vm472_vm0 = vcmask 883712  }
 0x10b   : > { %v648_v20 = vsel %vm638_vm5, %v637_v41, %v1973_v42  ;;  %v614_v26 = vsel %vm611_vm2, %v2379_v37, %v388_v28  ;;  %v444_v47 = vsel %vm442_vm1, %v2000_v49, %v2003_v63  ;;  %vm590_vm9 = vcmask 130048  }
 0x10c   : > { %981 = vrot.lane.b32.xlu1 %v928_v55, %s1488_s15  ;;  %983 = vrot.lane.b32.xlu0 %v941_v60, %s1488_s15  ;;  %v629_v50 = vsel %vm627_vm4, %v614_v26, %v408_v16  ;;  %vm562_vm10 = vcmask 146432  }
 0x10d   : > { %v640_v14 = vsel %vm638_vm5, %v629_v50, %v428_v40 }
 0x10e   : > { %v2066_v19 = vpop.permute.xlu1 %449  ;;  %v452_v57 = vpop.permute.xlu0 %451 }
 0x10f   : > { %v459_v43 = vsel %vm457_vm15, %v2066_v19, %v452_v57 }
 0x110   : > { %985 = vrot.lane.b32.xlu1 %v942_v3, %s1488_s15  ;;  %987 = vrot.lane.b32.xlu0 %v943_v5, %s1488_s15  ;;  %v445_v3 = vsel %vm442_vm1, %v2003_v63, %v2028_v51  ;;  %v654_v5 = vsel %vm611_vm2, %v444_v47, %v459_v43 }
 0x112   : > { %v454_v24 = vpop.permute.xlu1 %453  ;;  %v2091_v35 = vpop.permute.xlu0 %455 }
 0x113   : > { %v460_v60 = vsel %vm457_vm15, %v452_v57, %v454_v24  ;;  %v461_v57 = vsel %vm457_vm15, %v454_v24, %v2091_v35  ;;  %v446_v24 = vsel %vm442_vm1, %v2028_v51, %v2030_v52  ;;  %v663_v58 = vsel %vm611_vm2, %v2030_v52, %v2091_v35 }
 0x114   : > { %989 = vrot.lane.b32.xlu1 %v945_v11, %s1488_s15  ;;  %991 = vrot.lane.b32.xlu0 %v947_v34, %s1488_s15  ;;  %v657_v61 = vsel %vm611_vm2, %v445_v3, %v460_v60  ;;  %v660_v31 = vsel %vm611_vm2, %v446_v24, %v461_v57 }
 0x116   : > { %v2110_v59 = vpop.permute.xlu1 %432  ;;  %v448_v25 = vpop.permute.xlu0 %447 }
 0x117   : > { %v458_v32 = vsel %vm457_vm15, %v448_v25, %v2066_v19  ;;  %v443_v52 = vsel %vm442_vm1, %v2110_v59, %v2000_v49 }
 0x118   : > { %1035 = vrot.lane.b32.xlu1 %v642_v7, %s1489_s16  ;;  %1037 = vrot.lane.b32.xlu0 %v644_v44, %s1489_s16  ;;  %v651_v19 = vsel %vm611_vm2, %v443_v52, %v458_v32 }
 0x11a   : > { %v465_v38 = vpop.permute.xlu1 %464  ;;  %v467_v39 = vpop.permute.xlu0 %466 }
 0x11b   : > { %v474_v56 = vsel %vm472_vm0, %v465_v38, %v467_v39 }
 0x11c   : > { %1039 = vrot.lane.b32.xlu1 %v646_v45, %s1489_s16  ;;  %1041 = vrot.lane.b32.xlu0 %v648_v20, %s1489_s16  ;;  %v667_v48 = vsel %vm627_vm4, %v654_v5, %v474_v56 }
 0x11e   : > { %v469_v55 = vpop.permute.xlu1 %468  ;;  %v471_v18 = vpop.permute.xlu0 %470 }
 0x11f   : > { %v475_v17 = vsel %vm472_vm0, %v467_v39, %v469_v55  ;;  %v476_v11 = vsel %vm472_vm0, %v469_v55, %v471_v18  ;;  %v673_v44 = vsel %vm627_vm4, %v663_v58, %v471_v18 }
 0x120   : > { %1033 = vrot.lane.b32.xlu1 %v640_v14, %s1489_s16  ;;  %v669_v53 = vsel %vm627_vm4, %v657_v61, %v475_v17  ;;  %v671_v7 = vsel %vm627_vm4, %v660_v31, %v476_v11 }
 0x122   : > { %v463_v42 = vpop.permute.xlu1 %462  ;;  %v480_v23 = vpop.permute.xlu0 %479 }
 0x123   : > { %v473_v0 = vsel %vm472_vm0, %v463_v42, %v465_v38 }
 0x124   : > { %v665_v28 = vsel %vm627_vm4, %v651_v19, %v473_v0 }
 0x126   : > { %v482_v62 = vpop.permute.xlu1 %481  ;;  %v484_v27 = vpop.permute.xlu0 %483 }
 0x127   : > { %v489_v54 = vsel %vm487_vm3, %v480_v23, %v482_v62  ;;  %v490_v36 = vsel %vm487_vm3, %v482_v62, %v484_v27 }
 0x128   : > { %v677_v63 = vsel %vm638_vm5, %v667_v48, %v489_v54  ;;  %v679_v34 = vsel %vm638_vm5, %v669_v53, %v490_v36 }
 0x129   : > { %1045 = vrot.lane.b32.xlu0 %v677_v63, %s1489_s16  ;;  %1047 = vrot.lane.b32.xlu1 %v679_v34, %s1489_s16 }
 0x12a   : > { %v486_v21 = vpop.permute.xlu1 %485  ;;  %v478_v4 = vpop.permute.xlu0 %477 }
 0x12b   : > { %v491_v51 = vsel %vm487_vm3, %v484_v27, %v486_v21  ;;  %v683_v33 = vsel %vm638_vm5, %v673_v44, %v486_v21  ;;  %v488_v35 = vsel %vm487_vm3, %v478_v4, %v480_v23 }
 0x12c   : > { %v681_v29 = vsel %vm638_vm5, %v671_v7, %v491_v51  ;;  %v675_v41 = vsel %vm638_vm5, %v665_v28, %v488_v35 }
 0x12d   : > { %1049 = vrot.lane.b32.xlu0 %v681_v29, %s1489_s16  ;;  %1051 = vrot.lane.b32.xlu1 %v683_v33, %s1489_s16 }
 0x12e   : > { %v495_v25 = vpop.permute.xlu1 %494  ;;  %v497_v30 = vpop.permute.xlu0 %496 }
 0x12f   : > { %v504_v39 = vsel %vm502_vm6, %v495_v25, %v497_v30 }
 0x130   : > { %v689_v40 = vsel %vm611_vm2, %v504_v39, %v2024_v8 }
 0x131   : > { %1043 = vrot.lane.b32.xlu0 %v675_v41, %s1489_s16  ;;  %v702_v42 = vsel %vm627_vm4, %v689_v40, %v2014_v13 }
 0x132   : > { %v499_v38 = vpop.permute.xlu1 %498  ;;  %v501_v12 = vpop.permute.xlu0 %500 }
 0x133   : > { %v505_v16 = vsel %vm502_vm6, %v497_v30, %v499_v38  ;;  %v506_v26 = vsel %vm502_vm6, %v499_v38, %v501_v12 }
 0x134   : > { %v692_v37 = vsel %vm611_vm2, %v505_v16, %v2059_v1  ;;  %v695_v8 = vsel %vm611_vm2, %v506_v26, %v2064_v10  ;;  %v698_v1 = vsel %vm611_vm2, %v501_v12, %v1806_v6 }
 0x135   : > { %v704_v23 = vsel %vm627_vm4, %v692_v37, %v2047_v46  ;;  %v708_v6 = vsel %vm627_vm4, %v698_v1, %v1836_v22  ;;  %v706_v47 = vsel %vm627_vm4, %v695_v8, %v2054_v9 }
 0x136   : > { %v493_v49 = vpop.permute.xlu1 %492  ;;  %v508_v59 = vpop.permute.xlu0 %507 }
 0x137   : > { %v518_v56 = vsel %vm517_vm12, %v508_v59, %v1798_v2  ;;  %v503_v46 = vsel %vm502_vm6, %v493_v49, %v495_v25  ;;  %vm993_vm12 = vcmask 56320  }
 0x138   : > { %v686_v3 = vsel %vm611_vm2, %v503_v46, %v518_v56 }
 0x13a   : > { %v523_v45 = vpop.permute.xlu1 %522  ;;  %v540_v20 = vpop.permute.xlu0 %539 }
 0x13b   : > { %v533_v2 = vsel %vm532_vm11, %v523_v45, %v1828_v15  ;;  %vm606_vm11 = vcmask 64512  }
 0x13c   : > { %v700_v27 = vsel %vm627_vm4, %v686_v3, %v533_v2 }
 0x13e   : > { %v542_v50 = vpop.permute.xlu1 %541  ;;  %v544_v55 = vpop.permute.xlu0 %543 }
 0x13f   : > { %v549_v18 = vsel %vm547_vm7, %v540_v20, %v542_v50  ;;  %v550_v14 = vsel %vm547_vm7, %v542_v50, %v544_v55 }
 0x140   : > { %v712_v43 = vsel %vm638_vm5, %v702_v42, %v549_v18  ;;  %v714_v60 = vsel %vm638_vm5, %v704_v23, %v550_v14 }
 0x141   : > { %1055 = vrot.lane.b32.xlu1 %v712_v43, %s1489_s16  ;;  %1057 = vrot.lane.b32.xlu0 %v714_v60, %s1489_s16 }
 0x142   : > { %v546_v13 = vpop.permute.xlu1 %545  ;;  %v538_v17 = vpop.permute.xlu0 %537 }
 0x143   : > { %v551_v10 = vsel %vm547_vm7, %v544_v55, %v546_v13  ;;  %v718_v5 = vsel %vm638_vm5, %v708_v6, %v546_v13  ;;  %v548_v57 = vsel %vm547_vm7, %v538_v17, %v540_v20 }
 0x144   : > { %v716_v61 = vsel %vm638_vm5, %v706_v47, %v551_v10  ;;  %v710_v9 = vsel %vm638_vm5, %v700_v27, %v548_v57 }
 0x145   : > { %1059 = vrot.lane.b32.xlu1 %v716_v61, %s1489_s16  ;;  %1061 = vrot.lane.b32.xlu0 %v718_v5, %s1489_s16 }
 0x146   : > { %v555_v62 = vpop.permute.xlu1 %554  ;;  %v557_v22 = vpop.permute.xlu0 %556 }
 0x147   : > { %v564_v7 = vsel %vm562_vm10, %v555_v62, %v557_v22 }
 0x149   : > { %1053 = vrot.lane.b32.xlu1 %v710_v9, %s1489_s16 }
 0x14a   : > { %v559_v48 = vpop.permute.xlu1 %558  ;;  %v561_v15 = vpop.permute.xlu0 %560 }
 0x14b   : > { %v565_v28 = vsel %vm562_vm10, %v557_v22, %v559_v48  ;;  %v566_v41 = vsel %vm562_vm10, %v559_v48, %v561_v15 }
 0x14e   : > { %v568_v53 = vpop.permute.xlu1 %567  ;;  %v570_v54 = vpop.permute.xlu0 %569 }
 0x14f   : > { %v576_v4 = vsel %vm575_vm8, %v568_v53, %v570_v54 }
 0x150   : > { %v724_v44 = vsel %vm611_vm2, %v564_v7, %v576_v4  ;;  %v1007_v4 = vld [vmem:[%s2360_s1] sm:$0xff] }
 0x152   : > { %v572_v36 = vpop.permute.xlu1 %571  ;;  %v574_v11 = vpop.permute.xlu0 %573 }
 0x153   : > { %v577_v33 = vsel %vm575_vm8, %v570_v54, %v572_v36  ;;  %v578_v29 = vsel %vm575_vm8, %v572_v36, %v574_v11  ;;  %v733_v18 = vsel %vm611_vm2, %v561_v15, %v574_v11  ;;  %v1490_v36 = vmov 0  }
 0x154   : > { %v727_v12 = vsel %vm611_vm2, %v565_v28, %v577_v33  ;;  %v730_v49 = vsel %vm611_vm2, %v566_v41, %v578_v29  ;;  %1204 = vmatprep.mubr.bf16.mxu0 %v1490_v36  ;;  %1245 = vmatprep.mubr.bf16.mxu1 %v1490_v36 }
 0x155   : > { %1454 = vset.pattern.permute.xlu0 %v1490_v36 }
 0x156   : > { %v553_v63 = vpop.permute.xlu1 %552  ;;  %v581_v34 = vpop.permute.xlu0 %580 }
 0x157   : > { %v563_v38 = vsel %vm562_vm10, %v553_v63, %v555_v62 }
 0x158   : > { %v721_v37 = vsel %vm611_vm2, %v563_v38, %v568_v53  ;;  %vm1103_vm2 = vcmask 908288  }
 0x159   : > { %v735_v23 = vsel %vm627_vm4, %v721_v37, %v581_v34 }
 0x15a   : > { %v583_v24 = vpop.permute.xlu1 %582  ;;  %v585_v31 = vpop.permute.xlu0 %584 }
 0x15b   : > { %v591_v32 = vsel %vm590_vm9, %v581_v34, %v583_v24  ;;  %v592_v19 = vsel %vm590_vm9, %v583_v24, %v585_v31 }
 0x15c   : > { %v737_v52 = vsel %vm627_vm4, %v724_v44, %v591_v32  ;;  %v739_v16 = vsel %vm627_vm4, %v727_v12, %v592_v19 }
 0x15e   : > { %v587_v58 = vpop.permute.xlu1 %586  ;;  %v589_v21 = vpop.permute.xlu0 %588 }
 0x15f   : > { %v593_v25 = vsel %vm590_vm9, %v585_v31, %v587_v58  ;;  %v594_v26 = vsel %vm590_vm9, %v587_v58, %v589_v21 }
 0x160   : > { %v741_v45 = vsel %vm627_vm4, %v730_v49, %v593_v25  ;;  %v743_v8 = vsel %vm627_vm4, %v733_v18, %v594_v26 }
 0x162   : > { %v597_v51 = vpop.permute.xlu1 %596  ;;  %v599_v0 = vpop.permute.xlu0 %598 }
 0x163   : > { %v607_v35 = vsel %vm606_vm11, %v597_v51, %v599_v0  ;;  %v745_v43 = vsel %vm638_vm5, %v735_v23, %v597_v51 }
 0x164   : > { %v747_v30 = vsel %vm638_vm5, %v737_v52, %v607_v35 }
 0x165   : > { %1065 = vrot.lane.b32.xlu0 %v747_v30, %s1489_s16 }
 0x166   : > { %v601_v59 = vpop.permute.xlu1 %600  ;;  %v603_v39 = vpop.permute.xlu0 %602 }
 0x167   : > { %v608_v20 = vsel %vm606_vm11, %v599_v0, %v601_v59  ;;  %v609_v40 = vsel %vm606_vm11, %v601_v59, %v603_v39 }
 0x168   : > { %v749_v50 = vsel %vm638_vm5, %v739_v16, %v608_v20  ;;  %v751_v55 = vsel %vm638_vm5, %v741_v45, %v609_v40 }
 0x169   : > { %1067 = vrot.lane.b32.xlu1 %v749_v50, %s1489_s16  ;;  %1069 = vrot.lane.b32.xlu0 %v751_v55, %s1489_s16 }
 0x16a   : > { %v605_v14 = vpop.permute.xlu1 %604  ;;  %v964_v42 = vpop.permute.xlu0 %963 }
 0x16b   : > { %v610_v1 = vsel %vm606_vm11, %v603_v39, %v605_v14 }
 0x16c   : > { %v753_v60 = vsel %vm638_vm5, %v743_v8, %v610_v1 }
 0x16d   : > { %1071 = vrot.lane.b32.xlu1 %v753_v60, %s1489_s16  ;;  %1063 = vrot.lane.b32.xlu0 %v745_v43, %s1489_s16 }
 0x16e   : > { %v966_v56 = vpop.permute.xlu1 %965  ;;  %v968_v13 = vpop.permute.xlu0 %967 }
 0x16f   : > { %v994_v17 = vsel %vm993_vm12, %v964_v42, %v966_v56  ;;  %v995_v46 = vsel %vm993_vm12, %v966_v56, %v968_v13 }
 0x171   : > { %1075 = vrot.lane.b32.xlu1 %v994_v17, %s1489_s16  ;;  %1077 = vrot.lane.b32.xlu0 %v995_v46, %s1489_s16 }
 0x172   : > { %v970_v10 = vpop.permute.xlu1 %969  ;;  %v972_v6 = vpop.permute.xlu0 %971 }
 0x173   : > { %v996_v47 = vsel %vm993_vm12, %v968_v13, %v970_v10  ;;  %v997_v3 = vsel %vm993_vm12, %v970_v10, %v972_v6 }
 0x175   : > { %1079 = vrot.lane.b32.xlu1 %v996_v47, %s1489_s16  ;;  %1081 = vrot.lane.b32.xlu0 %v997_v3, %s1489_s16 }
 0x176   : > { %v974_v2 = vpop.permute.xlu1 %973  ;;  %v976_v5 = vpop.permute.xlu0 %975 }
 0x177   : > { %v998_v61 = vsel %vm993_vm12, %v974_v2, %v976_v5 }
 0x179   : > { %1073 = vrot.lane.b32.xlu1 %v964_v42, %s1489_s16  ;;  %1085 = vrot.lane.b32.xlu0 %v998_v61, %s1489_s16 }
 0x17a   : > { %v978_v57 = vpop.permute.xlu1 %977  ;;  %v980_v62 = vpop.permute.xlu0 %979 }
 0x17b   : > { %v999_v22 = vsel %vm993_vm12, %v976_v5, %v978_v57  ;;  %v1000_v27 = vsel %vm993_vm12, %v978_v57, %v980_v62 }
 0x17d   : > { %1087 = vrot.lane.b32.xlu1 %v999_v22, %s1489_s16  ;;  %1089 = vrot.lane.b32.xlu0 %v1000_v27, %s1489_s16 }
 0x17e   : > { %v982_v9 = vpop.permute.xlu1 %981  ;;  %v984_v48 = vpop.permute.xlu0 %983 }
 0x17f   : > { %v1001_v15 = vsel %vm993_vm12, %v980_v62, %v982_v9 }
 0x181   : > { %1091 = vrot.lane.b32.xlu1 %v1001_v15, %s1489_s16  ;;  %1083 = vrot.lane.b32.xlu0 %v974_v2, %s1489_s16 }
 0x182   : > { %v986_v53 = vpop.permute.xlu1 %985  ;;  %v988_v54 = vpop.permute.xlu0 %987 }
 0x183   : > { %v1002_v11 = vsel %vm993_vm12, %v984_v48, %v986_v53  ;;  %v1003_v24 = vsel %vm993_vm12, %v986_v53, %v988_v54 }
 0x185   : > { %1093 = vrot.lane.b32.xlu1 %v984_v48, %s1489_s16  ;;  %1095 = vrot.lane.b32.xlu0 %v1002_v11, %s1489_s16 }
 0x186   : > { %v990_v63 = vpop.permute.xlu1 %989  ;;  %v992_v34 = vpop.permute.xlu0 %991 }
 0x187   : > { %v1004_v31 = vsel %vm993_vm12, %v988_v54, %v990_v63  ;;  %v1005_v7 = vsel %vm993_vm12, %v990_v63, %v992_v34 }
 0x189   : > { %1097 = vrot.lane.b32.xlu1 %v1003_v24, %s1489_s16  ;;  %1099 = vrot.lane.b32.xlu0 %v1004_v31, %s1489_s16 }
 0x18a   : > { %v1036_v58 = vpop.permute.xlu1 %1035  ;;  %v1038_v21 = vpop.permute.xlu0 %1037 }
 0x18b   : > { %v1105_v32 = vsel %vm1103_vm2, %v1036_v58, %v1038_v21 }
 0x18c   : > { %1172 = vmatprep.subr.bf16.mxu0 %v1105_v32 }
 0x18d   : > { %1101 = vrot.lane.b32.xlu1 %v1005_v7, %s1489_s16  ;;  %1010 = vperm.xlu0 %1454, %v1007_v4   ;;  %v2380_v7 = vld [vmem:[#allocation2_spill] sm:$0xff] }
 0x18e   : > { %v1040_v44 = vpop.permute.xlu1 %1039  ;;  %v1042_v51 = vpop.permute.xlu0 %1041 }
 0x18f   : > { %v1107_v0 = vsel %vm1103_vm2, %v1040_v44, %v1042_v51  ;;  %v1106_v33 = vsel %vm1103_vm2, %v1038_v21, %v1040_v44  ;;  %v1262_v44 = vsub.s32 0, %v2380_v7  ;;  %v1266_v51 = vsub.s32 1, %v2380_v7 }
 0x190   : > { %1213 = vmatprep.subr.bf16.mxu1 %v1107_v0 }
 0x191   : > { %1214 = vmatpush1.bf16.msra.mxu1 %v1106_v33  ;;  %v1258_v33 = vld [vmem:[%s302_s25] sm:$0xf] }
 0x192   : > { %v1034_v29 = vpop.permute.xlu1 %1033 }
 0x193   : > { %v1104_v52 = vsel %vm1103_vm2, %v1034_v29, %v1036_v58  ;;  %v1006_v58 = vld [vmem:[%s2359_s0] sm:$0xf] }
 0x194   : > { %1173 = vmatpush1.bf16.msra.mxu0 %v1104_v52 }
 0x19b   : > { %v1046_v35 = vpop.permute.xlu0 %1045  ;;  %v1048_v19 = vpop.permute.xlu1 %1047 }
 0x19c   : > { %v1109_v25 = vsel %vm1103_vm2, %v1046_v35, %v1048_v19 }
 0x19d   : > { %1174 = vmatprep.subr.bf16.mxu0 %v1109_v25  ;;  %v1263_v25 = vrot.slane %v1258_v33, %v1262_v44 }
 0x19f   : > { %v1050_v30 = vpop.permute.xlu0 %1049  ;;  %v1052_v28 = vpop.permute.xlu1 %1051 }
 0x1a0   : > { %v1111_v41 = vsel %vm1103_vm2, %v1050_v30, %v1052_v28  ;;  %v1110_v38 = vsel %vm1103_vm2, %v1048_v19, %v1050_v30 }
 0x1a1   : > { %1215 = vmatprep.subr.bf16.mxu1 %v1111_v41  ;;  %v1267_v41 = vrot.slane %v1258_v33, %v1266_v51 }
 0x1a2   : > { %1216 = vmatpush1.bf16.msra.mxu1 %v1110_v38  ;;  %v1274_v38 = vsub.s32 3, %v2380_v7 }
 0x1a3   : > { %v1044_v12 = vpop.permute.xlu0 %1043 }
 0x1a4   : > { %v1108_v49 = vsel %vm1103_vm2, %v1044_v12, %v1046_v35  ;;  %v1270_v35 = vsub.s32 2, %v2380_v7 }
 0x1a5   : > { %1175 = vmatpush1.bf16.msra.mxu0 %v1108_v49 }
 0x1b3   : > { %v1056_v59 = vpop.permute.xlu1 %1055  ;;  %v1058_v39 = vpop.permute.xlu0 %1057 }
 0x1b4   : > { %v1113_v16 = vsel %vm1103_vm2, %v1056_v59, %v1058_v39 }
 0x1b5   : > { %1176 = vmatprep.subr.bf16.mxu0 %v1113_v16 }
 0x1b7   : > { %v1060_v45 = vpop.permute.xlu1 %1059  ;;  %v1062_v20 = vpop.permute.xlu0 %1061 }
 0x1b8   : > { %v1115_v40 = vsel %vm1103_vm2, %v1060_v45, %v1062_v20  ;;  %v1114_v37 = vsel %vm1103_vm2, %v1058_v39, %v1060_v45  ;;  %v1271_v45 = vrot.slane %v1258_v33, %v1270_v35 }
 0x1b9   : > { %1217 = vmatprep.subr.bf16.mxu1 %v1115_v40 }
 0x1ba   : > { %1218 = vmatpush1.bf16.msra.mxu1 %v1114_v37 }
 0x1bb   : > { %v1054_v26 = vpop.permute.xlu1 %1053 }
 0x1bc   : > { %v1112_v50 = vsel %vm1103_vm2, %v1054_v26, %v1056_v59 }
 0x1bd   : > { %1177 = vmatpush1.bf16.msra.mxu0 %v1112_v50  ;;  %v1275_v50 = vrot.slane %v1258_v33, %v1274_v38 }
 0x1d7   : > { %v1066_v55 = vpop.permute.xlu0 %1065 }
 0x1db   : > { %v1068_v18 = vpop.permute.xlu1 %1067  ;;  %v1070_v14 = vpop.permute.xlu0 %1069 }
 0x1dc   : > { %v1117_v42 = vsel %vm1103_vm2, %v1066_v55, %v1068_v18  ;;  %v1118_v60 = vsel %vm1103_vm2, %v1068_v18, %v1070_v14 }
 0x1dd   : > { %1178 = vmatprep.subr.bf16.mxu0 %v1117_v42 }
 0x1df   : > { %v1072_v23 = vpop.permute.xlu1 %1071  ;;  %v1064_v8 = vpop.permute.xlu0 %1063 }
 0x1e0   : > { %v1119_v1 = vsel %vm1103_vm2, %v1070_v14, %v1072_v23  ;;  %v1116_v43 = vsel %vm1103_vm2, %v1064_v8, %v1066_v55 }
 0x1e1   : > { %1219 = vmatprep.subr.bf16.mxu1 %v1119_v1  ;;  %1179 = vmatpush1.bf16.msra.mxu0 %v1116_v43 }
 0x1e2   : > { %1220 = vmatpush1.bf16.msra.mxu1 %v1118_v60 }
 0x1e3   : > { %v1076_v56 = vpop.permute.xlu1 %1075  ;;  %v1078_v13 = vpop.permute.xlu0 %1077 }
 0x1e4   : > { %v1121_v17 = vsel %vm1103_vm2, %v1076_v56, %v1078_v13 }
 0x1e5   : > { %1180 = vmatprep.subr.bf16.mxu0 %v1121_v17 }
 0x1e7   : > { %v1080_v46 = vpop.permute.xlu1 %1079  ;;  %v1082_v10 = vpop.permute.xlu0 %1081 }
 0x1e8   : > { %v1123_v6 = vsel %vm1103_vm2, %v1080_v46, %v1082_v10  ;;  %v1122_v47 = vsel %vm1103_vm2, %v1078_v13, %v1080_v46 }
 0x1e9   : > { %1221 = vmatprep.subr.bf16.mxu1 %v1123_v6 }
 0x1ea   : > { %1222 = vmatpush1.bf16.msra.mxu1 %v1122_v47 }
 0x1eb   : > { %v1074_v3 = vpop.permute.xlu1 %1073  ;;  %v1086_v2 = vpop.permute.xlu0 %1085 }
 0x1ec   : > { %v1120_v5 = vsel %vm1103_vm2, %v1074_v3, %v1076_v56 }
 0x1ed   : > { %1181 = vmatpush1.bf16.msra.mxu0 %v1120_v5 }
 0x1ef   : > { %v1088_v61 = vpop.permute.xlu1 %1087  ;;  %v1090_v57 = vpop.permute.xlu0 %1089 }
 0x1f0   : > { %v1125_v62 = vsel %vm1103_vm2, %v1086_v2, %v1088_v61  ;;  %v1126_v15 = vsel %vm1103_vm2, %v1088_v61, %v1090_v57 }
 0x1f1   : > { %1182 = vmatprep.subr.bf16.mxu0 %v1125_v62 }
 0x1f3   : > { %v1092_v22 = vpop.permute.xlu1 %1091  ;;  %v1084_v27 = vpop.permute.xlu0 %1083 }
 0x1f4   : > { %v1127_v9 = vsel %vm1103_vm2, %v1090_v57, %v1092_v22  ;;  %v1124_v48 = vsel %vm1103_vm2, %v1084_v27, %v1086_v2 }
 0x1f5   : > { %1223 = vmatprep.subr.bf16.mxu1 %v1127_v9  ;;  %1183 = vmatpush1.bf16.msra.mxu0 %v1124_v48 }
 0x1f6   : > { %1224 = vmatpush1.bf16.msra.mxu1 %v1126_v15 }
 0x1f7   : > { %v1094_v53 = vpop.permute.xlu1 %1093  ;;  %v1096_v54 = vpop.permute.xlu0 %1095 }
 0x1f8   : > { %v1128_v36 = vsel %vm1103_vm2, %v1094_v53, %v1096_v54 }
 0x1f9   : > { %v1161_v24 = vsel %vm638_vm5, %v1128_v36, 0 }
 0x1fb   : > { %v1098_v11 = vpop.permute.xlu1 %1097  ;;  %v1100_v63 = vpop.permute.xlu0 %1099 }
 0x1fc   : > { %v1129_v34 = vsel %vm1103_vm2, %v1096_v54, %v1098_v11  ;;  %v1130_v31 = vsel %vm1103_vm2, %v1098_v11, %v1100_v63 }
 0x1fd   : > { %1406 = vmatprep.subr.msk.bf16.mxu0 %vm638_vm5, %v1129_v34  ;;  %v1167_v32 = vsel %vm638_vm5, %v1130_v31, 0 }
 0x1fe   : > { %1185 = vmatpush1.bf16.msra.mxu0 %v1161_v24 }
 0x1ff   : > { %v1102_v21 = vpop.permute.xlu1 %1101 }
 0x200   : > { %v1131_v4 = vsel %vm1103_vm2, %v1100_v63, %v1102_v21 }
 0x201   : > { %1408 = vmatprep.subr.msk.bf16.mxu1 %vm638_vm5, %v1131_v4  ;;  %1407 = vmatmul.mubr.msk.bf16.vlgmr.msra.gmra.mrb[0].mxu0 %vm472_vm0, %v1006_v58 }
 0x202   : > { %1226 = vmatpush1.bf16.msra.mxu1 %v1167_v32 }
 0x205   : > { %1409 = vmatmul.mubr.msk.bf16.vlgmr.msra.gmra.mrb[0].mxu1 %vm472_vm0, %v1006_v58 }
 0x20c   : > { %v1011_v0 = vpop.permute.xlu0 %1010 }
 0x2d4   : > { %v1206_v29 = vpop.f32.mrb[0].mxu0 }
 0x2d5   : > { %v1208_v52 = vpop.f32.mrb[1].mxu0  ;;  %v1207_v19 = vadd.f32 %v1206_v29, %v1011_v0 }
 0x2d6   : > { %v1210_v30 = vpop.f32.mrb[2].mxu0  ;;  %v1209_v28 = vadd.f32 %v1208_v52, %v1011_v0 }
 0x2d7   : > { %v1211_v12 = vpop.f32.mrb[3].mxu0  ;;  %v1254_v49 = vmax.f32 %v1207_v19, 0.0 }
 0x2d8   : > { %v1247_v59 = vpop.f32.mrb[0].mxu1  ;;  %v1255_v39 = vmax.f32 %v1209_v28, 0.0 }
 0x2d9   : > { %v1248_v16 = vadd.f32 %v1247_v59, %v1011_v0  ;;  %v1280_v20 = vmul.f32 %v1263_v25, %v1254_v49  ;;  %v1249_v40 = vpop.f32.mrb[1].mxu1 }
 0x2da   : > { %v1281_v37 = vmul.f32 %v1267_v41, %v1255_v39  ;;  %v1250_v26 = vadd.f32 %v1249_v40, %v1011_v0  ;;  %v1251_v55 = vpop.f32.mrb[2].mxu1 }
 0x2db   : > { %v1256_v18 = vmax.f32 %v1248_v16, 0.0  ;;  %v1252_v14 = vpop.f32.mrb[3].mxu1 }
 0x2dc   : > { %v1418_v42 = vpack.c.bf16 %v1281_v37, %v1280_v20  ;;  %v1257_v23 = vmax.f32 %v1250_v26, 0.0 }
 0x2dd   : > { %v1282_v8 = vmul.f32 %v1271_v45, %v1256_v18 }
 0x2de   : > { %v1283_v1 = vmul.f32 %v1275_v50, %v1257_v23  ;;  %1300 = vst [vmem:[%s330_s29] sm:$0xff] %v1418_v42 }
 0x2e0   : > { %v1419_v43 = vpack.c.bf16 %v1283_v1, %v1282_v8 }
 0x2e2   : > { %1301 = vst [vmem:[%s330_s29 + $0x8] sm:$0xff] %v1419_v43 }
 0x2e3 PF: > { %s16_s21 = sadd.s32 1, %s1463_s21  }
 0x2e4   : > { %p13_p7 = scmp.ge.s32.totalorder %s16_s21, 6  }
 0x2e6   :  { %15 = sbr.rel (!%p13_p7) target bundleno = 1 (0x1), region = 83 }

// kernel: autoencoder_forward.7
= control target key start
LH: loop header
LB: loop body
LE: loop exit
PB: predicated region body
PF: predicated region fallthrough
CT: control target
= control target key end

     0   :  { %s1762_s21 = smov 0   ;;  %s1764_s22 = smov 0   ;;  %s2779_s0 = inlined_call_operand.vmem [shape: bf16[16,216], index: 0, kind: input, shape index: {}]   ;;  %s2780_s1 = inlined_call_operand.vmem [shape: f32[16,1], index: 1, kind: input, shape index: {}]   ;;  %s2781_s2 = inlined_call_operand.vmem [shape: f32[1,2048], index: 2, kind: input, shape index: {}]   ;;  %s2782_s3 = inlined_call_operand.vmem [shape: bf16[8,3072], index: 3, kind: input, shape index: {}, may-alias: {3,4,5}]   ;;  %s2783_s4 = inlined_call_operand.vmem [shape: bf16[8,3072], index: 4, kind: input, shape index: {}, may-alias: {3,4,5}]   ;;  %s2784_s5 = inlined_call_operand.vmem [shape: bf16[8,3072], index: 5, kind: input, shape index: {}, may-alias: {3,4,5}]   ;;  %s2785_s6 = inlined_call_operand.vmem [shape: bf16[16,2048], index: 6, kind: output, shape index: {}]  }
   0x1   :  { %s1766_s23 = smov 0  }
   0x2 LB: > { %s1775_s24 = sadd.s32 4294967295, %s1700_s23   ;;  %s1777_s25 = sadd.s32 1, %s1700_s23   ;;  %s1700_s23 = sphi %s1766_s23, %s2804_s23   ;;  %s1696_s22 = sphi %s1764_s22, %s2803_s22   ;;  %s1692_s21 = sphi %s1762_s21, %s2802_s21  }
   0x3   : > { %s170_s26 = ssub.s32 %s1700_s23, %s1777_s25  ;;  %s173_s27 = sadd.s32 1, %s1696_s22 }
   0x4   : > { %p171_p0 = scmp.eq.s32.totalorder %s170_s26, 0  ;;  %p183_p1 = scmp.ne.s32.totalorder %s1696_s22, %s1692_s21 }
   0x5   : > { %p184_p2 = scmp.eq.s32.totalorder %s1775_s24, 3  ;;  %p1579_p3 = scmp.ge.s32.totalorder %s1700_s23, 1 }
   0x6   : > { %s1785_s28 = scalar_select %p171_p0, %s1696_s22, %s173_s27  }
   0x7   : > { %p1787_p4 = por %p184_p2, %p183_p1  ;;  %p253_p5 = scmp.lt.s32.totalorder %s1700_s23, 5 }
   0x9   : > { %p254_p6 = pnand %p1579_p3, %p253_p5 }
   0xb   : > { %257 = sbr.rel (%p254_p6) target bundleno = 800 (0x320), region = 44 }
  0x12   : > { %s1792_s30 = sshll.u32 %s1775_s24, 2  ;;  %s1702_s18 = smov 127   ;;  %vm362_vm0 = vcmask 1039360   ;;  %vm575_vm1 = vcmask 1043456   ;;  %vm724_vm2 = vcmask 392192   ;;  %vm709_vm3 = vcmask 400384  }
  0x13   : > { %p304_p7 = scmp.lt.s32.totalorder %s1792_s30, 23  ;;  %s1610_s7 = sadd.s32 4, %s1792_s30  ;;  %vm754_vm4 = vcmask 318464   ;;  %vm739_vm5 = vcmask 384000   ;;  %vm784_vm6 = vcmask 302080   ;;  %vm769_vm7 = vcmask 310272  }
  0x14   : > { %p311_p8 = scmp.lt.s32.totalorder %s1610_s7, 23  ;;  %s1612_s8 = sadd.s32 8, %s1792_s30  ;;  %vm799_vm8 = vcmask 236544   ;;  %vm482_vm9 = vcmask 228352   ;;  %vm497_vm10 = vcmask 220160   ;;  %vm392_vm11 = vcmask 965632  }
  0x15   : > { %s305_s9 = scalar_select %p304_p7, %s1792_s30, 23  ;;  %vm377_vm12 = vcmask 1031168   ;;  %vm422_vm13 = vcmask 949248   ;;  %vm407_vm14 = vcmask 957440   ;;  %vm452_vm15 = vcmask 875520  }
  0x16   : > { %s2806_s7 = smov (!%p311_p8, %s1610_s7), 23  ;;  %p319_p9 = scmp.lt.s32.totalorder %s1612_s8, 23 }
  0x17   : > { %s1583_s10 = sshll.u32 %s305_s9, 2  ;;  %s1585_s14 = sshll.u32 %s2806_s7, 2 }
  0x18   : > { %s307_s13 = scalar_lea.vmem %s2782_s3, %s1583_s10  ;;  %s314_s17 = scalar_lea.vmem %s2783_s4, %s1585_s14 }
  0x19   : > { %v1804_v0 = vld [vmem:[%s307_s13 + $0xc] ss:$0 sps:$4 sm:$0xff]   ;;  %v328_v1 = vld [vmem:[%s314_s17] sm:$0xff]  ;;  %s2808_s8 = smov (!%p319_p9, %s1612_s8), 23  ;;  %s1703_s27 = smov 49  }
  0x1a   : > { %v329_v2 = vld [vmem:[%s314_s17 + $0x8] sm:$0xff]  ;;  %v1806_v3 = vcombine.low %v328_v1, %v328_v1  ;;  %v1808_v4 = vcombine.high %v328_v1, %v328_v1  ;;  %352 = vrot.lane.b32.xlu0 %v1804_v0, %s1702_s18  ;;  %s1587_s19 = sshll.u32 %s2808_s8, 2  ;;  %s1704_s7 = smov 48  }
  0x1b   : > { %v1811_v5 = vcombine.low %v329_v2, %v329_v2  ;;  %s322_s26 = scalar_lea.vmem %s2784_s5, %s1587_s19  ;;  %v1817_v6 = vcombine.high %v329_v2, %v329_v2  ;;  %s1705_s8 = smov 47  }
  0x1c   : > { %356 = vrot.lane.b32.xlu1 %v1808_v4, %s1702_s18  ;;  %v1821_v7 = vld [vmem:[%s322_s26] ss:$0 sps:$4 sm:$0xff]   ;;  %s1706_s9 = smov 39   ;;  %s1707_s10 = smov 38  }
  0x1d   : > { %s1708_s11 = smov 37   ;;  %s1709_s12 = smov 28  }
  0x1e   : > { %354 = vrot.lane.b32.xlu0 %v1806_v3, %s1702_s18  ;;  %s1710_s13 = smov 29   ;;  %s1711_s14 = smov 27  }
  0x1f   : > { %s1712_s15 = smov 126   ;;  %s1713_s16 = smov 118  }
  0x20   : > { %358 = vrot.lane.b32.xlu1 %v1811_v5, %s1702_s18  ;;  %s1714_s17 = smov 117   ;;  %s1716_s19 = smov 108  }
  0x21   : > { %s1717_s20 = smov 107   ;;  %s1718_s23 = smov 106  }
  0x22   : > { %360 = vrot.lane.b32.xlu0 %v1817_v6, %s1702_s18  ;;  %s1719_s26 = smov 26   ;;  %p299_p10 = scmp.lt.s32.totalorder %s1792_s30, 15 }
  0x24   : > { %696 = vrot.lane.b32.xlu1 %v1821_v7, %s1702_s18  ;;  %s1715_s18 = smov 116   ;;  %s2810_s30 = smov (!%p299_p10, %s1792_s30), 15 }
  0x26   : > { %699 = vrot.lane.b32.xlu0 %v1806_v3, %s1703_s27 }
  0x28   : > { %701 = vrot.lane.b32.xlu1 %v1808_v4, %s1703_s27 }
  0x2a   : > { %703 = vrot.lane.b32.xlu0 %v1811_v5, %s1703_s27 }
  0x2c   : > { %705 = vrot.lane.b32.xlu1 %v1817_v6, %s1703_s27 }
  0x2e   : > { %707 = vrot.lane.b32.xlu0 %v1821_v7, %s1703_s27  ;;  %s1720_s27 = smov 18  }
  0x30   : > { %714 = vrot.lane.b32.xlu1 %v1806_v3, %s1704_s7 }
  0x32   : > { %716 = vrot.lane.b32.xlu0 %v1808_v4, %s1704_s7 }
  0x34   : > { %718 = vrot.lane.b32.xlu1 %v1811_v5, %s1704_s7 }
  0x36   : > { %720 = vrot.lane.b32.xlu0 %v1817_v6, %s1704_s7 }
  0x38   : > { %722 = vrot.lane.b32.xlu1 %v1821_v7, %s1704_s7  ;;  %s1721_s7 = smov 17  }
  0x3a   : > { %729 = vrot.lane.b32.xlu0 %v1806_v3, %s1705_s8 }
  0x3c   : > { %731 = vrot.lane.b32.xlu1 %v1808_v4, %s1705_s8 }
  0x3e   : > { %733 = vrot.lane.b32.xlu0 %v1811_v5, %s1705_s8 }
  0x40   : > { %735 = vrot.lane.b32.xlu1 %v1817_v6, %s1705_s8 }
  0x42   : > { %737 = vrot.lane.b32.xlu0 %v1821_v7, %s1705_s8  ;;  %s1722_s8 = smov 16  }
  0x44   : > { %744 = vrot.lane.b32.xlu1 %v1806_v3, %s1706_s9 }
  0x46   : > { %746 = vrot.lane.b32.xlu0 %v1808_v4, %s1706_s9 }
  0x48   : > { %748 = vrot.lane.b32.xlu1 %v1811_v5, %s1706_s9 }
  0x4a   : > { %750 = vrot.lane.b32.xlu0 %v1817_v6, %s1706_s9 }
  0x4c   : > { %752 = vrot.lane.b32.xlu1 %v1821_v7, %s1706_s9  ;;  %s1723_s9 = smov 8  }
  0x4e   : > { %759 = vrot.lane.b32.xlu0 %v1806_v3, %s1707_s10 }
  0x50   : > { %761 = vrot.lane.b32.xlu1 %v1808_v4, %s1707_s10 }
  0x52   : > { %763 = vrot.lane.b32.xlu0 %v1811_v5, %s1707_s10 }
  0x54   : > { %765 = vrot.lane.b32.xlu1 %v1817_v6, %s1707_s10 }
  0x56   : > { %767 = vrot.lane.b32.xlu0 %v1821_v7, %s1707_s10  ;;  %s1724_s10 = smov 7  }
  0x58   : > { %774 = vrot.lane.b32.xlu1 %v1806_v3, %s1708_s11 }
  0x5a   : > { %776 = vrot.lane.b32.xlu0 %v1808_v4, %s1708_s11 }
  0x5c   : > { %778 = vrot.lane.b32.xlu1 %v1811_v5, %s1708_s11 }
  0x5e   : > { %780 = vrot.lane.b32.xlu0 %v1817_v6, %s1708_s11 }
  0x60   : > { %782 = vrot.lane.b32.xlu1 %v1821_v7, %s1708_s11  ;;  %s1725_s11 = smov 111  }
  0x62   : > { %474 = vrot.lane.b32.xlu0 %v1806_v3, %s1709_s12 }
  0x64   : > { %476 = vrot.lane.b32.xlu1 %v1808_v4, %s1709_s12 }
  0x66   : > { %478 = vrot.lane.b32.xlu0 %v1811_v5, %s1709_s12 }
  0x68   : > { %480 = vrot.lane.b32.xlu1 %v1817_v6, %s1709_s12 }
  0x6a   : > { %789 = vrot.lane.b32.xlu0 %v1806_v3, %s1710_s13 }
  0x6c   : > { %791 = vrot.lane.b32.xlu1 %v1808_v4, %s1710_s13 }
  0x6e   : > { %793 = vrot.lane.b32.xlu0 %v1811_v5, %s1710_s13 }
  0x70   : > { %795 = vrot.lane.b32.xlu1 %v1817_v6, %s1710_s13 }
  0x72   : > { %797 = vrot.lane.b32.xlu0 %v1821_v7, %s1710_s13 }
  0x74   : > { %804 = vrot.lane.b32.xlu1 %v1821_v7, %s1709_s12 }
  0x76   : > { %489 = vrot.lane.b32.xlu0 %v1806_v3, %s1711_s14 }
  0x78   : > { %491 = vrot.lane.b32.xlu1 %v1808_v4, %s1711_s14 }
  0x7a   : > { %493 = vrot.lane.b32.xlu0 %v1811_v5, %s1711_s14 }
  0x7c   : > { %495 = vrot.lane.b32.xlu1 %v1817_v6, %s1711_s14 }
  0x7e   : > { %807 = vrot.lane.b32.xlu0 %v1821_v7, %s1711_s14 }
  0x80   : > { %369 = vrot.lane.b32.xlu1 %v1806_v3, %s1712_s15 }
  0x82   : > { %371 = vrot.lane.b32.xlu0 %v1808_v4, %s1712_s15 }
  0x84   : > { %373 = vrot.lane.b32.xlu1 %v1811_v5, %s1712_s15 }
  0x86   : > { %375 = vrot.lane.b32.xlu0 %v1817_v6, %s1712_s15 }
  0x88   : > { %384 = vrot.lane.b32.xlu1 %v1806_v3, %s1713_s16 }
  0x8a   : > { %386 = vrot.lane.b32.xlu0 %v1808_v4, %s1713_s16 }
  0x8c   : > { %388 = vrot.lane.b32.xlu1 %v1811_v5, %s1713_s16  ;;  %v1887_v8 = vpop.permute.xlu0 %352 }
  0x8e   : > { %v1889_v9 = vpop.permute.xlu1 %356  ;;  %390 = vrot.lane.b32.xlu0 %v1817_v6, %s1713_s16 }
  0x90   : > { %367 = vrot.lane.b32.xlu1 %v1804_v0, %s1712_s15  ;;  %v1893_v10 = vpop.permute.xlu0 %354 }
  0x91   : > { %v364_v61 = vsel %vm362_vm0, %v1893_v10, %v1889_v9 }
  0x92   : > { %v1895_v11 = vpop.permute.xlu1 %358  ;;  %382 = vrot.lane.b32.xlu0 %v1804_v0, %s1713_s16  ;;  %v2061_v2 = vsel %vm575_vm1, %v1806_v3, %v364_v61 }
  0x93   : > { %v365_v63 = vsel %vm362_vm0, %v1889_v9, %v1895_v11 }
  0x94   : > { %399 = vrot.lane.b32.xlu1 %v1806_v3, %s1714_s17  ;;  %v1899_v12 = vpop.permute.xlu0 %360  ;;  %v2072_v9 = vsel %vm575_vm1, %v1808_v4, %v365_v63 }
  0x96   : > { %v1901_v13 = vpop.permute.xlu1 %696  ;;  %401 = vrot.lane.b32.xlu0 %v1808_v4, %s1714_s17 }
  0x98   : > { %403 = vrot.lane.b32.xlu1 %v1811_v5, %s1714_s17  ;;  %v1905_v14 = vpop.permute.xlu0 %699 }
  0x9a   : > { %v1907_v15 = vpop.permute.xlu1 %701  ;;  %405 = vrot.lane.b32.xlu0 %v1817_v6, %s1714_s17 }
  0x9c   : > { %414 = vrot.lane.b32.xlu1 %v1806_v3, %s1715_s18  ;;  %v1911_v16 = vpop.permute.xlu0 %703 }
  0x9e   : > { %v1913_v17 = vpop.permute.xlu1 %705  ;;  %416 = vrot.lane.b32.xlu0 %v1808_v4, %s1715_s18 }
  0xa0   : > { %418 = vrot.lane.b32.xlu1 %v1811_v5, %s1715_s18  ;;  %v1917_v18 = vpop.permute.xlu0 %707 }
  0xa2   : > { %v1919_v19 = vpop.permute.xlu1 %714  ;;  %420 = vrot.lane.b32.xlu0 %v1817_v6, %s1715_s18 }
  0xa4   : > { %397 = vrot.lane.b32.xlu1 %v1804_v0, %s1714_s17  ;;  %v1923_v20 = vpop.permute.xlu0 %716 }
  0xa6   : > { %v1925_v21 = vpop.permute.xlu1 %718  ;;  %412 = vrot.lane.b32.xlu0 %v1804_v0, %s1715_s18 }
  0xa8   : > { %429 = vrot.lane.b32.xlu1 %v1806_v3, %s1716_s19  ;;  %v1929_v22 = vpop.permute.xlu0 %720 }
  0xaa   : > { %v1931_v23 = vpop.permute.xlu1 %722  ;;  %431 = vrot.lane.b32.xlu0 %v1808_v4, %s1716_s19 }
  0xac   : > { %433 = vrot.lane.b32.xlu1 %v1811_v5, %s1716_s19  ;;  %v1935_v24 = vpop.permute.xlu0 %729 }
  0xae   : > { %v1937_v25 = vpop.permute.xlu1 %731  ;;  %435 = vrot.lane.b32.xlu0 %v1817_v6, %s1716_s19 }
  0xb0   : > { %444 = vrot.lane.b32.xlu1 %v1806_v3, %s1717_s20  ;;  %v1941_v26 = vpop.permute.xlu0 %733 }
  0xb2   : > { %v1943_v27 = vpop.permute.xlu1 %735  ;;  %446 = vrot.lane.b32.xlu0 %v1808_v4, %s1717_s20 }
  0xb4   : > { %448 = vrot.lane.b32.xlu1 %v1811_v5, %s1717_s20  ;;  %v1947_v28 = vpop.permute.xlu0 %737 }
  0xb6   : > { %v1949_v29 = vpop.permute.xlu1 %744  ;;  %450 = vrot.lane.b32.xlu0 %v1817_v6, %s1717_s20 }
  0xb8   : > { %427 = vrot.lane.b32.xlu1 %v1804_v0, %s1716_s19  ;;  %v1953_v30 = vpop.permute.xlu0 %746 }
  0xba   : > { %v1955_v31 = vpop.permute.xlu1 %748  ;;  %442 = vrot.lane.b32.xlu0 %v1804_v0, %s1717_s20 }
  0xbc   : > { %459 = vrot.lane.b32.xlu1 %v1806_v3, %s1718_s23  ;;  %v1959_v32 = vpop.permute.xlu0 %750 }
  0xbe   : > { %v1961_v33 = vpop.permute.xlu1 %752  ;;  %461 = vrot.lane.b32.xlu0 %v1808_v4, %s1718_s23 }
  0xc0   : > { %463 = vrot.lane.b32.xlu1 %v1811_v5, %s1718_s23  ;;  %v1965_v34 = vpop.permute.xlu0 %759 }
  0xc2   : > { %v1967_v35 = vpop.permute.xlu1 %761  ;;  %465 = vrot.lane.b32.xlu0 %v1817_v6, %s1718_s23 }
  0xc4   : > { %457 = vrot.lane.b32.xlu1 %v1804_v0, %s1718_s23  ;;  %v1971_v36 = vpop.permute.xlu0 %763 }
  0xc6   : > { %v1973_v37 = vpop.permute.xlu1 %765  ;;  %472 = vrot.lane.b32.xlu0 %v1804_v0, %s1709_s12 }
  0xc8   : > { %504 = vrot.lane.b32.xlu1 %v1806_v3, %s1719_s26  ;;  %v1978_v38 = vpop.permute.xlu0 %767 }
  0xca   : > { %v1980_v39 = vpop.permute.xlu1 %774  ;;  %506 = vrot.lane.b32.xlu0 %v1808_v4, %s1719_s26 }
  0xcc   : > { %508 = vrot.lane.b32.xlu1 %v1811_v5, %s1719_s26  ;;  %v1984_v40 = vpop.permute.xlu0 %776 }
  0xce   : > { %v1986_v41 = vpop.permute.xlu1 %778  ;;  %510 = vrot.lane.b32.xlu0 %v1817_v6, %s1719_s26 }
  0xd0   : > { %487 = vrot.lane.b32.xlu1 %v1804_v0, %s1711_s14  ;;  %v1991_v42 = vpop.permute.xlu0 %780 }
  0xd2   : > { %v1993_v43 = vpop.permute.xlu1 %782  ;;  %502 = vrot.lane.b32.xlu0 %v1804_v0, %s1719_s26  ;;  %s301_s26 = scalar_lea.vmem %s2781_s2, %s2810_s30  ;;  %s1617_s30 = sshll.u32 (%p1787_p4), %s1775_s24, 4 }
  0xd4   : > { %519 = vrot.lane.b32.xlu1 %v1806_v3, %s1720_s27  ;;  %v1997_v44 = vpop.permute.xlu0 %474 }
  0xd6   : > { %v1999_v45 = vpop.permute.xlu1 %476  ;;  %521 = vrot.lane.b32.xlu0 %v1808_v4, %s1720_s27 }
  0xd8   : > { %523 = vrot.lane.b32.xlu1 %v1811_v5, %s1720_s27  ;;  %v2003_v46 = vpop.permute.xlu0 %478 }
  0xda   : > { %v2005_v47 = vpop.permute.xlu1 %480  ;;  %525 = vrot.lane.b32.xlu0 %v1817_v6, %s1720_s27 }
  0xdc   : > { %532 = vrot.lane.b32.xlu1 %v1806_v3, %s1721_s7  ;;  %v2009_v48 = vpop.permute.xlu0 %789 }
  0xde   : > { %v2011_v49 = vpop.permute.xlu1 %791  ;;  %534 = vrot.lane.b32.xlu0 %v1808_v4, %s1721_s7 }
  0xe0   : > { %536 = vrot.lane.b32.xlu1 %v1811_v5, %s1721_s7  ;;  %v2015_v50 = vpop.permute.xlu0 %793 }
  0xe2   : > { %v2017_v51 = vpop.permute.xlu1 %795  ;;  %538 = vrot.lane.b32.xlu0 %v1817_v6, %s1721_s7 }
  0xe4   : > { %517 = vrot.lane.b32.xlu1 %v1804_v0, %s1720_s27  ;;  %v2021_v52 = vpop.permute.xlu0 %797  ;;  %s295_s27 = sand.u32 1, %s1692_s21  }
  0xe5   : > { %s1580_s7 = sshll.u32 %s295_s27, 5 }
  0xe6   : > { %v2023_v53 = vpop.permute.xlu1 %804  ;;  %544 = vrot.lane.b32.xlu0 %v1806_v3, %s1722_s8  ;;  %s297_s21 = scalar_lea.vmem [#allocation2], %s1580_s7 }
  0xe8   : > { %546 = vrot.lane.b32.xlu1 %v1808_v4, %s1722_s8  ;;  %v2027_v54 = vpop.permute.xlu0 %489 }
  0xea   : > { %v2029_v55 = vpop.permute.xlu1 %491  ;;  %548 = vrot.lane.b32.xlu0 %v1811_v5, %s1722_s8 }
  0xec   : > { %550 = vrot.lane.b32.xlu1 %v1817_v6, %s1722_s8  ;;  %v2033_v56 = vpop.permute.xlu0 %493 }
  0xee   : > { %v2035_v57 = vpop.permute.xlu1 %495  ;;  %552 = vrot.lane.b32.xlu0 %v1821_v7, %s1722_s8 }
  0xf0   : > { %560 = vrot.lane.b32.xlu1 %v1806_v3, %s1723_s9  ;;  %v2039_v58 = vpop.permute.xlu0 %807 }
  0xf2   : > { %v2041_v59 = vpop.permute.xlu1 %369  ;;  %562 = vrot.lane.b32.xlu0 %v1808_v4, %s1723_s9 }
  0xf3   : > { %2792 = vst [vmem:[#allocation3_spill] sm:$0xff] %v2041_v59 }
  0xf4   : > { %564 = vrot.lane.b32.xlu1 %v1811_v5, %s1723_s9  ;;  %v2045_v60 = vpop.permute.xlu0 %371 }
  0xf5   : > { %2793 = vst [vmem:[#allocation4_spill] sm:$0xff] %v2045_v60 }
  0xf6   : > { %v2050_v62 = vpop.permute.xlu1 %373  ;;  %566 = vrot.lane.b32.xlu0 %v1817_v6, %s1723_s9 }
  0xf7   : > { %2794 = vst [vmem:[#allocation5_spill] sm:$0xff] %v2050_v62  ;;  %v366_v62 = vsel %vm362_vm0, %v1895_v11, %v1899_v12  ;;  %v725_v11 = vsel %vm724_vm2, %v1919_v19, %v1923_v20 }
  0xf8   : > { %568 = vrot.lane.b32.xlu1 %v1821_v7, %s1723_s9  ;;  %v2057_v1 = vpop.permute.xlu0 %375  ;;  %v2083_v61 = vsel %vm575_vm1, %v1811_v5, %v366_v62  ;;  %v814_v5 = vsel %vm575_vm1, %v1821_v7, %v1901_v13  ;;  %v710_v62 = vsel %vm709_vm3, %v1905_v14, %v1907_v15  ;;  %v727_v7 = vsel %vm724_vm2, %v1925_v21, %v1929_v22 }
  0xf9   : > { %2795 = vst [vmem:[#allocation6_spill] sm:$0xff] %v2057_v1  ;;  %v698_v1 = vsel %vm362_vm0, %v1899_v12, %v1901_v13  ;;  %v817_v19 = vsel %vm575_vm1, %v710_v62, %v725_v11  ;;  %v728_v11 = vsel %vm724_vm2, %v1929_v22, %v1931_v23  ;;  %v755_v22 = vsel %vm754_vm4, %v1949_v29, %v1953_v30 }
  0xfa   : > { %v2063_v59 = vpop.permute.xlu1 %384  ;;  %897 = vrot.lane.b32.xlu0 %v2061_v2, %s1724_s10  ;;  %v811_v4 = vsel %vm575_vm1, %v1817_v6, %v698_v1  ;;  %v726_v1 = vsel %vm724_vm2, %v1923_v20, %v1925_v21  ;;  %v712_v20 = vsel %vm709_vm3, %v1911_v16, %v1913_v17  ;;  %v713_v21 = vsel %vm709_vm3, %v1913_v17, %v1917_v18 }
  0xfb   : > { %v740_v17 = vsel %vm739_vm5, %v1935_v24, %v1937_v25  ;;  %vm467_vm2 = vcmask 867328  }
  0xfc   : > { %899 = vrot.lane.b32.xlu1 %v2072_v9, %s1724_s10  ;;  %v2079_v3 = vpop.permute.xlu0 %386  ;;  %v832_v29 = vsel %vm575_vm1, %v740_v17, %v755_v22  ;;  %v786_v22 = vsel %vm784_vm6, %v1984_v40, %v1986_v41  ;;  %v771_v17 = vsel %vm769_vm7, %v1967_v35, %v1971_v36 }
  0xfe   : > { %v2085_v60 = vpop.permute.xlu1 %388  ;;  %901 = vrot.lane.b32.xlu0 %v2083_v61, %s1724_s10 }
  0xff   : > { %2796 = vst [vmem:[#allocation7_spill] sm:$0xff] %v2085_v60 }
 0x100   : > { %903 = vrot.lane.b32.xlu1 %v811_v4, %s1724_s10  ;;  %v2095_v63 = vpop.permute.xlu0 %390  ;;  %v711_v4 = vsel %vm709_vm3, %v1907_v15, %v1911_v16  ;;  %v823_v15 = vsel %vm575_vm1, %v712_v20, %v727_v7  ;;  %v826_v16 = vsel %vm575_vm1, %v713_v21, %v728_v11  ;;  %v758_v20 = vsel %vm754_vm4, %v1959_v32, %v1961_v33 }
 0x101   : > { %v820_v14 = vsel %vm575_vm1, %v711_v4, %v726_v1  ;;  %v756_v4 = vsel %vm754_vm4, %v1953_v30, %v1955_v31  ;;  %v742_v30 = vsel %vm739_vm5, %v1941_v26, %v1943_v27  ;;  %v743_v11 = vsel %vm739_vm5, %v1943_v27, %v1947_v28 }
 0x102   : > { %v2106_v60 = vpop.permute.xlu1 %367  ;;  %905 = vrot.lane.b32.xlu0 %v814_v5, %s1724_s10  ;;  %v770_v27 = vsel %vm769_vm7, %v1965_v34, %v1967_v35  ;;  %v850_v34 = vsel %vm575_vm1, %v771_v17, %v786_v22  ;;  %vm512_vm3 = vcmask 211968  }
 0x104   : > { %907 = vrot.lane.b32.xlu1 %v817_v19, %s1724_s10  ;;  %v2117_v13 = vpop.permute.xlu0 %382  ;;  %v829_v19 = vsel %vm575_vm1, %v1917_v18, %v1931_v23  ;;  %v757_v18 = vsel %vm754_vm4, %v1955_v31, %v1959_v32  ;;  %v785_v32 = vsel %vm784_vm6, %v1980_v39, %v1984_v40  ;;  %v772_v40 = vsel %vm769_vm7, %v1971_v36, %v1973_v37 }
 0x105   : > { %v838_v31 = vsel %vm575_vm1, %v742_v30, %v757_v18  ;;  %v847_v39 = vsel %vm575_vm1, %v770_v27, %v785_v32  ;;  %v801_v30 = vsel %vm799_vm8, %v2011_v49, %v2015_v50  ;;  %v803_v32 = vsel %vm799_vm8, %v2017_v51, %v2021_v52 }
 0x106   : > { %v2126_v5 = vpop.permute.xlu1 %399  ;;  %909 = vrot.lane.b32.xlu0 %v820_v14, %s1724_s10  ;;  %v741_v14 = vsel %vm739_vm5, %v1937_v25, %v1941_v26  ;;  %v841_v26 = vsel %vm575_vm1, %v743_v11, %v758_v20  ;;  %v806_v11 = vsel %vm482_vm9, %v2005_v47, %v2023_v53  ;;  %vm540_vm4 = vcmask 138240  }
 0x107   : > { %v835_v24 = vsel %vm575_vm1, %v741_v14, %v756_v4  ;;  %v788_v4 = vsel %vm784_vm6, %v1991_v42, %v1993_v43  ;;  %v868_v27 = vsel %vm575_vm1, %v803_v32, %v806_v11  ;;  %v2801_v11 = vld [vmem:[#allocation6_spill] sm:$0xff]  ;;  %vm527_vm5 = vcmask 146432  }
 0x108   : > { %911 = vrot.lane.b32.xlu1 %v823_v15, %s1724_s10  ;;  %v2134_v62 = vpop.permute.xlu0 %401 }
 0x10a   : > { %v2140_v1 = vpop.permute.xlu1 %403  ;;  %913 = vrot.lane.b32.xlu0 %v826_v16, %s1724_s10  ;;  %v844_v16 = vsel %vm575_vm1, %v1947_v28, %v1961_v33  ;;  %v787_v28 = vsel %vm784_vm6, %v1986_v41, %v1991_v42  ;;  %v773_v41 = vsel %vm769_vm7, %v1973_v37, %v1978_v38  ;;  %v800_v42 = vsel %vm799_vm8, %v2009_v48, %v2011_v49 }
 0x10b   : > { %v853_v35 = vsel %vm575_vm1, %v772_v40, %v787_v28  ;;  %v856_v36 = vsel %vm575_vm1, %v773_v41, %v788_v4  ;;  %v2241_v37 = vsel %vm482_vm9, %v1997_v44, %v1999_v45  ;;  %v2305_v28 = vsel %vm497_vm10, %v2029_v55, %v2033_v56 }
 0x10c   : > { %915 = vrot.lane.b32.xlu1 %v829_v19, %s1724_s10  ;;  %v2153_v7 = vpop.permute.xlu0 %405  ;;  %v861_v20 = vsel %vm575_vm1, %v800_v42, %v2241_v37  ;;  %v363_v41 = vsel %vm362_vm0, %v1887_v8, %v1893_v10  ;;  %v2797_v10 = vld [vmem:[#allocation4_spill] sm:$0xff]  ;;  %v2798_v42 = vld [vmem:[#allocation3_spill] sm:$0xff]  ;;  %vm437_vm0 = vcmask 883712   ;;  %vm570_vm6 = vcmask 64512  }
 0x10d   : > { %v578_v8 = vsel %vm575_vm1, %v1804_v0, %v363_v41  ;;  %v605_v41 = vsel %vm575_vm1, %v2801_v11, %v2095_v63  ;;  %vm554_vm7 = vcmask 130048  }
 0x10e   : > { %v2162_v23 = vpop.permute.xlu1 %414  ;;  %917 = vrot.lane.b32.xlu0 %v832_v29, %s1724_s10 }
 0x110   : > { %919 = vrot.lane.b32.xlu1 %v835_v24, %s1724_s10  ;;  %v2173_v25 = vpop.permute.xlu0 %416  ;;  %v859_v24 = vsel %vm575_vm1, %v1978_v38, %v1993_v43  ;;  %v2254_v38 = vsel %vm482_vm9, %v1999_v45, %v2003_v46  ;;  %v802_v43 = vsel %vm799_vm8, %v2015_v50, %v2017_v51  ;;  %v2273_v45 = vsel %vm482_vm9, %v2003_v46, %v2005_v47 }
 0x111   : > { %v863_v49 = vsel %vm575_vm1, %v801_v30, %v2254_v38  ;;  %v865_v50 = vsel %vm575_vm1, %v802_v43, %v2273_v45  ;;  %v871_v46 = vsel %vm575_vm1, %v2021_v52, %v2023_v53  ;;  %v2296_v51 = vsel %vm497_vm10, %v2027_v54, %v2029_v55 }
 0x112   : > { %v2179_v15 = vpop.permute.xlu1 %418  ;;  %921 = vrot.lane.b32.xlu0 %v838_v31, %s1724_s10  ;;  %v2314_v53 = vsel %vm497_vm10, %v2033_v56, %v2035_v57  ;;  %v809_v55 = vsel %vm497_vm10, %v2035_v57, %v2039_v58  ;;  %vm957_vm8 = vcmask 56320  }
 0x114   : > { %923 = vrot.lane.b32.xlu1 %v841_v26, %s1724_s10  ;;  %v2187_v21 = vpop.permute.xlu0 %420 }
 0x116   : > { %v2198_v19 = vpop.permute.xlu1 %397  ;;  %925 = vrot.lane.b32.xlu0 %v844_v16, %s1724_s10 }
 0x118   : > { %927 = vrot.lane.b32.xlu1 %v847_v39, %s1724_s10  ;;  %v2209_v33 = vpop.permute.xlu0 %412 }
 0x11a   : > { %v2218_v29 = vpop.permute.xlu1 %429  ;;  %929 = vrot.lane.b32.xlu0 %v850_v34, %s1724_s10 }
 0x11c   : > { %931 = vrot.lane.b32.xlu1 %v853_v35, %s1724_s10  ;;  %v2226_v14 = vpop.permute.xlu0 %431 }
 0x11e   : > { %v2232_v18 = vpop.permute.xlu1 %433  ;;  %933 = vrot.lane.b32.xlu0 %v856_v36, %s1724_s10 }
 0x120   : > { %935 = vrot.lane.b32.xlu1 %v859_v24, %s1724_s10  ;;  %v2247_v48 = vpop.permute.xlu0 %435  ;;  %v2799_v24 = vld [vmem:[#allocation7_spill] sm:$0xff] }
 0x121   : > { %v395_v30 = vsel %vm392_vm11, %v2079_v3, %v2799_v24  ;;  %v396_v0 = vsel %vm392_vm11, %v2799_v24, %v2095_v63  ;;  %v425_v63 = vsel %vm422_vm13, %v2173_v25, %v2179_v15 }
 0x122   : > { %v2259_v31 = vpop.permute.xlu1 %444  ;;  %937 = vrot.lane.b32.xlu0 %v861_v20, %s1724_s10  ;;  %v2800_v20 = vld [vmem:[#allocation5_spill] sm:$0xff] }
 0x123   : > { %v380_v43 = vsel %vm377_vm12, %v2797_v10, %v2800_v20 }
 0x124   : > { %939 = vrot.lane.b32.xlu1 %v863_v49, %s1724_s10  ;;  %v2268_v26 = vpop.permute.xlu0 %446 }
 0x126   : > { %v2280_v16 = vpop.permute.xlu1 %448  ;;  %941 = vrot.lane.b32.xlu0 %v865_v50, %s1724_s10  ;;  %v381_v50 = vsel %vm377_vm12, %v2800_v20, %v2801_v11 }
 0x128   : > { %943 = vrot.lane.b32.xlu1 %v868_v27, %s1724_s10  ;;  %v2285_v22 = vpop.permute.xlu0 %450  ;;  %v602_v27 = vsel %vm575_vm1, %v381_v50, %v396_v0  ;;  %v454_v0 = vsel %vm452_vm15, %v2259_v31, %v2268_v26 }
 0x129   : > { %v456_v11 = vsel %vm452_vm15, %v2280_v16, %v2285_v22 }
 0x12a   : > { %v2290_v39 = vpop.permute.xlu1 %427  ;;  %945 = vrot.lane.b32.xlu0 %v871_v46, %s1724_s10  ;;  %v393_v46 = vsel %vm392_vm11, %v2117_v13, %v2063_v59  ;;  %v409_v13 = vsel %vm407_vm14, %v2126_v5, %v2134_v62 }
 0x12c   : > { %947 = vrot.lane.b32.xlu1 %v2296_v51, %s1724_s10  ;;  %v2300_v17 = vpop.permute.xlu0 %442 }
 0x12e   : > { %v2307_v52 = vpop.permute.xlu1 %459  ;;  %949 = vrot.lane.b32.xlu0 %v2305_v28, %s1724_s10 }
 0x130   : > { %951 = vrot.lane.b32.xlu1 %v2314_v53, %s1724_s10  ;;  %v2318_v34 = vpop.permute.xlu0 %461 }
 0x132   : > { %v2323_v40 = vpop.permute.xlu1 %463  ;;  %953 = vrot.lane.b32.xlu0 %v809_v55, %s1724_s10 }
 0x134   : > { %955 = vrot.lane.b32.xlu1 %v2039_v58, %s1724_s10  ;;  %v2328_v4 = vpop.permute.xlu0 %465  ;;  %v590_v58 = vsel %vm575_vm1, %v1817_v6, %v1899_v12  ;;  %s1468_s10 = scalar_lea.vmem (%p1787_p4), %s2785_s6, %s1617_s30 }
 0x136   : > { %v2330_v56 = vpop.permute.xlu1 %457  ;;  %1044 = vrot.lane.b32.xlu0 %v2061_v2, %s1725_s11  ;;  %v394_v2 = vsel %vm392_vm11, %v2063_v59, %v2079_v3  ;;  %v599_v3 = vsel %vm575_vm1, %v380_v43, %v395_v30  ;;  %v411_v30 = vsel %vm407_vm14, %v2140_v1, %v2153_v7  ;;  %v408_v43 = vsel %vm407_vm14, %v2198_v19, %v2126_v5 }
 0x137   : > { %v440_v19 = vsel %vm437_vm0, %v2226_v14, %v2232_v18 }
 0x138   : > { %1046 = vrot.lane.b32.xlu1 %v2072_v9, %s1725_s11  ;;  %v2336_v35 = vpop.permute.xlu0 %472 }
 0x13a   : > { %v2341_v36 = vpop.permute.xlu1 %504  ;;  %1048 = vrot.lane.b32.xlu0 %v2083_v61, %s1725_s11  ;;  %v379_v61 = vsel %vm377_vm12, %v2798_v42, %v2797_v10 }
 0x13b   : > { %v596_v12 = vsel %vm575_vm1, %v379_v61, %v394_v2  ;;  %v424_v2 = vsel %vm422_vm13, %v2162_v23, %v2173_v25  ;;  %v426_v61 = vsel %vm422_vm13, %v2179_v15, %v2187_v21  ;;  %v423_v15 = vsel %vm422_vm13, %v2209_v33, %v2162_v23 }
 0x13c   : > { %1050 = vrot.lane.b32.xlu1 %v590_v58, %s1725_s11  ;;  %v2352_v9 = vpop.permute.xlu0 %506  ;;  %v378_v58 = vsel %vm377_vm12, %v2106_v60, %v2798_v42  ;;  %v611_v10 = vsel %vm575_vm1, %v409_v13, %v424_v2  ;;  %v410_v42 = vsel %vm407_vm14, %v2134_v62, %v2140_v1  ;;  %v617_v62 = vsel %vm575_vm1, %v411_v30, %v426_v61 }
 0x13d   : > { %v593_v59 = vsel %vm575_vm1, %v378_v58, %v393_v46  ;;  %v614_v25 = vsel %vm575_vm1, %v410_v42, %v425_v63  ;;  %v620_v1 = vsel %vm575_vm1, %v2153_v7, %v2187_v21  ;;  %v608_v33 = vsel %vm575_vm1, %v408_v43, %v423_v15 }
 0x13e   : > { %v2362_v6 = vpop.permute.xlu1 %508  ;;  %1042 = vrot.lane.b32.xlu0 %v578_v8, %s1725_s11  ;;  %v455_v7 = vsel %vm452_vm15, %v2268_v26, %v2280_v16  ;;  %v453_v16 = vsel %vm452_vm15, %v2300_v17, %v2259_v31  ;;  %v635_v58 = vsel %vm575_vm1, %v2247_v48, %v2285_v22  ;;  %v469_v2 = vsel %vm467_vm2, %v2307_v52, %v2318_v34 }
 0x13f   : > { %v629_v26 = vsel %vm575_vm1, %v440_v19, %v455_v7  ;;  %v470_v17 = vsel %vm467_vm2, %v2318_v34, %v2323_v40  ;;  %v471_v22 = vsel %vm467_vm2, %v2323_v40, %v2328_v4 }
 0x140   : > { %1054 = vrot.lane.b32.xlu1 %v596_v12, %s1725_s11  ;;  %v2373_v49 = vpop.permute.xlu0 %510  ;;  %v644_v13 = vsel %vm575_vm1, %v470_v17, %v2254_v38  ;;  %v647_v63 = vsel %vm575_vm1, %v471_v22, %v2273_v45  ;;  %v650_v38 = vsel %vm575_vm1, %v2328_v4, %v2005_v47  ;;  %v514_v45 = vsel %vm512_vm3, %v2341_v36, %v2352_v9 }
 0x141   : > { %v656_v47 = vsel %vm575_vm1, %v2296_v51, %v514_v45 }
 0x142   : > { %v2379_v32 = vpop.permute.xlu1 %487  ;;  %1056 = vrot.lane.b32.xlu0 %v599_v3, %s1725_s11  ;;  %v439_v3 = vsel %vm437_vm0, %v2218_v29, %v2226_v14 }
 0x143   : > { %v626_v5 = vsel %vm575_vm1, %v439_v3, %v454_v0  ;;  %v498_v30 = vsel %vm497_vm10, %v2379_v32, %v2027_v54  ;;  %vm1291_vm10 = vcmask 719872  }
 0x144   : > { %1058 = vrot.lane.b32.xlu1 %v602_v27, %s1725_s11  ;;  %v2387_v55 = vpop.permute.xlu0 %502  ;;  %v441_v27 = vsel %vm437_vm0, %v2232_v18, %v2247_v48  ;;  %v438_v18 = vsel %vm437_vm0, %v2290_v39, %v2218_v29  ;;  %v641_v29 = vsel %vm575_vm1, %v469_v2, %v2241_v37  ;;  %v483_v37 = vsel %vm482_vm9, %v2336_v35, %v1997_v44 }
 0x145   : > { %v632_v14 = vsel %vm575_vm1, %v441_v27, %v456_v11  ;;  %v623_v31 = vsel %vm575_vm1, %v438_v18, %v453_v16  ;;  %v515_v35 = vsel %vm512_vm3, %v2352_v9, %v2362_v6  ;;  %v513_v51 = vsel %vm512_vm3, %v2387_v55, %v2341_v36 }
 0x146   : > { %v2398_v8 = vpop.permute.xlu1 %519  ;;  %1060 = vrot.lane.b32.xlu0 %v605_v41, %s1725_s11  ;;  %v653_v36 = vsel %vm575_vm1, %v498_v30, %v513_v51  ;;  %vm1182_vm9 = vcmask 908288  }
 0x148   : > { %1052 = vrot.lane.b32.xlu1 %v593_v59, %s1725_s11  ;;  %v2409_v60 = vpop.permute.xlu0 %521 }
 0x149   : > { %v529_v55 = vsel %vm527_vm5, %v2398_v8, %v2409_v60 }
 0x14a   : > { %v2418_v24 = vpop.permute.xlu1 %523  ;;  %1064 = vrot.lane.b32.xlu0 %v611_v10, %s1725_s11  ;;  %v468_v10 = vsel %vm467_vm2, %v2330_v56, %v2307_v52  ;;  %v516_v52 = vsel %vm512_vm3, %v2362_v6, %v2373_v49  ;;  %v659_v56 = vsel %vm575_vm1, %v2305_v28, %v515_v35  ;;  %v665_v28 = vsel %vm575_vm1, %v2035_v57, %v2373_v49 }
 0x14b   : > { %v638_v44 = vsel %vm575_vm1, %v468_v10, %v483_v37  ;;  %v662_v9 = vsel %vm575_vm1, %v2314_v53, %v516_v52  ;;  %v530_v32 = vsel %vm527_vm5, %v2409_v60, %v2418_v24 }
 0x14c   : > { %1066 = vrot.lane.b32.xlu1 %v614_v25, %s1725_s11  ;;  %v2426_v12 = vpop.permute.xlu0 %525 }
 0x14d   : > { %v531_v0 = vsel %vm527_vm5, %v2418_v24, %v2426_v12 }
 0x14e   : > { %v2432_v20 = vpop.permute.xlu1 %532  ;;  %1068 = vrot.lane.b32.xlu0 %v617_v62, %s1725_s11 }
 0x150   : > { %1070 = vrot.lane.b32.xlu1 %v620_v1, %s1725_s11  ;;  %v2445_v23 = vpop.permute.xlu0 %534 }
 0x151   : > { %v541_v53 = vsel %vm540_vm4, %v2432_v20, %v2445_v23 }
 0x152   : > { %v2454_v21 = vpop.permute.xlu1 %536  ;;  %1062 = vrot.lane.b32.xlu0 %v608_v33, %s1725_s11  ;;  %v671_v49 = vsel %vm575_vm1, %v529_v55, %v541_v53 }
 0x153   : > { %v542_v57 = vsel %vm540_vm4, %v2445_v23, %v2454_v21 }
 0x154   : > { %1074 = vrot.lane.b32.xlu1 %v626_v5, %s1725_s11  ;;  %v2465_v50 = vpop.permute.xlu0 %538  ;;  %v674_v43 = vsel %vm575_vm1, %v530_v32, %v542_v57 }
 0x155   : > { %v543_v15 = vsel %vm540_vm4, %v2454_v21, %v2465_v50  ;;  %v680_v7 = vsel %vm575_vm1, %v2426_v12, %v2465_v50 }
 0x156   : > { %v2471_v46 = vpop.permute.xlu1 %517  ;;  %1076 = vrot.lane.b32.xlu0 %v629_v26, %s1725_s11  ;;  %v677_v33 = vsel %vm575_vm1, %v531_v0, %v543_v15 }
 0x157   : > { %v528_v60 = vsel %vm527_vm5, %v2471_v46, %v2398_v8 }
 0x158   : > { %1078 = vrot.lane.b32.xlu1 %v632_v14, %s1725_s11  ;;  %v2479_v41 = vpop.permute.xlu0 %544  ;;  %v668_v5 = vsel %vm575_vm1, %v528_v60, %v2432_v20 }
 0x15a   : > { %v2490_v59 = vpop.permute.xlu1 %546  ;;  %1080 = vrot.lane.b32.xlu0 %v635_v58, %s1725_s11 }
 0x15b   : > { %v555_v8 = vsel %vm554_vm7, %v2479_v41, %v2490_v59 }
 0x15c   : > { %1072 = vrot.lane.b32.xlu1 %v623_v31, %s1725_s11  ;;  %v2498_v48 = vpop.permute.xlu0 %548 }
 0x15d   : > { %v556_v50 = vsel %vm554_vm7, %v2490_v59, %v2498_v48 }
 0x15e   : > { %v2505_v39 = vpop.permute.xlu1 %550  ;;  %1084 = vrot.lane.b32.xlu0 %v641_v29, %s1725_s11 }
 0x15f   : > { %v557_v46 = vsel %vm554_vm7, %v2498_v48, %v2505_v39 }
 0x160   : > { %1086 = vrot.lane.b32.xlu1 %v644_v13, %s1725_s11  ;;  %v2511_v34 = vpop.permute.xlu0 %552 }
 0x161   : > { %v558_v18 = vsel %vm554_vm7, %v2505_v39, %v2511_v34 }
 0x162   : > { %v2518_v40 = vpop.permute.xlu1 %560  ;;  %1088 = vrot.lane.b32.xlu0 %v647_v63, %s1725_s11 }
 0x163   : > { %v683_v17 = vsel %vm575_vm1, %v2479_v41, %v2518_v40 }
 0x164   : > { %1090 = vrot.lane.b32.xlu1 %v650_v38, %s1725_s11  ;;  %v563_v42 = vpop.permute.xlu0 %562 }
 0x165   : > { %v571_v24 = vsel %vm570_vm6, %v2518_v40, %v563_v42 }
 0x166   : > { %v565_v61 = vpop.permute.xlu1 %564  ;;  %1082 = vrot.lane.b32.xlu0 %v638_v44, %s1725_s11  ;;  %v686_v12 = vsel %vm575_vm1, %v555_v8, %v571_v24  ;;  %v1677_v8 = vld [vmem:[%s2779_s0 + $0x4] ss:$8 sps:$4 sm:$0xff]  }
 0x167   : > { %v572_v19 = vsel %vm570_vm6, %v563_v42, %v565_v61  ;;  %1597 = vmatprep.mubr.msk.bf16.mxu0 %vm1291_vm10, %v1677_v8  ;;  %1599 = vmatprep.mubr.msk.bf16.mxu1 %vm1291_vm10, %v1677_v8 }
 0x168   : > { %1094 = vrot.lane.b32.xlu1 %v656_v47, %s1725_s11  ;;  %v567_v4 = vpop.permute.xlu0 %566  ;;  %v689_v27 = vsel %vm575_vm1, %v556_v50, %v572_v19 }
 0x169   : > { %v573_v26 = vsel %vm570_vm6, %v565_v61, %v567_v4 }
 0x16a   : > { %v569_v25 = vpop.permute.xlu1 %568  ;;  %1096 = vrot.lane.b32.xlu0 %v659_v56, %s1725_s11  ;;  %v692_v58 = vsel %vm575_vm1, %v557_v46, %v573_v26  ;;  %v1726_v46 = vmov 0  }
 0x16b   : > { %v574_v14 = vsel %vm570_vm6, %v567_v4, %v569_v25  ;;  %1668 = vset.pattern.permute.xlu1 %v1726_v46  ;;  %1667 = vset.pattern.permute.xlu0 %v1726_v46 }
 0x16c   : > { %1098 = vrot.lane.b32.xlu1 %v662_v9, %s1725_s11  ;;  %v2551_v6 = vpop.permute.xlu0 %897  ;;  %v695_v59 = vsel %vm575_vm1, %v558_v18, %v574_v14 }
 0x16e   : > { %v900_v62 = vpop.permute.xlu1 %899  ;;  %1100 = vrot.lane.b32.xlu0 %v665_v28, %s1725_s11 }
 0x16f   : > { %v958_v29 = vsel %vm957_vm8, %v2551_v6, %v900_v62 }
 0x170   : > { %1092 = vrot.lane.b32.xlu1 %v653_v36, %s1725_s11  ;;  %v902_v54 = vpop.permute.xlu0 %901 }
 0x171   : > { %v959_v39 = vsel %vm957_vm8, %v900_v62, %v902_v54 }
 0x172   : > { %v904_v1 = vpop.permute.xlu1 %903  ;;  %1104 = vrot.lane.b32.xlu0 %v671_v49, %s1725_s11 }
 0x173   : > { %v960_v34 = vsel %vm957_vm8, %v902_v54, %v904_v1 }
 0x174   : > { %1106 = vrot.lane.b32.xlu1 %v674_v43, %s1725_s11  ;;  %v906_v23 = vpop.permute.xlu0 %905 }
 0x175   : > { %v961_v41 = vsel %vm957_vm8, %v904_v1, %v906_v23 }
 0x176   : > { %v908_v3 = vpop.permute.xlu1 %907  ;;  %1108 = vrot.lane.b32.xlu0 %v677_v33, %s1725_s11 }
 0x178   : > { %1110 = vrot.lane.b32.xlu1 %v680_v7, %s1725_s11  ;;  %v910_v21 = vpop.permute.xlu0 %909 }
 0x179   : > { %v962_v38 = vsel %vm957_vm8, %v908_v3, %v910_v21 }
 0x17a   : > { %v912_v11 = vpop.permute.xlu1 %911  ;;  %1102 = vrot.lane.b32.xlu0 %v668_v5, %s1725_s11 }
 0x17b   : > { %v963_v45 = vsel %vm957_vm8, %v910_v21, %v912_v11 }
 0x17c   : > { %1114 = vrot.lane.b32.xlu1 %v686_v12, %s1725_s11  ;;  %v914_v20 = vpop.permute.xlu0 %913 }
 0x17d   : > { %v964_v44 = vsel %vm957_vm8, %v912_v11, %v914_v20 }
 0x17e   : > { %v916_v16 = vpop.permute.xlu1 %915  ;;  %1116 = vrot.lane.b32.xlu0 %v689_v27, %s1725_s11 }
 0x17f   : > { %v965_v61 = vsel %vm957_vm8, %v914_v20, %v916_v16 }
 0x180   : > { %1118 = vrot.lane.b32.xlu1 %v692_v58, %s1725_s11  ;;  %v918_v2 = vpop.permute.xlu0 %917 }
 0x182   : > { %v920_v31 = vpop.permute.xlu1 %919  ;;  %1120 = vrot.lane.b32.xlu0 %v695_v59, %s1725_s11 }
 0x183   : > { %v966_v4 = vsel %vm957_vm8, %v918_v2, %v920_v31 }
 0x184   : > { %1112 = vrot.lane.b32.xlu1 %v683_v17, %s1725_s11  ;;  %v922_v48 = vpop.permute.xlu0 %921 }
 0x185   : > { %v967_v25 = vsel %vm957_vm8, %v920_v31, %v922_v48 }
 0x186   : > { %v924_v22 = vpop.permute.xlu1 %923  ;;  %1124 = vrot.lane.b32.xlu0 %v958_v29, %s1725_s11  ;;  %v984_v29 = vld [vmem:[%s2780_s1] sm:$0xff] }
 0x187   : > { %v968_v51 = vsel %vm957_vm8, %v922_v48, %v924_v22 }
 0x188   : > { %1126 = vrot.lane.b32.xlu1 %v959_v39, %s1725_s11  ;;  %v926_v13 = vpop.permute.xlu0 %925  ;;  %v985_v39 = vld [vmem:[%s2780_s1 + $0x8] sm:$0xff] }
 0x189   : > { %v969_v28 = vsel %vm957_vm8, %v924_v22, %v926_v13 }
 0x18a   : > { %v928_v63 = vpop.permute.xlu1 %927  ;;  %1128 = vrot.lane.b32.xlu0 %v960_v34, %s1725_s11 }
 0x18c   : > { %1130 = vrot.lane.b32.xlu1 %v961_v41, %s1725_s11  ;;  %v930_v37 = vpop.permute.xlu0 %929 }
 0x18d   : > { %v970_v62 = vsel %vm957_vm8, %v928_v63, %v930_v37 }
 0x18e   : > { %v932_v40 = vpop.permute.xlu1 %931  ;;  %1122 = vrot.lane.b32.xlu0 %v2551_v6, %s1725_s11 }
 0x18f   : > { %v971_v55 = vsel %vm957_vm8, %v930_v37, %v932_v40 }
 0x190   : > { %1134 = vrot.lane.b32.xlu1 %v962_v38, %s1725_s11  ;;  %v934_v10 = vpop.permute.xlu0 %933 }
 0x191   : > { %v972_v54 = vsel %vm957_vm8, %v932_v40, %v934_v10 }
 0x192   : > { %v936_v42 = vpop.permute.xlu1 %935  ;;  %1136 = vrot.lane.b32.xlu0 %v963_v45, %s1725_s11 }
 0x193   : > { %v973_v32 = vsel %vm957_vm8, %v934_v10, %v936_v42 }
 0x194   : > { %1138 = vrot.lane.b32.xlu1 %v964_v44, %s1725_s11  ;;  %v938_v35 = vpop.permute.xlu0 %937 }
 0x196   : > { %v940_v47 = vpop.permute.xlu1 %939  ;;  %1140 = vrot.lane.b32.xlu0 %v965_v61, %s1725_s11 }
 0x197   : > { %v974_v0 = vsel %vm957_vm8, %v938_v35, %v940_v47 }
 0x198   : > { %1132 = vrot.lane.b32.xlu1 %v908_v3, %s1725_s11  ;;  %v942_v52 = vpop.permute.xlu0 %941 }
 0x199   : > { %v975_v33 = vsel %vm957_vm8, %v940_v47, %v942_v52 }
 0x19a   : > { %v944_v56 = vpop.permute.xlu1 %943  ;;  %1144 = vrot.lane.b32.xlu0 %v966_v4, %s1725_s11 }
 0x19b   : > { %v976_v24 = vsel %vm957_vm8, %v942_v52, %v944_v56 }
 0x19c   : > { %1146 = vrot.lane.b32.xlu1 %v967_v25, %s1725_s11  ;;  %v946_v9 = vpop.permute.xlu0 %945 }
 0x19d   : > { %v977_v19 = vsel %vm957_vm8, %v944_v56, %v946_v9 }
 0x19e   : > { %v948_v6 = vpop.permute.xlu1 %947  ;;  %1148 = vrot.lane.b32.xlu0 %v968_v51, %s1725_s11 }
 0x1a0   : > { %1150 = vrot.lane.b32.xlu1 %v969_v28, %s1725_s11  ;;  %v950_v30 = vpop.permute.xlu0 %949 }
 0x1a1   : > { %v978_v20 = vsel %vm957_vm8, %v948_v6, %v950_v30 }
 0x1a2   : > { %v2653_v53 = vpop.permute.xlu1 %951  ;;  %1142 = vrot.lane.b32.xlu0 %v918_v2, %s1725_s11 }
 0x1a3   : > { %v979_v58 = vsel %vm957_vm8, %v950_v30, %v2653_v53 }
 0x1a4   : > { %1154 = vrot.lane.b32.xlu1 %v970_v62, %s1725_s11  ;;  %v954_v36 = vpop.permute.xlu0 %953 }
 0x1a5   : > { %v980_v59 = vsel %vm957_vm8, %v2653_v53, %v954_v36 }
 0x1a6   : > { %v956_v57 = vpop.permute.xlu1 %955  ;;  %1156 = vrot.lane.b32.xlu0 %v971_v55, %s1725_s11 }
 0x1a7   : > { %v981_v17 = vsel %vm957_vm8, %v954_v36, %v956_v57 }
 0x1a8   : > { %1158 = vrot.lane.b32.xlu1 %v972_v54, %s1725_s11  ;;  %v1045_v49 = vpop.permute.xlu0 %1044 }
 0x1aa   : > { %v1047_v15 = vpop.permute.xlu1 %1046  ;;  %1160 = vrot.lane.b32.xlu0 %v973_v32, %s1725_s11 }
 0x1ab   : > { %v1184_v1 = vsel %vm1182_vm9, %v1045_v49, %v1047_v15 }
 0x1ac   : > { %1152 = vrot.lane.b32.xlu1 %v928_v63, %s1725_s11  ;;  %1307 = vmatprep.subr.bf16.mxu0 %v1184_v1  ;;  %v1049_v43 = vpop.permute.xlu0 %1048 }
 0x1ad   : > { %v1185_v3 = vsel %vm1182_vm9, %v1047_v15, %v1049_v43 }
 0x1ae   : > { %v1051_v23 = vpop.permute.xlu1 %1050  ;;  %1164 = vrot.lane.b32.xlu0 %v974_v0, %s1725_s11 }
 0x1af   : > { %v1186_v60 = vsel %vm1182_vm9, %v1049_v43, %v1051_v23 }
 0x1b0   : > { %1166 = vrot.lane.b32.xlu1 %v975_v33, %s1725_s11  ;;  %1350 = vmatprep.subr.bf16.mxu1 %v1186_v60  ;;  %v1043_v7 = vpop.permute.xlu0 %1042 }
 0x1b1   : > { %1351 = vmatpush1.bf16.msra.mxu1 %v1185_v3  ;;  %v1183_v21 = vsel %vm1182_vm9, %v1043_v7, %v1045_v49 }
 0x1b2   : > { %v1055_v5 = vpop.permute.xlu1 %1054  ;;  %1168 = vrot.lane.b32.xlu0 %v976_v24, %s1725_s11  ;;  %1308 = vmatpush1.bf16.msra.mxu0 %v1183_v21 }
 0x1b4   : > { %1170 = vrot.lane.b32.xlu1 %v977_v19, %s1725_s11  ;;  %v1057_v11 = vpop.permute.xlu0 %1056 }
 0x1b5   : > { %v1188_v12 = vsel %vm1182_vm9, %v1055_v5, %v1057_v11 }
 0x1b6   : > { %v1059_v50 = vpop.permute.xlu1 %1058  ;;  %1162 = vrot.lane.b32.xlu0 %v938_v35, %s1725_s11  ;;  %1309 = vmatprep.subr.bf16.mxu0 %v1188_v12 }
 0x1b7   : > { %v1189_v16 = vsel %vm1182_vm9, %v1057_v11, %v1059_v50 }
 0x1b8   : > { %1172 = vrot.lane.b32.xlu1 %v948_v6, %s1725_s11  ;;  %v1061_v26 = vpop.permute.xlu0 %1060 }
 0x1b9   : > { %v1190_v27 = vsel %vm1182_vm9, %v1059_v50, %v1061_v26 }
 0x1ba   : > { %v1053_v14 = vpop.permute.xlu1 %1052  ;;  %1174 = vrot.lane.b32.xlu0 %v978_v20, %s1725_s11  ;;  %1352 = vmatprep.subr.bf16.mxu1 %v1190_v27 }
 0x1bb   : > { %v1187_v18 = vsel %vm1182_vm9, %v1053_v14, %v1055_v5  ;;  %1353 = vmatpush1.bf16.msra.mxu1 %v1189_v16 }
 0x1bc   : > { %1176 = vrot.lane.b32.xlu1 %v979_v58, %s1725_s11  ;;  %1310 = vmatpush1.bf16.msra.mxu0 %v1187_v18  ;;  %v1065_v2 = vpop.permute.xlu0 %1064 }
 0x1be   : > { %v1067_v31 = vpop.permute.xlu1 %1066  ;;  %1178 = vrot.lane.b32.xlu0 %v980_v59, %s1725_s11 }
 0x1bf   : > { %v1192_v48 = vsel %vm1182_vm9, %v1065_v2, %v1067_v31 }
 0x1c0   : > { %1180 = vrot.lane.b32.xlu1 %v981_v17, %s1725_s11  ;;  %1311 = vmatprep.subr.bf16.mxu0 %v1192_v48  ;;  %v1069_v22 = vpop.permute.xlu0 %1068 }
 0x1c1   : > { %v1193_v63 = vsel %vm1182_vm9, %v1067_v31, %v1069_v22 }
 0x1c2   : > { %v1071_v13 = vpop.permute.xlu1 %1070  ;;  %988 = vperm.xlu0 %1667, %v984_v29  }
 0x1c3   : > { %v1194_v34 = vsel %vm1182_vm9, %v1069_v22, %v1071_v13 }
 0x1c4   : > { %1354 = vmatprep.subr.bf16.mxu1 %v1194_v34  ;;  %v1063_v41 = vpop.permute.xlu0 %1062  ;;  %993 = vperm.xlu1 %1668, %v985_v39  }
 0x1c5   : > { %1355 = vmatpush1.bf16.msra.mxu1 %v1193_v63  ;;  %v1191_v37 = vsel %vm1182_vm9, %v1063_v41, %v1065_v2 }
 0x1c6   : > { %v1075_v40 = vpop.permute.xlu1 %1074  ;;  %1312 = vmatpush1.bf16.msra.mxu0 %v1191_v37 }
 0x1c8   : > { %v1077_v38 = vpop.permute.xlu0 %1076 }
 0x1c9   : > { %v1196_v10 = vsel %vm1182_vm9, %v1075_v40, %v1077_v38 }
 0x1ca   : > { %v1079_v45 = vpop.permute.xlu1 %1078  ;;  %1313 = vmatprep.subr.bf16.mxu0 %v1196_v10 }
 0x1cb   : > { %v1197_v61 = vsel %vm1182_vm9, %v1077_v38, %v1079_v45 }
 0x1cc   : > { %v1081_v42 = vpop.permute.xlu0 %1080 }
 0x1cd   : > { %v1198_v44 = vsel %vm1182_vm9, %v1079_v45, %v1081_v42 }
 0x1ce   : > { %v1073_v35 = vpop.permute.xlu1 %1072  ;;  %1356 = vmatprep.subr.bf16.mxu1 %v1198_v44 }
 0x1cf   : > { %v1195_v47 = vsel %vm1182_vm9, %v1073_v35, %v1075_v40  ;;  %1357 = vmatpush1.bf16.msra.mxu1 %v1197_v61 }
 0x1d0   : > { %1314 = vmatpush1.bf16.msra.mxu0 %v1195_v47  ;;  %v1085_v52 = vpop.permute.xlu0 %1084 }
 0x1d2   : > { %v1087_v4 = vpop.permute.xlu1 %1086 }
 0x1d3   : > { %v1200_v56 = vsel %vm1182_vm9, %v1085_v52, %v1087_v4 }
 0x1d4   : > { %1315 = vmatprep.subr.bf16.mxu0 %v1200_v56  ;;  %v1089_v25 = vpop.permute.xlu0 %1088 }
 0x1d5   : > { %v1201_v6 = vsel %vm1182_vm9, %v1087_v4, %v1089_v25 }
 0x1d6   : > { %v1091_v9 = vpop.permute.xlu1 %1090 }
 0x1d7   : > { %v1202_v51 = vsel %vm1182_vm9, %v1089_v25, %v1091_v9 }
 0x1d8   : > { %1358 = vmatprep.subr.bf16.mxu1 %v1202_v51  ;;  %v1083_v28 = vpop.permute.xlu0 %1082 }
 0x1d9   : > { %1359 = vmatpush1.bf16.msra.mxu1 %v1201_v6  ;;  %v1199_v30 = vsel %vm1182_vm9, %v1083_v28, %v1085_v52 }
 0x1da   : > { %v1095_v53 = vpop.permute.xlu1 %1094  ;;  %1316 = vmatpush1.bf16.msra.mxu0 %v1199_v30 }
 0x1dc   : > { %v1097_v62 = vpop.permute.xlu0 %1096 }
 0x1dd   : > { %v1204_v36 = vsel %vm1182_vm9, %v1095_v53, %v1097_v62 }
 0x1de   : > { %v1099_v55 = vpop.permute.xlu1 %1098  ;;  %1317 = vmatprep.subr.bf16.mxu0 %v1204_v36 }
 0x1df   : > { %v1205_v32 = vsel %vm1182_vm9, %v1097_v62, %v1099_v55 }
 0x1e0   : > { %v1101_v57 = vpop.permute.xlu0 %1100 }
 0x1e1   : > { %v1206_v54 = vsel %vm1182_vm9, %v1099_v55, %v1101_v57 }
 0x1e2   : > { %v1093_v49 = vpop.permute.xlu1 %1092  ;;  %1360 = vmatprep.subr.bf16.mxu1 %v1206_v54 }
 0x1e3   : > { %v1203_v15 = vsel %vm1182_vm9, %v1093_v49, %v1095_v53  ;;  %1361 = vmatpush1.bf16.msra.mxu1 %v1205_v32 }
 0x1e4   : > { %1318 = vmatpush1.bf16.msra.mxu0 %v1203_v15  ;;  %v1105_v1 = vpop.permute.xlu0 %1104 }
 0x1e6   : > { %v1107_v43 = vpop.permute.xlu1 %1106 }
 0x1e7   : > { %v1208_v0 = vsel %vm1182_vm9, %v1105_v1, %v1107_v43 }
 0x1e8   : > { %1319 = vmatprep.subr.bf16.mxu0 %v1208_v0  ;;  %v1109_v23 = vpop.permute.xlu0 %1108 }
 0x1e9   : > { %v1209_v3 = vsel %vm1182_vm9, %v1107_v43, %v1109_v23 }
 0x1ea   : > { %v1111_v33 = vpop.permute.xlu1 %1110 }
 0x1eb   : > { %v1210_v60 = vsel %vm1182_vm9, %v1109_v23, %v1111_v33 }
 0x1ec   : > { %1362 = vmatprep.subr.bf16.mxu1 %v1210_v60  ;;  %v1103_v7 = vpop.permute.xlu0 %1102 }
 0x1ed   : > { %1363 = vmatpush1.bf16.msra.mxu1 %v1209_v3  ;;  %v1207_v24 = vsel %vm1182_vm9, %v1103_v7, %v1105_v1  ;;  %v1675_v3 = vld [vmem:[%s2779_s0] ss:$8 sps:$4 sm:$0xff]  }
 0x1ee   : > { %v1115_v21 = vpop.permute.xlu1 %1114  ;;  %1320 = vmatpush1.bf16.msra.mxu0 %v1207_v24 }
 0x1f0   : > { %v1117_v5 = vpop.permute.xlu0 %1116 }
 0x1f1   : > { %v1212_v8 = vsel %vm1182_vm9, %v1115_v21, %v1117_v5 }
 0x1f2   : > { %v1119_v19 = vpop.permute.xlu1 %1118  ;;  %1321 = vmatprep.subr.bf16.mxu0 %v1212_v8  ;;  %v1403_v8 = vlaneseq }
 0x1f3   : > { %v1213_v26 = vsel %vm1182_vm9, %v1117_v5, %v1119_v19 }
 0x1f4   : > { %v1121_v11 = vpop.permute.xlu0 %1120 }
 0x1f5   : > { %v1214_v12 = vsel %vm1182_vm9, %v1119_v19, %v1121_v11  ;;  %v1404_v19 = vshrl.u32 %v1403_v8, 7 }
 0x1f6   : > { %v1113_v50 = vpop.permute.xlu1 %1112  ;;  %1364 = vmatprep.subr.bf16.mxu1 %v1214_v12  ;;  %v1401_v12 = vld [vmem:[%s301_s26] sm:$0xf] }
 0x1f7   : > { %v1211_v20 = vsel %vm1182_vm9, %v1113_v50, %v1115_v21  ;;  %1365 = vmatpush1.bf16.msra.mxu1 %v1213_v26  ;;  %v1405_v11 = vsub.s32 0, %v1404_v19  ;;  %v1409_v50 = vsub.s32 1, %v1404_v19 }
 0x1f8   : > { %1322 = vmatpush1.bf16.msra.mxu0 %v1211_v20  ;;  %v1125_v27 = vpop.permute.xlu0 %1124 }
 0x1fa   : > { %v1127_v46 = vpop.permute.xlu1 %1126 }
 0x1fb   : > { %v1216_v14 = vsel %vm1182_vm9, %v1125_v27, %v1127_v46 }
 0x1fc   : > { %1323 = vmatprep.subr.bf16.mxu0 %v1216_v14  ;;  %v1129_v16 = vpop.permute.xlu0 %1128  ;;  %v1406_v14 = vrot.slane %v1401_v12, %v1405_v11 }
 0x1fd   : > { %v1217_v2 = vsel %vm1182_vm9, %v1127_v46, %v1129_v16 }
 0x1fe   : > { %v1131_v58 = vpop.permute.xlu1 %1130 }
 0x1ff   : > { %v1218_v18 = vsel %vm1182_vm9, %v1129_v16, %v1131_v58  ;;  %v1413_v58 = vsub.s32 2, %v1404_v19 }
 0x200   : > { %1366 = vmatprep.subr.bf16.mxu1 %v1218_v18  ;;  %v1123_v59 = vpop.permute.xlu0 %1122 }
 0x201   : > { %1367 = vmatpush1.bf16.msra.mxu1 %v1217_v2  ;;  %v1215_v31 = vsel %vm1182_vm9, %v1123_v59, %v1125_v27  ;;  %v1410_v2 = vrot.slane %v1401_v12, %v1409_v50 }
 0x202   : > { %v1135_v17 = vpop.permute.xlu1 %1134  ;;  %1324 = vmatpush1.bf16.msra.mxu0 %v1215_v31  ;;  %v1417_v31 = vsub.s32 3, %v1404_v19 }
 0x204   : > { %v1137_v48 = vpop.permute.xlu0 %1136 }
 0x205   : > { %v1220_v29 = vsel %vm1182_vm9, %v1135_v17, %v1137_v48 }
 0x206   : > { %v1139_v22 = vpop.permute.xlu1 %1138  ;;  %1325 = vmatprep.subr.bf16.mxu0 %v1220_v29 }
 0x207   : > { %v1221_v63 = vsel %vm1182_vm9, %v1137_v48, %v1139_v22 }
 0x208   : > { %v1141_v39 = vpop.permute.xlu0 %1140 }
 0x209   : > { %v1222_v13 = vsel %vm1182_vm9, %v1139_v22, %v1141_v39 }
 0x20a   : > { %v1133_v34 = vpop.permute.xlu1 %1132  ;;  %1368 = vmatprep.subr.bf16.mxu1 %v1222_v13 }
 0x20b   : > { %v1219_v41 = vsel %vm1182_vm9, %v1133_v34, %v1135_v17  ;;  %1369 = vmatpush1.bf16.msra.mxu1 %v1221_v63 }
 0x20c   : > { %1326 = vmatpush1.bf16.msra.mxu0 %v1219_v41  ;;  %v1145_v37 = vpop.permute.xlu0 %1144 }
 0x20e   : > { %v1147_v40 = vpop.permute.xlu1 %1146 }
 0x20f   : > { %v1224_v38 = vsel %vm1182_vm9, %v1145_v37, %v1147_v40 }
 0x210   : > { %1327 = vmatprep.subr.bf16.mxu0 %v1224_v38  ;;  %v1149_v10 = vpop.permute.xlu0 %1148 }
 0x211   : > { %v1225_v44 = vsel %vm1182_vm9, %v1147_v40, %v1149_v10  ;;  %v1414_v40 = vrot.slane %v1401_v12, %v1413_v58 }
 0x212   : > { %v1151_v45 = vpop.permute.xlu1 %1150 }
 0x213   : > { %v1226_v42 = vsel %vm1182_vm9, %v1149_v10, %v1151_v45 }
 0x214   : > { %1370 = vmatprep.subr.bf16.mxu1 %v1226_v42  ;;  %v1143_v35 = vpop.permute.xlu0 %1142  ;;  %v1418_v42 = vrot.slane %v1401_v12, %v1417_v31 }
 0x215   : > { %1371 = vmatpush1.bf16.msra.mxu1 %v1225_v44  ;;  %v1223_v61 = vsel %vm1182_vm9, %v1143_v35, %v1145_v37 }
 0x216   : > { %v1155_v47 = vpop.permute.xlu1 %1154  ;;  %1328 = vmatpush1.bf16.msra.mxu0 %v1223_v61 }
 0x218   : > { %v1157_v52 = vpop.permute.xlu0 %1156 }
 0x219   : > { %v1228_v4 = vsel %vm1182_vm9, %v1155_v47, %v1157_v52 }
 0x21a   : > { %v1159_v56 = vpop.permute.xlu1 %1158  ;;  %1329 = vmatprep.subr.bf16.mxu0 %v1228_v4 }
 0x21b   : > { %v1229_v6 = vsel %vm1182_vm9, %v1157_v52, %v1159_v56 }
 0x21c   : > { %v1161_v25 = vpop.permute.xlu0 %1160 }
 0x21d   : > { %v1230_v9 = vsel %vm1182_vm9, %v1159_v56, %v1161_v25 }
 0x21e   : > { %v1153_v51 = vpop.permute.xlu1 %1152  ;;  %1372 = vmatprep.subr.bf16.mxu1 %v1230_v9 }
 0x21f   : > { %v1227_v28 = vsel %vm1182_vm9, %v1153_v51, %v1155_v47  ;;  %1373 = vmatpush1.bf16.msra.mxu1 %v1229_v6 }
 0x220   : > { %1330 = vmatpush1.bf16.msra.mxu0 %v1227_v28  ;;  %v1165_v30 = vpop.permute.xlu0 %1164 }
 0x222   : > { %v1167_v53 = vpop.permute.xlu1 %1166 }
 0x223   : > { %v1232_v62 = vsel %vm1182_vm9, %v1165_v30, %v1167_v53 }
 0x224   : > { %1331 = vmatprep.subr.bf16.mxu0 %v1232_v62  ;;  %v1169_v36 = vpop.permute.xlu0 %1168 }
 0x225   : > { %v1233_v54 = vsel %vm1182_vm9, %v1167_v53, %v1169_v36 }
 0x226   : > { %v1171_v55 = vpop.permute.xlu1 %1170 }
 0x227   : > { %v1234_v57 = vsel %vm1182_vm9, %v1169_v36, %v1171_v55 }
 0x228   : > { %1374 = vmatprep.subr.bf16.mxu1 %v1234_v57  ;;  %v1163_v49 = vpop.permute.xlu0 %1162 }
 0x229   : > { %1375 = vmatpush1.bf16.msra.mxu1 %v1233_v54  ;;  %v1231_v32 = vsel %vm1182_vm9, %v1163_v49, %v1165_v30 }
 0x22a   : > { %v1173_v15 = vpop.permute.xlu1 %1172  ;;  %1332 = vmatpush1.bf16.msra.mxu0 %v1231_v32 }
 0x22c   : > { %v1175_v1 = vpop.permute.xlu0 %1174 }
 0x22d   : > { %v1235_v43 = vsel %vm1182_vm9, %v1173_v15, %v1175_v1 }
 0x22e   : > { %v1177_v0 = vpop.permute.xlu1 %1176  ;;  %v1296_v33 = vsel %vm575_vm1, %v1235_v43, 0 }
 0x22f   : > { %v1236_v23 = vsel %vm1182_vm9, %v1175_v1, %v1177_v0 }
 0x230   : > { %1596 = vmatprep.subr.msk.bf16.mxu0 %vm575_vm1, %v1236_v23  ;;  %v1179_v60 = vpop.permute.xlu0 %1178 }
 0x231   : > { %1334 = vmatpush1.bf16.msra.mxu0 %v1296_v33  ;;  %v1237_v7 = vsel %vm1182_vm9, %v1177_v0, %v1179_v60 }
 0x232   : > { %v1181_v24 = vpop.permute.xlu1 %1180  ;;  %v1302_v5 = vsel %vm575_vm1, %v1237_v7, 0 }
 0x233   : > { %v1238_v21 = vsel %vm1182_vm9, %v1179_v60, %v1181_v24 }
 0x234   : > { %1598 = vmatprep.subr.msk.bf16.mxu1 %vm575_vm1, %v1238_v21  ;;  %1340 = vmatmul.mubr.bf16.vlgmr.msra.gmra.mrb[0].mxu0 %v1675_v3 }
 0x235   : > { %1377 = vmatpush1.bf16.msra.mxu1 %v1302_v5 }
 0x238   : > { %1383 = vmatmul.mubr.bf16.vlgmr.msra.gmra.mrb[0].mxu1 %v1675_v3 }
 0x241   : > { %v989_v26 = vpop.permute.xlu0 %988 }
 0x243   : > { %v994_v27 = vpop.permute.xlu1 %993 }
 0x307   : > { %v1341_v20 = vpop.f32.mrb[0].mxu0 }
 0x308   : > { %v1343_v46 = vpop.f32.mrb[1].mxu0  ;;  %v1342_v16 = vadd.f32 %v1341_v20, %v989_v26 }
 0x309   : > { %v1345_v18 = vpop.f32.mrb[2].mxu0  ;;  %v1344_v59 = vadd.f32 %v1343_v46, %v989_v26 }
 0x30a   : > { %v1346_v17 = vadd.f32 %v1345_v18, %v994_v27  ;;  %v1347_v48 = vpop.f32.mrb[3].mxu0  ;;  %v1393_v29 = vmax.f32 %v1342_v16, 0.0 }
 0x30b   : > { %v1348_v22 = vadd.f32 %v1347_v48, %v994_v27  ;;  %v1384_v39 = vpop.f32.mrb[0].mxu1  ;;  %v1394_v13 = vmax.f32 %v1344_v59, 0.0 }
 0x30c   : > { %v1397_v34 = vmax.f32 %v1346_v17, 0.0  ;;  %v1385_v63 = vadd.f32 %v1384_v39, %v989_v26  ;;  %v1423_v41 = vmul.f32 %v1406_v14, %v1393_v29  ;;  %v1386_v37 = vpop.f32.mrb[1].mxu1 }
 0x30d   : > { %v1398_v38 = vmax.f32 %v1348_v22, 0.0  ;;  %v1424_v10 = vmul.f32 %v1410_v2, %v1394_v13  ;;  %v1387_v45 = vadd.f32 %v1386_v37, %v989_v26  ;;  %v1388_v44 = vpop.f32.mrb[2].mxu1 }
 0x30e   : > { %v1427_v35 = vmul.f32 %v1406_v14, %v1397_v34  ;;  %v1395_v61 = vmax.f32 %v1385_v63, 0.0  ;;  %v1389_v47 = vadd.f32 %v1388_v44, %v994_v27  ;;  %v1390_v52 = vpop.f32.mrb[3].mxu1 }
 0x30f   : > { %v1428_v4 = vmul.f32 %v1410_v2, %v1398_v38  ;;  %v1613_v56 = vpack.c.bf16 %v1424_v10, %v1423_v41  ;;  %v1396_v25 = vmax.f32 %v1387_v45, 0.0  ;;  %v1391_v9 = vadd.f32 %v1390_v52, %v994_v27 }
 0x310   : > { %v1425_v51 = vmul.f32 %v1414_v40, %v1395_v61  ;;  %v1399_v6 = vmax.f32 %v1389_v47, 0.0 }
 0x311   : > { %v1615_v28 = vpack.c.bf16 %v1428_v4, %v1427_v35  ;;  %1455 = vst [vmem:[%s297_s21] sm:$0xff] %v1613_v56  ;;  %v1426_v30 = vmul.f32 %v1418_v42, %v1396_v25  ;;  %v1400_v53 = vmax.f32 %v1391_v9, 0.0  ;;  %1465 = sbr.rel (!%p1787_p4) target bundleno = 800 (0x320), region = 48 }
 0x312   : > { %v1429_v62 = vmul.f32 %v1414_v40, %v1399_v6 }
 0x313   : > { %1457 = vst [vmem:[%s297_s21 + $0x10] sm:$0xff] %v1615_v28  ;;  %v1614_v36 = vpack.c.bf16 %v1426_v30, %v1425_v51  ;;  %v1430_v55 = vmul.f32 %v1418_v42, %v1400_v53 }
 0x315   : > { %1456 = vst [vmem:[%s297_s21 + $0x8] sm:$0xff] %v1614_v36  ;;  %v1616_v57 = vpack.c.bf16 %v1430_v55, %v1429_v62 }
 0x317   : > { %1458 = vst [vmem:[%s297_s21 + $0x18] sm:$0xff] %v1616_v57 }
 0x318   : > { %v1481_v54 = vld [vmem:[%s297_s21] sm:$0xff] }
 0x319   : > { %1482 = vst [vmem:[%s1468_s10] sm:$0xff] %v1481_v54 }
 0x31a   : > { %v1485_v32 = vld [vmem:[%s297_s21 + $0x10] sm:$0xff] }
 0x31b   : > { %1486 = vst [vmem:[%s1468_s10 + $0x40] sm:$0xff] %v1485_v32 }
 0x31c   : > { %v1483_v49 = vld [vmem:[%s297_s21 + $0x8] sm:$0xff] }
 0x31d   : > { %1484 = vst [vmem:[%s1468_s10 + $0x8] sm:$0xff] %v1483_v49 }
 0x31e   : > { %v1487_v15 = vld [vmem:[%s297_s21 + $0x18] sm:$0xff] }
 0x31f   : > { %1488 = vst [vmem:[%s1468_s10 + $0x48] sm:$0xff] %v1487_v15 }
 0x320 PF: > { %p13_p11 = scmp.ge.s32.totalorder %s1777_s25, 6   ;;  %s2802_s21 = smov %s1696_s22 }
 0x321   : > { %s2803_s22 = smov %s1785_s28  ;;  %s2804_s23 = smov %s1777_s25 }
 0x322   :  { %15 = sbr.rel (!%p13_p11) target bundleno = 2 (0x2), region = 106 }

// kernel: autoencoder_forward.5
= control target key start
LH: loop header
LB: loop body
LE: loop exit
PB: predicated region body
PF: predicated region fallthrough
CT: control target
= control target key end

     0   :  { %s1758_s21 = smov 0   ;;  %s2649_s0 = inlined_call_operand.vmem [shape: bf16[4,27], index: 0, kind: input, shape index: {}]   ;;  %s2650_s1 = inlined_call_operand.vmem [shape: f32[4,1], index: 1, kind: input, shape index: {}]   ;;  %s2651_s2 = inlined_call_operand.vmem [shape: f32[1,2048], index: 2, kind: input, shape index: {}]   ;;  %s2652_s3 = inlined_call_operand.vmem [shape: bf16[1,3072], index: 3, kind: input, shape index: {}, may-alias: {3,4,5}]   ;;  %s2653_s4 = inlined_call_operand.vmem [shape: bf16[1,3072], index: 4, kind: input, shape index: {}, may-alias: {3,4,5}]   ;;  %s2654_s5 = inlined_call_operand.vmem [shape: bf16[1,3072], index: 5, kind: input, shape index: {}, may-alias: {3,4,5}]   ;;  %s2655_s6 = inlined_call_operand.vmem [shape: bf16[4,2048], index: 6, kind: output, shape index: {}]  }
   0x1 LB: > { %s1505_s22 = sadd.s32 4294967295, %s1693_s21   ;;  %p1509_p0 = scmp.ge.s32.totalorder %s1693_s21, 1  ;;  %s1693_s21 = sphi %s1758_s21, %s16_s21  }
   0x2   : > { %p250_p1 = scmp.lt.s32.totalorder %s1693_s21, 5 }
   0x4   : > { %p251_p2 = pnand %p1509_p0, %p250_p1 }
   0x5   : > { %s1766_s23 = sshll.u32 (!%p251_p2), %s1505_s22, 2  ;;  %v339_v0 = vlaneseq (!%p251_p2)  ;;  %v1695_v1 = vmov (!%p251_p2), 1966171168   ;;  %s1696_s12 = smov (!%p251_p2), 49   ;;  %vm415_vm0 = vcmask (!%p251_p2), 1039360   ;;  %vm2656_vm1 = vcmask (!%p251_p2), 1040384  }
   0x6   : > { %254 = sbr.rel (%p251_p2) target bundleno = 685 (0x2ad), region = 44  ;;  %s1526_s24 = sadd.s32 (!%p251_p2), 4, %s1766_s23  ;;  %v337_v2 = vunpack.c.l.s4 (!%p251_p2), %v1695_v1  ;;  %vm740_vm2 = vsmask.f32 (!%p251_p2), 256  ;;  %vm966_vm4 = vcmask (!%p251_p2), 400384   ;;  %vm768_vm5 = vcmask (!%p251_p2), 1041408  }
   0x7   : > { %s1528_s25 = sadd.s32 (!%p251_p2), 8, %s1766_s23  ;;  %p305_p3 = scmp.lt.s32.totalorder (!%p251_p2), %s1526_s24, 23  ;;  %v1770_v3 = vshrl.u32 (!%p251_p2), %v339_v0, 7  ;;  %vm2017_vm3 = vmand (!%p251_p2), %vm2656_vm1, %vm740_vm2  ;;  %vm769_vm6 = vsmask.f32 (!%p251_p2), 1280  ;;  %vm982_vm7 = vcmask (!%p251_p2), 392192  }
   0x8   : > { %p312_p4 = scmp.lt.s32.totalorder (!%p251_p2), %s1528_s25, 23  ;;  %v338_v4 = vunpack.c.0.s8 (!%p251_p2), %v337_v2  ;;  %p299_p5 = scmp.lt.s32.totalorder (!%p251_p2), %s1766_s23, 23  ;;  %vm1003_vm8 = vcmask (!%p251_p2), 384000   ;;  %vm797_vm9 = vcmask (!%p251_p2), 1042432   ;;  %vm798_vm10 = vsmask.f32 (!%p251_p2), 2304 }
   0x9   : > { %s1697_s13 = smov (!%p251_p2), 127   ;;  %s1698_s14 = smov (!%p251_p2), 48   ;;  %vm1019_vm11 = vcmask (!%p251_p2), 318464   ;;  %vm1040_vm12 = vcmask (!%p251_p2), 310272   ;;  %vm826_vm13 = vcmask (!%p251_p2), 1043456   ;;  %vm1056_vm15 = vcmask (!%p251_p2), 302080  }
   0xa   : > { %v341_v5 = vsub.s32 (!%p251_p2), %v338_v4, %v1770_v3  ;;  %s1699_s15 = smov (!%p251_p2), 47   ;;  %s1700_s16 = smov (!%p251_p2), 39   ;;  %vm827_vm14 = vsmask.f32 (!%p251_p2), 3328  ;;  %vm1077_vm2 = vcmask (!%p251_p2), 236544  }
   0xb   : > { %s1701_s17 = smov (!%p251_p2), 38   ;;  %s1702_s18 = smov (!%p251_p2), 37  }
   0xc   : > { %s1703_s19 = smov (!%p251_p2), 29   ;;  %s1704_s20 = smov (!%p251_p2), 28  }
   0xd   : > { %s2679_s24 = smov (!%p305_p3, %s1526_s24), 23  ;;  %s2681_s25 = smov (!%p312_p4, %s1528_s25), 23 }
   0xe   : > { %s307_s28 = scalar_lea.vmem %s2653_s4, %s2679_s24  ;;  %s314_s7 = scalar_lea.vmem %s2654_s5, %s2681_s25 }
   0xf   : > { %v1517_v6 = vld.sshfl [vmem:[%s307_s28] sm:$0x33 pattern:$0x75316420]  ;;  %s300_s8 = scalar_select %p299_p5, %s1766_s23, 23 }
  0x10   : > { %v1780_v7 = vrot.slane %v1517_v6, %v341_v5  ;;  %v353_v8 = vcombine.high %v1517_v6, %v1517_v6  ;;  %v1518_v9 = vld.sshfl [vmem:[%s314_s7] sm:$0x33 pattern:$0x75316420]  ;;  %s1705_s22 = smov 27   ;;  %s1706_s24 = smov 126  }
  0x11   : > { %v1783_v10 = vrot.slane %v1518_v9, %v341_v5  ;;  %s301_s11 = scalar_lea.vmem %s2652_s3, %s300_s8  ;;  %s1707_s25 = smov 118  }
  0x12   : > { %v426_v11 = vrot.slane %v1780_v7, 7  ;;  %v1786_v12 = vrot.slane %v353_v8, %v341_v5  ;;  %v1789_v13 = vshll.u32 %v1780_v7, 16  ;;  %v1516_v14 = vld.sshfl [vmem:[%s301_s11] sm:$0x33 pattern:$0x75316420]  ;;  %v1803_v17 = vcombine.high %v1780_v7, %v1780_v7 }
  0x13   : > { %v955_v15 = vrot.slane %v1783_v10, 7  ;;  %v335_v19 = vcombine.high %v1516_v14, %v1516_v14  ;;  %v1823_v27 = vshll.u32 %v1783_v10, 16  ;;  %v471_v37 = vrot.slane %v1780_v7, 6  ;;  %s1708_s26 = smov 117   ;;  %s1709_s27 = smov 116  }
  0x14   : > { %956 = vrot.lane.b32.xlu1 %v426_v11, %s1696_s12  ;;  %v1799_v16 = vshll.u32 %v1786_v12, 16  ;;  %v1807_v18 = vcombine.high %v1786_v12, %v1786_v12  ;;  %v428_v22 = vrot.slane %v1803_v17, 7  ;;  %v427_v23 = vrot.slane %v1786_v12, 7  ;;  %s1710_s28 = smov 108   ;;  %s1711_s29 = smov 107  }
  0x15   : > { %v342_v21 = vrot.slane %v335_v19, %v341_v5  ;;  %v1815_v24 = vshll.u32 %v1803_v17, 16  ;;  %v446_v33 = vrot.slane %v1789_v13, 7  ;;  %v491_v40 = vrot.slane %v1789_v13, 6  ;;  %s1712_s30 = smov 106   ;;  %s1713_s7 = smov 26  }
  0x16   : > { %v1565_v20 = vpack.i.bf16 %v1799_v16, %v1789_v13  ;;  %v1818_v25 = vshll.u32 %v1807_v18, 16  ;;  %v447_v34 = vrot.slane %v1799_v16, 7  ;;  %v429_v35 = vrot.slane %v1807_v18, 7  ;;  %s1714_s8 = smov 18   ;;  %s1715_s9 = smov 17  }
  0x17   : > { %v1820_v26 = vcombine.high %v342_v21, %v342_v21  ;;  %v448_v30 = vrot.slane %v1815_v24, 7  ;;  %v493_v39 = vrot.slane %v1815_v24, 6  ;;  %v492_v41 = vrot.slane %v1799_v16, 6  ;;  %s1716_s10 = smov 16   ;;  %s1717_s11 = smov 8  }
  0x18   : > { %964 = vrot.lane.b32.xlu1 %v955_v15, %s1696_s12  ;;  %1566 = vrot.lane.b32.xlu0 %v1565_v20, %s1697_s13  ;;  %v1575_v29 = vpack.i.bf16 %v1818_v25, %v1815_v24  ;;  %v449_v31 = vrot.slane %v1818_v25, 7  ;;  %v1846_v38 = vpack.i.bf16 %v447_v34, %v446_v33  ;;  %v494_v42 = vrot.slane %v1818_v25, 6  ;;  %p294_p6 = scmp.lt.s32.totalorder %s1766_s23, 15 }
  0x19   : > { %v1826_v28 = vshll.u32 %v1820_v26, 16  ;;  %v536_v43 = vrot.slane %v1789_v13, 5  ;;  %v537_v44 = vrot.slane %v1799_v16, 5  ;;  %v538_v45 = vrot.slane %v1815_v24, 5 }
  0x1a   : > { %v1843_v36 = vpack.i.bf16 %v449_v31, %v448_v30  ;;  %v539_v46 = vrot.slane %v1818_v25, 5  ;;  %v1860_v47 = vpack.i.bf16 %v492_v41, %v491_v40  ;;  %v1862_v48 = vpack.i.bf16 %v494_v42, %v493_v39  ;;  %s2683_s23 = smov (!%p294_p6, %s1766_s23), 15 }
  0x1b   : > { %v1570_v32 = vpack.i.bf16 %v1826_v28, %v1823_v27  ;;  %v1864_v49 = vpack.i.bf16 %v537_v44, %v536_v43  ;;  %v628_v51 = vrot.slane %v1815_v24, 3  ;;  %v629_v52 = vrot.slane %v1818_v25, 3 }
  0x1c   : > { %960 = vrot.lane.b32.xlu1 %v428_v22, %s1696_s12  ;;  %958 = vrot.lane.b32.xlu0 %v427_v23, %s1696_s12  ;;  %v1866_v50 = vpack.i.bf16 %v539_v46, %v538_v45  ;;  %v971_v53 = vrot.slane %v1823_v27, 7  ;;  %v473_v54 = vrot.slane %v1803_v17, 6  ;;  %v626_v55 = vrot.slane %v1789_v13, 3 }
  0x1d   : > { %v627_v56 = vrot.slane %v1799_v16, 3  ;;  %v1877_v57 = vpack.i.bf16 %v629_v52, %v628_v51  ;;  %v472_v59 = vrot.slane %v1786_v12, 6  ;;  %v992_v60 = vrot.slane %v1783_v10, 6 }
  0x1e   : > { %v672_v61 = vrot.slane %v1815_v24, 2  ;;  %v673_v62 = vrot.slane %v1818_v25, 2  ;;  %v474_v63 = vrot.slane %v1807_v18, 6  ;;  %v670_v1 = vrot.slane %v1789_v13, 2 }
  0x1f   : > { %v1879_v58 = vpack.i.bf16 %v627_v56, %v626_v55  ;;  %v671_v2 = vrot.slane %v1799_v16, 2  ;;  %v516_v4 = vrot.slane %v1780_v7, 5  ;;  %v1008_v6 = vrot.slane %v1823_v27, 6 }
  0x20   : > { %1576 = vrot.lane.b32.xlu0 %v1575_v29, %s1697_s13  ;;  %1571 = vrot.lane.b32.xlu1 %v1570_v32, %s1697_s13  ;;  %v1890_v0 = vpack.i.bf16 %v673_v62, %v672_v61  ;;  %v518_v8 = vrot.slane %v1803_v17, 5  ;;  %v711_v9 = vrot.slane %v1789_v13, 1  ;;  %v712_v14 = vrot.slane %v1799_v16, 1  ;;  %s1719_s13 = smov 111  }
  0x21   : > { %v1898_v5 = vpack.i.bf16 %v671_v2, %v670_v1  ;;  %v517_v15 = vrot.slane %v1786_v12, 5  ;;  %v1029_v19 = vrot.slane %v1783_v10, 5  ;;  %v519_v21 = vrot.slane %v1807_v18, 5 }
  0x22   : > { %v1911_v20 = vpack.i.bf16 %v712_v14, %v711_v9  ;;  %v713_v29 = vrot.slane %v1815_v24, 1  ;;  %v714_v30 = vrot.slane %v1818_v25, 1  ;;  %v561_v31 = vrot.slane %v1780_v7, 4 }
  0x23   : > { %v1045_v33 = vrot.slane %v1823_v27, 5  ;;  %v562_v34 = vrot.slane %v1786_v12, 4  ;;  %v1066_v39 = vrot.slane %v1783_v10, 4  ;;  %v583_v40 = vrot.slane %v1815_v24, 4 }
  0x24   : > { %962 = vrot.lane.b32.xlu0 %v429_v35, %s1696_s12  ;;  %1586 = vrot.lane.b32.xlu1 %v1843_v36, %s1698_s14  ;;  %v1922_v32 = vpack.i.bf16 %v714_v30, %v713_v29  ;;  %v584_v41 = vrot.slane %v1818_v25, 4  ;;  %v581_v43 = vrot.slane %v1789_v13, 4  ;;  %v582_v44 = vrot.slane %v1799_v16, 4  ;;  %s1718_s12 = smov 7  }
  0x25   : > { %v606_v46 = vrot.slane %v1780_v7, 3  ;;  %v580_v24 = vrot.slane %v1826_v28, 4  ;;  %v1082_v25 = vrot.slane %v1823_v27, 4  ;;  %v608_v51 = vrot.slane %v1803_v17, 3 }
  0x26   : > { %v1615_v42 = vpack.i.bf16 %v584_v41, %v583_v40  ;;  %v1610_v45 = vpack.i.bf16 %v582_v44, %v581_v43  ;;  %v1088_v16 = vrot.slane %v1783_v10, 3  ;;  %v607_v52 = vrot.slane %v1786_v12, 3 }
  0x27   : > { %v1620_v13 = vpack.i.bf16 %v580_v24, %v1082_v25  ;;  %v425_v55 = vrot.slane %v1820_v26, 7  ;;  %v445_v56 = vrot.slane %v1826_v28, 7  ;;  %v605_v2 = vrot.slane %v1820_v26, 3 }
  0x28   : > { %1581 = vrot.lane.b32.xlu0 %v1846_v38, %s1698_s14  ;;  %993 = vrot.lane.b32.xlu1 %v471_v37, %s1699_s15  ;;  %v625_v30 = vrot.slane %v1826_v28, 3  ;;  %v692_v43 = vrot.slane %v1786_v12, 1  ;;  %v694_v24 = vrot.slane %v1807_v18, 1 }
  0x2c   : > { %980 = vrot.lane.b32.xlu0 %v971_v53, %s1698_s14  ;;  %997 = vrot.lane.b32.xlu1 %v473_v54, %s1699_s15  ;;  %v609_v53 = vrot.slane %v1807_v18, 3 }
  0x30   : > { %995 = vrot.lane.b32.xlu0 %v472_v59, %s1699_s15  ;;  %1001 = vrot.lane.b32.xlu1 %v992_v60, %s1699_s15 }
  0x34   : > { %999 = vrot.lane.b32.xlu0 %v474_v63, %s1699_s15  ;;  %1596 = vrot.lane.b32.xlu1 %v1862_v48, %s1700_s16 }
  0x38   : > { %1591 = vrot.lane.b32.xlu0 %v1860_v47, %s1700_s16  ;;  %1030 = vrot.lane.b32.xlu1 %v516_v4, %s1701_s17 }
  0x3c   : > { %1017 = vrot.lane.b32.xlu0 %v1008_v6, %s1700_s16  ;;  %1034 = vrot.lane.b32.xlu1 %v518_v8, %s1701_s17 }
  0x40   : > { %1032 = vrot.lane.b32.xlu0 %v517_v15, %s1701_s17  ;;  %1038 = vrot.lane.b32.xlu1 %v1029_v19, %s1701_s17  ;;  %v651_v19 = vrot.slane %v1780_v7, 2 }
  0x44   : > { %1036 = vrot.lane.b32.xlu0 %v519_v21, %s1701_s17  ;;  %1606 = vrot.lane.b32.xlu1 %v1866_v50, %s1702_s18 }
  0x48   : > { %1601 = vrot.lane.b32.xlu0 %v1864_v49, %s1702_s18  ;;  %1067 = vrot.lane.b32.xlu1 %v561_v31, %s1703_s19 }
  0x4c   : > { %1054 = vrot.lane.b32.xlu0 %v1045_v33, %s1702_s18  ;;  %1071 = vrot.lane.b32.xlu1 %v1803_v17, %s1703_s19 }
  0x50   : > { %1069 = vrot.lane.b32.xlu0 %v562_v34, %s1703_s19  ;;  %1075 = vrot.lane.b32.xlu1 %v1066_v39, %s1703_s19  ;;  %v650_v39 = vrot.slane %v1820_v26, 2 }
  0x54   : > { %1073 = vrot.lane.b32.xlu0 %v1807_v18, %s1703_s19  ;;  %1616 = vrot.lane.b32.xlu1 %v1615_v42, %s1704_s20 }
  0x58   : > { %1611 = vrot.lane.b32.xlu0 %v1610_v45, %s1704_s20  ;;  %612 = vrot.lane.b32.xlu1 %v606_v46, %s1705_s22  ;;  %v691_v46 = vrot.slane %v1780_v7, 1 }
  0x5c   : > { %616 = vrot.lane.b32.xlu1 %v608_v51, %s1705_s22  ;;  %1621 = vrot.lane.b32.xlu0 %v1620_v13, %s1704_s20  ;;  %s296_s20 = scalar_lea.vmem %s2651_s2, %s2683_s23 }
  0x60   : > { %1089 = vrot.lane.b32.xlu1 %v1088_v16, %s1705_s22  ;;  %614 = vrot.lane.b32.xlu0 %v607_v52, %s1705_s22 }
  0x64   : > { %434 = vrot.lane.b32.xlu1 %v427_v23, %s1706_s24  ;;  %618 = vrot.lane.b32.xlu0 %v609_v53, %s1705_s22 }
  0x68   : > { %438 = vrot.lane.b32.xlu1 %v429_v35, %s1706_s24  ;;  %432 = vrot.lane.b32.xlu0 %v426_v11, %s1706_s24  ;;  %v470_v11 = vrot.slane %v1820_v26, 6 }
  0x6c   : > { %1626 = vrot.lane.b32.xlu1 %v1846_v38, %s1707_s25  ;;  %436 = vrot.lane.b32.xlu0 %v428_v22, %s1706_s24  ;;  %v490_v22 = vrot.slane %v1826_v28, 6  ;;  %v535_v38 = vrot.slane %v1826_v28, 5  ;;  %v654_v28 = vrot.slane %v1807_v18, 2 }
  0x70   : > { %430 = vrot.lane.b32.xlu0 %v425_v55, %s1706_s24  ;;  %450 = vrot.lane.b32.xlu1 %v445_v56, %s1707_s25 }
  0x74   : > { %1631 = vrot.lane.b32.xlu0 %v1843_v36, %s1707_s25  ;;  %479 = vrot.lane.b32.xlu1 %v472_v59, %s1708_s26 }
  0x78   : > { %477 = vrot.lane.b32.xlu0 %v471_v37, %s1708_s26  ;;  %483 = vrot.lane.b32.xlu1 %v474_v63, %s1708_s26  ;;  %v515_v37 = vrot.slane %v1820_v26, 5 }
  0x7c   : > { %481 = vrot.lane.b32.xlu0 %v473_v54, %s1708_s26  ;;  %1636 = vrot.lane.b32.xlu1 %v1860_v47, %s1709_s27 }
  0x80   : > { %475 = vrot.lane.b32.xlu0 %v470_v11, %s1708_s26  ;;  %495 = vrot.lane.b32.xlu1 %v490_v22, %s1709_s27 }
  0x84   : > { %1641 = vrot.lane.b32.xlu0 %v1862_v48, %s1709_s27  ;;  %524 = vrot.lane.b32.xlu1 %v517_v15, %s1710_s28 }
  0x86   : > { %v1976_v23 = vpop.permute.xlu1 %956 }
  0x88   : > { %522 = vrot.lane.b32.xlu0 %v516_v4, %s1710_s28  ;;  %528 = vrot.lane.b32.xlu1 %v519_v21, %s1710_s28 }
  0x8a   : > { %v1982_v35 = vpop.permute.xlu1 %964  ;;  %v1984_v36 = vpop.permute.xlu0 %1566 }
  0x8b   : > { %v1568_v60 = vunpack.i.l.bf16 %v1984_v36  ;;  %v1569_v25 = vunpack.i.h.bf16 %v1984_v36  ;;  %v695_v36 = vrot.slane %v1783_v10, 1 }
  0x8c   : > { %526 = vrot.lane.b32.xlu0 %v518_v8, %s1710_s28  ;;  %1646 = vrot.lane.b32.xlu1 %v1864_v49, %s1711_s29 }
  0x8d   : > { %v417_v16 = vsel %vm415_vm0, %v1568_v60, %v1569_v25 }
  0x8e   : > { %v1991_v47 = vpop.permute.xlu1 %960  ;;  %v1993_v48 = vpop.permute.xlu0 %958  ;;  %v2100_v11 = vsel %vm2017_vm3, %v1780_v7, %v417_v16 }
  0x8f   : > { %v967_v22 = vsel %vm966_vm4, %v1976_v23, %v1993_v48 }
  0x90   : > { %520 = vrot.lane.b32.xlu0 %v515_v37, %s1710_s28  ;;  %540 = vrot.lane.b32.xlu1 %v535_v38, %s1711_s29  ;;  %v718_v37 = vrot.slane %v1823_v27, 1 }
  0x92   : > { %v1995_v54 = vpop.permute.xlu0 %1576  ;;  %v1997_v59 = vpop.permute.xlu1 %1571 }
  0x93   : > { %v1574_v61 = vunpack.i.h.bf16 %v1997_v59  ;;  %v2005_v49 = vunpack.i.h.bf16 %v1995_v54  ;;  %v1578_v13 = vunpack.i.l.bf16 %v1995_v54  ;;  %v1573_v52 = vunpack.i.l.bf16 %v1997_v59 }
  0x94   : > { %1651 = vrot.lane.b32.xlu0 %v1866_v50, %s1711_s29  ;;  %569 = vrot.lane.b32.xlu1 %v562_v34, %s1712_s30 }
  0x95   : > { %v2010_v62 = vsel %vm415_vm0, %v1574_v61, %v1568_v60  ;;  %v746_v4 = vsel %vm2017_vm3, %v1807_v18, %v2005_v49  ;;  %v419_v56 = vsel %vm415_vm0, %v1578_v13, %v2005_v49  ;;  %v418_v38 = vsel %vm415_vm0, %v1569_v25, %v1578_v13 }
  0x96   : > { %v2012_v63 = vpop.permute.xlu0 %962  ;;  %v2014_v1 = vpop.permute.xlu1 %1586  ;;  %v742_v6 = vsel %vm2017_vm3, %v1820_v26, %v2010_v62  ;;  %v952_v7 = vsel %vm415_vm0, %v2005_v49, %v1573_v52  ;;  %v2118_v23 = vsel %vm2017_vm3, %v1803_v17, %v419_v56  ;;  %vm2155_vm0 = vmand %vm768_vm5, %vm769_vm6  ;;  %vm595_vm6 = vcmask 228352  }
  0x97   : > { %v1589_v54 = vunpack.i.h.bf16 %v2014_v1  ;;  %v1588_v59 = vunpack.i.l.bf16 %v2014_v1  ;;  %v968_v1 = vsel %vm966_vm4, %v1993_v48, %v1991_v47  ;;  %v2148_v48 = vsel %vm2017_vm3, %v1786_v12, %v418_v38 }
  0x98   : > { %567 = vrot.lane.b32.xlu0 %v561_v31, %s1712_s30  ;;  %573 = vrot.lane.b32.xlu1 %v1807_v18, %s1712_s30  ;;  %v653_v31 = vrot.slane %v1803_v17, 2 }
  0x9a   : > { %v2033_v8 = vpop.permute.xlu0 %1581  ;;  %v2035_v9 = vpop.permute.xlu1 %993 }
  0x9b   : > { %v1584_v27 = vunpack.i.h.bf16 %v2033_v8  ;;  %v1583_v60 = vunpack.i.l.bf16 %v2033_v8  ;;  %v1093_v8 = vsel %vm2017_vm3, %v1783_v10, %v1573_v52  ;;  %v985_v10 = vsel %vm982_vm7, %v1588_v59, %v1589_v54 }
  0x9c   : > { %571 = vrot.lane.b32.xlu0 %v1803_v17, %s1712_s30  ;;  %610 = vrot.lane.b32.xlu1 %v605_v2, %s1705_s22  ;;  %v1109_v25 = vsel %vm2656_vm1, %v1093_v8, %v1982_v35  ;;  %s1515_s22 = sshll.u32 %s2683_s23, 1 }
  0x9d   : > { %s321_s26 = scalar_lea.vmem %s2655_s6, %s1515_s22 }
  0x9e   : > { %v2039_v14 = vpop.permute.xlu0 %980  ;;  %v2041_v15 = vpop.permute.xlu1 %997 }
  0xa0   : > { %565 = vrot.lane.b32.xlu0 %v1820_v26, %s1712_s30  ;;  %1661 = vrot.lane.b32.xlu1 %v1877_v57, %s1713_s7  ;;  %v652_v57 = vrot.slane %v1786_v12, 2 }
  0xa2   : > { %v2046_v21 = vpop.permute.xlu0 %995  ;;  %v2048_v29 = vpop.permute.xlu1 %1001 }
  0xa4   : > { %1656 = vrot.lane.b32.xlu0 %v1879_v58, %s1713_s7  ;;  %657 = vrot.lane.b32.xlu1 %v651_v19, %s1714_s8  ;;  %v1092_v19 = vsel %vm2017_vm3, %v1807_v18, %v952_v7  ;;  %vm485_vm3 = vcmask 957440  }
  0xa6   : > { %v2053_v33 = vpop.permute.xlu0 %999  ;;  %v2055_v34 = vpop.permute.xlu1 %1596 }
  0xa7   : > { %v1598_v12 = vunpack.i.l.bf16 %v2055_v34  ;;  %v1006_v13 = vsel %vm1003_vm8, %v2041_v15, %v2053_v33 }
  0xa8   : > { %630 = vrot.lane.b32.xlu0 %v625_v30, %s1713_s7  ;;  %661 = vrot.lane.b32.xlu1 %v653_v31, %s1714_s8  ;;  %v983_v31 = vsel %vm982_vm7, %v1583_v60, %v1584_v27 }
  0xaa   : > { %v2059_v40 = vpop.permute.xlu0 %1591  ;;  %v2061_v41 = vpop.permute.xlu1 %1030 }
  0xab   : > { %v1594_v16 = vunpack.i.h.bf16 %v2059_v40  ;;  %v1593_v52 = vunpack.i.l.bf16 %v2059_v40 }
  0xac   : > { %659 = vrot.lane.b32.xlu0 %v652_v57, %s1714_s8  ;;  %655 = vrot.lane.b32.xlu1 %v650_v39, %s1714_s8  ;;  %v984_v57 = vsel %vm982_vm7, %v1584_v27, %v1588_v59  ;;  %v1599_v39 = vunpack.i.h.bf16 %v2055_v34  ;;  %v1004_v34 = vsel %vm1003_vm8, %v2035_v9, %v2046_v21  ;;  %v1007_v27 = vsel %vm1003_vm8, %v2053_v33, %v2048_v29 }
  0xad   : > { %v1020_v60 = vsel %vm1019_vm11, %v1593_v52, %v1594_v16 }
  0xae   : > { %v2064_v58 = vpop.permute.xlu0 %1017  ;;  %v2066_v42 = vpop.permute.xlu1 %1034 }
  0xb0   : > { %663 = vrot.lane.b32.xlu0 %v654_v28, %s1714_s8  ;;  %1671 = vrot.lane.b32.xlu1 %v1890_v0, %s1715_s9 }
  0xb2   : > { %v2070_v44 = vpop.permute.xlu0 %1032  ;;  %v2072_v45 = vpop.permute.xlu1 %1038 }
  0xb4   : > { %1666 = vrot.lane.b32.xlu0 %v1898_v5, %s1715_s9  ;;  %698 = vrot.lane.b32.xlu1 %v692_v43, %s1716_s10  ;;  %v693_v5 = vrot.slane %v1803_v17, 1  ;;  %v970_v17 = vsel %vm966_vm4, %v2012_v63, %v1982_v35  ;;  %v1005_v35 = vsel %vm1003_vm8, %v2046_v21, %v2041_v15  ;;  %v1022_v21 = vsel %vm1019_vm11, %v1598_v12, %v1599_v39  ;;  %vm2247_vm8 = vmand %vm826_vm13, %vm827_vm14 }
  0xb5   : > { %vm2667_vm14 = vcmask 1040384  }
  0xb6   : > { %v2079_v51 = vpop.permute.xlu0 %1036  ;;  %v2081_v0 = vpop.permute.xlu1 %1606 }
  0xb7   : > { %v1608_v59 = vunpack.i.l.bf16 %v2081_v0  ;;  %v1044_v33 = vsel %vm1040_vm12, %v2079_v51, %v2072_v45 }
  0xb8   : > { %696 = vrot.lane.b32.xlu0 %v691_v46, %s1716_s10  ;;  %702 = vrot.lane.b32.xlu1 %v694_v24, %s1716_s10  ;;  %v1105_v46 = vsel %vm2656_vm1, %v1092_v19, %v970_v17  ;;  %v986_v24 = vsel %vm982_vm7, %v1589_v54, %v2039_v14  ;;  %vm855_vm7 = vcmask 1044480   ;;  %v1023_v17 = vsel %vm1019_vm11, %v1599_v39, %v2064_v58 }
  0xb9   : > { %v1114_v40 = vsel %vm2155_vm0, %v1105_v46, %v986_v24  ;;  %v1041_v19 = vsel %vm1040_vm12, %v2061_v41, %v2070_v44 }
  0xba   : > { %v2091_v53 = vpop.permute.xlu0 %1601  ;;  %v2093_v55 = vpop.permute.xlu1 %1067  ;;  %v1130_v41 = vsel %vm768_vm5, %v1114_v40, %v1007_v27 }
  0xbc   : > { %700 = vrot.lane.b32.xlu0 %v693_v5, %s1716_s10  ;;  %1676 = vrot.lane.b32.xlu1 %v1911_v20, %s1717_s11  ;;  %v969_v20 = vsel %vm966_vm4, %v1991_v47, %v2012_v63  ;;  %v1095_v47 = vsel %vm2656_vm1, %v2100_v11, %v967_v22  ;;  %v1098_v5 = vsel %vm2656_vm1, %v2148_v48, %v968_v1  ;;  %vm2201_vm4 = vmand %vm797_vm9, %vm798_vm10  ;;  %vm856_vm10 = vsmask.f32 4352 }
  0xbd   : > { %v1101_v63 = vsel %vm2656_vm1, %v2118_v23, %v969_v20  ;;  %v1111_v56 = vsel %vm2155_vm0, %v1095_v47, %v983_v31  ;;  %v1112_v9 = vsel %vm2155_vm0, %v1098_v5, %v984_v57  ;;  %v1043_v1 = vsel %vm1040_vm12, %v2066_v42, %v2079_v51 }
  0xbe   : > { %v2125_v61 = vpop.permute.xlu0 %1054  ;;  %v2127_v2 = vpop.permute.xlu1 %1071  ;;  %v1113_v22 = vsel %vm2155_vm0, %v1101_v63, %v985_v10  ;;  %v1118_v7 = vsel %vm768_vm5, %v1111_v56, %v1004_v34  ;;  %v1122_v20 = vsel %vm768_vm5, %v1112_v9, %v1005_v35  ;;  %vm620_vm1 = vcmask 220160  }
  0xbf   : > { %v1604_v47 = vunpack.i.h.bf16 %v2091_v53  ;;  %v1603_v63 = vunpack.i.l.bf16 %v2091_v53  ;;  %v1136_v57 = vsel %vm2201_vm4, %v1118_v7, %v1020_v60  ;;  %v1139_v51 = vsel %vm2201_vm4, %v1130_v41, %v1023_v17 }
  0xc0   : > { %704 = vrot.lane.b32.xlu0 %v695_v36, %s1716_s10  ;;  %727 = vrot.lane.b32.xlu1 %v718_v37, %s1717_s11  ;;  %v1126_v36 = vsel %vm768_vm5, %v1113_v22, %v1006_v13  ;;  %v1155_v34 = vsel %vm797_vm9, %v1139_v51, %v1044_v33 }
  0xc1   : > { %v1138_v8 = vsel %vm2201_vm4, %v1126_v36, %v1022_v21  ;;  %v1057_v5 = vsel %vm1056_vm15, %v1603_v63, %v1604_v47 }
  0xc2   : > { %v2163_v28 = vpop.permute.xlu0 %1069  ;;  %v2165_v43 = vpop.permute.xlu1 %1075  ;;  %v1151_v39 = vsel %vm797_vm9, %v1138_v8, %v1043_v1 }
  0xc3   : > { %v1079_v22 = vsel %vm1077_vm2, %v2163_v28, %v2127_v2 }
  0xc4   : > { %1681 = vrot.lane.b32.xlu0 %v1922_v32, %s1717_s11  ;;  %v1115_v32 = vsel %vm2155_vm0, %v1109_v25, %v2039_v14  ;;  %v1609_v14 = vunpack.i.h.bf16 %v2081_v0  ;;  %v1021_v0 = vsel %vm1019_vm11, %v1594_v16, %v1598_v12  ;;  %v1143_v25 = vsel %vm797_vm9, %v1136_v57, %v1041_v19  ;;  %vm2301_vm11 = vmand %vm855_vm7, %vm856_vm10 }
  0xc5   : > { %v2211_v54 = vsel %vm768_vm5, %v1115_v32, %v2048_v29  ;;  %v1042_v29 = vsel %vm1040_vm12, %v2070_v44, %v2066_v42  ;;  %v1137_v53 = vsel %vm2201_vm4, %v1122_v20, %v1021_v0  ;;  %v1058_v16 = vsel %vm1056_vm15, %v1604_v47, %v1608_v59 }
  0xc6   : > { %v1074_v37 = vpop.permute.xlu0 %1073  ;;  %v2206_v38 = vpop.permute.xlu1 %1616  ;;  %v1059_v44 = vsel %vm1056_vm15, %v1608_v59, %v1609_v14  ;;  %v1140_v24 = vsel %vm2201_vm4, %v2211_v54, %v2064_v58  ;;  %v1147_v13 = vsel %vm797_vm9, %v1137_v53, %v1042_v29  ;;  %v1078_v58 = vsel %vm1077_vm2, %v2093_v55, %v2163_v28 }
  0xc7   : > { %v1163_v52 = vsel %vm2247_vm8, %v1151_v39, %v1059_v44  ;;  %v1618_v35 = vunpack.i.l.bf16 %v2206_v38  ;;  %v1080_v40 = vsel %vm1077_vm2, %v2127_v2, %v1074_v37  ;;  %v2277_v36 = vunpack.i.h.bf16 %v2206_v38 }
  0xc8   : > { %v1060_v55 = vsel %vm1056_vm15, %v1609_v14, %v2125_v61  ;;  %v1161_v28 = vsel %vm2247_vm8, %v1143_v25, %v1057_v5  ;;  %v1162_v2 = vsel %vm2247_vm8, %v1147_v13, %v1058_v16  ;;  %v1081_v27 = vsel %vm1077_vm2, %v1074_v37, %v2165_v43  ;;  %vm2668_vm2 = vmmov %vm2667_vm14 }
  0xc9   : > { %v1168_v38 = vsel %vm826_vm13, %v1161_v28, %v1078_v58  ;;  %v1172_v20 = vsel %vm826_vm13, %v1162_v2, %v1079_v22  ;;  %v1176_v60 = vsel %vm826_vm13, %v1163_v52, %v1080_v40  ;;  %v2324_v47 = vsel %vm595_vm6, %v1618_v35, %v2277_v36  ;;  %vm2670_vm10 = vmmov %vm2668_vm2 }
  0xca   : > { %v1612_v10 = vpop.permute.xlu0 %1611  ;;  %v2239_v31 = vpop.permute.xlu1 %612  ;;  %v1164_v41 = vsel %vm2247_vm8, %v1155_v34, %v1060_v55  ;;  %vm440_vm12 = vcmask 1031168   ;;  %vm460_vm15 = vcmask 965632  }
  0xcb   : > { %v1614_v12 = vunpack.i.h.bf16 %v1612_v10  ;;  %v1613_v46 = vunpack.i.l.bf16 %v1612_v10  ;;  %v1159_v10 = vsel %vm797_vm9, %v1140_v24, %v2072_v45  ;;  %v1180_v39 = vsel %vm826_vm13, %v1164_v41, %v1081_v27 }
  0xcc   : > { %v1165_v57 = vsel %vm2247_vm8, %v1159_v10, %v2125_v61 }
  0xcd   : > { %v2280_v7 = vsel %vm595_vm6, %v1613_v46, %v1614_v12  ;;  %v2283_v54 = vsel %vm595_vm6, %v1614_v12, %v1618_v35  ;;  %v1188_v12 = vsel %vm2301_vm11, %v1176_v60, %v2324_v47  ;;  %v1184_v61 = vsel %vm826_vm13, %v1165_v57, %v2165_v43 }
  0xce   : > { %v617_v56 = vpop.permute.xlu1 %616  ;;  %v1622_v9 = vpop.permute.xlu0 %1621  ;;  %v1186_v37 = vsel %vm2301_vm11, %v1168_v38, %v2280_v7  ;;  %v1187_v8 = vsel %vm2301_vm11, %v1172_v20, %v2283_v54 }
  0xcf   : > { %v1624_v32 = vunpack.i.h.bf16 %v1622_v9  ;;  %v1623_v21 = vunpack.i.l.bf16 %v1622_v9 }
  0xd1   : > { %v2292_v59 = vsel %vm595_vm6, %v1624_v32, %v1613_v46  ;;  %v1085_v63 = vsel %vm595_vm6, %v2277_v36, %v1623_v21  ;;  %v1190_v13 = vsel %vm2301_vm11, %v1184_v61, %v1623_v21  ;;  %vm2669_vm6 = vmmov %vm2668_vm2 }
  0xd2   : > { %v1090_v1 = vpop.permute.xlu1 %1089  ;;  %v615_v14 = vpop.permute.xlu0 %614  ;;  %v1189_v46 = vsel %vm2301_vm11, %v1180_v39, %v1085_v63 }
  0xd3   : > { %v2307_v0 = vsel %vm620_vm1, %v2239_v31, %v615_v14  ;;  %v2310_v19 = vsel %vm620_vm1, %v615_v14, %v617_v56  ;;  %v1202_v52 = vsel %vm855_vm7, %v1190_v13, %v1090_v1 }
  0xd4   : > { %v1192_v29 = vsel %vm855_vm7, %v1186_v37, %v2307_v0  ;;  %v1194_v33 = vsel %vm855_vm7, %v1187_v8, %v2310_v19 }
  0xd5   : > { %1208 = vrot.lane.b32.xlu0 %v1192_v29, %s1718_s12  ;;  %1210 = vrot.lane.b32.xlu1 %v1194_v33, %s1718_s12 }
  0xd6   : > { %v435_v44 = vpop.permute.xlu1 %434  ;;  %v2336_v51 = vpop.permute.xlu0 %618 }
  0xd7   : > { %v2340_v53 = vsel %vm620_vm1, %v617_v56, %v2336_v51  ;;  %v1091_v45 = vsel %vm620_vm1, %v2336_v51, %v1090_v1 }
  0xd8   : > { %v1196_v24 = vsel %vm855_vm7, %v1188_v12, %v2340_v53  ;;  %v1199_v25 = vsel %vm855_vm7, %v1189_v46, %v1091_v45 }
  0xd9   : > { %1212 = vrot.lane.b32.xlu0 %v1196_v24, %s1718_s12  ;;  %1214 = vrot.lane.b32.xlu1 %v1199_v25, %s1718_s12 }
  0xda   : > { %v439_v34 = vpop.permute.xlu1 %438  ;;  %v433_v5 = vpop.permute.xlu0 %432 }
  0xdb   : > { %v766_v43 = vsel %vm2667_vm14, %v746_v4, %v439_v34  ;;  %v442_v16 = vsel %vm440_vm12, %v433_v5, %v435_v44  ;;  %vm505_vm14 = vcmask 949248  }
  0xdc   : > { %v2368_v32 = vsel %vm2668_vm2, %v2100_v11, %v442_v16 }
  0xdd   : > { %1216 = vrot.lane.b32.xlu0 %v1202_v52, %s1718_s12 }
  0xde   : > { %v1627_v35 = vpop.permute.xlu1 %1626  ;;  %v437_v56 = vpop.permute.xlu0 %436 }
  0xdf   : > { %v1629_v9 = vunpack.i.h.bf16 %v1627_v35  ;;  %v1628_v58 = vunpack.i.l.bf16 %v1627_v35  ;;  %v443_v22 = vsel %vm440_vm12, %v435_v44, %v437_v56  ;;  %v444_v40 = vsel %vm440_vm12, %v437_v56, %v439_v34 }
  0xe0   : > { %v758_v1 = vsel %vm2670_vm10, %v2148_v48, %v443_v22  ;;  %vm914_vm10 = vsmask.f32 6400 }
  0xe1   : > { %v2371_v18 = vsel %vm460_vm15, %v1628_v58, %v1629_v9 }
  0xe2   : > { %v431_v49 = vpop.permute.xlu0 %430  ;;  %v451_v4 = vpop.permute.xlu1 %450  ;;  %v772_v21 = vsel %vm2155_vm0, %v2368_v32, %v2371_v18 }
  0xe3   : > { %v441_v55 = vsel %vm440_vm12, %v431_v49, %v433_v5  ;;  %v461_v28 = vsel %vm460_vm15, %v451_v4, %v1628_v58  ;;  %vm2671_vm12 = vmmov %vm2668_vm2  ;;  %vm575_vm2 = vcmask 867328  }
  0xe4   : > { %v750_v11 = vsel %vm2669_vm6, %v742_v6, %v441_v55  ;;  %v762_v14 = vsel %vm2671_vm12, %v2118_v23, %v444_v40  ;;  %vm913_vm6 = vcmask 1046528  }
  0xe5   : > { %v771_v2 = vsel %vm2155_vm0, %v750_v11, %v461_v28 }
  0xe6   : > { %v1632_v38 = vpop.permute.xlu0 %1631  ;;  %v480_v20 = vpop.permute.xlu1 %479 }
  0xe7   : > { %v1634_v27 = vunpack.i.h.bf16 %v1632_v38  ;;  %v1633_v60 = vunpack.i.l.bf16 %v1632_v38 }
  0xe9   : > { %v463_v50 = vsel %vm460_vm15, %v1629_v9, %v1633_v60  ;;  %v464_v37 = vsel %vm460_vm15, %v1633_v60, %v1634_v27  ;;  %v775_v26 = vsel %vm2155_vm0, %v766_v43, %v1634_v27  ;;  %vm550_vm15 = vcmask 875520  }
  0xea   : > { %v478_v62 = vpop.permute.xlu0 %477  ;;  %v484_v6 = vpop.permute.xlu1 %483  ;;  %v773_v8 = vsel %vm2155_vm0, %v758_v1, %v463_v50  ;;  %v774_v29 = vsel %vm2155_vm0, %v762_v14, %v464_v37  ;;  %vm530_vm0 = vcmask 883712  }
  0xeb   : > { %v795_v48 = vsel %vm768_vm5, %v775_v26, %v484_v6  ;;  %v487_v40 = vsel %vm485_vm3, %v478_v62, %v480_v20 }
  0xee   : > { %v482_v33 = vpop.permute.xlu0 %481  ;;  %v1637_v23 = vpop.permute.xlu1 %1636 }
  0xef   : > { %v488_v63 = vsel %vm485_vm3, %v480_v20, %v482_v33  ;;  %v489_v10 = vsel %vm485_vm3, %v482_v33, %v484_v6  ;;  %v1638_v39 = vunpack.i.l.bf16 %v1637_v23  ;;  %v1639_v52 = vunpack.i.h.bf16 %v1637_v23 }
  0xf0   : > { %v787_v41 = vsel %vm768_vm5, %v773_v8, %v488_v63  ;;  %v791_v57 = vsel %vm768_vm5, %v774_v29, %v489_v10 }
  0xf1   : > { %v507_v18 = vsel %vm505_vm14, %v1638_v39, %v1639_v52 }
  0xf2   : > { %v476_v44 = vpop.permute.xlu0 %475  ;;  %v496_v45 = vpop.permute.xlu1 %495 }
  0xf3   : > { %v486_v30 = vsel %vm485_vm3, %v476_v44, %v478_v62  ;;  %v506_v12 = vsel %vm505_vm14, %v496_v45, %v1638_v39  ;;  %vm706_vm3 = vcmask 130048  }
  0xf4   : > { %v779_v46 = vsel %vm768_vm5, %v771_v2, %v486_v30  ;;  %v783_v2 = vsel %vm768_vm5, %v772_v21, %v487_v40  ;;  %vm665_vm5 = vcmask 146432  }
  0xf5   : > { %v800_v61 = vsel %vm2201_vm4, %v779_v46, %v506_v12  ;;  %v801_v60 = vsel %vm2201_vm4, %v783_v2, %v507_v18 }
  0xf6   : > { %v1642_v24 = vpop.permute.xlu0 %1641  ;;  %v525_v25 = vpop.permute.xlu1 %524 }
  0xf7   : > { %v1644_v16 = vunpack.i.h.bf16 %v1642_v24  ;;  %v1643_v9 = vunpack.i.l.bf16 %v1642_v24 }
  0xf9   : > { %v804_v32 = vsel %vm2201_vm4, %v795_v48, %v1644_v16  ;;  %v508_v55 = vsel %vm505_vm14, %v1639_v52, %v1643_v9  ;;  %v509_v14 = vsel %vm505_vm14, %v1643_v9, %v1644_v16  ;;  %vm942_vm14 = vcmask 1047552  }
  0xfa   : > { %v523_v13 = vpop.permute.xlu0 %522  ;;  %v529_v34 = vpop.permute.xlu1 %528  ;;  %v802_v21 = vsel %vm2201_vm4, %v787_v41, %v508_v55  ;;  %v803_v41 = vsel %vm2201_vm4, %v791_v57, %v509_v14  ;;  %vm885_vm4 = vsmask.f32 5376 }
  0xfb   : > { %v532_v28 = vsel %vm530_vm0, %v523_v13, %v525_v25  ;;  %v824_v38 = vsel %vm797_vm9, %v804_v32, %v529_v34 }
  0xfc   : > { %v812_v50 = vsel %vm797_vm9, %v801_v60, %v532_v28 }
  0xfe   : > { %v527_v5 = vpop.permute.xlu0 %526  ;;  %v1647_v43 = vpop.permute.xlu1 %1646 }
  0xff   : > { %v1649_v58 = vunpack.i.h.bf16 %v1647_v43  ;;  %v1648_v22 = vunpack.i.l.bf16 %v1647_v43  ;;  %v533_v37 = vsel %vm530_vm0, %v525_v25, %v527_v5  ;;  %v534_v6 = vsel %vm530_vm0, %v527_v5, %v529_v34 }
 0x100   : > { %v816_v30 = vsel %vm797_vm9, %v802_v21, %v533_v37  ;;  %v820_v12 = vsel %vm797_vm9, %v803_v41, %v534_v6 }
 0x101   : > { %v552_v20 = vsel %vm550_vm15, %v1648_v22, %v1649_v58 }
 0x102   : > { %v521_v35 = vpop.permute.xlu0 %520  ;;  %v541_v56 = vpop.permute.xlu1 %540  ;;  %v830_v29 = vsel %vm2247_vm8, %v812_v50, %v552_v20 }
 0x103   : > { %v531_v39 = vsel %vm530_vm0, %v521_v35, %v523_v13  ;;  %v551_v13 = vsel %vm550_vm15, %v541_v56, %v1648_v22  ;;  %vm943_vm0 = vsmask.f32 7424 }
 0x104   : > { %v808_v25 = vsel %vm797_vm9, %v800_v61, %v531_v39  ;;  %vm640_vm9 = vcmask 211968  }
 0x105   : > { %v829_v56 = vsel %vm2247_vm8, %v808_v25, %v551_v13 }
 0x106   : > { %v1652_v49 = vpop.permute.xlu0 %1651  ;;  %v570_v4 = vpop.permute.xlu1 %569 }
 0x107   : > { %v1654_v11 = vunpack.i.h.bf16 %v1652_v49  ;;  %v1653_v27 = vunpack.i.l.bf16 %v1652_v49 }
 0x109   : > { %v833_v1 = vsel %vm2247_vm8, %v824_v38, %v1654_v11  ;;  %v553_v33 = vsel %vm550_vm15, %v1649_v58, %v1653_v27  ;;  %v554_v23 = vsel %vm550_vm15, %v1653_v27, %v1654_v11  ;;  %vm2516_vm15 = vmand %vm913_vm6, %vm914_vm10 }
 0x10a   : > { %v568_v26 = vpop.permute.xlu0 %567  ;;  %v574_v62 = vpop.permute.xlu1 %573 }
 0x10b   : > { %v577_v8 = vsel %vm575_vm2, %v568_v26, %v570_v4  ;;  %v853_v48 = vsel %vm826_vm13, %v833_v1, %v574_v62 }
 0x10c   : > { %v841_v63 = vsel %vm826_vm13, %v830_v29, %v577_v8  ;;  %v862_v10 = vsel %vm2301_vm11, %v853_v48, %v2277_v36 }
 0x10d   : > { %v859_v44 = vsel %vm2301_vm11, %v841_v63, %v2280_v7  ;;  %v2446_v45 = vsel %vm855_vm7, %v862_v10, %v2336_v51  ;;  %v831_v7 = vsel %vm2247_vm8, %v816_v30, %v553_v33  ;;  %v832_v51 = vsel %vm2247_vm8, %v820_v12, %v554_v23 }
 0x10e   : > { %v572_v46 = vpop.permute.xlu0 %571  ;;  %v2450_v24 = vpop.permute.xlu1 %610  ;;  %v870_v15 = vsel %vm855_vm7, %v859_v44, %v2307_v0  ;;  %vm682_vm8 = vcmask 138240  }
 0x10f   : > { %v578_v36 = vsel %vm575_vm2, %v570_v4, %v572_v46  ;;  %v579_v57 = vsel %vm575_vm2, %v572_v46, %v574_v62 }
 0x110   : > { %v845_v34 = vsel %vm826_vm13, %v831_v7, %v578_v36  ;;  %v849_v5 = vsel %vm826_vm13, %v832_v51, %v579_v57  ;;  %v621_v36 = vsel %vm620_vm1, %v2450_v24, %v2239_v31 }
 0x111   : > { %v860_v0 = vsel %vm2301_vm11, %v845_v34, %v2283_v54  ;;  %v861_v43 = vsel %vm2301_vm11, %v849_v5, %v2324_v47 }
 0x112   : > { %v566_v16 = vpop.permute.xlu0 %565  ;;  %v2470_v52 = vpop.permute.xlu1 %1661  ;;  %v2474_v61 = vsel %vm855_vm7, %v860_v0, %v2310_v19  ;;  %v2478_v35 = vsel %vm855_vm7, %v861_v43, %v2340_v53 }
 0x113   : > { %v576_v54 = vsel %vm575_vm2, %v566_v16, %v568_v26  ;;  %v1664_v50 = vunpack.i.h.bf16 %v2470_v52  ;;  %v1663_v37 = vunpack.i.l.bf16 %v2470_v52  ;;  %vm729_vm2 = vcmask 64512  }
 0x114   : > { %v2484_v9 = vsel %vm826_vm13, %v829_v56, %v576_v54  ;;  %vm884_vm13 = vcmask 1045504  }
 0x115   : > { %v858_v47 = vsel %vm2301_vm11, %v2484_v9, %v2292_v59  ;;  %vm2503_vm12 = vmand %vm884_vm13, %vm885_vm4  ;;  %v644_v10 = vsel %vm640_vm9, %v1663_v37, %v1664_v50  ;;  %vm1218_vm11 = vcmask 56320  }
 0x116   : > { %v1657_v58 = vpop.permute.xlu0 %1656  ;;  %v658_v19 = vpop.permute.xlu1 %657  ;;  %vm2524_vm4 = vmand %vm942_vm14, %vm943_vm0  ;;  %v890_v25 = vsel %vm2503_vm12, %v2478_v35, %v644_v10  ;;  %v891_v13 = vsel %vm2503_vm12, %v2446_v45, %v1664_v50  ;;  %v866_v0 = vsel %vm855_vm7, %v858_v47, %v621_v36 }
 0x117   : > { %v1659_v49 = vunpack.i.h.bf16 %v1657_v58  ;;  %v1658_v4 = vunpack.i.l.bf16 %v1657_v58 }
 0x119   : > { %v642_v38 = vsel %vm640_vm9, %v1658_v4, %v1659_v49  ;;  %v643_v57 = vsel %vm640_vm9, %v1659_v49, %v1663_v37 }
 0x11a   : > { %v631_v22 = vpop.permute.xlu0 %630  ;;  %v662_v40 = vpop.permute.xlu1 %661  ;;  %v888_v21 = vsel %vm2503_vm12, %v870_v15, %v642_v38  ;;  %v889_v43 = vsel %vm2503_vm12, %v2474_v61, %v643_v57 }
 0x11b   : > { %v641_v7 = vsel %vm640_vm9, %v631_v22, %v1658_v4 }
 0x11c   : > { %v887_v35 = vsel %vm2503_vm12, %v866_v0, %v641_v7 }
 0x11e   : > { %v660_v32 = vpop.permute.xlu0 %659  ;;  %v656_v53 = vpop.permute.xlu1 %655 }
 0x11f   : > { %v667_v27 = vsel %vm665_vm5, %v658_v19, %v660_v32  ;;  %v668_v51 = vsel %vm665_vm5, %v660_v32, %v662_v40  ;;  %v666_v34 = vsel %vm665_vm5, %v656_v53, %v658_v19 }
 0x120   : > { %v899_v26 = vsel %vm884_vm13, %v888_v21, %v667_v27  ;;  %v903_v56 = vsel %vm884_vm13, %v889_v43, %v668_v51  ;;  %v895_v59 = vsel %vm884_vm13, %v887_v35, %v666_v34  ;;  %v1223_v43 = vld [vmem:[%s2649_s0] sm:$0x3] }
 0x122   : > { %v2490_v18 = vpop.permute.xlu0 %663  ;;  %v2492_v42 = vpop.permute.xlu1 %1671 }
 0x123   : > { %v1674_v41 = vunpack.i.h.bf16 %v2492_v42  ;;  %v1673_v39 = vunpack.i.l.bf16 %v2492_v42  ;;  %v669_v12 = vsel %vm665_vm5, %v662_v40, %v2490_v18  ;;  %v911_v9 = vsel %vm884_vm13, %v891_v13, %v2490_v18 }
 0x124   : > { %v907_v31 = vsel %vm884_vm13, %v890_v25, %v669_v12  ;;  %vm1255_vm5 = vcmask 908288  }
 0x125   : > { %v685_v24 = vsel %vm682_vm8, %v1673_v39, %v1674_v41 }
 0x126   : > { %v2494_v55 = vpop.permute.xlu0 %1666  ;;  %v699_v28 = vpop.permute.xlu1 %698  ;;  %v919_v58 = vsel %vm2516_vm15, %v907_v31, %v685_v24 }
 0x127   : > { %v1669_v11 = vunpack.i.h.bf16 %v2494_v55  ;;  %v1668_v2 = vunpack.i.l.bf16 %v2494_v55  ;;  %v920_v55 = vsel %vm2516_vm15, %v911_v9, %v1674_v41 }
 0x129   : > { %v683_v14 = vsel %vm682_vm8, %v1668_v2, %v1669_v11  ;;  %v684_v5 = vsel %vm682_vm8, %v1669_v11, %v1673_v39  ;;  %v916_v53 = vsel %vm2516_vm15, %v895_v59, %v1668_v2  ;;  %v1388_v59 = vsub.s32 3, %v1770_v3 }
 0x12a   : > { %v2500_v20 = vpop.permute.xlu0 %696  ;;  %v703_v60 = vpop.permute.xlu1 %702  ;;  %v917_v48 = vsel %vm2516_vm15, %v899_v26, %v683_v14  ;;  %v918_v61 = vsel %vm2516_vm15, %v903_v56, %v684_v5  ;;  %v1372_v56 = vld [vmem:[%s296_s20] sm:$0xf] }
 0x12b   : > { %v707_v6 = vsel %vm706_vm3, %v2500_v20, %v699_v28 }
 0x12c   : > { %v928_v30 = vsel %vm913_vm6, %v917_v48, %v707_v6  ;;  %v1224_v6 = vld [vmem:[%s2650_s1] sm:$0xf] }
 0x12e   : > { %v701_v8 = vpop.permute.xlu0 %700  ;;  %v1677_v29 = vpop.permute.xlu1 %1676 }
 0x12f   : > { %v1679_v33 = vunpack.i.h.bf16 %v1677_v29  ;;  %v1678_v23 = vunpack.i.l.bf16 %v1677_v29  ;;  %v708_v45 = vsel %vm706_vm3, %v699_v28, %v701_v8  ;;  %v709_v16 = vsel %vm706_vm3, %v701_v8, %v703_v60 }
 0x130   : > { %v932_v22 = vsel %vm913_vm6, %v918_v61, %v708_v45  ;;  %v936_v32 = vsel %vm913_vm6, %v919_v58, %v709_v16  ;;  %v924_v28 = vsel %vm913_vm6, %v916_v53, %v2500_v20  ;;  %v1720_v20 = vmov 0  }
 0x131   : > { %v730_v44 = vsel %vm729_vm2, %v1678_v23, %v1679_v33  ;;  %v945_v38 = vsel %vm2524_vm4, %v924_v28, %v1678_v23  ;;  %1318 = vmatprep.mubr.bf16.mxu0 %v1720_v20  ;;  %1359 = vmatprep.mubr.bf16.mxu1 %v1720_v20  ;;  %v1376_v45 = vsub.s32 0, %v1770_v3  ;;  %v1380_v16 = vsub.s32 1, %v1770_v3 }
 0x132   : > { %v705_v46 = vpop.permute.xlu0 %704  ;;  %v946_v15 = vsel %vm2524_vm4, %v928_v30, %v730_v44  ;;  %v728_v47 = vpop.permute.xlu1 %727  ;;  %1685 = vset.pattern.permute.xlu1 %v1720_v20  ;;  %1686 = vset.pattern.permute.xlu0 %v1720_v20  ;;  %v1721_v30 = vmov 65535   ;;  %v1389_v28 = vrot.slane %v1372_v56, %v1388_v59 }
 0x133   : > { %1237 = vrot.lane.b32.xlu1 %v946_v15, %s1719_s13  ;;  %v710_v18 = vsel %vm706_vm3, %v703_v60, %v705_v46  ;;  %v1272_v12 = vsel %vm855_vm7, 4294967295, %v1721_v30 }
 0x134   : > { %v940_v11 = vsel %vm913_vm6, %v920_v55, %v710_v18  ;;  %v1273_v46 = vsel %vm884_vm13, %v1272_v12, 0 }
 0x136   : > { %v1682_v52 = vpop.permute.xlu0 %1681 }
 0x137   : > { %v1684_v17 = vunpack.i.h.bf16 %v1682_v52  ;;  %v1683_v54 = vunpack.i.l.bf16 %v1682_v52  ;;  %v1384_v52 = vsub.s32 2, %v1770_v3 }
 0x139   : > { %v731_v19 = vsel %vm729_vm2, %v1679_v33, %v1683_v54  ;;  %v732_v40 = vsel %vm729_vm2, %v1683_v54, %v1684_v17  ;;  %v733_v4 = vsel %vm729_vm2, %v1684_v17, %v728_v47  ;;  %v1722_v17 = vmov 1983009808  }
 0x13a   : > { %v947_v42 = vsel %vm2524_vm4, %v932_v22, %v731_v19  ;;  %v948_v49 = vsel %vm2524_vm4, %v936_v32, %v732_v40  ;;  %v949_v2 = vsel %vm2524_vm4, %v940_v11, %v733_v4  ;;  %v1409_v54 = vunpack.c.l.s4 %v1722_v17 }
 0x13b   : > { %1239 = vrot.lane.b32.xlu0 %v947_v42, %s1719_s13  ;;  %1241 = vrot.lane.b32.xlu1 %v948_v49, %s1719_s13  ;;  %v1377_v19 = vrot.slane %v1372_v56, %v1376_v45  ;;  %v1381_v22 = vrot.slane %v1372_v56, %v1380_v16  ;;  %v1385_v53 = vrot.slane %v1372_v56, %v1384_v52 }
 0x13c   : > { %v1410_v49 = vunpack.c.0.s8 %v1409_v54 }
 0x13f   : > { %1243 = vrot.lane.b32.xlu0 %v949_v2, %s1719_s13  ;;  %1235 = vrot.lane.b32.xlu1 %v945_v38, %s1719_s13 }
 0x147   : > { %v1209_v27 = vpop.permute.xlu0 %1208  ;;  %v1211_v60 = vpop.permute.xlu1 %1210 }
 0x148   : > { %v1219_v1 = vsel %vm1218_vm11, %v1209_v27, %v1211_v60 }
 0x149   : > { %1247 = vrot.lane.b32.xlu0 %v1219_v1, %s1719_s13 }
 0x14b   : > { %v1213_v14 = vpop.permute.xlu0 %1212  ;;  %v1215_v50 = vpop.permute.xlu1 %1214 }
 0x14c   : > { %v1220_v37 = vsel %vm1218_vm11, %v1211_v60, %v1213_v14  ;;  %v1221_v21 = vsel %vm1218_vm11, %v1213_v14, %v1215_v50 }
 0x14d   : > { %1251 = vrot.lane.b32.xlu0 %v1221_v21, %s1719_s13  ;;  %1249 = vrot.lane.b32.xlu1 %v1220_v37, %s1719_s13  ;;  %v1413_v37 = vsub.s32 %v1410_v49, %v1770_v3 }
 0x14f   : > { %v1217_v26 = vpop.permute.xlu0 %1216 }
 0x150   : > { %v1222_v62 = vsel %vm1218_vm11, %v1215_v50, %v1217_v26 }
 0x151   : > { %1245 = vrot.lane.b32.xlu0 %v1209_v27, %s1719_s13  ;;  %1253 = vrot.lane.b32.xlu1 %v1222_v62, %s1719_s13 }
 0x155   : > { %1227 = vperm.xlu1 %1685, %v1224_v6  }
 0x1a5   : > { %v1238_v8 = vpop.permute.xlu1 %1237 }
 0x1ad   : > { %v1240_v29 = vpop.permute.xlu0 %1239  ;;  %v1242_v48 = vpop.permute.xlu1 %1241 }
 0x1ae   : > { %v1257_v33 = vsel %vm1255_vm5, %v1238_v8, %v1240_v29  ;;  %v1258_v39 = vsel %vm1255_vm5, %v1240_v29, %v1242_v48 }
 0x1af   : > { %1286 = vmatprep.subr.bf16.mxu0 %v1257_v33 }
 0x1b1   : > { %v1244_v23 = vpop.permute.xlu0 %1243  ;;  %v1236_v63 = vpop.permute.xlu1 %1235 }
 0x1b2   : > { %v1256_v10 = vsel %vm1255_vm5, %v1236_v63, %v1238_v8  ;;  %v1259_v41 = vsel %vm1255_vm5, %v1242_v48, %v1244_v23 }
 0x1b3   : > { %1287 = vmatpush1.bf16.msra.mxu0 %v1256_v10  ;;  %1327 = vmatprep.subr.bf16.mxu1 %v1259_v41 }
 0x1b4   : > { %1328 = vmatpush1.bf16.msra.mxu1 %v1258_v39 }
 0x1bb   : > { %v1248_v44 = vpop.permute.xlu0 %1247 }
 0x1bf   : > { %v1252_v15 = vpop.permute.xlu0 %1251  ;;  %v1250_v36 = vpop.permute.xlu1 %1249 }
 0x1c0   : > { %v1261_v57 = vsel %vm1255_vm5, %v1248_v44, %v1250_v36  ;;  %v1262_v51 = vsel %vm1255_vm5, %v1250_v36, %v1252_v15 }
 0x1c1   : > { %v1278_v7 = vand.u32 %v1273_v46, %v1261_v57  ;;  %v1281_v0 = vand.u32 %v1273_v46, %v1262_v51 }
 0x1c3   : > { %v1246_v25 = vpop.permute.xlu0 %1245  ;;  %1288 = vmatprep.subr.bf16.mxu0 %v1278_v7  ;;  %v1254_v13 = vpop.permute.xlu1 %1253 }
 0x1c4   : > { %v1260_v34 = vsel %vm1255_vm5, %v1246_v25, %v1248_v44  ;;  %v1263_v31 = vsel %vm1255_vm5, %v1252_v15, %v1254_v13 }
 0x1c5   : > { %v1275_v24 = vand.u32 %v1273_v46, %v1260_v34  ;;  %v1284_v5 = vand.u32 %v1273_v46, %v1263_v31 }
 0x1c7   : > { %1289 = vmatpush1.bf16.msra.mxu0 %v1275_v24  ;;  %1329 = vmatprep.subr.bf16.mxu1 %v1284_v5 }
 0x1c8   : > { %1330 = vmatpush1.bf16.msra.mxu1 %v1281_v0 }
 0x1ca   : > { %1519 = vmatmul.mubr.msk.bf16.vlgmr.msra.gmra.mrb[0].mxu0 %vm620_vm1, %v1223_v43 }
 0x1cb   : > { %1520 = vmatmul.mubr.msk.bf16.vlgmr.msra.gmra.mrb[0].mxu1 %vm620_vm1, %v1223_v43 }
 0x1d4   : > { %v1228_v35 = vpop.permute.xlu1 %1227 }
 0x29d   : > { %v1320_v9 = vpop.f32.mrb[0].mxu0 }
 0x29e   : > { %v1322_v47 = vpop.f32.mrb[1].mxu0  ;;  %v1361_v61 = vpop.f32.mrb[0].mxu1  ;;  %v1321_v58 = vadd.f32 %v1320_v9, %v1228_v35 }
 0x29f   : > { %v1323_v40 = vadd.f32 %v1322_v47, %v1228_v35  ;;  %v1362_v32 = vadd.f32 %v1361_v61, %v1228_v35  ;;  %v1324_v18 = vpop.f32.mrb[2].mxu0  ;;  %v1363_v42 = vpop.f32.mrb[1].mxu1 }
 0x2a0   : > { %v1368_v4 = vmax.f32 %v1321_v58, 0.0  ;;  %v1364_v55 = vadd.f32 %v1363_v42, %v1228_v35  ;;  %v1325_v11 = vpop.f32.mrb[3].mxu0  ;;  %v1365_v2 = vpop.f32.mrb[2].mxu1 }
 0x2a1   : > { %v1369_v38 = vmax.f32 %v1323_v40, 0.0  ;;  %v1370_v27 = vmax.f32 %v1362_v32, 0.0  ;;  %v1366_v60 = vpop.f32.mrb[3].mxu1 }
 0x2a2   : > { %v1394_v1 = vmul.f32 %v1377_v19, %v1368_v4  ;;  %v1371_v20 = vmax.f32 %v1364_v55, 0.0 }
 0x2a3   : > { %v1395_v14 = vmul.f32 %v1381_v22, %v1369_v38  ;;  %v1396_v50 = vmul.f32 %v1385_v53, %v1370_v27 }
 0x2a4   : > { %v1397_v21 = vmul.f32 %v1389_v28, %v1371_v20 }
 0x2a5   : > { %v1521_v26 = vpack.c.bf16 %v1395_v14, %v1394_v1 }
 0x2a6   : > { %v1522_v62 = vpack.c.bf16 %v1397_v21, %v1396_v50 }
 0x2a7   : > { %v1414_v6 = vrot.slane %v1521_v26, %v1413_v37 }
 0x2a8   : > { %v1421_v8 = vrot.slane %v1522_v62, %v1413_v37 }
 0x2aa   : > { %v1422_v29 = vcombine.low %v1414_v6, %v1421_v8 }
 0x2ac   : > { %1424 = vst [vmem:[%s321_s26] sm:$0xff] %v1422_v29 }
 0x2ad PF: > { %s16_s21 = sadd.s32 1, %s1693_s21  }
 0x2ae   : > { %p13_p7 = scmp.ge.s32.totalorder %s16_s21, 6  }
 0x2b0   :  { %15 = sbr.rel (!%p13_p7) target bundleno = 1 (0x1), region = 83 }

// kernel: autoencoder_forward.8
= control target key start
LH: loop header
LB: loop body
LE: loop exit
PB: predicated region body
PF: predicated region fallthrough
CT: control target
= control target key end

     0   :  { %s3107_s21 = smov 0   ;;  %s3109_s22 = smov 0   ;;  %s5597_s0 = inlined_call_operand.vmem [shape: bf16[8,648], index: 0, kind: input, shape index: {}]   ;;  %s5598_s1 = inlined_call_operand.vmem [shape: f32[8,1], index: 1, kind: input, shape index: {}]   ;;  %s5599_s2 = inlined_call_operand.vmem [shape: f32[1,2048], index: 2, kind: input, shape index: {}]   ;;  %s5600_s3 = inlined_call_operand.vmem [shape: bf16[24,3072], index: 3, kind: input, shape index: {}, may-alias: {3,4,5}]   ;;  %s5601_s4 = inlined_call_operand.vmem [shape: bf16[24,3072], index: 4, kind: input, shape index: {}, may-alias: {3,4,5}]   ;;  %s5602_s5 = inlined_call_operand.vmem [shape: bf16[24,3072], index: 5, kind: input, shape index: {}, may-alias: {3,4,5}]   ;;  %s5603_s6 = inlined_call_operand.vmem [shape: bf16[8,2048], index: 6, kind: output, shape index: {}]  }
   0x1   :  { %s3111_s23 = smov 0   ;;  %s3113_s24 = smov 0  }
   0x2   :  { %s3115_s25 = smov 0   ;;  %s3117_s26 = smov 0  }
   0x3   :  { %s3119_s27 = smov 0  }
   0x4 LB: > { %s2804_s28 = sadd.s32 4294967295, %s3045_s27   ;;  %s3144_s29 = sadd.s32 1, %s3045_s27   ;;  %s3045_s27 = sphi %s3119_s27, %s6089_s27   ;;  %s3041_s26 = sphi %s3117_s26, %s6088_s26   ;;  %s3037_s25 = sphi %s3115_s25, %s6087_s25   ;;  %s3033_s24 = sphi %s3113_s24, %s6086_s24   ;;  %s3029_s23 = sphi %s3111_s23, %s6085_s23   ;;  %s3025_s22 = sphi %s3109_s22, %s6084_s22   ;;  %s3021_s21 = sphi %s3107_s21, %s6083_s21  }
   0x5   : > { %s88_s30 = ssub.s32 %s3045_s27, %s3144_s29  ;;  %s91_s7 = sadd.s32 1, %s3041_s26 }
   0x6   : > { %p89_p0 = scmp.eq.s32.totalorder %s88_s30, 0  ;;  %p98_p1 = scmp.ne.s32.totalorder %s3041_s26, %s3037_s25 }
   0x7   : > { %p99_p2 = scmp.eq.s32.totalorder %s3045_s27, 0  ;;  %s115_s8 = sadd.s32 1, %s3144_s29 }
   0x8   : > { %s3154_s9 = scalar_select %p89_p0, %s3041_s26, %s91_s7  }
   0x9   : > { %p3158_p3 = por %p99_p2, %p98_p1  ;;  %s116_s11 = ssub.s32 %s3144_s29, %s115_s8 }
   0xa   : > { %p117_p4 = scmp.eq.s32.totalorder %s116_s11, 0  ;;  %s119_s12 = sadd.s32 1, %s3033_s24 }
   0xb   : > { %p126_p5 = scmp.ne.s32.totalorder %s3033_s24, %s3029_s23  ;;  %s142_s13 = sadd.s32 2, %s3045_s27 }
   0xc   : > { %s3168_s14 = scalar_select %p117_p4, %s3033_s24, %s119_s12  }
   0xd   : > { %p3172_p6 = por %p126_p5, %p99_p2  ;;  %s143_s16 = sadd.s32 2, %s3144_s29 }
   0xe   : > { %s144_s17 = ssub.s32 %s142_s13, %s143_s16  ;;  %s147_s18 = sadd.s32 1, %s3025_s22 }
   0xf   : > { %p145_p7 = scmp.eq.s32.totalorder %s144_s17, 0  ;;  %p154_p8 = scmp.ne.s32.totalorder %s3025_s22, %s3021_s21 }
  0x10   : > { %p2807_p10 = scmp.ge.s32.totalorder %s3045_s27, 4 }
  0x11   : > { %s3181_s19 = scalar_select %p145_p7, %s3025_s22, %s147_s18  }
  0x12   : > { %p3185_p9 = por %p154_p8, %p99_p2  ;;  %212 = sbr.rel (%p2807_p10) target bundleno = 46 (0x2e), region = 24 }
  0x19   : > { %223 = sbr.rel (!%p3158_p3) target bundleno = 32 (0x20), region = 32  ;;  %s225_s30 = sand.u32 (%p3158_p3), 1, %s3041_s26  }
  0x1a   : > { %s2854_s7 = sshll.u32 (%p3158_p3), %s3045_s27, 4  ;;  %s2877_s8 = smul.u32 (%p3158_p3), 48, %s225_s30 }
  0x1b   : > { %s230_s13 = scalar_lea.vmem (%p3158_p3), %s5600_s3, %s2854_s7 }
  0x1c   : > { %v243_v0 = vld [vmem:[%s230_s13] sm:$0xff] (%p3158_p3)  ;;  %v245_v1 = vld [vmem:[%s230_s13 + $0x8] sm:$0xff] (%p3158_p3)  ;;  %s227_s16 = scalar_lea.vmem (%p3158_p3), [#allocation2], %s2877_s8 }
  0x1d   : > { %v247_v2 = vld [vmem:[%s230_s13 + $0x60] sm:$0xff] (%p3158_p3)  ;;  %v249_v3 = vld [vmem:[%s230_s13 + $0x68] sm:$0xff] (%p3158_p3)  ;;  %244 = vst [vmem:[%s227_s16] sm:$0xff] (%p3158_p3), %v243_v0  ;;  %246 = vst [vmem:[%s227_s16 + $0x8] sm:$0xff] (%p3158_p3), %v245_v1 }
  0x1e   : > { %v251_v4 = vld [vmem:[%s230_s13 + $0xc0] sm:$0xff] (%p3158_p3)  ;;  %v253_v5 = vld [vmem:[%s230_s13 + $0xc8] sm:$0xff] (%p3158_p3)  ;;  %248 = vst [vmem:[%s227_s16 + $0x10] sm:$0xff] (%p3158_p3), %v247_v2  ;;  %250 = vst [vmem:[%s227_s16 + $0x18] sm:$0xff] (%p3158_p3), %v249_v3 }
  0x1f   : > { %252 = vst [vmem:[%s227_s16 + $0x20] sm:$0xff] (%p3158_p3), %v251_v4  ;;  %254 = vst [vmem:[%s227_s16 + $0x28] sm:$0xff] (%p3158_p3), %v253_v5 }
  0x20 PF: > { %260 = sbr.rel (!%p3172_p6) target bundleno = 39 (0x27), region = 55  ;;  %s262_s10 = sand.u32 (%p3172_p6), 1, %s3033_s24  }
  0x21   : > { %s2810_s17 = sshll.u32 (%p3172_p6), %s3045_s27, 4  ;;  %s2878_s18 = smul.u32 (%p3172_p6), 48, %s262_s10 }
  0x22   : > { %s2725_s11 = scalar_lea.vmem (%p3172_p6), %s5601_s4, %s2810_s17 }
  0x23   : > { %v2811_v6 = vld [vmem:[%s2725_s11 + $0x10] sm:$0xff] (%p3172_p6)  ;;  %v2812_v7 = vld [vmem:[%s2725_s11 + $0x18] sm:$0xff] (%p3172_p6)  ;;  %s264_s8 = scalar_lea.vmem (%p3172_p6), [#allocation3], %s2878_s18 }
  0x24   : > { %v2813_v8 = vld [vmem:[%s2725_s11 + $0x70] sm:$0xff] (%p3172_p6)  ;;  %v2814_v9 = vld [vmem:[%s2725_s11 + $0x78] sm:$0xff] (%p3172_p6)  ;;  %282 = vst [vmem:[%s264_s8] sm:$0xff] (%p3172_p6), %v2811_v6  ;;  %284 = vst [vmem:[%s264_s8 + $0x8] sm:$0xff] (%p3172_p6), %v2812_v7 }
  0x25   : > { %v2815_v10 = vld [vmem:[%s2725_s11 + $0xd0] sm:$0xff] (%p3172_p6)  ;;  %v2816_v11 = vld [vmem:[%s2725_s11 + $0xd8] sm:$0xff] (%p3172_p6)  ;;  %286 = vst [vmem:[%s264_s8 + $0x10] sm:$0xff] (%p3172_p6), %v2813_v8  ;;  %288 = vst [vmem:[%s264_s8 + $0x18] sm:$0xff] (%p3172_p6), %v2814_v9 }
  0x26   : > { %290 = vst [vmem:[%s264_s8 + $0x20] sm:$0xff] (%p3172_p6), %v2815_v10  ;;  %292 = vst [vmem:[%s264_s8 + $0x28] sm:$0xff] (%p3172_p6), %v2816_v11 }
  0x27 PF: > { %298 = sbr.rel (!%p3185_p9) target bundleno = 46 (0x2e), region = 78  ;;  %s300_s15 = sand.u32 (%p3185_p9), 1, %s3025_s22  }
  0x28   : > { %s2817_s12 = sshll.u32 (%p3185_p9), %s3045_s27, 4  ;;  %s2879_s13 = smul.u32 (%p3185_p9), 48, %s300_s15 }
  0x29   : > { %s2730_s17 = scalar_lea.vmem (%p3185_p9), %s5602_s5, %s2817_s12 }
  0x2a   : > { %v2818_v12 = vld [vmem:[%s2730_s17 + $0x20] sm:$0xff] (%p3185_p9)  ;;  %v2819_v13 = vld [vmem:[%s2730_s17 + $0x28] sm:$0xff] (%p3185_p9)  ;;  %s302_s18 = scalar_lea.vmem (%p3185_p9), [#allocation4], %s2879_s13 }
  0x2b   : > { %v2820_v14 = vld [vmem:[%s2730_s17 + $0x80] sm:$0xff] (%p3185_p9)  ;;  %v2821_v15 = vld [vmem:[%s2730_s17 + $0x88] sm:$0xff] (%p3185_p9)  ;;  %320 = vst [vmem:[%s302_s18] sm:$0xff] (%p3185_p9), %v2818_v12  ;;  %322 = vst [vmem:[%s302_s18 + $0x8] sm:$0xff] (%p3185_p9), %v2819_v13 }
  0x2c   : > { %v2822_v16 = vld [vmem:[%s2730_s17 + $0xe0] sm:$0xff] (%p3185_p9)  ;;  %v2823_v17 = vld [vmem:[%s2730_s17 + $0xe8] sm:$0xff] (%p3185_p9)  ;;  %324 = vst [vmem:[%s302_s18 + $0x10] sm:$0xff] (%p3185_p9), %v2820_v14  ;;  %326 = vst [vmem:[%s302_s18 + $0x18] sm:$0xff] (%p3185_p9), %v2821_v15 }
  0x2d   : > { %328 = vst [vmem:[%s302_s18 + $0x20] sm:$0xff] (%p3185_p9), %v2822_v16  ;;  %330 = vst [vmem:[%s302_s18 + $0x28] sm:$0xff] (%p3185_p9), %v2823_v17 }
  0x2e PF: > { %p2824_p11 = scmp.ge.s32.totalorder %s3045_s27, 1  ;;  %p335_p12 = scmp.lt.s32.totalorder %s3045_s27, 5 }
  0x30   : > { %p336_p13 = pnand %p2824_p11, %p335_p12 }
  0x32   : > { %339 = sbr.rel (%p336_p13) target bundleno = 1431 (0x597), region = 101 }
  0x39   : > { %s349_s20 = sand.u32 1, %s3029_s23   ;;  %s342_s7 = sand.u32 1, %s3037_s25   ;;  %vm468_vm0 = vcmask 1043456   ;;  %vm504_vm1 = vcmask 1039360   ;;  %vm1063_vm2 = vcmask 400384   ;;  %vm1092_vm3 = vcmask 392192  }
  0x3a   : > { %s2881_s30 = smul.u32 48, %s349_s20  ;;  %s3047_s23 = smov 127   ;;  %vm1121_vm4 = vcmask 384000   ;;  %vm1150_vm5 = vcmask 318464   ;;  %vm1179_vm6 = vcmask 310272   ;;  %vm1208_vm7 = vcmask 302080  }
  0x3b   : > { %s2880_s11 = smul.u32 48, %s342_s7  ;;  %s3048_s25 = smov 126   ;;  %vm1237_vm8 = vcmask 236544   ;;  %vm736_vm9 = vcmask 228352   ;;  %vm533_vm10 = vcmask 1031168   ;;  %vm562_vm11 = vcmask 965632  }
  0x3c   : > { %s3215_s8 = scalar_lea.vmem [#allocation3], %s2881_s30  ;;  %s3049_s12 = smov 118   ;;  %vm591_vm12 = vcmask 957440   ;;  %vm620_vm13 = vcmask 949248   ;;  %vm649_vm14 = vcmask 883712   ;;  %vm678_vm15 = vcmask 875520  }
  0x3d   : > { %v3218_v18 = vld [vmem:[%s3215_s8 + $0x4] ss:$16 sps:$4 sm:$0xff]   ;;  %s3220_s15 = scalar_lea.vmem [#allocation2], %s2880_s11  ;;  %v3229_v21 = vld [vmem:[%s3215_s8 + $0x8] ss:$16 sps:$4 sm:$0xff]   ;;  %s3050_s13 = smov 117  }
  0x3e   : > { %v3223_v19 = vld [vmem:[%s3220_s15 + $0xc] ss:$16 sps:$4 sm:$0xff]   ;;  %v3226_v20 = vrot.slane %v3218_v18, 4  ;;  %v3235_v23 = vld [vmem:[%s3215_s8] ss:$16 sps:$4 sm:$0xff]   ;;  %v3240_v24 = vrot.slane %v3229_v21, 4 }
  0x3f   : > { %v3232_v22 = vrot.slane %v3223_v19, 4  ;;  %v3245_v25 = vrot.slane %v3235_v23, 4  ;;  %v3248_v26 = vld [vmem:[%s3215_s8 + $0xc] ss:$16 sps:$4 sm:$0xff]   ;;  %v421_v28 = vld [vmem:[%s3215_s8 + $0x20] sm:$0xff]  ;;  %s3051_s16 = smov 116  }
  0x40   : > { %488 = vrot.lane.b32.xlu1 %v3226_v20, %s3047_s23  ;;  %v3251_v27 = vld [vmem:[%s3220_s15 + $0x2c] ss:$0 sps:$4 sm:$0xff]   ;;  %v3259_v29 = vrot.slane %v3248_v26, 4  ;;  %v3266_v31 = vcombine.high %v421_v28, %v421_v28  ;;  %v3268_v32 = vcombine.low %v421_v28, %v421_v28  ;;  %s3052_s10 = smov 108   ;;  %s3053_s17 = smov 107  }
  0x41   : > { %484 = vrot.lane.b32.xlu0 %v3232_v22, %s3047_s23  ;;  %v3264_v30 = vsel %vm468_vm0, %v3232_v22, %v3251_v27  ;;  %v422_v33 = vld [vmem:[%s3215_s8 + $0x28] sm:$0xff]  ;;  %s356_s18 = sand.u32 1, %s3021_s21   ;;  %s3054_s21 = smov 106  }
  0x42   : > { %v3278_v34 = vsel %vm468_vm0, %v3226_v20, %v3266_v31  ;;  %v3280_v35 = vcombine.high %v422_v33, %v422_v33  ;;  %v3285_v36 = vsel %vm468_vm0, %v3245_v25, %v3268_v32  ;;  %v3287_v37 = vcombine.low %v422_v33, %v422_v33  ;;  %s3385_s20 = smul.u32 48, %s356_s18  ;;  %s3055_s7 = smov 28  }
  0x43   : > { %s3056_s11 = smov 27   ;;  %s3064_s18 = smov 47  }
  0x44   : > { %490 = vrot.lane.b32.xlu1 %v3240_v24, %s3047_s23  ;;  %v3296_v38 = vsel %vm468_vm0, %v3259_v29, %v3280_v35  ;;  %v3301_v39 = vsel %vm468_vm0, %v3240_v24, %v3287_v37  ;;  %s358_s30 = scalar_lea.vmem [#allocation4], %s3385_s20  ;;  %s3065_s20 = smov 39  }
  0x45   : > { %486 = vrot.lane.b32.xlu0 %v3245_v25, %s3047_s23 }
  0x48   : > { %494 = vrot.lane.b32.xlu1 %v3264_v30, %s3047_s23 }
  0x49   : > { %492 = vrot.lane.b32.xlu0 %v3259_v29, %s3047_s23 }
  0x4c   : > { %498 = vrot.lane.b32.xlu1 %v3278_v34, %s3047_s23 }
  0x4d   : > { %496 = vrot.lane.b32.xlu0 %v3285_v36, %s3047_s23 }
  0x50   : > { %502 = vrot.lane.b32.xlu1 %v3296_v38, %s3047_s23 }
  0x51   : > { %500 = vrot.lane.b32.xlu0 %v3301_v39, %s3047_s23 }
  0x54   : > { %515 = vrot.lane.b32.xlu1 %v3235_v23, %s3048_s25 }
  0x55   : > { %513 = vrot.lane.b32.xlu0 %v3223_v19, %s3048_s25 }
  0x58   : > { %519 = vrot.lane.b32.xlu1 %v3229_v21, %s3048_s25 }
  0x59   : > { %517 = vrot.lane.b32.xlu0 %v3218_v18, %s3048_s25 }
  0x5c   : > { %523 = vrot.lane.b32.xlu1 %v3251_v27, %s3048_s25 }
  0x5d   : > { %521 = vrot.lane.b32.xlu0 %v3248_v26, %s3048_s25 }
  0x60   : > { %527 = vrot.lane.b32.xlu1 %v3266_v31, %s3048_s25 }
  0x61   : > { %525 = vrot.lane.b32.xlu0 %v3268_v32, %s3048_s25 }
  0x64   : > { %531 = vrot.lane.b32.xlu1 %v3280_v35, %s3048_s25 }
  0x65   : > { %529 = vrot.lane.b32.xlu0 %v3287_v37, %s3048_s25  ;;  %s3057_s25 = smov 26  }
  0x68   : > { %544 = vrot.lane.b32.xlu1 %v3245_v25, %s3049_s12 }
  0x69   : > { %542 = vrot.lane.b32.xlu0 %v3232_v22, %s3049_s12 }
  0x6c   : > { %548 = vrot.lane.b32.xlu1 %v3240_v24, %s3049_s12 }
  0x6d   : > { %546 = vrot.lane.b32.xlu0 %v3226_v20, %s3049_s12 }
  0x70   : > { %552 = vrot.lane.b32.xlu1 %v3264_v30, %s3049_s12 }
  0x71   : > { %550 = vrot.lane.b32.xlu0 %v3259_v29, %s3049_s12 }
  0x74   : > { %556 = vrot.lane.b32.xlu1 %v3278_v34, %s3049_s12 }
  0x75   : > { %554 = vrot.lane.b32.xlu0 %v3285_v36, %s3049_s12 }
  0x78   : > { %560 = vrot.lane.b32.xlu1 %v3296_v38, %s3049_s12 }
  0x79   : > { %558 = vrot.lane.b32.xlu0 %v3301_v39, %s3049_s12  ;;  %s3058_s12 = smov 18  }
  0x7c   : > { %573 = vrot.lane.b32.xlu1 %v3235_v23, %s3050_s13 }
  0x7d   : > { %571 = vrot.lane.b32.xlu0 %v3223_v19, %s3050_s13 }
  0x80   : > { %577 = vrot.lane.b32.xlu1 %v3229_v21, %s3050_s13 }
  0x81   : > { %575 = vrot.lane.b32.xlu0 %v3218_v18, %s3050_s13 }
  0x84   : > { %581 = vrot.lane.b32.xlu1 %v3251_v27, %s3050_s13 }
  0x85   : > { %579 = vrot.lane.b32.xlu0 %v3248_v26, %s3050_s13 }
  0x88   : > { %585 = vrot.lane.b32.xlu1 %v3266_v31, %s3050_s13 }
  0x89   : > { %583 = vrot.lane.b32.xlu0 %v3268_v32, %s3050_s13 }
  0x8c   : > { %589 = vrot.lane.b32.xlu1 %v3280_v35, %s3050_s13 }
  0x8d   : > { %587 = vrot.lane.b32.xlu0 %v3287_v37, %s3050_s13  ;;  %s3059_s13 = smov 17  }
  0x90   : > { %602 = vrot.lane.b32.xlu1 %v3245_v25, %s3051_s16 }
  0x91   : > { %600 = vrot.lane.b32.xlu0 %v3232_v22, %s3051_s16 }
  0x94   : > { %606 = vrot.lane.b32.xlu1 %v3240_v24, %s3051_s16 }
  0x95   : > { %604 = vrot.lane.b32.xlu0 %v3226_v20, %s3051_s16 }
  0x98   : > { %610 = vrot.lane.b32.xlu1 %v3264_v30, %s3051_s16 }
  0x99   : > { %608 = vrot.lane.b32.xlu0 %v3259_v29, %s3051_s16 }
  0x9c   : > { %614 = vrot.lane.b32.xlu1 %v3278_v34, %s3051_s16 }
  0x9d   : > { %612 = vrot.lane.b32.xlu0 %v3285_v36, %s3051_s16 }
  0xa0   : > { %618 = vrot.lane.b32.xlu1 %v3296_v38, %s3051_s16 }
  0xa1   : > { %616 = vrot.lane.b32.xlu0 %v3301_v39, %s3051_s16  ;;  %s3060_s16 = smov 16  }
  0xa4   : > { %631 = vrot.lane.b32.xlu1 %v3235_v23, %s3052_s10 }
  0xa5   : > { %629 = vrot.lane.b32.xlu0 %v3223_v19, %s3052_s10 }
  0xa8   : > { %635 = vrot.lane.b32.xlu1 %v3229_v21, %s3052_s10 }
  0xa9   : > { %633 = vrot.lane.b32.xlu0 %v3218_v18, %s3052_s10 }
  0xac   : > { %639 = vrot.lane.b32.xlu1 %v3251_v27, %s3052_s10 }
  0xad   : > { %637 = vrot.lane.b32.xlu0 %v3248_v26, %s3052_s10 }
  0xb0   : > { %643 = vrot.lane.b32.xlu1 %v3266_v31, %s3052_s10 }
  0xb1   : > { %641 = vrot.lane.b32.xlu0 %v3268_v32, %s3052_s10 }
  0xb2   : > { %v3355_v40 = vpop.permute.xlu1 %488 }
  0xb3   : > { %v3357_v41 = vpop.permute.xlu0 %484 }
  0xb4   : > { %647 = vrot.lane.b32.xlu1 %v3280_v35, %s3052_s10 }
  0xb5   : > { %645 = vrot.lane.b32.xlu0 %v3287_v37, %s3052_s10  ;;  %s3061_s10 = smov 8  }
  0xb6   : > { %v3361_v42 = vpop.permute.xlu1 %490 }
  0xb7   : > { %v3363_v43 = vpop.permute.xlu0 %486 }
  0xb8   : > { %660 = vrot.lane.b32.xlu1 %v3245_v25, %s3053_s17 }
  0xb9   : > { %658 = vrot.lane.b32.xlu0 %v3232_v22, %s3053_s17 }
  0xba   : > { %v3367_v44 = vpop.permute.xlu1 %494 }
  0xbb   : > { %v3369_v45 = vpop.permute.xlu0 %492 }
  0xbc   : > { %664 = vrot.lane.b32.xlu1 %v3240_v24, %s3053_s17 }
  0xbd   : > { %662 = vrot.lane.b32.xlu0 %v3226_v20, %s3053_s17 }
  0xbe   : > { %v3373_v46 = vpop.permute.xlu1 %498 }
  0xbf   : > { %v3375_v47 = vpop.permute.xlu0 %496 }
  0xc0   : > { %668 = vrot.lane.b32.xlu1 %v3264_v30, %s3053_s17 }
  0xc1   : > { %666 = vrot.lane.b32.xlu0 %v3259_v29, %s3053_s17 }
  0xc2   : > { %v3379_v48 = vpop.permute.xlu1 %502 }
  0xc3   : > { %v3381_v49 = vpop.permute.xlu0 %500 }
  0xc4   : > { %672 = vrot.lane.b32.xlu1 %v3278_v34, %s3053_s17 }
  0xc5   : > { %670 = vrot.lane.b32.xlu0 %v3285_v36, %s3053_s17 }
  0xc6   : > { %v3388_v50 = vpop.permute.xlu1 %515 }
  0xc7   : > { %v3390_v51 = vpop.permute.xlu0 %513 }
  0xc8   : > { %676 = vrot.lane.b32.xlu1 %v3296_v38, %s3053_s17 }
  0xc9   : > { %674 = vrot.lane.b32.xlu0 %v3301_v39, %s3053_s17  ;;  %s3062_s17 = smov 49  }
  0xca   : > { %v3395_v52 = vpop.permute.xlu1 %519 }
  0xcb   : > { %v3397_v53 = vpop.permute.xlu0 %517 }
  0xcc   : > { %689 = vrot.lane.b32.xlu1 %v3235_v23, %s3054_s21 }
  0xcd   : > { %687 = vrot.lane.b32.xlu0 %v3223_v19, %s3054_s21 }
  0xce   : > { %v3401_v54 = vpop.permute.xlu1 %523 }
  0xcf   : > { %5743 = vst [vmem:[#allocation5_spill] sm:$0xff] %v3401_v54  ;;  %v3403_v55 = vpop.permute.xlu0 %521 }
  0xd0   : > { %693 = vrot.lane.b32.xlu1 %v3229_v21, %s3054_s21 }
  0xd1   : > { %691 = vrot.lane.b32.xlu0 %v3218_v18, %s3054_s21 }
  0xd2   : > { %v3407_v56 = vpop.permute.xlu1 %527 }
  0xd3   : > { %5744 = vst [vmem:[#allocation6_spill] sm:$0xff] %v3407_v56  ;;  %v3409_v57 = vpop.permute.xlu0 %525 }
  0xd4   : > { %5745 = vst [vmem:[#allocation7_spill] sm:$0xff] %v3409_v57  ;;  %697 = vrot.lane.b32.xlu1 %v3251_v27, %s3054_s21 }
  0xd5   : > { %695 = vrot.lane.b32.xlu0 %v3248_v26, %s3054_s21 }
  0xd6   : > { %v3413_v58 = vpop.permute.xlu1 %531 }
  0xd7   : > { %5746 = vst [vmem:[#allocation8_spill] sm:$0xff] %v3413_v58  ;;  %v3415_v59 = vpop.permute.xlu0 %529 }
  0xd8   : > { %5747 = vst [vmem:[#allocation9_spill] sm:$0xff] %v3415_v59  ;;  %701 = vrot.lane.b32.xlu1 %v3266_v31, %s3054_s21 }
  0xd9   : > { %699 = vrot.lane.b32.xlu0 %v3268_v32, %s3054_s21 }
  0xda   : > { %v3419_v60 = vpop.permute.xlu1 %544 }
  0xdb   : > { %v3421_v61 = vpop.permute.xlu0 %542 }
  0xdc   : > { %5748 = vst [vmem:[#allocation10_spill] sm:$0xff] %v3421_v61  ;;  %705 = vrot.lane.b32.xlu1 %v3280_v35, %s3054_s21  ;;  %v3973_v61 = vsel %vm504_vm1, %v3373_v46, %v3381_v49 }
  0xdd   : > { %703 = vrot.lane.b32.xlu0 %v3287_v37, %s3054_s21  ;;  %s3067_s21 = smov 37  }
  0xde   : > { %v3425_v62 = vpop.permute.xlu1 %548 }
  0xdf   : > { %v3427_v63 = vpop.permute.xlu0 %546 }
  0xe0   : > { %718 = vrot.lane.b32.xlu1 %v3245_v25, %s3055_s7 }
  0xe1   : > { %716 = vrot.lane.b32.xlu0 %v3232_v22, %s3055_s7 }
  0xe2   : > { %v3433_v0 = vpop.permute.xlu1 %552 }
  0xe3   : > { %5749 = vst [vmem:[#allocation11_spill] sm:$0xff] %v3433_v0  ;;  %v3435_v1 = vpop.permute.xlu0 %550 }
  0xe4   : > { %5750 = vst [vmem:[#allocation12_spill] sm:$0xff] %v3435_v1  ;;  %722 = vrot.lane.b32.xlu1 %v3240_v24, %s3055_s7 }
  0xe5   : > { %720 = vrot.lane.b32.xlu0 %v3226_v20, %s3055_s7 }
  0xe6   : > { %v3441_v2 = vpop.permute.xlu1 %556 }
  0xe7   : > { %5751 = vst [vmem:[#allocation13_spill] sm:$0xff] %v3441_v2  ;;  %v3443_v3 = vpop.permute.xlu0 %554  ;;  %v508_v2 = vsel %vm504_vm1, %v3361_v42, %v3369_v45 }
  0xe8   : > { %5752 = vst [vmem:[#allocation14_spill] sm:$0xff] %v3443_v3  ;;  %726 = vrot.lane.b32.xlu1 %v3264_v30, %s3055_s7 }
  0xe9   : > { %724 = vrot.lane.b32.xlu0 %v3259_v29, %s3055_s7 }
  0xea   : > { %v3449_v4 = vpop.permute.xlu1 %560 }
  0xeb   : > { %5753 = vst [vmem:[#allocation15_spill] sm:$0xff] %v3449_v4  ;;  %v3451_v5 = vpop.permute.xlu0 %558  ;;  %v506_v4 = vsel %vm504_vm1, %v3363_v43, %v3355_v40 }
  0xec   : > { %5754 = vst [vmem:[#allocation16_spill] sm:$0xff] %v3451_v5  ;;  %730 = vrot.lane.b32.xlu1 %v3278_v34, %s3055_s7 }
  0xed   : > { %728 = vrot.lane.b32.xlu0 %v3285_v36, %s3055_s7 }
  0xee   : > { %v3457_v6 = vpop.permute.xlu1 %573 }
  0xef   : > { %5755 = vst [vmem:[#allocation17_spill] sm:$0xff] %v3457_v6  ;;  %v3459_v7 = vpop.permute.xlu0 %571 }
  0xf0   : > { %5756 = vst [vmem:[#allocation18_spill] sm:$0xff] %v3459_v7  ;;  %734 = vrot.lane.b32.xlu1 %v3296_v38, %s3055_s7 }
  0xf1   : > { %732 = vrot.lane.b32.xlu0 %v3301_v39, %s3055_s7 }
  0xf2   : > { %v3465_v8 = vpop.permute.xlu1 %577 }
  0xf3   : > { %5757 = vst [vmem:[#allocation19_spill] sm:$0xff] %v3465_v8  ;;  %v3467_v9 = vpop.permute.xlu0 %575 }
  0xf4   : > { %5758 = vst [vmem:[#allocation20_spill] sm:$0xff] %v3467_v9  ;;  %747 = vrot.lane.b32.xlu1 %v3235_v23, %s3056_s11 }
  0xf5   : > { %745 = vrot.lane.b32.xlu0 %v3223_v19, %s3056_s11 }
  0xf6   : > { %v3473_v10 = vpop.permute.xlu1 %581 }
  0xf7   : > { %5759 = vst [vmem:[#allocation21_spill] sm:$0xff] %v3473_v10  ;;  %v3475_v11 = vpop.permute.xlu0 %579 }
  0xf8   : > { %5760 = vst [vmem:[#allocation22_spill] sm:$0xff] %v3475_v11  ;;  %751 = vrot.lane.b32.xlu1 %v3229_v21, %s3056_s11 }
  0xf9   : > { %749 = vrot.lane.b32.xlu0 %v3218_v18, %s3056_s11 }
  0xfa   : > { %v3481_v12 = vpop.permute.xlu1 %585 }
  0xfb   : > { %5761 = vst [vmem:[#allocation23_spill] sm:$0xff] %v3481_v12  ;;  %v3483_v13 = vpop.permute.xlu0 %583 }
  0xfc   : > { %5762 = vst [vmem:[#allocation24_spill] sm:$0xff] %v3483_v13  ;;  %755 = vrot.lane.b32.xlu1 %v3251_v27, %s3056_s11 }
  0xfd   : > { %753 = vrot.lane.b32.xlu0 %v3248_v26, %s3056_s11 }
  0xfe   : > { %v3489_v14 = vpop.permute.xlu1 %589 }
  0xff   : > { %5763 = vst [vmem:[#allocation25_spill] sm:$0xff] %v3489_v14  ;;  %v3491_v15 = vpop.permute.xlu0 %587 }
 0x100   : > { %5764 = vst [vmem:[#allocation26_spill] sm:$0xff] %v3491_v15  ;;  %759 = vrot.lane.b32.xlu1 %v3266_v31, %s3056_s11 }
 0x101   : > { %757 = vrot.lane.b32.xlu0 %v3268_v32, %s3056_s11 }
 0x102   : > { %v3497_v16 = vpop.permute.xlu1 %602 }
 0x103   : > { %5765 = vst [vmem:[#allocation27_spill] sm:$0xff] %v3497_v16  ;;  %v3499_v17 = vpop.permute.xlu0 %600 }
 0x104   : > { %5766 = vst [vmem:[#allocation28_spill] sm:$0xff] %v3499_v17  ;;  %763 = vrot.lane.b32.xlu1 %v3280_v35, %s3056_s11 }
 0x105   : > { %761 = vrot.lane.b32.xlu0 %v3287_v37, %s3056_s11 }
 0x106   : > { %v3505_v28 = vpop.permute.xlu1 %606 }
 0x107   : > { %5767 = vst [vmem:[#allocation29_spill] sm:$0xff] %v3505_v28  ;;  %v3507_v33 = vpop.permute.xlu0 %604 }
 0x108   : > { %5768 = vst [vmem:[#allocation30_spill] sm:$0xff] %v3507_v33  ;;  %776 = vrot.lane.b32.xlu1 %v3245_v25, %s3057_s25 }
 0x109   : > { %774 = vrot.lane.b32.xlu0 %v3232_v22, %s3057_s25 }
 0x10a   : > { %v3511_v10 = vpop.permute.xlu1 %610 }
 0x10b   : > { %5769 = vst [vmem:[#allocation31_spill] sm:$0xff] %v3511_v10  ;;  %v3513_v15 = vpop.permute.xlu0 %608 }
 0x10c   : > { %5770 = vst [vmem:[#allocation32_spill] sm:$0xff] %v3513_v15  ;;  %780 = vrot.lane.b32.xlu1 %v3240_v24, %s3057_s25 }
 0x10d   : > { %778 = vrot.lane.b32.xlu0 %v3226_v20, %s3057_s25 }
 0x10e   : > { %v3517_v17 = vpop.permute.xlu1 %614 }
 0x10f   : > { %5771 = vst [vmem:[#allocation33_spill] sm:$0xff] %v3517_v17  ;;  %v3519_v14 = vpop.permute.xlu0 %612 }
 0x110   : > { %5772 = vst [vmem:[#allocation34_spill] sm:$0xff] %v3519_v14  ;;  %784 = vrot.lane.b32.xlu1 %v3264_v30, %s3057_s25 }
 0x111   : > { %782 = vrot.lane.b32.xlu0 %v3259_v29, %s3057_s25 }
 0x112   : > { %v3523_v7 = vpop.permute.xlu1 %618 }
 0x113   : > { %5773 = vst [vmem:[#allocation35_spill] sm:$0xff] %v3523_v7  ;;  %v3525_v28 = vpop.permute.xlu0 %616 }
 0x114   : > { %5774 = vst [vmem:[#allocation36_spill] sm:$0xff] %v3525_v28  ;;  %788 = vrot.lane.b32.xlu1 %v3278_v34, %s3057_s25 }
 0x115   : > { %786 = vrot.lane.b32.xlu0 %v3285_v36, %s3057_s25 }
 0x116   : > { %v3529_v22 = vpop.permute.xlu1 %631 }
 0x117   : > { %5775 = vst [vmem:[#allocation37_spill] sm:$0xff] %v3529_v22  ;;  %v3531_v10 = vpop.permute.xlu0 %629 }
 0x118   : > { %5776 = vst [vmem:[#allocation38_spill] sm:$0xff] %v3531_v10  ;;  %792 = vrot.lane.b32.xlu1 %v3296_v38, %s3057_s25 }
 0x119   : > { %790 = vrot.lane.b32.xlu0 %v3301_v39, %s3057_s25  ;;  %s3068_s25 = smov 29  }
 0x11a   : > { %v3535_v14 = vpop.permute.xlu1 %635 }
 0x11b   : > { %5777 = vst [vmem:[#allocation39_spill] sm:$0xff] %v3535_v14  ;;  %v3537_v30 = vpop.permute.xlu0 %633 }
 0x11c   : > { %5778 = vst [vmem:[#allocation40_spill] sm:$0xff] %v3537_v30  ;;  %805 = vrot.lane.b32.xlu1 %v3235_v23, %s3058_s12 }
 0x11d   : > { %803 = vrot.lane.b32.xlu0 %v3223_v19, %s3058_s12 }
 0x11e   : > { %v3541_v7 = vpop.permute.xlu1 %639 }
 0x11f   : > { %5779 = vst [vmem:[#allocation41_spill] sm:$0xff] %v3541_v7  ;;  %v3543_v17 = vpop.permute.xlu0 %637 }
 0x120   : > { %5780 = vst [vmem:[#allocation42_spill] sm:$0xff] %v3543_v17  ;;  %809 = vrot.lane.b32.xlu1 %v3229_v21, %s3058_s12 }
 0x121   : > { %807 = vrot.lane.b32.xlu0 %v3218_v18, %s3058_s12 }
 0x122   : > { %v3547_v10 = vpop.permute.xlu1 %643 }
 0x123   : > { %5781 = vst [vmem:[#allocation43_spill] sm:$0xff] %v3547_v10  ;;  %v3549_v22 = vpop.permute.xlu0 %641 }
 0x124   : > { %5782 = vst [vmem:[#allocation44_spill] sm:$0xff] %v3549_v22  ;;  %813 = vrot.lane.b32.xlu1 %v3251_v27, %s3058_s12 }
 0x125   : > { %811 = vrot.lane.b32.xlu0 %v3248_v26, %s3058_s12 }
 0x126   : > { %v3553_v14 = vpop.permute.xlu1 %647 }
 0x127   : > { %5783 = vst [vmem:[#allocation45_spill] sm:$0xff] %v3553_v14  ;;  %v3555_v30 = vpop.permute.xlu0 %645 }
 0x128   : > { %5784 = vst [vmem:[#allocation46_spill] sm:$0xff] %v3555_v30  ;;  %817 = vrot.lane.b32.xlu1 %v3266_v31, %s3058_s12 }
 0x129   : > { %815 = vrot.lane.b32.xlu0 %v3268_v32, %s3058_s12 }
 0x12a   : > { %v3559_v19 = vpop.permute.xlu1 %660 }
 0x12b   : > { %5785 = vst [vmem:[#allocation47_spill] sm:$0xff] %v3559_v19  ;;  %v3561_v7 = vpop.permute.xlu0 %658 }
 0x12c   : > { %5786 = vst [vmem:[#allocation48_spill] sm:$0xff] %v3561_v7  ;;  %821 = vrot.lane.b32.xlu1 %v3280_v35, %s3058_s12 }
 0x12d   : > { %819 = vrot.lane.b32.xlu0 %v3287_v37, %s3058_s12  ;;  %s3069_s12 = smov 7  }
 0x12e   : > { %v3565_v22 = vpop.permute.xlu1 %664 }
 0x12f   : > { %5787 = vst [vmem:[#allocation49_spill] sm:$0xff] %v3565_v22  ;;  %v3567_v27 = vpop.permute.xlu0 %662 }
 0x130   : > { %5788 = vst [vmem:[#allocation50_spill] sm:$0xff] %v3567_v27  ;;  %834 = vrot.lane.b32.xlu1 %v3226_v20, %s3059_s13 }
 0x131   : > { %832 = vrot.lane.b32.xlu0 %v3245_v25, %s3059_s13 }
 0x132   : > { %v3571_v14 = vpop.permute.xlu1 %668 }
 0x133   : > { %5789 = vst [vmem:[#allocation51_spill] sm:$0xff] %v3571_v14  ;;  %v3573_v10 = vpop.permute.xlu0 %666 }
 0x134   : > { %5790 = vst [vmem:[#allocation52_spill] sm:$0xff] %v3573_v10  ;;  %838 = vrot.lane.b32.xlu1 %v3259_v29, %s3059_s13 }
 0x135   : > { %836 = vrot.lane.b32.xlu0 %v3240_v24, %s3059_s13 }
 0x136   : > { %v3577_v7 = vpop.permute.xlu1 %672 }
 0x137   : > { %5791 = vst [vmem:[#allocation53_spill] sm:$0xff] %v3577_v7  ;;  %v3579_v30 = vpop.permute.xlu0 %670 }
 0x138   : > { %5792 = vst [vmem:[#allocation54_spill] sm:$0xff] %v3579_v30  ;;  %842 = vrot.lane.b32.xlu1 %v3278_v34, %s3059_s13 }
 0x139   : > { %840 = vrot.lane.b32.xlu0 %v3285_v36, %s3059_s13 }
 0x13a   : > { %v3583_v19 = vpop.permute.xlu1 %676 }
 0x13b   : > { %5793 = vst [vmem:[#allocation55_spill] sm:$0xff] %v3583_v19  ;;  %v3585_v27 = vpop.permute.xlu0 %674 }
 0x13c   : > { %5794 = vst [vmem:[#allocation56_spill] sm:$0xff] %v3585_v27  ;;  %846 = vrot.lane.b32.xlu1 %v3296_v38, %s3059_s13  ;;  %v3603_v27 = vld [vmem:[%s358_s30] ss:$16 sps:$4 sm:$0xff]  }
 0x13d   : > { %844 = vrot.lane.b32.xlu0 %v3301_v39, %s3059_s13 }
 0x13e   : > { %v3589_v14 = vpop.permute.xlu1 %689 }
 0x13f   : > { %5795 = vst [vmem:[#allocation57_spill] sm:$0xff] %v3589_v14  ;;  %v3591_v10 = vpop.permute.xlu0 %687 }
 0x140   : > { %5796 = vst [vmem:[#allocation58_spill] sm:$0xff] %v3591_v10  ;;  %857 = vrot.lane.b32.xlu1 %v3218_v18, %s3060_s16 }
 0x141   : > { %855 = vrot.lane.b32.xlu0 %v3235_v23, %s3060_s16 }
 0x142   : > { %v3595_v30 = vpop.permute.xlu1 %693 }
 0x143   : > { %5797 = vst [vmem:[#allocation59_spill] sm:$0xff] %v3595_v30  ;;  %v3597_v7 = vpop.permute.xlu0 %691 }
 0x144   : > { %5798 = vst [vmem:[#allocation60_spill] sm:$0xff] %v3597_v7  ;;  %861 = vrot.lane.b32.xlu1 %v3248_v26, %s3060_s16  ;;  %v3618_v7 = vld [vmem:[%s358_s30 + $0x20] ss:$0 sps:$4 sm:$0xff]   ;;  %s3066_s30 = smov 38  }
 0x145   : > { %859 = vrot.lane.b32.xlu0 %v3229_v21, %s3060_s16 }
 0x146   : > { %v3605_v14 = vpop.permute.xlu1 %697 }
 0x147   : > { %5799 = vst [vmem:[#allocation61_spill] sm:$0xff] %v3605_v14  ;;  %v3607_v10 = vpop.permute.xlu0 %695 }
 0x148   : > { %5800 = vst [vmem:[#allocation62_spill] sm:$0xff] %v3607_v10  ;;  %865 = vrot.lane.b32.xlu1 %v3268_v32, %s3060_s16 }
 0x149   : > { %863 = vrot.lane.b32.xlu0 %v3603_v27, %s3060_s16 }
 0x14a   : > { %v3611_v19 = vpop.permute.xlu1 %701 }
 0x14b   : > { %5801 = vst [vmem:[#allocation63_spill] sm:$0xff] %v3611_v19  ;;  %v3613_v30 = vpop.permute.xlu0 %699 }
 0x14c   : > { %5802 = vst [vmem:[#allocation64_spill] sm:$0xff] %v3613_v30  ;;  %869 = vrot.lane.b32.xlu1 %v3287_v37, %s3060_s16 }
 0x14d   : > { %867 = vrot.lane.b32.xlu0 %v3266_v31, %s3060_s16 }
 0x14e   : > { %v3621_v22 = vpop.permute.xlu1 %705 }
 0x14f   : > { %5803 = vst [vmem:[#allocation65_spill] sm:$0xff] %v3621_v22  ;;  %v3623_v14 = vpop.permute.xlu0 %703 }
 0x150   : > { %5804 = vst [vmem:[#allocation66_spill] sm:$0xff] %v3623_v14  ;;  %873 = vrot.lane.b32.xlu1 %v3618_v7, %s3060_s16  ;;  %v3640_v14 = vrot.slane %v3603_v27, 4 }
 0x151   : > { %871 = vrot.lane.b32.xlu0 %v3280_v35, %s3060_s16 }
 0x152   : > { %v3627_v10 = vpop.permute.xlu1 %718  ;;  %v3657_v13 = vsel %vm468_vm0, %v3640_v14, %v3618_v7 }
 0x153   : > { %v3629_v19 = vpop.permute.xlu0 %716 }
 0x154   : > { %5805 = vst [vmem:[#allocation67_spill] sm:$0xff] %v3629_v19  ;;  %889 = vrot.lane.b32.xlu1 %v3226_v20, %s3061_s10 }
 0x155   : > { %887 = vrot.lane.b32.xlu0 %v3245_v25, %s3061_s10 }
 0x156   : > { %v3633_v30 = vpop.permute.xlu1 %722 }
 0x157   : > { %v3635_v17 = vpop.permute.xlu0 %720 }
 0x158   : > { %893 = vrot.lane.b32.xlu1 %v3259_v29, %s3061_s10 }
 0x159   : > { %891 = vrot.lane.b32.xlu0 %v3240_v24, %s3061_s10 }
 0x15a   : > { %v3642_v22 = vpop.permute.xlu1 %726 }
 0x15b   : > { %5806 = vst [vmem:[#allocation68_spill] sm:$0xff] %v3642_v22  ;;  %v3644_v28 = vpop.permute.xlu0 %724 }
 0x15c   : > { %897 = vrot.lane.b32.xlu1 %v3285_v36, %s3061_s10 }
 0x15d   : > { %895 = vrot.lane.b32.xlu0 %v3640_v14, %s3061_s10 }
 0x15e   : > { %v3648_v19 = vpop.permute.xlu1 %730 }
 0x15f   : > { %5807 = vst [vmem:[#allocation69_spill] sm:$0xff] %v3648_v19  ;;  %v3650_v15 = vpop.permute.xlu0 %728 }
 0x160   : > { %5808 = vst [vmem:[#allocation70_spill] sm:$0xff] %v3650_v15  ;;  %901 = vrot.lane.b32.xlu1 %v3301_v39, %s3061_s10 }
 0x161   : > { %899 = vrot.lane.b32.xlu0 %v3278_v34, %s3061_s10 }
 0x162   : > { %v3659_v22 = vpop.permute.xlu1 %734 }
 0x163   : > { %5809 = vst [vmem:[#allocation71_spill] sm:$0xff] %v3659_v22  ;;  %v3661_v12 = vpop.permute.xlu0 %732 }
 0x164   : > { %5810 = vst [vmem:[#allocation72_spill] sm:$0xff] %v3661_v12  ;;  %905 = vrot.lane.b32.xlu1 %v3657_v13, %s3061_s10 }
 0x165   : > { %903 = vrot.lane.b32.xlu0 %v3296_v38, %s3061_s10 }
 0x166   : > { %v3665_v19 = vpop.permute.xlu1 %747 }
 0x167   : > { %5811 = vst [vmem:[#allocation73_spill] sm:$0xff] %v3665_v19  ;;  %v3667_v15 = vpop.permute.xlu0 %745 }
 0x168   : > { %5812 = vst [vmem:[#allocation74_spill] sm:$0xff] %v3667_v15  ;;  %1039 = vrot.lane.b32.xlu1 %v3657_v13, %s3047_s23 }
 0x169   : > { %1037 = vrot.lane.b32.xlu0 %v3640_v14, %s3047_s23  ;;  %s3063_s23 = smov 48  }
 0x16a   : > { %v3673_v11 = vpop.permute.xlu1 %751 }
 0x16b   : > { %5813 = vst [vmem:[#allocation75_spill] sm:$0xff] %v3673_v11  ;;  %v3675_v16 = vpop.permute.xlu0 %749 }
 0x16c   : > { %5814 = vst [vmem:[#allocation76_spill] sm:$0xff] %v3675_v16  ;;  %1045 = vrot.lane.b32.xlu1 %v3218_v18, %s3062_s17 }
 0x16d   : > { %1043 = vrot.lane.b32.xlu0 %v3235_v23, %s3062_s17 }
 0x16e   : > { %v3679_v22 = vpop.permute.xlu1 %755 }
 0x16f   : > { %5815 = vst [vmem:[#allocation77_spill] sm:$0xff] %v3679_v22  ;;  %v3681_v19 = vpop.permute.xlu0 %753 }
 0x170   : > { %5816 = vst [vmem:[#allocation78_spill] sm:$0xff] %v3681_v19  ;;  %1049 = vrot.lane.b32.xlu1 %v3248_v26, %s3062_s17 }
 0x171   : > { %1047 = vrot.lane.b32.xlu0 %v3229_v21, %s3062_s17 }
 0x172   : > { %v3685_v15 = vpop.permute.xlu1 %759 }
 0x173   : > { %5817 = vst [vmem:[#allocation79_spill] sm:$0xff] %v3685_v15  ;;  %v3687_v12 = vpop.permute.xlu0 %757 }
 0x174   : > { %5818 = vst [vmem:[#allocation80_spill] sm:$0xff] %v3687_v12  ;;  %1053 = vrot.lane.b32.xlu1 %v3268_v32, %s3062_s17 }
 0x175   : > { %1051 = vrot.lane.b32.xlu0 %v3603_v27, %s3062_s17 }
 0x176   : > { %v3691_v11 = vpop.permute.xlu1 %763 }
 0x177   : > { %5819 = vst [vmem:[#allocation81_spill] sm:$0xff] %v3691_v11  ;;  %v3693_v16 = vpop.permute.xlu0 %761 }
 0x178   : > { %5820 = vst [vmem:[#allocation82_spill] sm:$0xff] %v3693_v16  ;;  %1057 = vrot.lane.b32.xlu1 %v3287_v37, %s3062_s17 }
 0x179   : > { %1055 = vrot.lane.b32.xlu0 %v3266_v31, %s3062_s17 }
 0x17a   : > { %v3697_v22 = vpop.permute.xlu1 %776 }
 0x17b   : > { %5821 = vst [vmem:[#allocation83_spill] sm:$0xff] %v3697_v22  ;;  %v3699_v19 = vpop.permute.xlu0 %774 }
 0x17c   : > { %5822 = vst [vmem:[#allocation84_spill] sm:$0xff] %v3699_v19  ;;  %1061 = vrot.lane.b32.xlu1 %v3618_v7, %s3062_s17 }
 0x17d   : > { %1059 = vrot.lane.b32.xlu0 %v3280_v35, %s3062_s17 }
 0x17e   : > { %v3703_v12 = vpop.permute.xlu1 %780 }
 0x17f   : > { %5823 = vst [vmem:[#allocation85_spill] sm:$0xff] %v3703_v12  ;;  %v3705_v15 = vpop.permute.xlu0 %778 }
 0x180   : > { %5824 = vst [vmem:[#allocation86_spill] sm:$0xff] %v3705_v15  ;;  %1074 = vrot.lane.b32.xlu1 %v3226_v20, %s3063_s23 }
 0x181   : > { %1072 = vrot.lane.b32.xlu0 %v3245_v25, %s3063_s23 }
 0x182   : > { %v3709_v11 = vpop.permute.xlu1 %784 }
 0x183   : > { %5825 = vst [vmem:[#allocation87_spill] sm:$0xff] %v3709_v11  ;;  %v3711_v16 = vpop.permute.xlu0 %782 }
 0x184   : > { %5826 = vst [vmem:[#allocation88_spill] sm:$0xff] %v3711_v16  ;;  %1078 = vrot.lane.b32.xlu1 %v3259_v29, %s3063_s23 }
 0x185   : > { %1076 = vrot.lane.b32.xlu0 %v3240_v24, %s3063_s23 }
 0x186   : > { %v3715_v19 = vpop.permute.xlu1 %788 }
 0x187   : > { %5827 = vst [vmem:[#allocation89_spill] sm:$0xff] %v3715_v19  ;;  %v3717_v22 = vpop.permute.xlu0 %786 }
 0x188   : > { %5828 = vst [vmem:[#allocation90_spill] sm:$0xff] %v3717_v22  ;;  %1082 = vrot.lane.b32.xlu1 %v3285_v36, %s3063_s23 }
 0x189   : > { %1080 = vrot.lane.b32.xlu0 %v3640_v14, %s3063_s23 }
 0x18a   : > { %v3721_v15 = vpop.permute.xlu1 %792 }
 0x18b   : > { %5829 = vst [vmem:[#allocation91_spill] sm:$0xff] %v3721_v15  ;;  %v3723_v12 = vpop.permute.xlu0 %790 }
 0x18c   : > { %5830 = vst [vmem:[#allocation92_spill] sm:$0xff] %v3723_v12  ;;  %1086 = vrot.lane.b32.xlu1 %v3301_v39, %s3063_s23 }
 0x18d   : > { %1084 = vrot.lane.b32.xlu0 %v3278_v34, %s3063_s23 }
 0x18e   : > { %v3727_v11 = vpop.permute.xlu1 %805 }
 0x18f   : > { %5831 = vst [vmem:[#allocation93_spill] sm:$0xff] %v3727_v11  ;;  %v3729_v16 = vpop.permute.xlu0 %803 }
 0x190   : > { %5832 = vst [vmem:[#allocation94_spill] sm:$0xff] %v3729_v16  ;;  %1090 = vrot.lane.b32.xlu1 %v3657_v13, %s3063_s23 }
 0x191   : > { %1088 = vrot.lane.b32.xlu0 %v3296_v38, %s3063_s23 }
 0x192   : > { %v3733_v22 = vpop.permute.xlu1 %809 }
 0x193   : > { %5833 = vst [vmem:[#allocation95_spill] sm:$0xff] %v3733_v22  ;;  %v3735_v19 = vpop.permute.xlu0 %807 }
 0x194   : > { %5834 = vst [vmem:[#allocation96_spill] sm:$0xff] %v3735_v19  ;;  %1103 = vrot.lane.b32.xlu1 %v3218_v18, %s3064_s18 }
 0x195   : > { %1101 = vrot.lane.b32.xlu0 %v3235_v23, %s3064_s18 }
 0x196   : > { %v3739_v12 = vpop.permute.xlu1 %813 }
 0x197   : > { %5835 = vst [vmem:[#allocation97_spill] sm:$0xff] %v3739_v12  ;;  %v3741_v15 = vpop.permute.xlu0 %811 }
 0x198   : > { %5836 = vst [vmem:[#allocation98_spill] sm:$0xff] %v3741_v15  ;;  %1107 = vrot.lane.b32.xlu1 %v3248_v26, %s3064_s18 }
 0x199   : > { %1105 = vrot.lane.b32.xlu0 %v3229_v21, %s3064_s18 }
 0x19a   : > { %v3745_v16 = vpop.permute.xlu1 %817 }
 0x19b   : > { %5837 = vst [vmem:[#allocation99_spill] sm:$0xff] %v3745_v16  ;;  %v3747_v11 = vpop.permute.xlu0 %815 }
 0x19c   : > { %5838 = vst [vmem:[#allocation100_spill] sm:$0xff] %v3747_v11  ;;  %1111 = vrot.lane.b32.xlu1 %v3268_v32, %s3064_s18 }
 0x19d   : > { %1109 = vrot.lane.b32.xlu0 %v3603_v27, %s3064_s18 }
 0x19e   : > { %v3751_v19 = vpop.permute.xlu1 %821 }
 0x19f   : > { %5839 = vst [vmem:[#allocation101_spill] sm:$0xff] %v3751_v19  ;;  %v3753_v22 = vpop.permute.xlu0 %819 }
 0x1a0   : > { %5840 = vst [vmem:[#allocation102_spill] sm:$0xff] %v3753_v22  ;;  %1115 = vrot.lane.b32.xlu1 %v3287_v37, %s3064_s18 }
 0x1a1   : > { %1113 = vrot.lane.b32.xlu0 %v3266_v31, %s3064_s18 }
 0x1a2   : > { %v3757_v12 = vpop.permute.xlu1 %834 }
 0x1a3   : > { %5841 = vst [vmem:[#allocation103_spill] sm:$0xff] %v3757_v12  ;;  %v3759_v15 = vpop.permute.xlu0 %832 }
 0x1a4   : > { %5842 = vst [vmem:[#allocation104_spill] sm:$0xff] %v3759_v15  ;;  %1119 = vrot.lane.b32.xlu1 %v3618_v7, %s3064_s18 }
 0x1a5   : > { %1117 = vrot.lane.b32.xlu0 %v3280_v35, %s3064_s18  ;;  %s2825_s18 = sshll.u32 %s2804_s28, 2 }
 0x1a6   : > { %v3763_v11 = vpop.permute.xlu1 %838  ;;  %p398_p0 = scmp.lt.s32.totalorder %s2825_s18, 15 }
 0x1a7   : > { %5843 = vst [vmem:[#allocation105_spill] sm:$0xff] %v3763_v11  ;;  %v3765_v16 = vpop.permute.xlu0 %836 }
 0x1a8   : > { %5844 = vst [vmem:[#allocation106_spill] sm:$0xff] %v3765_v16  ;;  %1132 = vrot.lane.b32.xlu1 %v3226_v20, %s3065_s20  ;;  %s6091_s18 = smov (!%p398_p0, %s2825_s18), 15 }
 0x1a9   : > { %1130 = vrot.lane.b32.xlu0 %v3245_v25, %s3065_s20  ;;  %s2827_s27 = sshll.u32 %s6091_s18, 2 }
 0x1aa   : > { %v3769_v22 = vpop.permute.xlu1 %842 }
 0x1ab   : > { %5845 = vst [vmem:[#allocation107_spill] sm:$0xff] %v3769_v22  ;;  %v3771_v19 = vpop.permute.xlu0 %840 }
 0x1ac   : > { %5846 = vst [vmem:[#allocation108_spill] sm:$0xff] %v3771_v19  ;;  %1136 = vrot.lane.b32.xlu1 %v3259_v29, %s3065_s20 }
 0x1ad   : > { %1134 = vrot.lane.b32.xlu0 %v3240_v24, %s3065_s20 }
 0x1ae   : > { %v3775_v15 = vpop.permute.xlu1 %846 }
 0x1af   : > { %5847 = vst [vmem:[#allocation109_spill] sm:$0xff] %v3775_v15  ;;  %v3777_v12 = vpop.permute.xlu0 %844 }
 0x1b0   : > { %5848 = vst [vmem:[#allocation110_spill] sm:$0xff] %v3777_v12  ;;  %1140 = vrot.lane.b32.xlu1 %v3285_v36, %s3065_s20 }
 0x1b1   : > { %1138 = vrot.lane.b32.xlu0 %v3640_v14, %s3065_s20 }
 0x1b2   : > { %v3781_v16 = vpop.permute.xlu1 %857 }
 0x1b3   : > { %5849 = vst [vmem:[#allocation111_spill] sm:$0xff] %v3781_v16  ;;  %v3783_v11 = vpop.permute.xlu0 %855 }
 0x1b4   : > { %5850 = vst [vmem:[#allocation112_spill] sm:$0xff] %v3783_v11  ;;  %1144 = vrot.lane.b32.xlu1 %v3301_v39, %s3065_s20 }
 0x1b5   : > { %1142 = vrot.lane.b32.xlu0 %v3278_v34, %s3065_s20 }
 0x1b6   : > { %v3787_v19 = vpop.permute.xlu1 %861 }
 0x1b7   : > { %5851 = vst [vmem:[#allocation113_spill] sm:$0xff] %v3787_v19  ;;  %v3789_v22 = vpop.permute.xlu0 %859 }
 0x1b8   : > { %5852 = vst [vmem:[#allocation114_spill] sm:$0xff] %v3789_v22  ;;  %1148 = vrot.lane.b32.xlu1 %v3657_v13, %s3065_s20 }
 0x1b9   : > { %1146 = vrot.lane.b32.xlu0 %v3296_v38, %s3065_s20 }
 0x1ba   : > { %v3793_v15 = vpop.permute.xlu1 %865 }
 0x1bb   : > { %5853 = vst [vmem:[#allocation115_spill] sm:$0xff] %v3793_v15  ;;  %v3795_v12 = vpop.permute.xlu0 %863 }
 0x1bc   : > { %5854 = vst [vmem:[#allocation116_spill] sm:$0xff] %v3795_v12  ;;  %1161 = vrot.lane.b32.xlu1 %v3218_v18, %s3066_s30 }
 0x1bd   : > { %1159 = vrot.lane.b32.xlu0 %v3235_v23, %s3066_s30 }
 0x1be   : > { %v3799_v11 = vpop.permute.xlu1 %869 }
 0x1bf   : > { %5855 = vst [vmem:[#allocation117_spill] sm:$0xff] %v3799_v11  ;;  %v3801_v16 = vpop.permute.xlu0 %867 }
 0x1c0   : > { %5856 = vst [vmem:[#allocation118_spill] sm:$0xff] %v3801_v16  ;;  %1165 = vrot.lane.b32.xlu1 %v3248_v26, %s3066_s30 }
 0x1c1   : > { %1163 = vrot.lane.b32.xlu0 %v3229_v21, %s3066_s30 }
 0x1c2   : > { %v3805_v22 = vpop.permute.xlu1 %873 }
 0x1c3   : > { %5857 = vst [vmem:[#allocation119_spill] sm:$0xff] %v3805_v22  ;;  %v3807_v19 = vpop.permute.xlu0 %871 }
 0x1c4   : > { %5858 = vst [vmem:[#allocation120_spill] sm:$0xff] %v3807_v19  ;;  %1169 = vrot.lane.b32.xlu1 %v3268_v32, %s3066_s30 }
 0x1c5   : > { %1167 = vrot.lane.b32.xlu0 %v3603_v27, %s3066_s30 }
 0x1c6   : > { %v3811_v15 = vpop.permute.xlu1 %889 }
 0x1c7   : > { %5859 = vst [vmem:[#allocation121_spill] sm:$0xff] %v3811_v15  ;;  %v3813_v12 = vpop.permute.xlu0 %887 }
 0x1c8   : > { %5860 = vst [vmem:[#allocation122_spill] sm:$0xff] %v3813_v12  ;;  %1173 = vrot.lane.b32.xlu1 %v3287_v37, %s3066_s30 }
 0x1c9   : > { %1171 = vrot.lane.b32.xlu0 %v3266_v31, %s3066_s30 }
 0x1ca   : > { %v3817_v16 = vpop.permute.xlu1 %893 }
 0x1cb   : > { %5861 = vst [vmem:[#allocation123_spill] sm:$0xff] %v3817_v16  ;;  %v3819_v11 = vpop.permute.xlu0 %891 }
 0x1cc   : > { %5862 = vst [vmem:[#allocation124_spill] sm:$0xff] %v3819_v11  ;;  %1177 = vrot.lane.b32.xlu1 %v3618_v7, %s3066_s30 }
 0x1cd   : > { %1175 = vrot.lane.b32.xlu0 %v3280_v35, %s3066_s30 }
 0x1ce   : > { %v3823_v19 = vpop.permute.xlu1 %897 }
 0x1cf   : > { %5863 = vst [vmem:[#allocation125_spill] sm:$0xff] %v3823_v19  ;;  %v3825_v22 = vpop.permute.xlu0 %895 }
 0x1d0   : > { %5864 = vst [vmem:[#allocation126_spill] sm:$0xff] %v3825_v22  ;;  %1190 = vrot.lane.b32.xlu1 %v3226_v20, %s3067_s21 }
 0x1d1   : > { %1188 = vrot.lane.b32.xlu0 %v3245_v25, %s3067_s21 }
 0x1d2   : > { %v3829_v12 = vpop.permute.xlu1 %901 }
 0x1d3   : > { %5865 = vst [vmem:[#allocation127_spill] sm:$0xff] %v3829_v12  ;;  %v3831_v15 = vpop.permute.xlu0 %899 }
 0x1d4   : > { %5866 = vst [vmem:[#allocation128_spill] sm:$0xff] %v3831_v15  ;;  %1194 = vrot.lane.b32.xlu1 %v3259_v29, %s3067_s21 }
 0x1d5   : > { %1192 = vrot.lane.b32.xlu0 %v3240_v24, %s3067_s21 }
 0x1d6   : > { %v3835_v16 = vpop.permute.xlu1 %905 }
 0x1d7   : > { %5867 = vst [vmem:[#allocation129_spill] sm:$0xff] %v3835_v16  ;;  %v3837_v11 = vpop.permute.xlu0 %903 }
 0x1d8   : > { %5868 = vst [vmem:[#allocation130_spill] sm:$0xff] %v3837_v11  ;;  %1198 = vrot.lane.b32.xlu1 %v3285_v36, %s3067_s21 }
 0x1d9   : > { %1196 = vrot.lane.b32.xlu0 %v3640_v14, %s3067_s21 }
 0x1da   : > { %v3841_v19 = vpop.permute.xlu1 %1039 }
 0x1db   : > { %v3843_v20 = vpop.permute.xlu0 %1037 }
 0x1dc   : > { %1202 = vrot.lane.b32.xlu1 %v3301_v39, %s3067_s21 }
 0x1dd   : > { %1200 = vrot.lane.b32.xlu0 %v3278_v34, %s3067_s21 }
 0x1de   : > { %v3847_v25 = vpop.permute.xlu1 %1045 }
 0x1df   : > { %v3849_v29 = vpop.permute.xlu0 %1043 }
 0x1e0   : > { %1206 = vrot.lane.b32.xlu1 %v3657_v13, %s3067_s21  ;;  %v1064_v1 = vsel %vm1063_vm2, %v3849_v29, %v3847_v25 }
 0x1e1   : > { %1204 = vrot.lane.b32.xlu0 %v3296_v38, %s3067_s21  ;;  %s400_s21 = scalar_lea.vmem %s5599_s2, %s6091_s18 }
 0x1e2   : > { %v3853_v24 = vpop.permute.xlu1 %1049 }
 0x1e3   : > { %v3855_v36 = vpop.permute.xlu0 %1047 }
 0x1e4   : > { %1219 = vrot.lane.b32.xlu1 %v3218_v18, %s3068_s25  ;;  %v1065_v56 = vsel %vm1063_vm2, %v3847_v25, %v3855_v36 }
 0x1e5   : > { %1217 = vrot.lane.b32.xlu0 %v3235_v23, %s3068_s25 }
 0x1e6   : > { %v3859_v39 = vpop.permute.xlu1 %1053 }
 0x1e7   : > { %v3861_v34 = vpop.permute.xlu0 %1051 }
 0x1e8   : > { %1223 = vrot.lane.b32.xlu1 %v3248_v26, %s3068_s25  ;;  %v1067_v59 = vsel %vm1063_vm2, %v3853_v24, %v3861_v34 }
 0x1e9   : > { %1221 = vrot.lane.b32.xlu0 %v3229_v21, %s3068_s25 }
 0x1ea   : > { %v3865_v16 = vpop.permute.xlu1 %1057 }
 0x1eb   : > { %v3867_v38 = vpop.permute.xlu0 %1055 }
 0x1ec   : > { %1227 = vrot.lane.b32.xlu1 %v3268_v32, %s3068_s25  ;;  %v1069_v25 = vsel %vm1063_vm2, %v3867_v38, %v3865_v16 }
 0x1ed   : > { %1225 = vrot.lane.b32.xlu0 %v3603_v27, %s3068_s25 }
 0x1ee   : > { %v3871_v12 = vpop.permute.xlu1 %1061 }
 0x1ef   : > { %v3873_v11 = vpop.permute.xlu0 %1059 }
 0x1f0   : > { %1231 = vrot.lane.b32.xlu1 %v3287_v37, %s3068_s25 }
 0x1f1   : > { %1229 = vrot.lane.b32.xlu0 %v3266_v31, %s3068_s25 }
 0x1f2   : > { %v3877_v15 = vpop.permute.xlu1 %1074 }
 0x1f3   : > { %v3879_v22 = vpop.permute.xlu0 %1072 }
 0x1f4   : > { %1235 = vrot.lane.b32.xlu1 %v3618_v7, %s3068_s25 }
 0x1f5   : > { %1233 = vrot.lane.b32.xlu0 %v3280_v35, %s3068_s25 }
 0x1f6   : > { %v3883_v33 = vpop.permute.xlu1 %1078 }
 0x1f7   : > { %v3885_v6 = vpop.permute.xlu0 %1076 }
 0x1f8   : > { %1248 = vrot.lane.b32.xlu1 %v3657_v13, %s3055_s7  ;;  %v1094_v29 = vsel %vm1092_vm3, %v3877_v15, %v3885_v6 }
 0x1f9   : > { %1246 = vrot.lane.b32.xlu0 %v3640_v14, %s3055_s7  ;;  %s3070_s7 = smov 111  }
 0x1fa   : > { %v3891_v9 = vpop.permute.xlu1 %1082 }
 0x1fb   : > { %v3893_v8 = vpop.permute.xlu0 %1080 }
 0x1fc   : > { %1254 = vrot.lane.b32.xlu1 %v3618_v7, %s3056_s11 }
 0x1fd   : > { %1252 = vrot.lane.b32.xlu0 %v3603_v27, %s3056_s11 }
 0x1fe   : > { %v3899_v0 = vpop.permute.xlu1 %1086 }
 0x1ff   : > { %v3901_v5 = vpop.permute.xlu0 %1084 }
 0x200   : > { %1347 = vrot.lane.b32.xlu1 %v3218_v18, %s3069_s12 }
 0x201   : > { %1345 = vrot.lane.b32.xlu0 %v3235_v23, %s3069_s12  ;;  %v3924_v23 = vsel %vm468_vm0, %v3268_v32, %v506_v4  ;;  %v3942_v32 = vsel %vm468_vm0, %v3287_v37, %v508_v2  ;;  %v1262_v37 = vsel %vm468_vm0, %v3618_v7, %v3843_v20  ;;  %v3978_v7 = vsel %vm504_vm1, %v3375_v47, %v3373_v46 }
 0x202   : > { %v3907_v13 = vpop.permute.xlu1 %1090  ;;  %v3994_v46 = vsel %vm504_vm1, %v3381_v49, %v3379_v48 }
 0x203   : > { %v3909_v14 = vpop.permute.xlu0 %1088 }
 0x204   : > { %1351 = vrot.lane.b32.xlu1 %v3248_v26, %s3069_s12  ;;  %v507_v26 = vsel %vm504_vm1, %v3355_v40, %v3361_v42  ;;  %v1041_v40 = vsel %vm504_vm1, %v3369_v45, %v3843_v20 }
 0x205   : > { %1349 = vrot.lane.b32.xlu0 %v3229_v21, %s3069_s12  ;;  %v3946_v4 = vsel %vm468_vm0, %v3266_v31, %v507_v26  ;;  %v1259_v31 = vsel %vm468_vm0, %v3280_v35, %v1041_v40 }
 0x206   : > { %v3918_v3 = vpop.permute.xlu1 %1103 }
 0x207   : > { %v3920_v18 = vpop.permute.xlu0 %1101 }
 0x208   : > { %1355 = vrot.lane.b32.xlu1 %v3924_v23, %s3069_s12 }
 0x209   : > { %1353 = vrot.lane.b32.xlu0 %v3603_v27, %s3069_s12 }
 0x20a   : > { %v3936_v21 = vpop.permute.xlu1 %1107 }
 0x20b   : > { %v3938_v54 = vpop.permute.xlu0 %1105 }
 0x20c   : > { %1359 = vrot.lane.b32.xlu1 %v3942_v32, %s3069_s12 }
 0x20d   : > { %1357 = vrot.lane.b32.xlu0 %v3946_v4, %s3069_s12 }
 0x20e   : > { %v3955_v42 = vpop.permute.xlu1 %1111 }
 0x20f   : > { %v3957_v27 = vpop.permute.xlu0 %1109 }
 0x210   : > { %1363 = vrot.lane.b32.xlu1 %v1262_v37, %s3069_s12  ;;  %v1042_v37 = vsel %vm504_vm1, %v3379_v48, %v3841_v19 }
 0x211   : > { %1361 = vrot.lane.b32.xlu0 %v1259_v31, %s3069_s12 }
 0x212   : > { %v3966_v2 = vpop.permute.xlu1 %1115 }
 0x213   : > { %v3968_v26 = vpop.permute.xlu0 %1113 }
 0x214   : > { %1367 = vrot.lane.b32.xlu1 %v3973_v61, %s3069_s12 }
 0x215   : > { %1365 = vrot.lane.b32.xlu0 %v3978_v7, %s3069_s12 }
 0x216   : > { %v3984_v20 = vpop.permute.xlu1 %1119 }
 0x217   : > { %v3986_v40 = vpop.permute.xlu0 %1117 }
 0x218   : > { %1371 = vrot.lane.b32.xlu1 %v1042_v37, %s3069_s12  ;;  %v1066_v37 = vsel %vm1063_vm2, %v3855_v36, %v3853_v24 }
 0x219   : > { %1369 = vrot.lane.b32.xlu0 %v3994_v46, %s3069_s12 }
 0x21a   : > { %v3999_v31 = vpop.permute.xlu1 %1132 }
 0x21b   : > { %v4001_v58 = vpop.permute.xlu0 %1130 }
 0x21c   : > { %1375 = vrot.lane.b32.xlu1 %v1064_v1, %s3069_s12 }
 0x21d   : > { %1373 = vrot.lane.b32.xlu0 %v3841_v19, %s3069_s12 }
 0x21e   : > { %v4009_v49 = vpop.permute.xlu1 %1136 }
 0x21f   : > { %v4011_v57 = vpop.permute.xlu0 %1134 }
 0x220   : > { %1379 = vrot.lane.b32.xlu1 %v1066_v37, %s3069_s12  ;;  %v1068_v37 = vsel %vm1063_vm2, %v3859_v39, %v3867_v38  ;;  %v1071_v39 = vsel %vm1063_vm2, %v3873_v11, %v3871_v12 }
 0x221   : > { %1377 = vrot.lane.b32.xlu0 %v1065_v56, %s3069_s12  ;;  %v1093_v56 = vsel %vm1092_vm3, %v3879_v22, %v3877_v15  ;;  %v1096_v15 = vsel %vm1092_vm3, %v3883_v33, %v3893_v8  ;;  %v1095_v22 = vsel %vm1092_vm3, %v3885_v6, %v3883_v33 }
 0x222   : > { %v4021_v1 = vpop.permute.xlu1 %1140 }
 0x223   : > { %v4023_v19 = vpop.permute.xlu0 %1138 }
 0x224   : > { %1383 = vrot.lane.b32.xlu1 %v3861_v34, %s3069_s12  ;;  %v1268_v34 = vsel %vm468_vm0, %v1069_v25, %v1094_v29  ;;  %v1070_v29 = vsel %vm1063_vm2, %v3865_v16, %v3873_v11  ;;  %v1277_v11 = vsel %vm468_vm0, %v3871_v12, %v3893_v8  ;;  %vm707_vm2 = vcmask 867328  }
 0x225   : > { %1381 = vrot.lane.b32.xlu0 %v1067_v59, %s3069_s12  ;;  %v1265_v59 = vsel %vm468_vm0, %v1068_v37, %v1093_v56  ;;  %v1274_v56 = vsel %vm468_vm0, %v1071_v39, %v1096_v15  ;;  %v1271_v6 = vsel %vm468_vm0, %v1070_v29, %v1095_v22  ;;  %v1100_v22 = vsel %vm1092_vm3, %v3909_v14, %v3907_v13 }
 0x226   : > { %v4040_v36 = vpop.permute.xlu1 %1144 }
 0x227   : > { %v4045_v24 = vpop.permute.xlu0 %1142 }
 0x228   : > { %1387 = vrot.lane.b32.xlu1 %v1268_v34, %s3069_s12  ;;  %v1097_v34 = vsel %vm1092_vm3, %v3891_v9, %v3901_v5  ;;  %v1098_v9 = vsel %vm1092_vm3, %v3901_v5, %v3899_v0  ;;  %v1122_v5 = vsel %vm1121_vm4, %v3920_v18, %v3918_v3  ;;  %v1126_v18 = vsel %vm1121_vm4, %v3955_v42, %v3968_v26 }
 0x229   : > { %1385 = vrot.lane.b32.xlu0 %v1265_v59, %s3069_s12  ;;  %v1099_v59 = vsel %vm1092_vm3, %v3899_v0, %v3909_v14  ;;  %v1123_v0 = vsel %vm1121_vm4, %v3918_v3, %v3938_v54  ;;  %v1124_v3 = vsel %vm1121_vm4, %v3938_v54, %v3936_v21  ;;  %v1152_v54 = vsel %vm1150_vm5, %v3999_v31, %v4011_v57 }
 0x22a   : > { %v4060_v38 = vpop.permute.xlu1 %1148  ;;  %vm765_vm3 = vcmask 220160  }
 0x22b   : > { %v4065_v25 = vpop.permute.xlu0 %1146 }
 0x22c   : > { %1391 = vrot.lane.b32.xlu1 %v1274_v56, %s3069_s12  ;;  %v1125_v56 = vsel %vm1121_vm4, %v3936_v21, %v3957_v27  ;;  %v1128_v21 = vsel %vm1121_vm4, %v3966_v2, %v3986_v40 }
 0x22d   : > { %1389 = vrot.lane.b32.xlu0 %v1271_v6, %s3069_s12  ;;  %v1151_v6 = vsel %vm1150_vm5, %v4001_v58, %v3999_v31  ;;  %v1153_v58 = vsel %vm1150_vm5, %v4011_v57, %v4009_v49  ;;  %v1154_v57 = vsel %vm1150_vm5, %v4009_v49, %v4023_v19  ;;  %v1129_v31 = vsel %vm1121_vm4, %v3986_v40, %v3984_v20 }
 0x22e   : > { %v4071_v33 = vpop.permute.xlu1 %1161  ;;  %v1155_v40 = vsel %vm1150_vm5, %v4021_v1, %v4045_v24 }
 0x22f   : > { %v4073_v37 = vpop.permute.xlu0 %1159 }
 0x230   : > { %1395 = vrot.lane.b32.xlu1 %v1097_v34, %s3069_s12 }
 0x231   : > { %1393 = vrot.lane.b32.xlu0 %v1277_v11, %s3069_s12 }
 0x232   : > { %v4083_v16 = vpop.permute.xlu1 %1165 }
 0x233   : > { %v4085_v15 = vpop.permute.xlu0 %1163 }
 0x234   : > { %1399 = vrot.lane.b32.xlu1 %v1099_v59, %s3069_s12  ;;  %v1280_v59 = vsel %vm468_vm0, %v1126_v18, %v1151_v6  ;;  %v1158_v18 = vsel %vm1150_vm5, %v4065_v25, %v4060_v38 }
 0x235   : > { %1397 = vrot.lane.b32.xlu0 %v1098_v9, %s3069_s12  ;;  %v1127_v9 = vsel %vm1121_vm4, %v3968_v26, %v3966_v2  ;;  %v1292_v2 = vsel %vm468_vm0, %v3984_v20, %v4023_v19  ;;  %v1289_v26 = vsel %vm468_vm0, %v1129_v31, %v1154_v57  ;;  %vm794_vm4 = vcmask 211968  }
 0x236   : > { %v4095_v8 = vpop.permute.xlu1 %1169 }
 0x237   : > { %v4097_v12 = vpop.permute.xlu0 %1167 }
 0x238   : > { %1403 = vrot.lane.b32.xlu1 %v3907_v13, %s3069_s12 }
 0x239   : > { %1401 = vrot.lane.b32.xlu0 %v1100_v22, %s3069_s12 }
 0x23a   : > { %v4105_v39 = vpop.permute.xlu1 %1173 }
 0x23b   : > { %v4107_v29 = vpop.permute.xlu0 %1171 }
 0x23c   : > { %1407 = vrot.lane.b32.xlu1 %v1123_v0, %s3069_s12  ;;  %v1286_v0 = vsel %vm468_vm0, %v1128_v21, %v1153_v58  ;;  %v1180_v58 = vsel %vm1179_vm6, %v4073_v37, %v4071_v33  ;;  %v1184_v57 = vsel %vm1179_vm6, %v4095_v8, %v4107_v29 }
 0x23d   : > { %1405 = vrot.lane.b32.xlu0 %v1122_v5, %s3069_s12  ;;  %v1283_v5 = vsel %vm468_vm0, %v1127_v9, %v1152_v54 }
 0x23e   : > { %v4117_v13 = vpop.permute.xlu1 %1177 }
 0x23f   : > { %v4119_v14 = vpop.permute.xlu0 %1175 }
 0x240   : > { %1411 = vrot.lane.b32.xlu1 %v1125_v56, %s3069_s12  ;;  %v1186_v8 = vsel %vm1179_vm6, %v4105_v39, %v4119_v14 }
 0x241   : > { %1409 = vrot.lane.b32.xlu0 %v1124_v3, %s3069_s12  ;;  %v1156_v3 = vsel %vm1150_vm5, %v4045_v24, %v4040_v36 }
 0x242   : > { %v1191_v34 = vpop.permute.xlu1 %1190 }
 0x243   : > { %v1189_v11 = vpop.permute.xlu0 %1188 }
 0x244   : > { %1415 = vrot.lane.b32.xlu1 %v1280_v59, %s3069_s12  ;;  %v1157_v59 = vsel %vm1150_vm5, %v4040_v36, %v4065_v25  ;;  %v1182_v36 = vsel %vm1179_vm6, %v4085_v15, %v4083_v16  ;;  %v1181_v25 = vsel %vm1179_vm6, %v4071_v33, %v4085_v15  ;;  %v1185_v33 = vsel %vm1179_vm6, %v4107_v29, %v4105_v39 }
 0x245   : > { %1413 = vrot.lane.b32.xlu0 %v3957_v27, %s3069_s12  ;;  %vm823_vm5 = vcmask 146432  }
 0x246   : > { %v1195_v42 = vpop.permute.xlu1 %1194 }
 0x247   : > { %v1193_v22 = vpop.permute.xlu0 %1192 }
 0x248   : > { %1419 = vrot.lane.b32.xlu1 %v1286_v0, %s3069_s12  ;;  %v1183_v0 = vsel %vm1179_vm6, %v4083_v16, %v4097_v12 }
 0x249   : > { %1417 = vrot.lane.b32.xlu0 %v1283_v5, %s3069_s12  ;;  %v1209_v5 = vsel %vm1208_vm7, %v1189_v11, %v1191_v34  ;;  %v1187_v11 = vsel %vm1179_vm6, %v4119_v14, %v4117_v13  ;;  %vm848_vm6 = vcmask 138240  }
 0x24a   : > { %v1199_v27 = vpop.permute.xlu1 %1198 }
 0x24b   : > { %v1197_v56 = vpop.permute.xlu0 %1196 }
 0x24c   : > { %1423 = vrot.lane.b32.xlu1 %v1292_v2, %s3069_s12  ;;  %v1212_v16 = vsel %vm1208_vm7, %v1195_v42, %v1197_v56 }
 0x24d   : > { %1421 = vrot.lane.b32.xlu0 %v1289_v26, %s3069_s12 }
 0x24e   : > { %v1203_v6 = vpop.permute.xlu1 %1202 }
 0x24f   : > { %v1201_v49 = vpop.permute.xlu0 %1200 }
 0x250   : > { %1427 = vrot.lane.b32.xlu1 %v1156_v3, %s3069_s12  ;;  %v1304_v3 = vsel %vm468_vm0, %v1187_v11, %v1212_v16  ;;  %v4290_v16 = vsel %vm736_vm9, %v3633_v30, %v3644_v28 }
 0x251   : > { %1425 = vrot.lane.b32.xlu0 %v1155_v40, %s3069_s12 }
 0x252   : > { %v1207_v20 = vpop.permute.xlu1 %1206 }
 0x253   : > { %v1205_v19 = vpop.permute.xlu0 %1204 }
 0x254   : > { %1431 = vrot.lane.b32.xlu1 %v1158_v18, %s3069_s12  ;;  %v1213_v18 = vsel %vm1208_vm7, %v1199_v27, %v1201_v49 }
 0x255   : > { %1429 = vrot.lane.b32.xlu0 %v1157_v59, %s3069_s12  ;;  %v1307_v59 = vsel %vm468_vm0, %v4117_v13, %v1197_v56  ;;  %v1216_v13 = vsel %vm1208_vm7, %v1205_v19, %v1207_v20 }
 0x256   : > { %v1220_v1 = vpop.permute.xlu1 %1219 }
 0x257   : > { %v1218_v24 = vpop.permute.xlu0 %1217 }
 0x258   : > { %1435 = vrot.lane.b32.xlu1 %v1180_v58, %s3069_s12  ;;  %v1215_v58 = vsel %vm1208_vm7, %v1203_v6, %v1205_v19 }
 0x259   : > { %1433 = vrot.lane.b32.xlu0 %v4060_v38, %s3069_s12  ;;  %v1210_v38 = vsel %vm1208_vm7, %v1191_v34, %v1193_v22  ;;  %v1211_v34 = vsel %vm1208_vm7, %v1193_v22, %v1195_v42 }
 0x25a   : > { %v1224_v54 = vpop.permute.xlu1 %1223  ;;  %v1298_v2 = vsel %vm468_vm0, %v1185_v33, %v1210_v38  ;;  %v1301_v40 = vsel %vm468_vm0, %v1186_v8, %v1211_v34 }
 0x25b   : > { %v1222_v21 = vpop.permute.xlu0 %1221 }
 0x25c   : > { %1439 = vrot.lane.b32.xlu1 %v1182_v36, %s3069_s12  ;;  %v1214_v36 = vsel %vm1208_vm7, %v1201_v49, %v1203_v6  ;;  %v1238_v6 = vsel %vm1237_vm8, %v1218_v24, %v1220_v1  ;;  %v1240_v33 = vsel %vm1237_vm8, %v1222_v21, %v1224_v54  ;;  %vm875_vm7 = vcmask 130048  }
 0x25d   : > { %1437 = vrot.lane.b32.xlu0 %v1181_v25, %s3069_s12 }
 0x25e   : > { %v1228_v37 = vpop.permute.xlu1 %1227 }
 0x25f   : > { %v4197_v9 = vpop.permute.xlu0 %1225 }
 0x260   : > { %1443 = vrot.lane.b32.xlu1 %v4097_v12, %s3069_s12  ;;  %v1295_v12 = vsel %vm468_vm0, %v1184_v57, %v1209_v5 }
 0x261   : > { %1441 = vrot.lane.b32.xlu0 %v1183_v0, %s3069_s12  ;;  %v1239_v0 = vsel %vm1237_vm8, %v1220_v1, %v1222_v21  ;;  %v4272_v1 = vsel %vm736_vm9, %v3627_v10, %v3635_v17 }
 0x262   : > { %v1232_v15 = vpop.permute.xlu1 %1231 }
 0x263   : > { %v1230_v31 = vpop.permute.xlu0 %1229 }
 0x264   : > { %1447 = vrot.lane.b32.xlu1 %v1298_v2, %s3069_s12  ;;  %v1242_v5 = vsel %vm1237_vm8, %v1228_v37, %v1230_v31 }
 0x265   : > { %1445 = vrot.lane.b32.xlu0 %v1295_v12, %s3069_s12  ;;  %v1309_v2 = vsel %vm468_vm0, %v1242_v5, %v4272_v1  ;;  %v4295_v12 = vsel %vm736_vm9, %v3635_v17, %v3633_v30 }
 0x266   : > { %v1236_v26 = vpop.permute.xlu1 %1235 }
 0x267   : > { %v1234_v29 = vpop.permute.xlu0 %1233 }
 0x268   : > { %1451 = vrot.lane.b32.xlu1 %v1304_v3, %s3069_s12  ;;  %v1244_v37 = vsel %vm1237_vm8, %v1232_v15, %v1234_v29  ;;  %v1245_v17 = vsel %vm1237_vm8, %v1234_v29, %v1236_v26  ;;  %v2986_v29 = vld [vmem:[%s3215_s8] ss:$16 sps:$4 sm:$0xff]  }
 0x269   : > { %1449 = vrot.lane.b32.xlu0 %v1301_v40, %s3069_s12 }
 0x26a   : > { %v4229_v42 = vpop.permute.xlu1 %1248 }
 0x26b   : > { %v1247_v22 = vpop.permute.xlu0 %1246 }
 0x26c   : > { %1455 = vrot.lane.b32.xlu1 %v1213_v18, %s3069_s12  ;;  %v1319_v8 = vsel %vm468_vm0, %v1236_v26, %v1247_v22 }
 0x26d   : > { %1453 = vrot.lane.b32.xlu0 %v1307_v59, %s3069_s12  ;;  %v2985_v59 = vld [vmem:[%s3215_s8 + $0x4] ss:$16 sps:$4 sm:$0xff]  }
 0x26e   : > { %v4236_v39 = vpop.permute.xlu1 %1254 }
 0x26f   : > { %v4238_v14 = vpop.permute.xlu0 %1252 }
 0x270   : > { %1459 = vrot.lane.b32.xlu1 %v1215_v58, %s3069_s12 }
 0x271   : > { %1457 = vrot.lane.b32.xlu0 %v1214_v36, %s3069_s12  ;;  %v2988_v36 = vld [vmem:[%s3215_s8 + $0x8] ss:$16 sps:$4 sm:$0xff]  }
 0x272   : > { %v4244_v27 = vpop.permute.xlu1 %1347 }
 0x273   : > { %v4246_v25 = vpop.permute.xlu0 %1345 }
 0x274   : > { %1463 = vrot.lane.b32.xlu1 %v1207_v20, %s3069_s12  ;;  %v1241_v20 = vsel %vm1237_vm8, %v1224_v54, %v4197_v9  ;;  %v1243_v54 = vsel %vm1237_vm8, %v1230_v31, %v1232_v15  ;;  %v1313_v15 = vsel %vm468_vm0, %v1244_v37, %v4290_v16  ;;  %v1250_v31 = vsel %vm736_vm9, %v3644_v28, %v1247_v22  ;;  %v2987_v22 = vld [vmem:[%s3215_s8 + $0xc] ss:$16 sps:$4 sm:$0xff]  }
 0x275   : > { %1461 = vrot.lane.b32.xlu0 %v1216_v13, %s3069_s12  ;;  %v1316_v3 = vsel %vm468_vm0, %v1245_v17, %v1250_v31  ;;  %v2990_v37 = vld [vmem:[%s3220_s15 + $0x2c] ss:$0 sps:$4 sm:$0xff]   ;;  %v536_v31 = vsel %vm533_vm10, %v3397_v53, %v3395_v52  ;;  %vm907_vm8 = vcmask 64512  }
 0x276   : > { %v4251_v56 = vpop.permute.xlu1 %1351 }
 0x277   : > { %v4253_v38 = vpop.permute.xlu0 %1349 }
 0x278   : > { %1467 = vrot.lane.b32.xlu1 %v1239_v0, %s3069_s12 }
 0x279   : > { %1465 = vrot.lane.b32.xlu0 %v1238_v6, %s3069_s12  ;;  %v2989_v6 = vld [vmem:[%s3220_s15 + $0xc] ss:$16 sps:$4 sm:$0xff]  }
 0x27a   : > { %v4259_v49 = vpop.permute.xlu1 %1355 }
 0x27b   : > { %v4261_v19 = vpop.permute.xlu0 %1353 }
 0x27c   : > { %1471 = vrot.lane.b32.xlu1 %v1241_v20, %s3069_s12 }
 0x27d   : > { %1469 = vrot.lane.b32.xlu0 %v1240_v33, %s3069_s12  ;;  %v505_v33 = vsel %vm504_vm1, %v3357_v41, %v3363_v43 }
 0x27e   : > { %v4274_v24 = vpop.permute.xlu1 %1359 }
 0x27f   : > { %v4276_v57 = vpop.permute.xlu0 %1357 }
 0x280   : > { %1475 = vrot.lane.b32.xlu1 %v1309_v2, %s3069_s12 }
 0x281   : > { %1473 = vrot.lane.b32.xlu0 %v4197_v9, %s3069_s12  ;;  %v1311_v9 = vsel %vm468_vm0, %v1243_v54, %v4295_v12  ;;  %v919_v54 = vsel %vm468_vm0, %v2990_v37, %v505_v33  ;;  %v5882_v37 = vld [vmem:[#allocation8_spill] sm:$0xff] }
 0x282   : > { %v4285_v21 = vpop.permute.xlu1 %1363 }
 0x283   : > { %v4297_v34 = vpop.permute.xlu0 %1361 }
 0x284   : > { %1479 = vrot.lane.b32.xlu1 %v1313_v15, %s3069_s12  ;;  %v931_v15 = vsel %vm468_vm0, %v3280_v35, %v3369_v45 }
 0x285   : > { %1477 = vrot.lane.b32.xlu0 %v1311_v9, %s3069_s12  ;;  %v537_v9 = vsel %vm533_vm10, %v3395_v52, %v3403_v55  ;;  %v564_v52 = vsel %vm562_vm11, %v3419_v60, %v3427_v63 }
 0x286   : > { %v4307_v11 = vpop.permute.xlu1 %1367 }
 0x287   : > { %v4310_v30 = vpop.permute.xlu0 %1365 }
 0x288   : > { %1483 = vrot.lane.b32.xlu1 %v1319_v8, %s3069_s12  ;;  %v565_v8 = vsel %vm562_vm11, %v3427_v63, %v3425_v62 }
 0x289   : > { %1481 = vrot.lane.b32.xlu0 %v1316_v3, %s3069_s12  ;;  %v5876_v3 = vld [vmem:[#allocation6_spill] sm:$0xff] }
 0x28a   : > { %v4316_v40 = vpop.permute.xlu1 %1371 }
 0x28b   : > { %v4318_v18 = vpop.permute.xlu0 %1369 }
 0x28c   : > { %1654 = vrot.lane.b32.xlu1 %v2985_v59, %s3070_s7 }
 0x28d   : > { %1652 = vrot.lane.b32.xlu0 %v2986_v29, %s3070_s7 }
 0x28e   : > { %v4324_v58 = vpop.permute.xlu1 %1375 }
 0x28f   : > { %v4326_v26 = vpop.permute.xlu0 %1373 }
 0x290   : > { %1658 = vrot.lane.b32.xlu1 %v2987_v22, %s3070_s7 }
 0x291   : > { %1656 = vrot.lane.b32.xlu0 %v2988_v36, %s3070_s7 }
 0x292   : > { %v4332_v13 = vpop.permute.xlu1 %1379 }
 0x293   : > { %v4334_v0 = vpop.permute.xlu0 %1377 }
 0x294   : > { %1662 = vrot.lane.b32.xlu1 %v3924_v23, %s3070_s7 }
 0x295   : > { %1650 = vrot.lane.b32.xlu0 %v2989_v6, %s3070_s7  ;;  %v5880_v6 = vld [vmem:[#allocation12_spill] sm:$0xff] }
 0x296   : > { %v4340_v20 = vpop.permute.xlu1 %1383 }
 0x297   : > { %v4342_v5 = vpop.permute.xlu0 %1381 }
 0x298   : > { %1666 = vrot.lane.b32.xlu1 %v3942_v32, %s3070_s7 }
 0x299   : > { %1664 = vrot.lane.b32.xlu0 %v3946_v4, %s3070_s7 }
 0x29a   : > { %v4351_v2 = vpop.permute.xlu1 %1387 }
 0x29b   : > { %v4353_v23 = vpop.permute.xlu0 %1385 }
 0x29c   : > { %1660 = vrot.lane.b32.xlu1 %v919_v54, %s3070_s7 }
 0x29d   : > { %1668 = vrot.lane.b32.xlu0 %v931_v15, %s3070_s7 }
 0x29e   : > { %v4362_v41 = vpop.permute.xlu1 %1391 }
 0x29f   : > { %v4364_v43 = vpop.permute.xlu0 %1389 }
 0x2a0   : > { %1674 = vrot.lane.b32.xlu1 %v3973_v61, %s3070_s7  ;;  %v535_v61 = vsel %vm533_vm10, %v3388_v50, %v3397_v53  ;;  %v5875_v53 = vld [vmem:[#allocation9_spill] sm:$0xff] }
 0x2a1   : > { %1672 = vrot.lane.b32.xlu0 %v3978_v7, %s3070_s7  ;;  %v509_v7 = vsel %vm504_vm1, %v3367_v44, %v3375_v47  ;;  %v534_v47 = vsel %vm533_vm10, %v3390_v51, %v3388_v50  ;;  %v540_v59 = vsel %vm533_vm10, %v5876_v3, %v5875_v53  ;;  %v5878_v50 = vld [vmem:[#allocation7_spill] sm:$0xff]  ;;  %v541_v54 = vsel %vm533_vm10, %v5875_v53, %v5882_v37  ;;  %v5888_v53 = vld [vmem:[#allocation13_spill] sm:$0xff] }
 0x2a2   : > { %v4370_v32 = vpop.permute.xlu1 %1395  ;;  %v539_v51 = vsel %vm533_vm10, %v5878_v50, %v5876_v3  ;;  %v940_v36 = vsel %vm468_vm0, %v540_v59, %v565_v8  ;;  %v5889_v3 = vld [vmem:[#allocation14_spill] sm:$0xff]  ;;  %vm2060_vm1 = vcmask 908288  }
 0x2a3   : > { %5869 = vst [vmem:[#allocation131_spill] sm:$0xff] %v4370_v32  ;;  %v4372_v4 = vpop.permute.xlu0 %1393  ;;  %v937_v63 = vsel %vm468_vm0, %v539_v51, %v564_v52  ;;  %v568_v59 = vsel %vm562_vm11, %v5889_v3, %v5888_v53 }
 0x2a4   : > { %1678 = vrot.lane.b32.xlu1 %v3379_v48, %s3070_s7 }
 0x2a5   : > { %1676 = vrot.lane.b32.xlu0 %v3994_v46, %s3070_s7 }
 0x2a6   : > { %v4378_v35 = vpop.permute.xlu1 %1399 }
 0x2a7   : > { %v4380_v45 = vpop.permute.xlu0 %1397 }
 0x2a8   : > { %5870 = vst [vmem:[#allocation132_spill] sm:$0xff] %v4380_v45  ;;  %1682 = vrot.lane.b32.xlu1 %v535_v61, %s3070_s7  ;;  %v946_v61 = vsel %vm468_vm0, %v5882_v37, %v5880_v6 }
 0x2a9   : > { %1670 = vrot.lane.b32.xlu0 %v509_v7, %s3070_s7 }
 0x2aa   : > { %v4390_v48 = vpop.permute.xlu1 %1403 }
 0x2ab   : > { %5871 = vst [vmem:[#allocation133_spill] sm:$0xff] %v4390_v48  ;;  %v4392_v46 = vpop.permute.xlu0 %1401  ;;  %v6011_v48 = vld [vmem:[#allocation94_spill] sm:$0xff] }
 0x2ac   : > { %5872 = vst [vmem:[#allocation134_spill] sm:$0xff] %v4392_v46  ;;  %1686 = vrot.lane.b32.xlu1 %v537_v9, %s3070_s7  ;;  %v6010_v46 = vld [vmem:[#allocation106_spill] sm:$0xff] }
 0x2ad   : > { %1684 = vrot.lane.b32.xlu0 %v536_v31, %s3070_s7 }
 0x2ae   : > { %v4402_v17 = vpop.permute.xlu1 %1407 }
 0x2af   : > { %5873 = vst [vmem:[#allocation135_spill] sm:$0xff] %v4402_v17  ;;  %v4404_v44 = vpop.permute.xlu0 %1405  ;;  %v6009_v17 = vld [vmem:[#allocation105_spill] sm:$0xff] }
 0x2b0   : > { %5874 = vst [vmem:[#allocation136_spill] sm:$0xff] %v4404_v44  ;;  %1680 = vrot.lane.b32.xlu1 %v534_v47, %s3070_s7  ;;  %v5886_v47 = vld [vmem:[#allocation5_spill] sm:$0xff]  ;;  %v5997_v44 = vld [vmem:[#allocation90_spill] sm:$0xff] }
 0x2b1   : > { %1688 = vrot.lane.b32.xlu0 %v3403_v55, %s3070_s7  ;;  %v566_v55 = vsel %vm562_vm11, %v3425_v62, %v5880_v6  ;;  %v5884_v62 = vld [vmem:[#allocation10_spill] sm:$0xff]  ;;  %v538_v8 = vsel %vm533_vm10, %v5886_v47, %v5878_v50  ;;  %v5893_v6 = vld [vmem:[#allocation16_spill] sm:$0xff]  ;;  %v5899_v47 = vld [vmem:[#allocation19_spill] sm:$0xff]  ;;  %vm1515_vm10 = vcmask 56320  }
 0x2b2   : > { %v4421_v29 = vpop.permute.xlu1 %1411  ;;  %v943_v7 = vsel %vm468_vm0, %v541_v54, %v566_v55  ;;  %v563_v9 = vsel %vm562_vm11, %v5884_v62, %v3419_v60  ;;  %v569_v55 = vsel %vm562_vm11, %v5888_v53, %v5893_v6 }
 0x2b3   : > { %5877 = vst [vmem:[#allocation9_spill] sm:$0xff] %v4421_v29  ;;  %v4426_v22 = vpop.permute.xlu0 %1409  ;;  %v934_v51 = vsel %vm468_vm0, %v538_v8, %v563_v9  ;;  %v5900_v8 = vld [vmem:[#allocation20_spill] sm:$0xff] }
 0x2b4   : > { %5879 = vst [vmem:[#allocation6_spill] sm:$0xff] %v4426_v22  ;;  %1694 = vrot.lane.b32.xlu1 %v940_v36, %s3070_s7  ;;  %v594_v53 = vsel %vm591_vm12, %v5900_v8, %v5899_v47 }
 0x2b5   : > { %1692 = vrot.lane.b32.xlu0 %v937_v63, %s3070_s7  ;;  %v5892_v63 = vld [vmem:[#allocation15_spill] sm:$0xff] }
 0x2b6   : > { %v4435_v33 = vpop.permute.xlu1 %1415  ;;  %v570_v50 = vsel %vm562_vm11, %v5893_v6, %v5892_v63  ;;  %v5904_v6 = vld [vmem:[#allocation30_spill] sm:$0xff] }
 0x2b7   : > { %5881 = vst [vmem:[#allocation7_spill] sm:$0xff] %v4435_v33  ;;  %v4440_v15 = vpop.permute.xlu0 %1413 }
 0x2b8   : > { %5883 = vst [vmem:[#allocation12_spill] sm:$0xff] %v4440_v15  ;;  %1698 = vrot.lane.b32.xlu1 %v946_v61, %s3070_s7  ;;  %v5896_v61 = vld [vmem:[#allocation11_spill] sm:$0xff]  ;;  %v5992_v15 = vld [vmem:[#allocation88_spill] sm:$0xff] }
 0x2b9   : > { %1696 = vrot.lane.b32.xlu0 %v943_v7, %s3070_s7  ;;  %v567_v7 = vsel %vm562_vm11, %v5896_v61, %v5889_v3  ;;  %v5906_v61 = vld [vmem:[#allocation22_spill] sm:$0xff] }
 0x2ba   : > { %v4451_v31 = vpop.permute.xlu1 %1419 }
 0x2bb   : > { %5885 = vst [vmem:[#allocation8_spill] sm:$0xff] %v4451_v31  ;;  %v4456_v52 = vpop.permute.xlu0 %1417 }
 0x2bc   : > { %5887 = vst [vmem:[#allocation10_spill] sm:$0xff] %v4456_v52  ;;  %1702 = vrot.lane.b32.xlu1 %v568_v59, %s3070_s7  ;;  %v5901_v59 = vld [vmem:[#allocation17_spill] sm:$0xff] }
 0x2bd   : > { %1690 = vrot.lane.b32.xlu0 %v934_v51, %s3070_s7  ;;  %v593_v51 = vsel %vm591_vm12, %v5901_v59, %v5900_v8  ;;  %v5907_v8 = vld [vmem:[#allocation23_spill] sm:$0xff] }
 0x2be   : > { %v4464_v60 = vpop.permute.xlu1 %1423 }
 0x2bf   : > { %5890 = vst [vmem:[#allocation5_spill] sm:$0xff] %v4464_v60  ;;  %v4466_v36 = vpop.permute.xlu0 %1421 }
 0x2c0   : > { %5891 = vst [vmem:[#allocation13_spill] sm:$0xff] %v4466_v36  ;;  %1706 = vrot.lane.b32.xlu1 %v570_v50, %s3070_s7  ;;  %v5905_v50 = vld [vmem:[#allocation27_spill] sm:$0xff] }
 0x2c1   : > { %1704 = vrot.lane.b32.xlu0 %v569_v55, %s3070_s7  ;;  %v622_v55 = vsel %vm620_vm13, %v5905_v50, %v5904_v6 }
 0x2c2   : > { %v4476_v37 = vpop.permute.xlu1 %1427 }
 0x2c3   : > { %5894 = vst [vmem:[#allocation14_spill] sm:$0xff] %v4476_v37  ;;  %v4478_v54 = vpop.permute.xlu0 %1425 }
 0x2c4   : > { %5895 = vst [vmem:[#allocation15_spill] sm:$0xff] %v4478_v54  ;;  %1700 = vrot.lane.b32.xlu1 %v567_v7, %s3070_s7  ;;  %v595_v7 = vsel %vm591_vm12, %v5899_v47, %v5906_v61  ;;  %v5912_v54 = vld [vmem:[#allocation29_spill] sm:$0xff]  ;;  %v5913_v47 = vld [vmem:[#allocation18_spill] sm:$0xff] }
 0x2c5   : > { %1708 = vrot.lane.b32.xlu0 %v5892_v63, %s3070_s7 }
 0x2c6   : > { %v4486_v62 = vpop.permute.xlu1 %1431 }
 0x2c7   : > { %5897 = vst [vmem:[#allocation16_spill] sm:$0xff] %v4486_v62  ;;  %v4488_v9 = vpop.permute.xlu0 %1429  ;;  %v5911_v62 = vld [vmem:[#allocation32_spill] sm:$0xff] }
 0x2c8   : > { %5898 = vst [vmem:[#allocation11_spill] sm:$0xff] %v4488_v9  ;;  %1714 = vrot.lane.b32.xlu1 %v594_v53, %s3070_s7  ;;  %v5908_v53 = vld [vmem:[#allocation24_spill] sm:$0xff]  ;;  %v624_v37 = vsel %vm620_vm13, %v5912_v54, %v5911_v62 }
 0x2c9   : > { %1712 = vrot.lane.b32.xlu0 %v593_v51, %s3070_s7  ;;  %v597_v51 = vsel %vm591_vm12, %v5908_v53, %v5907_v8 }
 0x2ca   : > { %v4498_v3 = vpop.permute.xlu1 %1435  ;;  %v952_v9 = vsel %vm468_vm0, %v597_v51, %v622_v55 }
 0x2cb   : > { %5902 = vst [vmem:[#allocation19_spill] sm:$0xff] %v4498_v3  ;;  %v4500_v63 = vpop.permute.xlu0 %1433 }
 0x2cc   : > { %5903 = vst [vmem:[#allocation20_spill] sm:$0xff] %v4500_v63  ;;  %1718 = vrot.lane.b32.xlu1 %v5906_v61, %s3070_s7  ;;  %v592_v61 = vsel %vm591_vm12, %v5913_v47, %v5901_v59  ;;  %v5918_v59 = vld [vmem:[#allocation28_spill] sm:$0xff]  ;;  %v5919_v47 = vld [vmem:[#allocation21_spill] sm:$0xff] }
 0x2cd   : > { %1716 = vrot.lane.b32.xlu0 %v595_v7, %s3070_s7  ;;  %v623_v7 = vsel %vm620_vm13, %v5904_v6, %v5912_v54  ;;  %v621_v54 = vsel %vm620_vm13, %v5918_v59, %v5905_v50 }
 0x2ce   : > { %v4514_v3 = vpop.permute.xlu1 %1439 }
 0x2cf   : > { %5909 = vst [vmem:[#allocation17_spill] sm:$0xff] %v4514_v3  ;;  %v4516_v63 = vpop.permute.xlu0 %1437  ;;  %v5914_v3 = vld [vmem:[#allocation25_spill] sm:$0xff] }
 0x2d0   : > { %5910 = vst [vmem:[#allocation30_spill] sm:$0xff] %v4516_v63  ;;  %1722 = vrot.lane.b32.xlu1 %v952_v9, %s3070_s7  ;;  %v5915_v63 = vld [vmem:[#allocation26_spill] sm:$0xff]  ;;  %v961_v50 = vsel %vm468_vm0, %v5914_v3, %v5911_v62 }
 0x2d1   : > { %1710 = vrot.lane.b32.xlu0 %v592_v61, %s3070_s7  ;;  %v599_v55 = vsel %vm591_vm12, %v5915_v63, %v5914_v3  ;;  %v598_v36 = vsel %vm591_vm12, %v5907_v8, %v5915_v63  ;;  %v596_v61 = vsel %vm591_vm12, %v5919_v47, %v5908_v53  ;;  %v5925_v53 = vld [vmem:[#allocation33_spill] sm:$0xff] }
 0x2d2   : > { %v4533_v51 = vpop.permute.xlu1 %1443  ;;  %v958_v9 = vsel %vm468_vm0, %v599_v55, %v624_v37  ;;  %v955_v6 = vsel %vm468_vm0, %v598_v36, %v623_v7  ;;  %v949_v37 = vsel %vm468_vm0, %v596_v61, %v621_v54  ;;  %v5924_v7 = vld [vmem:[#allocation36_spill] sm:$0xff]  ;;  %v5929_v54 = vld [vmem:[#allocation35_spill] sm:$0xff] }
 0x2d3   : > { %5916 = vst [vmem:[#allocation27_spill] sm:$0xff] %v4533_v51  ;;  %v4538_v60 = vpop.permute.xlu0 %1441  ;;  %v627_v55 = vsel %vm620_vm13, %v5925_v53, %v5924_v7 }
 0x2d4   : > { %5917 = vst [vmem:[#allocation22_spill] sm:$0xff] %v4538_v60  ;;  %1726 = vrot.lane.b32.xlu1 %v958_v9, %s3070_s7  ;;  %v5926_v9 = vld [vmem:[#allocation34_spill] sm:$0xff]  ;;  %v5990_v60 = vld [vmem:[#allocation79_spill] sm:$0xff] }
 0x2d5   : > { %1724 = vrot.lane.b32.xlu0 %v955_v6, %s3070_s7  ;;  %v626_v59 = vsel %vm620_vm13, %v5926_v9, %v5925_v53  ;;  %v628_v6 = vsel %vm620_vm13, %v5924_v7, %v5929_v54 }
 0x2d6   : > { %v4550_v51 = vpop.permute.xlu1 %1447 }
 0x2d7   : > { %5920 = vst [vmem:[#allocation23_spill] sm:$0xff] %v4550_v51  ;;  %v4552_v63 = vpop.permute.xlu0 %1445 }
 0x2d8   : > { %5921 = vst [vmem:[#allocation24_spill] sm:$0xff] %v4552_v63  ;;  %1720 = vrot.lane.b32.xlu1 %v949_v37, %s3070_s7  ;;  %v5932_v37 = vld [vmem:[#allocation40_spill] sm:$0xff] }
 0x2d9   : > { %1728 = vrot.lane.b32.xlu0 %v961_v50, %s3070_s7  ;;  %v5933_v50 = vld [vmem:[#allocation37_spill] sm:$0xff] }
 0x2da   : > { %v4560_v36 = vpop.permute.xlu1 %1451  ;;  %v651_v53 = vsel %vm649_vm14, %v5933_v50, %v5932_v37 }
 0x2db   : > { %5922 = vst [vmem:[#allocation32_spill] sm:$0xff] %v4560_v36  ;;  %v4562_v8 = vpop.permute.xlu0 %1449 }
 0x2dc   : > { %5923 = vst [vmem:[#allocation29_spill] sm:$0xff] %v4562_v8  ;;  %1734 = vrot.lane.b32.xlu1 %v627_v55, %s3070_s7  ;;  %v5934_v55 = vld [vmem:[#allocation31_spill] sm:$0xff] }
 0x2dd   : > { %1732 = vrot.lane.b32.xlu0 %v626_v59, %s3070_s7  ;;  %v625_v59 = vsel %vm620_vm13, %v5934_v55, %v5926_v9  ;;  %v5941_v55 = vld [vmem:[#allocation38_spill] sm:$0xff] }
 0x2de   : > { %v4572_v62 = vpop.permute.xlu1 %1455 }
 0x2df   : > { %5927 = vst [vmem:[#allocation18_spill] sm:$0xff] %v4572_v62  ;;  %v4574_v3 = vpop.permute.xlu0 %1453  ;;  %v5938_v62 = vld [vmem:[#allocation39_spill] sm:$0xff] }
 0x2e0   : > { %5928 = vst [vmem:[#allocation25_spill] sm:$0xff] %v4574_v3  ;;  %1738 = vrot.lane.b32.xlu1 %v5929_v54, %s3070_s7 }
 0x2e1   : > { %1736 = vrot.lane.b32.xlu0 %v628_v6, %s3070_s7  ;;  %v5937_v6 = vld [vmem:[#allocation42_spill] sm:$0xff] }
 0x2e2   : > { %v4582_v47 = vpop.permute.xlu1 %1459 }
 0x2e3   : > { %5930 = vst [vmem:[#allocation26_spill] sm:$0xff] %v4582_v47  ;;  %v4584_v61 = vpop.permute.xlu0 %1457  ;;  %v652_v47 = vsel %vm649_vm14, %v5932_v37, %v5938_v62  ;;  %v5946_v37 = vld [vmem:[#allocation43_spill] sm:$0xff] }
 0x2e4   : > { %5931 = vst [vmem:[#allocation28_spill] sm:$0xff] %v4584_v61  ;;  %1742 = vrot.lane.b32.xlu1 %v651_v53, %s3070_s7  ;;  %v653_v61 = vsel %vm649_vm14, %v5938_v62, %v5937_v6  ;;  %v5944_v62 = vld [vmem:[#allocation47_spill] sm:$0xff] }
 0x2e5   : > { %1730 = vrot.lane.b32.xlu0 %v625_v59, %s3070_s7  ;;  %v650_v59 = vsel %vm649_vm14, %v5941_v55, %v5933_v50  ;;  %v5948_v50 = vld [vmem:[#allocation44_spill] sm:$0xff] }
 0x2e6   : > { %v4594_v7 = vpop.permute.xlu1 %1463  ;;  %v655_v55 = vsel %vm649_vm14, %v5948_v50, %v5946_v37 }
 0x2e7   : > { %5935 = vst [vmem:[#allocation21_spill] sm:$0xff] %v4594_v7  ;;  %v4596_v54 = vpop.permute.xlu0 %1461  ;;  %v5943_v7 = vld [vmem:[#allocation50_spill] sm:$0xff] }
 0x2e8   : > { %5936 = vst [vmem:[#allocation36_spill] sm:$0xff] %v4596_v54  ;;  %1746 = vrot.lane.b32.xlu1 %v653_v61, %s3070_s7  ;;  %v5942_v54 = vld [vmem:[#allocation49_spill] sm:$0xff]  ;;  %v680_v61 = vsel %vm678_vm15, %v5944_v62, %v5943_v7 }
 0x2e9   : > { %1744 = vrot.lane.b32.xlu0 %v652_v47, %s3070_s7  ;;  %v681_v3 = vsel %vm678_vm15, %v5943_v7, %v5942_v54  ;;  %v5945_v47 = vld [vmem:[#allocation46_spill] sm:$0xff]  ;;  %v967_v36 = vsel %vm468_vm0, %v655_v55, %v680_v61  ;;  %v5950_v7 = vld [vmem:[#allocation52_spill] sm:$0xff] }
 0x2ea   : > { %v4606_v9 = vpop.permute.xlu1 %1467 }
 0x2eb   : > { %5939 = vst [vmem:[#allocation33_spill] sm:$0xff] %v4606_v9  ;;  %v4608_v53 = vpop.permute.xlu0 %1465 }
 0x2ec   : > { %5940 = vst [vmem:[#allocation34_spill] sm:$0xff] %v4608_v53  ;;  %1740 = vrot.lane.b32.xlu1 %v650_v59, %s3070_s7  ;;  %v656_v53 = vsel %vm649_vm14, %v5946_v37, %v5945_v47 }
 0x2ed   : > { %1748 = vrot.lane.b32.xlu0 %v5937_v6, %s3070_s7  ;;  %v970_v59 = vsel %vm468_vm0, %v656_v53, %v681_v3  ;;  %v682_v6 = vsel %vm678_vm15, %v5942_v54, %v5950_v7  ;;  %v5954_v54 = vld [vmem:[#allocation48_spill] sm:$0xff] }
 0x2ee   : > { %v4625_v9 = vpop.permute.xlu1 %1471 }
 0x2ef   : > { %5947 = vst [vmem:[#allocation35_spill] sm:$0xff] %v4625_v9  ;;  %v4630_v8 = vpop.permute.xlu0 %1469  ;;  %v5952_v9 = vld [vmem:[#allocation45_spill] sm:$0xff] }
 0x2f0   : > { %5949 = vst [vmem:[#allocation40_spill] sm:$0xff] %v4630_v8  ;;  %1754 = vrot.lane.b32.xlu1 %v970_v59, %s3070_s7  ;;  %v657_v37 = vsel %vm649_vm14, %v5945_v47, %v5952_v9  ;;  %v976_v3 = vsel %vm468_vm0, %v5952_v9, %v5950_v7  ;;  %v5956_v47 = vld [vmem:[#allocation41_spill] sm:$0xff]  ;;  %v5959_v9 = vld [vmem:[#allocation54_spill] sm:$0xff] }
 0x2f1   : > { %1752 = vrot.lane.b32.xlu0 %v967_v36, %s3070_s7  ;;  %v973_v53 = vsel %vm468_vm0, %v657_v37, %v682_v6  ;;  %v679_v36 = vsel %vm678_vm15, %v5954_v54, %v5944_v62  ;;  %v654_v55 = vsel %vm649_vm14, %v5956_v47, %v5948_v50  ;;  %v5986_v8 = vld [vmem:[#allocation85_spill] sm:$0xff] }
 0x2f2   : > { %v4639_v63 = vpop.permute.xlu1 %1475  ;;  %v964_v6 = vsel %vm468_vm0, %v654_v55, %v679_v36  ;;  %v5964_v55 = vld [vmem:[#allocation51_spill] sm:$0xff]  ;;  %v798_v22 = vsel %vm794_vm4, %v5986_v8, %v5992_v15 }
 0x2f3   : > { %5951 = vst [vmem:[#allocation37_spill] sm:$0xff] %v4639_v63  ;;  %v4644_v51 = vpop.permute.xlu0 %1473  ;;  %v5958_v63 = vld [vmem:[#allocation53_spill] sm:$0xff] }
 0x2f4   : > { %5953 = vst [vmem:[#allocation31_spill] sm:$0xff] %v4644_v51  ;;  %1758 = vrot.lane.b32.xlu1 %v976_v3, %s3070_s7  ;;  %v684_v7 = vsel %vm678_vm15, %v5959_v9, %v5958_v63  ;;  %v5962_v3 = vld [vmem:[#allocation55_spill] sm:$0xff] }
 0x2f5   : > { %1756 = vrot.lane.b32.xlu0 %v973_v53, %s3070_s7  ;;  %v5963_v53 = vld [vmem:[#allocation56_spill] sm:$0xff] }
 0x2f6   : > { %v4655_v61 = vpop.permute.xlu1 %1479  ;;  %v686_v50 = vsel %vm678_vm15, %v5963_v53, %v5962_v3  ;;  %v685_v54 = vsel %vm678_vm15, %v5958_v63, %v5963_v53 }
 0x2f7   : > { %5955 = vst [vmem:[#allocation42_spill] sm:$0xff] %v4655_v61  ;;  %v4660_v59 = vpop.permute.xlu0 %1477 }
 0x2f8   : > { %5957 = vst [vmem:[#allocation39_spill] sm:$0xff] %v4660_v59  ;;  %1762 = vrot.lane.b32.xlu1 %v684_v7, %s3070_s7  ;;  %v683_v7 = vsel %vm678_vm15, %v5964_v55, %v5959_v9 }
 0x2f9   : > { %1750 = vrot.lane.b32.xlu0 %v964_v6, %s3070_s7 }
 0x2fa   : > { %v4668_v62 = vpop.permute.xlu1 %1483 }
 0x2fb   : > { %5960 = vst [vmem:[#allocation38_spill] sm:$0xff] %v4668_v62  ;;  %v4670_v37 = vpop.permute.xlu0 %1481  ;;  %v5967_v62 = vld [vmem:[#allocation57_spill] sm:$0xff] }
 0x2fc   : > { %5961 = vst [vmem:[#allocation49_spill] sm:$0xff] %v4670_v37  ;;  %1766 = vrot.lane.b32.xlu1 %v686_v50, %s3070_s7  ;;  %v5965_v50 = vld [vmem:[#allocation59_spill] sm:$0xff] }
 0x2fd   : > { %1764 = vrot.lane.b32.xlu0 %v685_v54, %s3070_s7  ;;  %v5966_v54 = vld [vmem:[#allocation60_spill] sm:$0xff] }
 0x2fe   : > { %v1655_v36 = vpop.permute.xlu1 %1654  ;;  %v710_v37 = vsel %vm707_vm2, %v5966_v54, %v5965_v50  ;;  %v709_v59 = vsel %vm707_vm2, %v5967_v62, %v5966_v54 }
 0x2ff   : > { %v1653_v47 = vpop.permute.xlu0 %1652 }
 0x300   : > { %1760 = vrot.lane.b32.xlu1 %v683_v7, %s3070_s7  ;;  %v2062_v6 = vsel %vm2060_vm1, %v1653_v47, %v1655_v36 }
 0x301   : > { %1768 = vrot.lane.b32.xlu0 %v5962_v3, %s3070_s7  ;;  %2401 = vmatprep.subr.bf16.mxu0 %v2062_v6  ;;  %v5968_v6 = vld [vmem:[#allocation62_spill] sm:$0xff] }
 0x302   : > { %v1659_v63 = vpop.permute.xlu1 %1658  ;;  %v711_v61 = vsel %vm707_vm2, %v5965_v50, %v5968_v6 }
 0x303   : > { %v1657_v53 = vpop.permute.xlu0 %1656 }
 0x304   : > { %1774 = vrot.lane.b32.xlu1 %v710_v37, %s3070_s7  ;;  %v2064_v9 = vsel %vm2060_vm1, %v1657_v53, %v1659_v63  ;;  %v2063_v55 = vsel %vm2060_vm1, %v1655_v36, %v1657_v53  ;;  %v5969_v37 = vld [vmem:[#allocation63_spill] sm:$0xff]  ;;  %v5970_v36 = vld [vmem:[#allocation64_spill] sm:$0xff] }
 0x305   : > { %1772 = vrot.lane.b32.xlu0 %v709_v59, %s3070_s7  ;;  %2524 = vmatprep.subr.bf16.mxu1 %v2064_v9  ;;  %v713_v59 = vsel %vm707_vm2, %v5970_v36, %v5969_v37 }
 0x306   : > { %2525 = vmatpush1.bf16.msra.mxu1 %v2063_v55  ;;  %v1663_v3 = vpop.permute.xlu1 %1662  ;;  %v982_v9 = vsel %vm468_vm0, %v713_v59, %v4272_v1  ;;  %v5971_v55 = vld [vmem:[#allocation58_spill] sm:$0xff] }
 0x307   : > { %v1651_v7 = vpop.permute.xlu0 %1650  ;;  %v708_v50 = vsel %vm707_vm2, %v5971_v55, %v5967_v62  ;;  %v5974_v55 = vld [vmem:[#allocation67_spill] sm:$0xff] }
 0x308   : > { %1778 = vrot.lane.b32.xlu1 %v5968_v6, %s3070_s7  ;;  %v2061_v54 = vsel %vm2060_vm1, %v1651_v7, %v1653_v47  ;;  %v5973_v7 = vld [vmem:[#allocation66_spill] sm:$0xff] }
 0x309   : > { %1776 = vrot.lane.b32.xlu0 %v711_v61, %s3070_s7  ;;  %2402 = vmatpush1.bf16.msra.mxu0 %v2061_v54  ;;  %v5972_v61 = vld [vmem:[#allocation65_spill] sm:$0xff]  ;;  %v714_v1 = vsel %vm707_vm2, %v5969_v37, %v5973_v7 }
 0x30a   : > { %v1667_v63 = vpop.permute.xlu1 %1666  ;;  %v715_v6 = vsel %vm707_vm2, %v5973_v7, %v5972_v61 }
 0x30b   : > { %v1665_v53 = vpop.permute.xlu0 %1664  ;;  %v988_v62 = vsel %vm468_vm0, %v715_v6, %v4290_v16  ;;  %v5975_v16 = vld [vmem:[#allocation61_spill] sm:$0xff] }
 0x30c   : > { %1782 = vrot.lane.b32.xlu1 %v982_v9, %s3070_s7  ;;  %v2066_v47 = vsel %vm2060_vm1, %v1663_v3, %v1665_v53  ;;  %v2067_v37 = vsel %vm2060_vm1, %v1665_v53, %v1667_v63  ;;  %v5976_v53 = vld [vmem:[#allocation72_spill] sm:$0xff] }
 0x30d   : > { %1770 = vrot.lane.b32.xlu0 %v708_v50, %s3070_s7  ;;  %2403 = vmatprep.subr.bf16.mxu0 %v2066_v47  ;;  %v737_v50 = vsel %vm736_vm9, %v5974_v55, %v3627_v10  ;;  %v985_v47 = vsel %vm468_vm0, %v714_v1, %v4295_v12  ;;  %v991_v12 = vsel %vm468_vm0, %v5972_v61, %v3644_v28 }
 0x30e   : > { %v1661_v54 = vpop.permute.xlu1 %1660 }
 0x30f   : > { %v1669_v59 = vpop.permute.xlu0 %1668  ;;  %v2065_v9 = vsel %vm2060_vm1, %v1661_v54, %v1663_v3  ;;  %v712_v3 = vsel %vm707_vm2, %v5975_v16, %v5970_v36  ;;  %v5977_v36 = vld [vmem:[#allocation69_spill] sm:$0xff] }
 0x310   : > { %1786 = vrot.lane.b32.xlu1 %v988_v62, %s3070_s7  ;;  %2404 = vmatpush1.bf16.msra.mxu0 %v2065_v9  ;;  %v2068_v51 = vsel %vm2060_vm1, %v1667_v63, %v1669_v59  ;;  %v979_v6 = vsel %vm468_vm0, %v712_v3, %v737_v50  ;;  %v4746_v1 = vsel %vm736_vm9, %v5977_v36, %v5976_v53  ;;  %v5978_v59 = vld [vmem:[#allocation70_spill] sm:$0xff]  ;;  %v5979_v50 = vld [vmem:[#allocation71_spill] sm:$0xff] }
 0x311   : > { %1784 = vrot.lane.b32.xlu0 %v985_v47, %s3070_s7  ;;  %2526 = vmatprep.subr.bf16.mxu1 %v2068_v51  ;;  %v4751_v62 = vsel %vm736_vm9, %v5978_v59, %v5977_v36  ;;  %v4762_v47 = vsel %vm736_vm9, %v5976_v53, %v5979_v50  ;;  %v4784_v53 = vld [vmem:[%s5597_s0] sm:$0xff] }
 0x312   : > { %2527 = vmatpush1.bf16.msra.mxu1 %v2067_v37  ;;  %v1675_v7 = vpop.permute.xlu1 %1674 }
 0x313   : > { %v1673_v10 = vpop.permute.xlu0 %1672 }
 0x314   : > { %1780 = vrot.lane.b32.xlu1 %v979_v6, %s3070_s7  ;;  %v2070_v54 = vsel %vm2060_vm1, %v1673_v10, %v1675_v7  ;;  %v5981_v6 = vld [vmem:[#allocation73_spill] sm:$0xff] }
 0x315   : > { %1788 = vrot.lane.b32.xlu0 %v991_v12, %s3070_s7  ;;  %2405 = vmatprep.subr.bf16.mxu0 %v2070_v54  ;;  %v5982_v54 = vld [vmem:[#allocation68_spill] sm:$0xff] }
 0x316   : > { %v1679_v51 = vpop.permute.xlu1 %1678 }
 0x317   : > { %v1677_v63 = vpop.permute.xlu0 %1676 }
 0x318   : > { %1794 = vrot.lane.b32.xlu1 %v4746_v1, %s3070_s7  ;;  %v2072_v28 = vsel %vm2060_vm1, %v1677_v63, %v1679_v51  ;;  %v2071_v61 = vsel %vm2060_vm1, %v1675_v7, %v1677_v63  ;;  %v5980_v7 = vld [vmem:[#allocation76_spill] sm:$0xff]  ;;  %v741_v51 = vsel %vm736_vm9, %v5982_v54, %v5978_v59 }
 0x319   : > { %1792 = vrot.lane.b32.xlu0 %v4751_v62, %s3070_s7  ;;  %2528 = vmatprep.subr.bf16.mxu1 %v2072_v28  ;;  %v4772_v12 = vsel %vm765_vm3, %v5981_v6, %v5980_v7  ;;  %v5983_v28 = vld [vmem:[#allocation78_spill] sm:$0xff] }
 0x31a   : > { %2529 = vmatpush1.bf16.msra.mxu1 %v2071_v61  ;;  %v1683_v9 = vpop.permute.xlu1 %1682  ;;  %v5984_v61 = vld [vmem:[#allocation75_spill] sm:$0xff] }
 0x31b   : > { %v1671_v55 = vpop.permute.xlu0 %1670  ;;  %v4797_v54 = vsel %vm765_vm3, %v5980_v7, %v5984_v61  ;;  %v5985_v7 = vld [vmem:[#allocation74_spill] sm:$0xff] }
 0x31c   : > { %1798 = vrot.lane.b32.xlu1 %v5979_v50, %s3070_s7  ;;  %v2069_v37 = vsel %vm2060_vm1, %v1671_v55, %v1673_v10  ;;  %v4789_v55 = vsel %vm765_vm3, %v5984_v61, %v5983_v28  ;;  %v766_v61 = vsel %vm765_vm3, %v5985_v7, %v5981_v6  ;;  %v5991_v7 = vld [vmem:[#allocation80_spill] sm:$0xff] }
 0x31d   : > { %1796 = vrot.lane.b32.xlu0 %v4762_v47, %s3070_s7  ;;  %2406 = vmatpush1.bf16.msra.mxu0 %v2069_v37  ;;  %v2841_v37 = vcombine.high %v4784_v53, %v4784_v53 }
 0x31e   : > { %v1687_v16 = vpop.permute.xlu1 %1686 }
 0x31f   : > { %v1685_v3 = vpop.permute.xlu0 %1684  ;;  %2556 = vmatprep.mubr.bf16.mxu1 %v2841_v37  ;;  %2433 = vmatprep.mubr.bf16.mxu0 %v2841_v37 }
 0x320   : > { %1802 = vrot.lane.b32.xlu1 %v4772_v12, %s3070_s7  ;;  %v2074_v10 = vsel %vm2060_vm1, %v1683_v9, %v1685_v3 }
 0x321   : > { %1790 = vrot.lane.b32.xlu0 %v741_v51, %s3070_s7  ;;  %2407 = vmatprep.subr.bf16.mxu0 %v2074_v10 }
 0x322   : > { %v1681_v63 = vpop.permute.xlu1 %1680 }
 0x323   : > { %v1689_v36 = vpop.permute.xlu0 %1688  ;;  %v2073_v59 = vsel %vm2060_vm1, %v1681_v63, %v1683_v9  ;;  %v2075_v9 = vsel %vm2060_vm1, %v1685_v3, %v1687_v16 }
 0x324   : > { %1806 = vrot.lane.b32.xlu1 %v4789_v55, %s3070_s7  ;;  %2408 = vmatpush1.bf16.msra.mxu0 %v2073_v59  ;;  %v2076_v51 = vsel %vm2060_vm1, %v1687_v16, %v1689_v36  ;;  %v5987_v59 = vld [vmem:[#allocation86_spill] sm:$0xff]  ;;  %v5988_v16 = vld [vmem:[#allocation83_spill] sm:$0xff] }
 0x325   : > { %1804 = vrot.lane.b32.xlu0 %v4797_v54, %s3070_s7  ;;  %2530 = vmatprep.subr.bf16.mxu1 %v2076_v51  ;;  %v797_v36 = vsel %vm794_vm4, %v5987_v59, %v5986_v8  ;;  %v796_v3 = vsel %vm794_vm4, %v5988_v16, %v5987_v59 }
 0x326   : > { %2531 = vmatpush1.bf16.msra.mxu1 %v2075_v9  ;;  %v1695_v10 = vpop.permute.xlu1 %1694  ;;  %v5989_v9 = vld [vmem:[#allocation82_spill] sm:$0xff] }
 0x327   : > { %v1693_v63 = vpop.permute.xlu0 %1692  ;;  %v4821_v6 = vsel %vm765_vm3, %v5990_v60, %v5989_v9 }
 0x328   : > { %1800 = vrot.lane.b32.xlu1 %v766_v61, %s3070_s7  ;;  %v2078_v51 = vsel %vm2060_vm1, %v1693_v63, %v1695_v10  ;;  %v4826_v61 = vsel %vm765_vm3, %v5991_v7, %v5990_v60  ;;  %v1000_v52 = vsel %vm468_vm0, %v4821_v6, %v797_v36  ;;  %v5993_v36 = vld [vmem:[#allocation81_spill] sm:$0xff] }
 0x329   : > { %1808 = vrot.lane.b32.xlu0 %v5983_v28, %s3070_s7  ;;  %2409 = vmatprep.subr.bf16.mxu0 %v2078_v51  ;;  %v997_v59 = vsel %vm468_vm0, %v4826_v61, %v796_v3  ;;  %v4842_v3 = vsel %vm765_vm3, %v5989_v9, %v5993_v36 }
 0x32a   : > { %v1699_v37 = vpop.permute.xlu1 %1698 }
 0x32b   : > { %v1697_v33 = vpop.permute.xlu0 %1696 }
 0x32c   : > { %1814 = vrot.lane.b32.xlu1 %v1000_v52, %s3070_s7  ;;  %v2080_v51 = vsel %vm2060_vm1, %v1697_v33, %v1699_v37  ;;  %v2079_v31 = vsel %vm2060_vm1, %v1695_v10, %v1697_v33  ;;  %v1006_v52 = vsel %vm468_vm0, %v5993_v36, %v5992_v15  ;;  %v1003_v33 = vsel %vm468_vm0, %v4842_v3, %v798_v22  ;;  %v5995_v37 = vld [vmem:[#allocation77_spill] sm:$0xff] }
 0x32d   : > { %1812 = vrot.lane.b32.xlu0 %v997_v59, %s3070_s7  ;;  %2532 = vmatprep.subr.bf16.mxu1 %v2080_v51  ;;  %v770_v59 = vsel %vm765_vm3, %v5995_v37, %v5991_v7  ;;  %v5996_v51 = vld [vmem:[#allocation89_spill] sm:$0xff] }
 0x32e   : > { %2533 = vmatpush1.bf16.msra.mxu1 %v2079_v31  ;;  %v1703_v60 = vpop.permute.xlu1 %1702  ;;  %v5994_v31 = vld [vmem:[#allocation84_spill] sm:$0xff]  ;;  %v800_v22 = vsel %vm794_vm4, %v5997_v44, %v5996_v51 }
 0x32f   : > { %v1691_v29 = vpop.permute.xlu0 %1690  ;;  %v795_v10 = vsel %vm794_vm4, %v5994_v31, %v5988_v16 }
 0x330   : > { %1818 = vrot.lane.b32.xlu1 %v1006_v52, %s3070_s7  ;;  %v2077_v8 = vsel %vm2060_vm1, %v1691_v29, %v1693_v63  ;;  %v994_v52 = vsel %vm468_vm0, %v770_v59, %v795_v10 }
 0x331   : > { %1816 = vrot.lane.b32.xlu0 %v1003_v33, %s3070_s7  ;;  %2410 = vmatpush1.bf16.msra.mxu0 %v2077_v8  ;;  %v5998_v33 = vld [vmem:[#allocation91_spill] sm:$0xff]  ;;  %v5999_v8 = vld [vmem:[#allocation92_spill] sm:$0xff] }
 0x332   : > { %v1707_v9 = vpop.permute.xlu1 %1706  ;;  %v802_v7 = vsel %vm794_vm4, %v5999_v8, %v5998_v33  ;;  %v801_v37 = vsel %vm794_vm4, %v5996_v51, %v5999_v8  ;;  %v6001_v8 = vld [vmem:[#allocation95_spill] sm:$0xff] }
 0x333   : > { %v1705_v15 = vpop.permute.xlu0 %1704 }
 0x334   : > { %1822 = vrot.lane.b32.xlu1 %v800_v22, %s3070_s7  ;;  %v2082_v29 = vsel %vm2060_vm1, %v1703_v60, %v1705_v15  ;;  %v2083_v59 = vsel %vm2060_vm1, %v1705_v15, %v1707_v9 }
 0x335   : > { %1810 = vrot.lane.b32.xlu0 %v994_v52, %s3070_s7  ;;  %2411 = vmatprep.subr.bf16.mxu0 %v2082_v29  ;;  %v6000_v29 = vld [vmem:[#allocation87_spill] sm:$0xff] }
 0x336   : > { %v1701_v63 = vpop.permute.xlu1 %1700 }
 0x337   : > { %v1709_v16 = vpop.permute.xlu0 %1708  ;;  %v2081_v31 = vsel %vm2060_vm1, %v1701_v63, %v1703_v60  ;;  %v799_v60 = vsel %vm794_vm4, %v6000_v29, %v5997_v44  ;;  %v6005_v29 = vld [vmem:[#allocation104_spill] sm:$0xff] }
 0x338   : > { %1826 = vrot.lane.b32.xlu1 %v802_v7, %s3070_s7  ;;  %2412 = vmatpush1.bf16.msra.mxu0 %v2081_v31  ;;  %v2084_v10 = vsel %vm2060_vm1, %v1707_v9, %v1709_v16  ;;  %v6002_v9 = vld [vmem:[#allocation96_spill] sm:$0xff]  ;;  %v6003_v7 = vld [vmem:[#allocation93_spill] sm:$0xff] }
 0x339   : > { %1824 = vrot.lane.b32.xlu0 %v801_v37, %s3070_s7  ;;  %2534 = vmatprep.subr.bf16.mxu1 %v2084_v10  ;;  %v826_v15 = vsel %vm823_vm5, %v6002_v9, %v6001_v8  ;;  %v825_v31 = vsel %vm823_vm5, %v6003_v7, %v6002_v9 }
 0x33a   : > { %2535 = vmatpush1.bf16.msra.mxu1 %v2083_v59  ;;  %v1715_v22 = vpop.permute.xlu1 %1714  ;;  %v6004_v59 = vld [vmem:[#allocation103_spill] sm:$0xff] }
 0x33b   : > { %v1713_v52 = vpop.permute.xlu0 %1712 }
 0x33c   : > { %1820 = vrot.lane.b32.xlu1 %v799_v60, %s3070_s7  ;;  %v2086_v51 = vsel %vm2060_vm1, %v1713_v52, %v1715_v22  ;;  %v849_v60 = vsel %vm848_vm6, %v6005_v29, %v6004_v59 }
 0x33d   : > { %1828 = vrot.lane.b32.xlu0 %v5998_v33, %s3070_s7  ;;  %2413 = vmatprep.subr.bf16.mxu0 %v2086_v51  ;;  %v6006_v51 = vld [vmem:[#allocation98_spill] sm:$0xff] }
 0x33e   : > { %v1719_v63 = vpop.permute.xlu1 %1718  ;;  %v827_v9 = vsel %vm823_vm5, %v6001_v8, %v6006_v51  ;;  %v851_v8 = vsel %vm848_vm6, %v6010_v46, %v6009_v17 }
 0x33f   : > { %v1717_v16 = vpop.permute.xlu0 %1716 }
 0x340   : > { %1834 = vrot.lane.b32.xlu1 %v826_v15, %s3070_s7  ;;  %v2088_v44 = vsel %vm2060_vm1, %v1717_v16, %v1719_v63  ;;  %v2087_v37 = vsel %vm2060_vm1, %v1715_v22, %v1717_v16  ;;  %v6007_v63 = vld [vmem:[#allocation99_spill] sm:$0xff]  ;;  %v6008_v16 = vld [vmem:[#allocation100_spill] sm:$0xff] }
 0x341   : > { %1832 = vrot.lane.b32.xlu0 %v825_v31, %s3070_s7  ;;  %2536 = vmatprep.subr.bf16.mxu1 %v2088_v44  ;;  %v829_v15 = vsel %vm823_vm5, %v6008_v16, %v6007_v63 }
 0x342   : > { %2537 = vmatpush1.bf16.msra.mxu1 %v2087_v37  ;;  %v1723_v33 = vpop.permute.xlu1 %1722  ;;  %v1012_v37 = vsel %vm468_vm0, %v829_v15, %v849_v60  ;;  %v6012_v60 = vld [vmem:[#allocation101_spill] sm:$0xff] }
 0x343   : > { %v1711_v10 = vpop.permute.xlu0 %1710 }
 0x344   : > { %1838 = vrot.lane.b32.xlu1 %v6006_v51, %s3070_s7  ;;  %v2085_v22 = vsel %vm2060_vm1, %v1711_v10, %v1713_v52  ;;  %v824_v51 = vsel %vm823_vm5, %v6011_v48, %v6003_v7  ;;  %v850_v10 = vsel %vm848_vm6, %v6004_v59, %v6010_v46 }
 0x345   : > { %1836 = vrot.lane.b32.xlu0 %v827_v9, %s3070_s7  ;;  %2414 = vmatpush1.bf16.msra.mxu0 %v2085_v22  ;;  %v6013_v9 = vld [vmem:[#allocation102_spill] sm:$0xff] }
 0x346   : > { %v1727_v31 = vpop.permute.xlu1 %1726  ;;  %v831_v22 = vsel %vm823_vm5, %v6013_v9, %v6012_v60  ;;  %v830_v48 = vsel %vm823_vm5, %v6007_v63, %v6013_v9 }
 0x347   : > { %v1725_v44 = vpop.permute.xlu0 %1724  ;;  %v1015_v45 = vsel %vm468_vm0, %v830_v48, %v850_v10  ;;  %v6016_v10 = vld [vmem:[#allocation107_spill] sm:$0xff] }
 0x348   : > { %1842 = vrot.lane.b32.xlu1 %v1012_v37, %s3070_s7  ;;  %v2090_v52 = vsel %vm2060_vm1, %v1723_v33, %v1725_v44  ;;  %v1018_v37 = vsel %vm468_vm0, %v831_v22, %v851_v8  ;;  %v2091_v59 = vsel %vm2060_vm1, %v1725_v44, %v1727_v31  ;;  %v6017_v22 = vld [vmem:[#allocation108_spill] sm:$0xff] }
 0x349   : > { %1830 = vrot.lane.b32.xlu0 %v824_v51, %s3070_s7  ;;  %2415 = vmatprep.subr.bf16.mxu0 %v2090_v52  ;;  %v6014_v51 = vld [vmem:[#allocation97_spill] sm:$0xff] }
 0x34a   : > { %v1721_v15 = vpop.permute.xlu1 %1720  ;;  %v828_v63 = vsel %vm823_vm5, %v6014_v51, %v6008_v16  ;;  %v6015_v16 = vld [vmem:[#allocation110_spill] sm:$0xff] }
 0x34b   : > { %v1729_v7 = vpop.permute.xlu0 %1728  ;;  %v2089_v32 = vsel %vm2060_vm1, %v1721_v15, %v1723_v33  ;;  %v1009_v33 = vsel %vm468_vm0, %v828_v63, %v6005_v29  ;;  %v853_v9 = vsel %vm848_vm6, %v6016_v10, %v6015_v16  ;;  %v852_v29 = vsel %vm848_vm6, %v6017_v22, %v6016_v10  ;;  %v6019_v63 = vld [vmem:[#allocation111_spill] sm:$0xff] }
 0x34c   : > { %1846 = vrot.lane.b32.xlu1 %v1018_v37, %s3070_s7  ;;  %2416 = vmatpush1.bf16.msra.mxu0 %v2089_v32  ;;  %v2092_v46 = vsel %vm2060_vm1, %v1727_v31, %v1729_v7  ;;  %v1021_v32 = vsel %vm468_vm0, %v6012_v60, %v6009_v17  ;;  %v6018_v7 = vld [vmem:[#allocation109_spill] sm:$0xff] }
 0x34d   : > { %1844 = vrot.lane.b32.xlu0 %v1015_v45, %s3070_s7  ;;  %2538 = vmatprep.subr.bf16.mxu1 %v2092_v46  ;;  %v854_v37 = vsel %vm848_vm6, %v6015_v16, %v6018_v7 }
 0x34e   : > { %2539 = vmatpush1.bf16.msra.mxu1 %v2091_v59  ;;  %v1735_v8 = vpop.permute.xlu1 %1734 }
 0x34f   : > { %v1733_v52 = vpop.permute.xlu0 %1732 }
 0x350   : > { %1840 = vrot.lane.b32.xlu1 %v1009_v33, %s3070_s7  ;;  %v2094_v45 = vsel %vm2060_vm1, %v1733_v52, %v1735_v8 }
 0x351   : > { %1848 = vrot.lane.b32.xlu0 %v1021_v32, %s3070_s7  ;;  %2417 = vmatprep.subr.bf16.mxu0 %v2094_v45 }
 0x352   : > { %v1739_v31 = vpop.permute.xlu1 %1738 }
 0x353   : > { %v1737_v44 = vpop.permute.xlu0 %1736 }
 0x354   : > { %1854 = vrot.lane.b32.xlu1 %v853_v9, %s3070_s7  ;;  %v2096_v17 = vsel %vm2060_vm1, %v1737_v44, %v1739_v31  ;;  %v2095_v60 = vsel %vm2060_vm1, %v1735_v8, %v1737_v44  ;;  %v6020_v8 = vld [vmem:[#allocation112_spill] sm:$0xff]  ;;  %v6022_v44 = vld [vmem:[#allocation114_spill] sm:$0xff] }
 0x355   : > { %1852 = vrot.lane.b32.xlu0 %v852_v29, %s3070_s7  ;;  %2540 = vmatprep.subr.bf16.mxu1 %v2096_v17  ;;  %v876_v33 = vsel %vm875_vm7, %v6020_v8, %v6019_v63  ;;  %v877_v9 = vsel %vm875_vm7, %v6019_v63, %v6022_v44 }
 0x356   : > { %2541 = vmatpush1.bf16.msra.mxu1 %v2095_v60  ;;  %v1743_v15 = vpop.permute.xlu1 %1742 }
 0x357   : > { %v1731_v48 = vpop.permute.xlu0 %1730 }
 0x358   : > { %1858 = vrot.lane.b32.xlu1 %v6018_v7, %s3070_s7  ;;  %v2093_v46 = vsel %vm2060_vm1, %v1731_v48, %v1733_v52  ;;  %v6021_v52 = vld [vmem:[#allocation113_spill] sm:$0xff]  ;;  %v6023_v48 = vld [vmem:[#allocation116_spill] sm:$0xff] }
 0x359   : > { %1856 = vrot.lane.b32.xlu0 %v854_v37, %s3070_s7  ;;  %2418 = vmatpush1.bf16.msra.mxu0 %v2093_v46  ;;  %v878_v16 = vsel %vm875_vm7, %v6022_v44, %v6021_v52  ;;  %v6024_v7 = vld [vmem:[#allocation124_spill] sm:$0xff]  ;;  %v6025_v37 = vld [vmem:[#allocation121_spill] sm:$0xff] }
 0x35a   : > { %v1747_v59 = vpop.permute.xlu1 %1746  ;;  %v909_v46 = vsel %vm907_vm8, %v6025_v37, %v6024_v7 }
 0x35b   : > { %v1745_v51 = vpop.permute.xlu0 %1744 }
 0x35c   : > { %1862 = vrot.lane.b32.xlu1 %v876_v33, %s3070_s7  ;;  %v2098_v32 = vsel %vm2060_vm1, %v1743_v15, %v1745_v51  ;;  %v6026_v33 = vld [vmem:[#allocation122_spill] sm:$0xff] }
 0x35d   : > { %1850 = vrot.lane.b32.xlu0 %v6017_v22, %s3070_s7  ;;  %2419 = vmatprep.subr.bf16.mxu0 %v2098_v32  ;;  %v2099_v22 = vsel %vm2060_vm1, %v1745_v51, %v1747_v59  ;;  %v6027_v51 = vld [vmem:[#allocation117_spill] sm:$0xff]  ;;  %v6028_v32 = vld [vmem:[#allocation118_spill] sm:$0xff] }
 0x35e   : > { %v1741_v45 = vpop.permute.xlu1 %1740 }
 0x35f   : > { %v1749_v31 = vpop.permute.xlu0 %1748  ;;  %v2097_v10 = vsel %vm2060_vm1, %v1741_v45, %v1743_v15  ;;  %v879_v15 = vsel %vm875_vm7, %v6021_v52, %v6023_v48  ;;  %v881_v45 = vsel %vm875_vm7, %v6028_v32, %v6027_v51  ;;  %v6029_v52 = vld [vmem:[#allocation115_spill] sm:$0xff] }
 0x360   : > { %1866 = vrot.lane.b32.xlu1 %v878_v16, %s3070_s7  ;;  %2420 = vmatpush1.bf16.msra.mxu0 %v2097_v10  ;;  %v2100_v29 = vsel %vm2060_vm1, %v1747_v59, %v1749_v31  ;;  %v908_v59 = vsel %vm907_vm8, %v6026_v33, %v6025_v37  ;;  %v880_v44 = vsel %vm875_vm7, %v6029_v52, %v6028_v32  ;;  %v6030_v10 = vld [vmem:[#allocation126_spill] sm:$0xff] }
 0x361   : > { %1864 = vrot.lane.b32.xlu0 %v877_v9, %s3070_s7  ;;  %2542 = vmatprep.subr.bf16.mxu1 %v2100_v29  ;;  %v6031_v9 = vld [vmem:[#allocation123_spill] sm:$0xff] }
 0x362   : > { %2543 = vmatpush1.bf16.msra.mxu1 %v2099_v22  ;;  %v1755_v17 = vpop.permute.xlu1 %1754  ;;  %v911_v29 = vsel %vm907_vm8, %v6031_v9, %v6030_v10  ;;  %v1027_v22 = vsel %vm468_vm0, %v880_v44, %v908_v59  ;;  %v910_v37 = vsel %vm907_vm8, %v6024_v7, %v6031_v9  ;;  %v6034_v10 = vld [vmem:[#allocation128_spill] sm:$0xff]  ;;  %v6035_v9 = vld [vmem:[#allocation125_spill] sm:$0xff] }
 0x363   : > { %v1753_v60 = vpop.permute.xlu0 %1752 }
 0x364   : > { %1860 = vrot.lane.b32.xlu1 %v6020_v8, %s3070_s7  ;;  %v2102_v63 = vsel %vm2060_vm1, %v1753_v60, %v1755_v17  ;;  %v1030_v8 = vsel %vm468_vm0, %v881_v45, %v909_v46  ;;  %v6032_v46 = vld [vmem:[#allocation119_spill] sm:$0xff] }
 0x365   : > { %1868 = vrot.lane.b32.xlu0 %v879_v15, %s3070_s7  ;;  %2421 = vmatprep.subr.bf16.mxu0 %v2102_v63  ;;  %v6033_v63 = vld [vmem:[#allocation120_spill] sm:$0xff] }
 0x366   : > { %v1759_v31 = vpop.permute.xlu1 %1758  ;;  %v883_v32 = vsel %vm875_vm7, %v6033_v63, %v6032_v46  ;;  %v882_v59 = vsel %vm875_vm7, %v6027_v51, %v6033_v63  ;;  %v1024_v51 = vsel %vm468_vm0, %v6029_v52, %v6026_v33 }
 0x367   : > { %v1757_v16 = vpop.permute.xlu0 %1756  ;;  %v1033_v44 = vsel %vm468_vm0, %v882_v59, %v910_v37  ;;  %v6037_v37 = vld [vmem:[#allocation127_spill] sm:$0xff] }
 0x368   : > { %1874 = vrot.lane.b32.xlu1 %v1030_v8, %s3070_s7  ;;  %v2104_v48 = vsel %vm2060_vm1, %v1757_v16, %v1759_v31  ;;  %v2103_v15 = vsel %vm2060_vm1, %v1755_v17, %v1757_v16  ;;  %v1036_v17 = vsel %vm468_vm0, %v883_v32, %v911_v29  ;;  %v913_v32 = vsel %vm907_vm8, %v6034_v10, %v6037_v37 }
 0x369   : > { %1872 = vrot.lane.b32.xlu0 %v1027_v22, %s3070_s7  ;;  %2544 = vmatprep.subr.bf16.mxu1 %v2104_v48  ;;  %v912_v22 = vsel %vm907_vm8, %v6035_v9, %v6034_v10 }
 0x36a   : > { %2545 = vmatpush1.bf16.msra.mxu1 %v2103_v15  ;;  %v1763_v45 = vpop.permute.xlu1 %1762  ;;  %v6036_v15 = vld [vmem:[#allocation130_spill] sm:$0xff] }
 0x36b   : > { %v1751_v31 = vpop.permute.xlu0 %1750  ;;  %v914_v46 = vsel %vm907_vm8, %v6037_v37, %v6036_v15 }
 0x36c   : > { %1878 = vrot.lane.b32.xlu1 %v1036_v17, %s3070_s7  ;;  %v2101_v7 = vsel %vm2060_vm1, %v1751_v31, %v1753_v60  ;;  %v6038_v17 = vld [vmem:[#allocation129_spill] sm:$0xff] }
 0x36d   : > { %1876 = vrot.lane.b32.xlu0 %v1033_v44, %s3070_s7  ;;  %2422 = vmatpush1.bf16.msra.mxu0 %v2101_v7 }
 0x36e   : > { %v1767_v16 = vpop.permute.xlu1 %1766 }
 0x36f   : > { %v1765_v8 = vpop.permute.xlu0 %1764 }
 0x370   : > { %1882 = vrot.lane.b32.xlu1 %v912_v22, %s3070_s7  ;;  %v2106_v29 = vsel %vm2060_vm1, %v1763_v45, %v1765_v8  ;;  %v2107_v52 = vsel %vm2060_vm1, %v1765_v8, %v1767_v16 }
 0x371   : > { %1870 = vrot.lane.b32.xlu0 %v1024_v51, %s3070_s7  ;;  %2423 = vmatprep.subr.bf16.mxu0 %v2106_v29  ;;  %v1251_v51 = vsel %vm736_vm9, %v5979_v50, %v4229_v42 }
 0x372   : > { %v1761_v60 = vpop.permute.xlu1 %1760 }
 0x373   : > { %v1769_v48 = vpop.permute.xlu0 %1768  ;;  %v2105_v63 = vsel %vm2060_vm1, %v1761_v60, %v1763_v45  ;;  %v915_v45 = vsel %vm907_vm8, %v6036_v15, %v6038_v17  ;;  %v1518_v15 = vsel %vm1515_vm10, %v4253_v38, %v4251_v56 }
 0x374   : > { %1886 = vrot.lane.b32.xlu1 %v914_v46, %s3070_s7  ;;  %2424 = vmatpush1.bf16.msra.mxu0 %v2105_v63  ;;  %v2108_v33 = vsel %vm2060_vm1, %v1767_v16, %v1769_v48  ;;  %v1517_v46 = vsel %vm1515_vm10, %v4244_v27, %v4253_v38 }
 0x375   : > { %1884 = vrot.lane.b32.xlu0 %v913_v32, %s3070_s7  ;;  %2546 = vmatprep.subr.bf16.mxu1 %v2108_v33 }
 0x376   : > { %2547 = vmatpush1.bf16.msra.mxu1 %v2107_v52  ;;  %v1775_v59 = vpop.permute.xlu1 %1774  ;;  %v1519_v52 = vsel %vm1515_vm10, %v4251_v56, %v4261_v19 }
 0x377   : > { %v1773_v31 = vpop.permute.xlu0 %1772 }
 0x378   : > { %1485 = vrot.lane.b32.xlu1 %v4751_v62, %s3069_s12  ;;  %v2110_v44 = vsel %vm2060_vm1, %v1773_v31, %v1775_v59 }
 0x379   : > { %1888 = vrot.lane.b32.xlu0 %v915_v45, %s3070_s7  ;;  %2425 = vmatprep.subr.bf16.mxu0 %v2110_v44 }
 0x37a   : > { %v1779_v7 = vpop.permute.xlu1 %1778 }
 0x37b   : > { %v1777_v10 = vpop.permute.xlu0 %1776 }
 0x37c   : > { %1489 = vrot.lane.b32.xlu1 %v4762_v47, %s3069_s12  ;;  %v2112_v16 = vsel %vm2060_vm1, %v1777_v10, %v1779_v7  ;;  %v2111_v8 = vsel %vm2060_vm1, %v1775_v59, %v1777_v10  ;;  %v1522_v10 = vsel %vm1515_vm10, %v4274_v24, %v4297_v34 }
 0x37d   : > { %1487 = vrot.lane.b32.xlu0 %v4746_v1, %s3069_s12  ;;  %2548 = vmatprep.subr.bf16.mxu1 %v2112_v16  ;;  %v1516_v1 = vsel %vm1515_vm10, %v4246_v25, %v4244_v27 }
 0x37e   : > { %2549 = vmatpush1.bf16.msra.mxu1 %v2111_v8  ;;  %v1783_v62 = vpop.permute.xlu1 %1782  ;;  %v1521_v8 = vsel %vm1515_vm10, %v4276_v57, %v4274_v24  ;;  %v1523_v24 = vsel %vm1515_vm10, %v4297_v34, %v4285_v21 }
 0x37f   : > { %v1771_v22 = vpop.permute.xlu0 %1770 }
 0x380   : > { %1493 = vrot.lane.b32.xlu1 %v4229_v42, %s3069_s12  ;;  %v2109_v47 = vsel %vm2060_vm1, %v1771_v22, %v1773_v31  ;;  %v2840_v22 = vcombine.low %v4784_v53, %v4784_v53 }
 0x381   : > { %1491 = vrot.lane.b32.xlu0 %v1251_v51, %s3069_s12  ;;  %2426 = vmatpush1.bf16.msra.mxu0 %v2109_v47 }
 0x382   : > { %v1787_v29 = vpop.permute.xlu1 %1786 }
 0x383   : > { %v1785_v60 = vpop.permute.xlu0 %1784 }
 0x384   : > { %1892 = vrot.lane.b32.xlu1 %v1516_v1, %s3070_s7  ;;  %v2114_v48 = vsel %vm2060_vm1, %v1783_v62, %v1785_v60 }
 0x385   : > { %1880 = vrot.lane.b32.xlu0 %v6035_v9, %s3070_s7  ;;  %2427 = vmatprep.subr.bf16.mxu0 %v2114_v48  ;;  %v2115_v9 = vsel %vm2060_vm1, %v1785_v60, %v1787_v29  ;;  %v1257_v48 = vsel %vm765_vm3, %v5993_v36, %v4236_v39 }
 0x386   : > { %v1781_v42 = vpop.permute.xlu1 %1780 }
 0x387   : > { %v1789_v50 = vpop.permute.xlu0 %1788  ;;  %v2113_v37 = vsel %vm2060_vm1, %v1781_v42, %v1783_v62 }
 0x388   : > { %1896 = vrot.lane.b32.xlu1 %v1518_v15, %s3070_s7  ;;  %2428 = vmatpush1.bf16.msra.mxu0 %v2113_v37  ;;  %v2116_v63 = vsel %vm2060_vm1, %v1787_v29, %v1789_v50  ;;  %v1526_v37 = vsel %vm1515_vm10, %v4318_v18, %v4316_v40 }
 0x389   : > { %1894 = vrot.lane.b32.xlu0 %v1517_v46, %s3070_s7  ;;  %2550 = vmatprep.subr.bf16.mxu1 %v2116_v63  ;;  %v1525_v46 = vsel %vm1515_vm10, %v4307_v11, %v4318_v18 }
 0x38a   : > { %2551 = vmatpush1.bf16.msra.mxu1 %v2115_v9  ;;  %v1795_v32 = vpop.permute.xlu1 %1794 }
 0x38b   : > { %v1793_v33 = vpop.permute.xlu0 %1792 }
 0x38c   : > { %1495 = vrot.lane.b32.xlu1 %v4772_v12, %s3069_s12  ;;  %v2118_v27 = vsel %vm2060_vm1, %v1793_v33, %v1795_v32  ;;  %v1256_v12 = vsel %vm765_vm3, %v5983_v28, %v4238_v14 }
 0x38d   : > { %1898 = vrot.lane.b32.xlu0 %v1519_v52, %s3070_s7  ;;  %2429 = vmatprep.subr.bf16.mxu0 %v2118_v27  ;;  %v1529_v27 = vsel %vm1515_vm10, %v4334_v0, %v4332_v13 }
 0x38e   : > { %v1799_v38 = vpop.permute.xlu1 %1798 }
 0x38f   : > { %v1797_v59 = vpop.permute.xlu0 %1796 }
 0x390   : > { %1499 = vrot.lane.b32.xlu1 %v4789_v55, %s3069_s12  ;;  %v2120_v31 = vsel %vm2060_vm1, %v1797_v59, %v1799_v38  ;;  %v2119_v17 = vsel %vm2060_vm1, %v1795_v32, %v1797_v59  ;;  %v1528_v38 = vsel %vm1515_vm10, %v4324_v58, %v4334_v0  ;;  %v1531_v59 = vsel %vm1515_vm10, %v4342_v5, %v4340_v20 }
 0x391   : > { %1497 = vrot.lane.b32.xlu0 %v4797_v54, %s3069_s12  ;;  %2552 = vmatprep.subr.bf16.mxu1 %v2120_v31  ;;  %v1520_v54 = vsel %vm1515_vm10, %v4259_v49, %v4276_v57  ;;  %v1530_v0 = vsel %vm1515_vm10, %v4332_v13, %v4342_v5 }
 0x392   : > { %2553 = vmatpush1.bf16.msra.mxu1 %v2119_v17  ;;  %v1803_v56 = vpop.permute.xlu1 %1802 }
 0x393   : > { %v1791_v19 = vpop.permute.xlu0 %1790 }
 0x394   : > { %1503 = vrot.lane.b32.xlu1 %v4238_v14, %s3069_s12  ;;  %v2117_v55 = vsel %vm2060_vm1, %v1791_v19, %v1793_v33  ;;  %v1527_v33 = vsel %vm1515_vm10, %v4316_v40, %v4326_v26 }
 0x395   : > { %1501 = vrot.lane.b32.xlu0 %v1256_v12, %s3069_s12  ;;  %2430 = vmatpush1.bf16.msra.mxu0 %v2117_v55  ;;  %v1532_v12 = vsel %vm1515_vm10, %v4353_v23, %v4351_v2 }
 0x396   : > { %v1807_v45 = vpop.permute.xlu1 %1806 }
 0x397   : > { %v1805_v44 = vpop.permute.xlu0 %1804 }
 0x398   : > { %1902 = vrot.lane.b32.xlu1 %v1520_v54, %s3070_s7  ;;  %v2122_v7 = vsel %vm2060_vm1, %v1803_v56, %v1805_v44 }
 0x399   : > { %1890 = vrot.lane.b32.xlu0 %v4246_v25, %s3070_s7  ;;  %2431 = vmatprep.subr.bf16.mxu0 %v2122_v7  ;;  %v2123_v25 = vsel %vm2060_vm1, %v1805_v44, %v1807_v45  ;;  %v1533_v44 = vsel %vm1515_vm10, %v4351_v2, %v4364_v43 }
 0x39a   : > { %v1801_v14 = vpop.permute.xlu1 %1800 }
 0x39b   : > { %v1809_v28 = vpop.permute.xlu0 %1808  ;;  %v2121_v16 = vsel %vm2060_vm1, %v1801_v14, %v1803_v56 }
 0x39c   : > { %1906 = vrot.lane.b32.xlu1 %v1522_v10, %s3070_s7  ;;  %2432 = vmatpush1.bf16.msra.mxu0 %v2121_v16  ;;  %v2124_v62 = vsel %vm2060_vm1, %v1807_v45, %v1809_v28  ;;  %v1534_v45 = vsel %vm1515_vm10, %v4364_v43, %v4362_v41  ;;  %v1535_v28 = vsel %vm1515_vm10, %v4362_v41, %v4372_v4  ;;  %v6039_v16 = vld [vmem:[#allocation132_spill] sm:$0xff] }
 0x39d   : > { %1904 = vrot.lane.b32.xlu0 %v1521_v8, %s3070_s7  ;;  %2554 = vmatprep.subr.bf16.mxu1 %v2124_v62  ;;  %v1537_v8 = vsel %vm1515_vm10, %v6039_v16, %v4378_v35  ;;  %v6040_v62 = vld [vmem:[#allocation131_spill] sm:$0xff] }
 0x39e   : > { %2555 = vmatpush1.bf16.msra.mxu1 %v2123_v25  ;;  %v1815_v51 = vpop.permute.xlu1 %1814  ;;  %v1536_v25 = vsel %vm1515_vm10, %v6040_v62, %v6039_v16 }
 0x39f   : > { %v1813_v47 = vpop.permute.xlu0 %1812  ;;  %2434 = vmatmul.mubr.bf16.vlgmr.msra.gmra.mrb[0].mxu0 %v2840_v22 }
 0x3a0   : > { %1505 = vrot.lane.b32.xlu1 %v4826_v61, %s3069_s12  ;;  %v2126_v57 = vsel %vm2060_vm1, %v1813_v47, %v1815_v51 }
 0x3a1   : > { %1908 = vrot.lane.b32.xlu0 %v1523_v24, %s3070_s7  ;;  %2442 = vmatprep.subr.bf16.mxu0 %v2126_v57 }
 0x3a2   : > { %v1819_v29 = vpop.permute.xlu1 %1818  ;;  %2557 = vmatmul.mubr.bf16.vlgmr.msra.gmra.mrb[0].mxu1 %v2840_v22  ;;  %v6041_v22 = vld [vmem:[#allocation133_spill] sm:$0xff] }
 0x3a3   : > { %v1817_v60 = vpop.permute.xlu0 %1816 }
 0x3a4   : > { %1509 = vrot.lane.b32.xlu1 %v4842_v3, %s3069_s12  ;;  %v2128_v53 = vsel %vm2060_vm1, %v1817_v60, %v1819_v29  ;;  %v2127_v1 = vsel %vm2060_vm1, %v1815_v51, %v1817_v60  ;;  %v6042_v51 = vld [vmem:[#allocation134_spill] sm:$0xff] }
 0x3a5   : > { %1507 = vrot.lane.b32.xlu0 %v4821_v6, %s3069_s12  ;;  %2565 = vmatprep.subr.bf16.mxu1 %v2128_v53  ;;  %v1524_v6 = vsel %vm1515_vm10, %v4310_v30, %v4307_v11  ;;  %v1538_v29 = vsel %vm1515_vm10, %v4378_v35, %v6042_v51 }
 0x3a6   : > { %2566 = vmatpush1.bf16.msra.mxu1 %v2127_v1  ;;  %v1823_v21 = vpop.permute.xlu1 %1822  ;;  %v6043_v1 = vld [vmem:[#allocation135_spill] sm:$0xff] }
 0x3a7   : > { %v1811_v34 = vpop.permute.xlu0 %1810 }
 0x3a8   : > { %v2125_v61 = vsel %vm2060_vm1, %v1811_v34, %v1813_v47  ;;  %1513 = vrot.lane.b32.xlu1 %v4236_v39, %s3069_s12  ;;  %v1539_v47 = vsel %vm1515_vm10, %v6042_v51, %v6041_v22  ;;  %v6058_v22 = vld [vmem:[#allocation17_spill] sm:$0xff]  ;;  %v6059_v51 = vld [vmem:[#allocation30_spill] sm:$0xff] }
 0x3a9   : > { %1511 = vrot.lane.b32.xlu0 %v1257_v48, %s3069_s12  ;;  %2443 = vmatpush1.bf16.msra.mxu0 %v2125_v61  ;;  %s411_s12 = scalar_lea.vmem %s5603_s6, %s2827_s27 }
 0x3aa   : > { %v1827_v3 = vpop.permute.xlu1 %1826 }
 0x3ab   : > { %v1825_v42 = vpop.permute.xlu0 %1824 }
 0x3ac   : > { %1912 = vrot.lane.b32.xlu1 %v1524_v6, %s3070_s7  ;;  %v2130_v50 = vsel %vm2060_vm1, %v1823_v21, %v1825_v42  ;;  %v6046_v6 = vld [vmem:[#allocation6_spill] sm:$0xff] }
 0x3ad   : > { %1900 = vrot.lane.b32.xlu0 %v4259_v49, %s3070_s7  ;;  %2444 = vmatprep.subr.bf16.mxu0 %v2130_v50  ;;  %v2131_v49 = vsel %vm2060_vm1, %v1825_v42, %v1827_v3  ;;  %v6045_v42 = vld [vmem:[#allocation9_spill] sm:$0xff] }
 0x3ae   : > { %v1821_v36 = vpop.permute.xlu1 %1820  ;;  %v1542_v50 = vsel %vm1515_vm10, %v6046_v6, %v6045_v42 }
 0x3af   : > { %v1829_v15 = vpop.permute.xlu0 %1828  ;;  %v2129_v39 = vsel %vm2060_vm1, %v1821_v36, %v1823_v21  ;;  %v6044_v21 = vld [vmem:[#allocation136_spill] sm:$0xff]  ;;  %v1541_v36 = vsel %vm1515_vm10, %v6043_v1, %v6046_v6 }
 0x3b0   : > { %1916 = vrot.lane.b32.xlu1 %v1526_v37, %s3070_s7  ;;  %2445 = vmatpush1.bf16.msra.mxu0 %v2129_v39  ;;  %v2132_v63 = vsel %vm2060_vm1, %v1827_v3, %v1829_v15  ;;  %v1540_v34 = vsel %vm1515_vm10, %v6044_v21, %v6043_v1 }
 0x3b1   : > { %1914 = vrot.lane.b32.xlu0 %v1525_v46, %s3070_s7  ;;  %2567 = vmatprep.subr.bf16.mxu1 %v2132_v63  ;;  %v6047_v63 = vld [vmem:[#allocation12_spill] sm:$0xff] }
 0x3b2   : > { %2568 = vmatpush1.bf16.msra.mxu1 %v2131_v49  ;;  %v1835_v9 = vpop.permute.xlu1 %1834  ;;  %v1543_v49 = vsel %vm1515_vm10, %v6045_v42, %v6047_v63  ;;  %v6064_v42 = vld [vmem:[#allocation24_spill] sm:$0xff] }
 0x3b3   : > { %v1833_v32 = vpop.permute.xlu0 %1832 }
 0x3b4   : > { %1910 = vrot.lane.b32.xlu1 %v4310_v30, %s3070_s7  ;;  %v2134_v11 = vsel %vm2060_vm1, %v1833_v32, %v1835_v9 }
 0x3b5   : > { %1918 = vrot.lane.b32.xlu0 %v1527_v33, %s3070_s7  ;;  %2446 = vmatprep.subr.bf16.mxu0 %v2134_v11  ;;  %v6048_v11 = vld [vmem:[#allocation8_spill] sm:$0xff] }
 0x3b6   : > { %v1839_v18 = vpop.permute.xlu1 %1838 }
 0x3b7   : > { %v1837_v52 = vpop.permute.xlu0 %1836 }
 0x3b8   : > { %1924 = vrot.lane.b32.xlu1 %v1529_v27, %s3070_s7  ;;  %v2136_v40 = vsel %vm2060_vm1, %v1837_v52, %v1839_v18  ;;  %v2135_v30 = vsel %vm2060_vm1, %v1835_v9, %v1837_v52  ;;  %v6049_v18 = vld [vmem:[#allocation10_spill] sm:$0xff]  ;;  %v6050_v27 = vld [vmem:[#allocation7_spill] sm:$0xff] }
 0x3b9   : > { %1922 = vrot.lane.b32.xlu0 %v1528_v38, %s3070_s7  ;;  %2569 = vmatprep.subr.bf16.mxu1 %v2136_v40  ;;  %v1545_v52 = vsel %vm1515_vm10, %v6049_v18, %v6048_v11  ;;  %v1544_v38 = vsel %vm1515_vm10, %v6050_v27, %v6049_v18 }
 0x3ba   : > { %2570 = vmatpush1.bf16.msra.mxu1 %v2135_v30  ;;  %v1843_v26 = vpop.permute.xlu1 %1842 }
 0x3bb   : > { %v1831_v31 = vpop.permute.xlu0 %1830 }
 0x3bc   : > { %v2133_v17 = vsel %vm2060_vm1, %v1831_v31, %v1833_v32  ;;  %1928 = vrot.lane.b32.xlu1 %v1531_v59, %s3070_s7 }
 0x3bd   : > { %1926 = vrot.lane.b32.xlu0 %v1530_v0, %s3070_s7  ;;  %2447 = vmatpush1.bf16.msra.mxu0 %v2133_v17  ;;  %v6051_v17 = vld [vmem:[#allocation5_spill] sm:$0xff] }
 0x3be   : > { %v1847_v56 = vpop.permute.xlu1 %1846  ;;  %v6052_v0 = vld [vmem:[#allocation13_spill] sm:$0xff] }
 0x3bf   : > { %v1845_v19 = vpop.permute.xlu0 %1844 }
 0x3c0   : > { %1932 = vrot.lane.b32.xlu1 %v1532_v12, %s3070_s7  ;;  %v2138_v20 = vsel %vm2060_vm1, %v1843_v26, %v1845_v19 }
 0x3c1   : > { %1920 = vrot.lane.b32.xlu0 %v4324_v58, %s3070_s7  ;;  %2448 = vmatprep.subr.bf16.mxu0 %v2138_v20  ;;  %v2139_v58 = vsel %vm2060_vm1, %v1845_v19, %v1847_v56  ;;  %v1546_v20 = vsel %vm1515_vm10, %v6048_v11, %v6052_v0  ;;  %v6067_v11 = vld [vmem:[#allocation25_spill] sm:$0xff] }
 0x3c2   : > { %v1841_v13 = vpop.permute.xlu1 %1840 }
 0x3c3   : > { %v1849_v5 = vpop.permute.xlu0 %1848  ;;  %v2137_v55 = vsel %vm2060_vm1, %v1841_v13, %v1843_v26  ;;  %v5264_v26 = vld [vmem:[%s5597_s0 + $0x8] sm:$0xff] }
 0x3c4   : > { %1936 = vrot.lane.b32.xlu1 %v1534_v45, %s3070_s7  ;;  %2449 = vmatpush1.bf16.msra.mxu0 %v2137_v55  ;;  %v2140_v54 = vsel %vm2060_vm1, %v1847_v56, %v1849_v5  ;;  %v2843_v31 = vcombine.high %v5264_v26, %v5264_v26  ;;  %v1547_v56 = vsel %vm1515_vm10, %v6052_v0, %v6051_v17  ;;  %v6053_v55 = vld [vmem:[#allocation14_spill] sm:$0xff]  ;;  %v6054_v45 = vld [vmem:[#allocation15_spill] sm:$0xff]  ;;  %v6071_v0 = vld [vmem:[#allocation21_spill] sm:$0xff] }
 0x3c5   : > { %1934 = vrot.lane.b32.xlu0 %v1533_v44, %s3070_s7  ;;  %2571 = vmatprep.subr.bf16.mxu1 %v2140_v54  ;;  %v1548_v44 = vsel %vm1515_vm10, %v6054_v45, %v6053_v55 }
 0x3c6   : > { %2572 = vmatpush1.bf16.msra.mxu1 %v2139_v58  ;;  %v1855_v7 = vpop.permute.xlu1 %1854  ;;  %2474 = vmatprep.mubr.bf16.mxu0 %v2843_v31 }
 0x3c7   : > { %v1853_v14 = vpop.permute.xlu0 %1852  ;;  %2597 = vmatprep.mubr.bf16.mxu1 %v2843_v31 }
 0x3c8   : > { %1930 = vrot.lane.b32.xlu1 %v4353_v23, %s3070_s7  ;;  %v2142_v2 = vsel %vm2060_vm1, %v1853_v14, %v1855_v7 }
 0x3c9   : > { %1938 = vrot.lane.b32.xlu0 %v1535_v28, %s3070_s7  ;;  %2450 = vmatprep.subr.bf16.mxu0 %v2142_v2  ;;  %v6056_v28 = vld [vmem:[#allocation11_spill] sm:$0xff] }
 0x3ca   : > { %v1859_v43 = vpop.permute.xlu1 %1858 }
 0x3cb   : > { %v1857_v10 = vpop.permute.xlu0 %1856 }
 0x3cc   : > { %1944 = vrot.lane.b32.xlu1 %v1537_v8, %s3070_s7  ;;  %v2144_v41 = vsel %vm2060_vm1, %v1857_v10, %v1859_v43  ;;  %v2143_v23 = vsel %vm2060_vm1, %v1855_v7, %v1857_v10  ;;  %v1549_v43 = vsel %vm1515_vm10, %v6053_v55, %v6056_v28 }
 0x3cd   : > { %1942 = vrot.lane.b32.xlu0 %v1536_v25, %s3070_s7  ;;  %2573 = vmatprep.subr.bf16.mxu1 %v2144_v41  ;;  %v6057_v25 = vld [vmem:[#allocation20_spill] sm:$0xff] }
 0x3ce   : > { %2574 = vmatpush1.bf16.msra.mxu1 %v2143_v23  ;;  %v1863_v4 = vpop.permute.xlu1 %1862 }
 0x3cf   : > { %v1851_v24 = vpop.permute.xlu0 %1850 }
 0x3d0   : > { %v2141_v57 = vsel %vm2060_vm1, %v1851_v24, %v1853_v14  ;;  %1948 = vrot.lane.b32.xlu1 %v1539_v47, %s3070_s7  ;;  %v6055_v14 = vld [vmem:[#allocation16_spill] sm:$0xff]  ;;  %v1553_v47 = vsel %vm1515_vm10, %v6059_v51, %v6058_v22  ;;  %v6060_v24 = vld [vmem:[#allocation19_spill] sm:$0xff] }
 0x3d1   : > { %1946 = vrot.lane.b32.xlu0 %v1538_v29, %s3070_s7  ;;  %2451 = vmatpush1.bf16.msra.mxu0 %v2141_v57  ;;  %v1550_v2 = vsel %vm1515_vm10, %v6056_v28, %v6055_v14  ;;  %v1551_v41 = vsel %vm1515_vm10, %v6055_v14, %v6057_v25  ;;  %v1552_v57 = vsel %vm1515_vm10, %v6060_v24, %v6059_v51 }
 0x3d2   : > { %v1867_v60 = vpop.permute.xlu1 %1866 }
 0x3d3   : > { %v1865_v53 = vpop.permute.xlu0 %1864 }
 0x3d4   : > { %1952 = vrot.lane.b32.xlu1 %v1540_v34, %s3070_s7  ;;  %v2146_v61 = vsel %vm2060_vm1, %v1863_v4, %v1865_v53  ;;  %v2147_v39 = vsel %vm2060_vm1, %v1865_v53, %v1867_v60  ;;  %v6062_v53 = vld [vmem:[#allocation22_spill] sm:$0xff] }
 0x3d5   : > { %1940 = vrot.lane.b32.xlu0 %v6040_v62, %s3070_s7  ;;  %2452 = vmatprep.subr.bf16.mxu0 %v2146_v61  ;;  %v1554_v61 = vsel %vm1515_vm10, %v6058_v22, %v6062_v53 }
 0x3d6   : > { %v1861_v35 = vpop.permute.xlu1 %1860 }
 0x3d7   : > { %v1869_v48 = vpop.permute.xlu0 %1868  ;;  %v2145_v3 = vsel %vm2060_vm1, %v1861_v35, %v1863_v4 }
 0x3d8   : > { %1956 = vrot.lane.b32.xlu1 %v1542_v50, %s3070_s7  ;;  %2453 = vmatpush1.bf16.msra.mxu0 %v2145_v3  ;;  %v2148_v15 = vsel %vm2060_vm1, %v1867_v60, %v1869_v48  ;;  %v6061_v60 = vld [vmem:[#allocation27_spill] sm:$0xff] }
 0x3d9   : > { %1954 = vrot.lane.b32.xlu0 %v1541_v36, %s3070_s7  ;;  %2575 = vmatprep.subr.bf16.mxu1 %v2148_v15  ;;  %v1555_v1 = vsel %vm1515_vm10, %v6062_v53, %v6061_v60  ;;  %v6063_v3 = vld [vmem:[#allocation23_spill] sm:$0xff]  ;;  %v6078_v60 = vld [vmem:[#allocation42_spill] sm:$0xff] }
 0x3da   : > { %2576 = vmatpush1.bf16.msra.mxu1 %v2147_v39  ;;  %v1875_v37 = vpop.permute.xlu1 %1874  ;;  %v1556_v6 = vsel %vm1515_vm10, %v6064_v42, %v6063_v3  ;;  %v6065_v39 = vld [vmem:[#allocation32_spill] sm:$0xff]  ;;  %v6079_v53 = vld [vmem:[#allocation39_spill] sm:$0xff] }
 0x3db   : > { %v1873_v46 = vpop.permute.xlu0 %1872  ;;  %v1559_v18 = vsel %vm1515_vm10, %v6065_v39, %v6067_v11 }
 0x3dc   : > { %1950 = vrot.lane.b32.xlu1 %v6044_v21, %s3070_s7  ;;  %v2150_v9 = vsel %vm2060_vm1, %v1873_v46, %v1875_v37 }
 0x3dd   : > { %1958 = vrot.lane.b32.xlu0 %v1543_v49, %s3070_s7  ;;  %2454 = vmatprep.subr.bf16.mxu0 %v2150_v9 }
 0x3de   : > { %v1879_v32 = vpop.permute.xlu1 %1878 }
 0x3df   : > { %v1877_v33 = vpop.permute.xlu0 %1876 }
 0x3e0   : > { %1964 = vrot.lane.b32.xlu1 %v1545_v52, %s3070_s7  ;;  %v2152_v40 = vsel %vm2060_vm1, %v1877_v33, %v1879_v32  ;;  %v2151_v30 = vsel %vm2060_vm1, %v1875_v37, %v1877_v33  ;;  %v6066_v37 = vld [vmem:[#allocation29_spill] sm:$0xff] }
 0x3e1   : > { %1962 = vrot.lane.b32.xlu0 %v1544_v38, %s3070_s7  ;;  %2577 = vmatprep.subr.bf16.mxu1 %v2152_v40  ;;  %v1557_v63 = vsel %vm1515_vm10, %v6063_v3, %v6066_v37  ;;  %v6068_v38 = vld [vmem:[#allocation26_spill] sm:$0xff]  ;;  %v6069_v40 = vld [vmem:[#allocation28_spill] sm:$0xff] }
 0x3e2   : > { %2578 = vmatpush1.bf16.msra.mxu1 %v2151_v30  ;;  %v1883_v59 = vpop.permute.xlu1 %1882  ;;  %v1561_v30 = vsel %vm1515_vm10, %v6069_v40, %v6068_v38 }
 0x3e3   : > { %v1871_v19 = vpop.permute.xlu0 %1870 }
 0x3e4   : > { %v2149_v12 = vsel %vm2060_vm1, %v1871_v19, %v1873_v46  ;;  %1968 = vrot.lane.b32.xlu1 %v1547_v56, %s3070_s7  ;;  %v1558_v46 = vsel %vm1515_vm10, %v6066_v37, %v6065_v39  ;;  %v6072_v56 = vld [vmem:[#allocation36_spill] sm:$0xff] }
 0x3e5   : > { %1966 = vrot.lane.b32.xlu0 %v1546_v20, %s3070_s7  ;;  %2455 = vmatpush1.bf16.msra.mxu0 %v2149_v12  ;;  %v1563_v19 = vsel %vm1515_vm10, %v6072_v56, %v6071_v0 }
 0x3e6   : > { %v1887_v13 = vpop.permute.xlu1 %1886 }
 0x3e7   : > { %v1885_v5 = vpop.permute.xlu0 %1884 }
 0x3e8   : > { %1972 = vrot.lane.b32.xlu1 %v1548_v44, %s3070_s7  ;;  %v2154_v54 = vsel %vm2060_vm1, %v1883_v59, %v1885_v5  ;;  %v2155_v16 = vsel %vm2060_vm1, %v1885_v5, %v1887_v13  ;;  %v6074_v44 = vld [vmem:[#allocation34_spill] sm:$0xff] }
 0x3e9   : > { %1960 = vrot.lane.b32.xlu0 %v6050_v27, %s3070_s7  ;;  %2456 = vmatprep.subr.bf16.mxu0 %v2154_v54 }
 0x3ea   : > { %v5284_v58 = vpop.permute.xlu1 %1485 }
 0x3eb   : > { %v1889_v7 = vpop.permute.xlu0 %1888 }
 0x3ec   : > { %1976 = vrot.lane.b32.xlu1 %v1550_v2, %s3070_s7  ;;  %v2156_v10 = vsel %vm2060_vm1, %v1887_v13, %v1889_v7  ;;  %v1562_v13 = vsel %vm1515_vm10, %v6068_v38, %v6072_v56  ;;  %v6075_v2 = vld [vmem:[#allocation35_spill] sm:$0xff] }
 0x3ed   : > { %1974 = vrot.lane.b32.xlu0 %v1549_v43, %s3070_s7  ;;  %2579 = vmatprep.subr.bf16.mxu1 %v2156_v10  ;;  %v6076_v43 = vld [vmem:[#allocation40_spill] sm:$0xff] }
 0x3ee   : > { %2580 = vmatpush1.bf16.msra.mxu1 %v2155_v16  ;;  %v5296_v8 = vpop.permute.xlu1 %1489  ;;  %v1566_v10 = vsel %vm1515_vm10, %v6076_v43, %v6075_v2 }
 0x3ef   : > { %v5298_v62 = vpop.permute.xlu0 %1487 }
 0x3f0   : > { %1970 = vrot.lane.b32.xlu1 %v6054_v45, %s3070_s7  ;;  %v6073_v45 = vld [vmem:[#allocation33_spill] sm:$0xff]  ;;  %v1572_v37 = vsel %vm1515_vm10, %v5284_v58, %v5298_v62 }
 0x3f1   : > { %1978 = vrot.lane.b32.xlu0 %v1551_v41, %s3070_s7  ;;  %v1564_v54 = vsel %vm1515_vm10, %v6074_v44, %v6073_v45  ;;  %v1565_v16 = vsel %vm1515_vm10, %v6073_v45, %v6076_v43 }
 0x3f2   : > { %v5306_v23 = vpop.permute.xlu1 %1493 }
 0x3f3   : > { %v5308_v4 = vpop.permute.xlu0 %1491 }
 0x3f4   : > { %1984 = vrot.lane.b32.xlu1 %v1553_v47, %s3070_s7  ;;  %v6077_v47 = vld [vmem:[#allocation31_spill] sm:$0xff]  ;;  %v1574_v11 = vsel %vm1515_vm10, %v5296_v8, %v5308_v4 }
 0x3f5   : > { %1982 = vrot.lane.b32.xlu0 %v1552_v57, %s3070_s7 }
 0x3f6   : > { %v1893_v29 = vpop.permute.xlu1 %1892 }
 0x3f7   : > { %v1881_v21 = vpop.permute.xlu0 %1880 }
 0x3f8   : > { %v2153_v34 = vsel %vm2060_vm1, %v1881_v21, %v1883_v59  ;;  %1988 = vrot.lane.b32.xlu1 %v1555_v1, %s3070_s7  ;;  %v6070_v59 = vld [vmem:[#allocation18_spill] sm:$0xff]  ;;  %v1569_v1 = vsel %vm1515_vm10, %v6079_v53, %v6078_v60  ;;  %v6080_v21 = vld [vmem:[#allocation37_spill] sm:$0xff] }
 0x3f9   : > { %1986 = vrot.lane.b32.xlu0 %v1554_v61, %s3070_s7  ;;  %2457 = vmatpush1.bf16.msra.mxu0 %v2153_v34  ;;  %v1560_v31 = vsel %vm1515_vm10, %v6070_v59, %v6069_v40  ;;  %v1568_v34 = vsel %vm1515_vm10, %v6080_v21, %v6079_v53 }
 0x3fa   : > { %v1897_v35 = vpop.permute.xlu1 %1896 }
 0x3fb   : > { %v1895_v48 = vpop.permute.xlu0 %1894 }
 0x3fc   : > { %1992 = vrot.lane.b32.xlu1 %v1556_v6, %s3070_s7  ;;  %v2158_v50 = vsel %vm2060_vm1, %v1893_v29, %v1895_v48  ;;  %v2159_v9 = vsel %vm2060_vm1, %v1895_v48, %v1897_v35  ;;  %v6082_v48 = vld [vmem:[#allocation49_spill] sm:$0xff] }
 0x3fd   : > { %1980 = vrot.lane.b32.xlu0 %v6060_v24, %s3070_s7  ;;  %2458 = vmatprep.subr.bf16.mxu0 %v2158_v50  ;;  %v1567_v24 = vsel %vm1515_vm10, %v6075_v2, %v6077_v47  ;;  %v1570_v50 = vsel %vm1515_vm10, %v6078_v60, %v6082_v48 }
 0x3fe   : > { %v5334_v36 = vpop.permute.xlu1 %1495 }
 0x3ff   : > { %v1899_v15 = vpop.permute.xlu0 %1898 }
 0x400   : > { %1996 = vrot.lane.b32.xlu1 %v1558_v46, %s3070_s7  ;;  %v2160_v49 = vsel %vm2060_vm1, %v1897_v35, %v1899_v15  ;;  %v6081_v35 = vld [vmem:[#allocation38_spill] sm:$0xff] }
 0x401   : > { %1994 = vrot.lane.b32.xlu0 %v1557_v63, %s3070_s7  ;;  %2581 = vmatprep.subr.bf16.mxu1 %v2160_v49  ;;  %v1571_v3 = vsel %vm1515_vm10, %v6082_v48, %v6081_v35 }
 0x402   : > { %2582 = vmatpush1.bf16.msra.mxu1 %v2159_v9  ;;  %v5346_v32 = vpop.permute.xlu1 %1499 }
 0x403   : > { %v5348_v33 = vpop.permute.xlu0 %1497 }
 0x404   : > { %1990 = vrot.lane.b32.xlu1 %v6064_v42, %s3070_s7  ;;  %v1576_v56 = vsel %vm1515_vm10, %v5334_v36, %v5348_v33 }
 0x405   : > { %1998 = vrot.lane.b32.xlu0 %v1559_v18, %s3070_s7  ;;  %v1573_v18 = vsel %vm1515_vm10, %v5298_v62, %v5296_v8 }
 0x406   : > { %v5356_v52 = vpop.permute.xlu1 %1503 }
 0x407   : > { %v5358_v27 = vpop.permute.xlu0 %1501 }
 0x408   : > { %2004 = vrot.lane.b32.xlu1 %v1561_v30, %s3070_s7 }
 0x409   : > { %2002 = vrot.lane.b32.xlu0 %v1560_v31, %s3070_s7  ;;  %v1575_v31 = vsel %vm1515_vm10, %v5308_v4, %v5306_v23 }
 0x40a   : > { %v1903_v17 = vpop.permute.xlu1 %1902 }
 0x40b   : > { %v1891_v12 = vpop.permute.xlu0 %1890 }
 0x40c   : > { %v2157_v20 = vsel %vm2060_vm1, %v1891_v12, %v1893_v29  ;;  %2008 = vrot.lane.b32.xlu1 %v1563_v19, %s3070_s7  ;;  %v1579_v19 = vsel %vm1515_vm10, %v5358_v27, %v5356_v52 }
 0x40d   : > { %2006 = vrot.lane.b32.xlu0 %v1562_v13, %s3070_s7  ;;  %2459 = vmatpush1.bf16.msra.mxu0 %v2157_v20 }
 0x40e   : > { %v1907_v5 = vpop.permute.xlu1 %1906 }
 0x40f   : > { %v1905_v55 = vpop.permute.xlu0 %1904 }
 0x410   : > { %2012 = vrot.lane.b32.xlu1 %v1564_v54, %s3070_s7  ;;  %v2162_v7 = vsel %vm2060_vm1, %v1903_v17, %v1905_v55  ;;  %v2163_v41 = vsel %vm2060_vm1, %v1905_v55, %v1907_v5 }
 0x411   : > { %2000 = vrot.lane.b32.xlu0 %v6070_v59, %s3070_s7  ;;  %2460 = vmatprep.subr.bf16.mxu0 %v2162_v7 }
 0x412   : > { %v5384_v14 = vpop.permute.xlu1 %1505 }
 0x413   : > { %v1909_v28 = vpop.permute.xlu0 %1908 }
 0x414   : > { %2016 = vrot.lane.b32.xlu1 %v1566_v10, %s3070_s7  ;;  %v2164_v25 = vsel %vm2060_vm1, %v1907_v5, %v1909_v28 }
 0x415   : > { %2014 = vrot.lane.b32.xlu0 %v1565_v16, %s3070_s7  ;;  %2583 = vmatprep.subr.bf16.mxu1 %v2164_v25  ;;  %v1587_v25 = vld [vmem:[%s5598_s1] sm:$0xff] }
 0x416   : > { %2584 = vmatpush1.bf16.msra.mxu1 %v2163_v41  ;;  %v5396_v22 = vpop.permute.xlu1 %1509 }
 0x417   : > { %v5398_v51 = vpop.permute.xlu0 %1507 }
 0x418   : > { %2010 = vrot.lane.b32.xlu1 %v6074_v44, %s3070_s7  ;;  %v1580_v54 = vsel %vm1515_vm10, %v5384_v14, %v5398_v51 }
 0x419   : > { %2018 = vrot.lane.b32.xlu0 %v1567_v24, %s3070_s7 }
 0x41a   : > { %v5406_v57 = vpop.permute.xlu1 %1513 }
 0x41b   : > { %v5408_v29 = vpop.permute.xlu0 %1511 }
 0x41c   : > { %2024 = vrot.lane.b32.xlu1 %v1569_v1, %s3070_s7  ;;  %v1583_v2 = vsel %vm1515_vm10, %v5408_v29, %v5406_v57 }
 0x41d   : > { %2022 = vrot.lane.b32.xlu0 %v1568_v34, %s3070_s7 }
 0x41e   : > { %v1913_v61 = vpop.permute.xlu1 %1912 }
 0x41f   : > { %v1901_v42 = vpop.permute.xlu0 %1900 }
 0x420   : > { %v2161_v6 = vsel %vm2060_vm1, %v1901_v42, %v1903_v17  ;;  %2028 = vrot.lane.b32.xlu1 %v1571_v3, %s3070_s7  ;;  %v1577_v17 = vsel %vm1515_vm10, %v5348_v33, %v5346_v32  ;;  %v1578_v33 = vsel %vm1515_vm10, %v5346_v32, %v5358_v27  ;;  %v3071_v32 = vmov 0  }
 0x421   : > { %2026 = vrot.lane.b32.xlu0 %v1570_v50, %s3070_s7  ;;  %2461 = vmatpush1.bf16.msra.mxu0 %v2161_v6  ;;  %v1581_v27 = vsel %vm1515_vm10, %v5398_v51, %v5396_v22 }
 0x422   : > { %v1917_v15 = vpop.permute.xlu1 %1916  ;;  %2964 = vset.pattern.permute.xlu0 %v3071_v32 }
 0x423   : > { %v1915_v39 = vpop.permute.xlu0 %1914 }
 0x424   : > { %2032 = vrot.lane.b32.xlu1 %v1572_v37, %s3070_s7  ;;  %v2166_v46 = vsel %vm2060_vm1, %v1913_v61, %v1915_v39  ;;  %v2167_v40 = vsel %vm2060_vm1, %v1915_v39, %v1917_v15  ;;  %v2842_v37 = vcombine.low %v5264_v26, %v5264_v26 }
 0x425   : > { %2020 = vrot.lane.b32.xlu0 %v6080_v21, %s3070_s7  ;;  %2462 = vmatprep.subr.bf16.mxu0 %v2166_v46  ;;  %v5514_v46 = vld [vmem:[%s5597_s0 + $0x10] sm:$0xff] }
 0x426   : > { %v1911_v63 = vpop.permute.xlu1 %1910 }
 0x427   : > { %v1919_v49 = vpop.permute.xlu0 %1918  ;;  %v2165_v9 = vsel %vm2060_vm1, %v1911_v63, %v1913_v61 }
 0x428   : > { %2036 = vrot.lane.b32.xlu1 %v1574_v11, %s3070_s7  ;;  %2463 = vmatpush1.bf16.msra.mxu0 %v2165_v9  ;;  %v2168_v38 = vsel %vm2060_vm1, %v1917_v15, %v1919_v49  ;;  %v2845_v11 = vcombine.high %v5514_v46, %v5514_v46 }
 0x429   : > { %2034 = vrot.lane.b32.xlu0 %v1573_v18, %s3070_s7  ;;  %2585 = vmatprep.subr.bf16.mxu1 %v2168_v38 }
 0x42a   : > { %2586 = vmatpush1.bf16.msra.mxu1 %v2167_v40  ;;  %v1925_v30 = vpop.permute.xlu1 %1924 }
 0x42b   : > { %v1923_v59 = vpop.permute.xlu0 %1922 }
 0x42c   : > { %2030 = vrot.lane.b32.xlu1 %v5284_v58, %s3070_s7  ;;  %v2170_v8 = vsel %vm2060_vm1, %v1923_v59, %v1925_v30 }
 0x42d   : > { %2038 = vrot.lane.b32.xlu0 %v1575_v31, %s3070_s7  ;;  %2464 = vmatprep.subr.bf16.mxu0 %v2170_v8 }
 0x42e   : > { %v1929_v62 = vpop.permute.xlu1 %1928 }
 0x42f   : > { %v1927_v0 = vpop.permute.xlu0 %1926 }
 0x430   : > { %v2171_v23 = vsel %vm2060_vm1, %v1925_v30, %v1927_v0  ;;  %2044 = vrot.lane.b32.xlu1 %v1577_v17, %s3070_s7  ;;  %v2172_v58 = vsel %vm2060_vm1, %v1927_v0, %v1929_v62 }
 0x431   : > { %2042 = vrot.lane.b32.xlu0 %v1576_v56, %s3070_s7  ;;  %2587 = vmatprep.subr.bf16.mxu1 %v2172_v58 }
 0x432   : > { %2588 = vmatpush1.bf16.msra.mxu1 %v2171_v23  ;;  %v1933_v4 = vpop.permute.xlu1 %1932 }
 0x433   : > { %v1921_v12 = vpop.permute.xlu0 %1920 }
 0x434   : > { %v2169_v20 = vsel %vm2060_vm1, %v1921_v12, %v1923_v59  ;;  %2048 = vrot.lane.b32.xlu1 %v1579_v19, %s3070_s7 }
 0x435   : > { %2046 = vrot.lane.b32.xlu0 %v1578_v33, %s3070_s7  ;;  %2465 = vmatpush1.bf16.msra.mxu0 %v2169_v20 }
 0x436   : > { %v1937_v13 = vpop.permute.xlu1 %1936 }
 0x437   : > { %v1935_v5 = vpop.permute.xlu0 %1934 }
 0x438   : > { %2050 = vrot.lane.b32.xlu1 %v5384_v14, %s3070_s7  ;;  %v2174_v55 = vsel %vm2060_vm1, %v1933_v4, %v1935_v5  ;;  %v2175_v7 = vsel %vm2060_vm1, %v1935_v5, %v1937_v13  ;;  %v1582_v14 = vsel %vm1515_vm10, %v5396_v22, %v5408_v29 }
 0x439   : > { %2040 = vrot.lane.b32.xlu0 %v5334_v36, %s3070_s7  ;;  %2466 = vmatprep.subr.bf16.mxu0 %v2174_v55 }
 0x43a   : > { %v1931_v52 = vpop.permute.xlu1 %1930 }
 0x43b   : > { %v1939_v45 = vpop.permute.xlu0 %1938  ;;  %v2173_v44 = vsel %vm2060_vm1, %v1931_v52, %v1933_v4 }
 0x43c   : > { %2054 = vrot.lane.b32.xlu1 %v1581_v27, %s3070_s7  ;;  %2467 = vmatpush1.bf16.msra.mxu0 %v2173_v44  ;;  %v2176_v36 = vsel %vm2060_vm1, %v1937_v13, %v1939_v45 }
 0x43d   : > { %2052 = vrot.lane.b32.xlu0 %v1580_v54, %s3070_s7  ;;  %2589 = vmatprep.subr.bf16.mxu1 %v2176_v36 }
 0x43e   : > { %2590 = vmatpush1.bf16.msra.mxu1 %v2175_v7  ;;  %v1945_v28 = vpop.permute.xlu1 %1944 }
 0x43f   : > { %v1943_v43 = vpop.permute.xlu0 %1942 }
 0x440   : > { %2058 = vrot.lane.b32.xlu1 %v1583_v2, %s3070_s7  ;;  %v2178_v10 = vsel %vm2060_vm1, %v1943_v43, %v1945_v28 }
 0x441   : > { %2056 = vrot.lane.b32.xlu0 %v1582_v14, %s3070_s7  ;;  %2468 = vmatprep.subr.bf16.mxu0 %v2178_v10 }
 0x442   : > { %v1949_v16 = vpop.permute.xlu1 %1948 }
 0x443   : > { %v1947_v41 = vpop.permute.xlu0 %1946 }
 0x444   : > { %v2179_v51 = vsel %vm2060_vm1, %v1945_v28, %v1947_v41  ;;  %v2180_v47 = vsel %vm2060_vm1, %v1947_v41, %v1949_v16 }
 0x445   : > { %2591 = vmatprep.subr.bf16.mxu1 %v2180_v47  ;;  %1590 = vperm.xlu0 %2964, %v1587_v25  }
 0x446   : > { %2592 = vmatpush1.bf16.msra.mxu1 %v2179_v51  ;;  %v1953_v22 = vpop.permute.xlu1 %1952 }
 0x447   : > { %v1941_v24 = vpop.permute.xlu0 %1940 }
 0x448   : > { %v2177_v57 = vsel %vm2060_vm1, %v1941_v24, %v1943_v43 }
 0x449   : > { %2469 = vmatpush1.bf16.msra.mxu0 %v2177_v57 }
 0x44a   : > { %v1957_v29 = vpop.permute.xlu1 %1956 }
 0x44b   : > { %v1955_v60 = vpop.permute.xlu0 %1954 }
 0x44c   : > { %v2182_v53 = vsel %vm2060_vm1, %v1953_v22, %v1955_v60  ;;  %v2183_v35 = vsel %vm2060_vm1, %v1955_v60, %v1957_v29 }
 0x44d   : > { %2470 = vmatprep.subr.bf16.mxu0 %v2182_v53 }
 0x44e   : > { %v1951_v1 = vpop.permute.xlu1 %1950 }
 0x44f   : > { %v1959_v21 = vpop.permute.xlu0 %1958  ;;  %v2181_v34 = vsel %vm2060_vm1, %v1951_v1, %v1953_v22 }
 0x450   : > { %2471 = vmatpush1.bf16.msra.mxu0 %v2181_v34  ;;  %v2184_v61 = vsel %vm2060_vm1, %v1957_v29, %v1959_v21 }
 0x451   : > { %2593 = vmatprep.subr.bf16.mxu1 %v2184_v61 }
 0x452   : > { %2594 = vmatpush1.bf16.msra.mxu1 %v2183_v35  ;;  %v1965_v48 = vpop.permute.xlu1 %1964 }
 0x453   : > { %v1963_v3 = vpop.permute.xlu0 %1962 }
 0x454   : > { %v2186_v42 = vsel %vm2060_vm1, %v1963_v3, %v1965_v48 }
 0x455   : > { %2472 = vmatprep.subr.bf16.mxu0 %v2186_v42 }
 0x456   : > { %v1969_v6 = vpop.permute.xlu1 %1968 }
 0x457   : > { %v1967_v50 = vpop.permute.xlu0 %1966 }
 0x458   : > { %v2187_v15 = vsel %vm2060_vm1, %v1965_v48, %v1967_v50  ;;  %v2188_v39 = vsel %vm2060_vm1, %v1967_v50, %v1969_v6 }
 0x459   : > { %2595 = vmatprep.subr.bf16.mxu1 %v2188_v39 }
 0x45a   : > { %2596 = vmatpush1.bf16.msra.mxu1 %v2187_v15  ;;  %v1973_v63 = vpop.permute.xlu1 %1972 }
 0x45b   : > { %v1961_v49 = vpop.permute.xlu0 %1960 }
 0x45c   : > { %v2185_v9 = vsel %vm2060_vm1, %v1961_v49, %v1963_v3 }
 0x45d   : > { %2473 = vmatpush1.bf16.msra.mxu0 %v2185_v9  ;;  %2598 = vmatmul.mubr.bf16.vlgmr.msra.gmra.mrb[0].mxu1 %v2842_v37 }
 0x45e   : > { %v1977_v18 = vpop.permute.xlu1 %1976  ;;  %2849 = vmatprep.mubr.msk.bf16.mxu1 %vm907_vm8, %v2845_v11 }
 0x45f   : > { %v1975_v38 = vpop.permute.xlu0 %1974 }
 0x460   : > { %v2190_v26 = vsel %vm2060_vm1, %v1973_v63, %v1975_v38  ;;  %2475 = vmatmul.mubr.bf16.vlgmr.msra.gmra.mrb[0].mxu0 %v2842_v37  ;;  %v2191_v8 = vsel %vm2060_vm1, %v1975_v38, %v1977_v18 }
 0x461   : > { %2483 = vmatprep.subr.bf16.mxu0 %v2190_v26  ;;  %2847 = vmatprep.mubr.msk.bf16.mxu0 %vm907_vm8, %v2845_v11 }
 0x462   : > { %v1971_v40 = vpop.permute.xlu1 %1970 }
 0x463   : > { %v1979_v30 = vpop.permute.xlu0 %1978  ;;  %v2189_v59 = vsel %vm2060_vm1, %v1971_v40, %v1973_v63 }
 0x464   : > { %2484 = vmatpush1.bf16.msra.mxu0 %v2189_v59  ;;  %v2192_v31 = vsel %vm2060_vm1, %v1977_v18, %v1979_v30 }
 0x465   : > { %2606 = vmatprep.subr.bf16.mxu1 %v2192_v31 }
 0x466   : > { %2607 = vmatpush1.bf16.msra.mxu1 %v2191_v8  ;;  %v1985_v62 = vpop.permute.xlu1 %1984 }
 0x467   : > { %v1983_v17 = vpop.permute.xlu0 %1982 }
 0x468   : > { %v2194_v0 = vsel %vm2060_vm1, %v1983_v17, %v1985_v62 }
 0x469   : > { %2485 = vmatprep.subr.bf16.mxu0 %v2194_v0 }
 0x46a   : > { %v1989_v56 = vpop.permute.xlu1 %1988 }
 0x46b   : > { %v1987_v23 = vpop.permute.xlu0 %1986 }
 0x46c   : > { %v2195_v58 = vsel %vm2060_vm1, %v1985_v62, %v1987_v23  ;;  %v2196_v4 = vsel %vm2060_vm1, %v1987_v23, %v1989_v56 }
 0x46d   : > { %2608 = vmatprep.subr.bf16.mxu1 %v2196_v4  ;;  %v2844_v4 = vcombine.low %v5514_v46, %v5514_v46 }
 0x46e   : > { %2609 = vmatpush1.bf16.msra.mxu1 %v2195_v58  ;;  %v1993_v19 = vpop.permute.xlu1 %1992 }
 0x46f   : > { %v1981_v12 = vpop.permute.xlu0 %1980 }
 0x470   : > { %v2193_v33 = vsel %vm2060_vm1, %v1981_v12, %v1983_v17 }
 0x471   : > { %2486 = vmatpush1.bf16.msra.mxu0 %v2193_v33 }
 0x472   : > { %v1997_v20 = vpop.permute.xlu1 %1996 }
 0x473   : > { %v1995_v13 = vpop.permute.xlu0 %1994 }
 0x474   : > { %v2198_v5 = vsel %vm2060_vm1, %v1993_v19, %v1995_v13  ;;  %v2199_v45 = vsel %vm2060_vm1, %v1995_v13, %v1997_v20 }
 0x475   : > { %2487 = vmatprep.subr.bf16.mxu0 %v2198_v5  ;;  %v2653_v5 = vlaneseq }
 0x476   : > { %v1991_v55 = vpop.permute.xlu1 %1990 }
 0x477   : > { %v1999_v52 = vpop.permute.xlu0 %1998  ;;  %v2197_v32 = vsel %vm2060_vm1, %v1991_v55, %v1993_v19  ;;  %v2654_v46 = vshrl.u32 %v2653_v5, 7 }
 0x478   : > { %2488 = vmatpush1.bf16.msra.mxu0 %v2197_v32  ;;  %v2200_v27 = vsel %vm2060_vm1, %v1997_v20, %v1999_v52  ;;  %v2651_v32 = vld [vmem:[%s400_s21] sm:$0xf] }
 0x479   : > { %2610 = vmatprep.subr.bf16.mxu1 %v2200_v27  ;;  %v2655_v55 = vsub.s32 0, %v2654_v46  ;;  %v2659_v27 = vsub.s32 1, %v2654_v46 }
 0x47a   : > { %2611 = vmatpush1.bf16.msra.mxu1 %v2199_v45  ;;  %v2005_v44 = vpop.permute.xlu1 %2004 }
 0x47b   : > { %v2003_v54 = vpop.permute.xlu0 %2002 }
 0x47c   : > { %v2202_v36 = vsel %vm2060_vm1, %v2003_v54, %v2005_v44 }
 0x47d   : > { %2489 = vmatprep.subr.bf16.mxu0 %v2202_v36 }
 0x47e   : > { %v2009_v7 = vpop.permute.xlu1 %2008 }
 0x47f   : > { %v2007_v28 = vpop.permute.xlu0 %2006 }
 0x480   : > { %v2203_v2 = vsel %vm2060_vm1, %v2005_v44, %v2007_v28  ;;  %v2204_v43 = vsel %vm2060_vm1, %v2007_v28, %v2009_v7  ;;  %v2663_v7 = vsub.s32 2, %v2654_v46 }
 0x481   : > { %2612 = vmatprep.subr.bf16.mxu1 %v2204_v43 }
 0x482   : > { %2613 = vmatpush1.bf16.msra.mxu1 %v2203_v2  ;;  %v2013_v14 = vpop.permute.xlu1 %2012  ;;  %v2660_v2 = vrot.slane %v2651_v32, %v2659_v27 }
 0x483   : > { %v2001_v10 = vpop.permute.xlu0 %2000 }
 0x484   : > { %v2201_v16 = vsel %vm2060_vm1, %v2001_v10, %v2003_v54  ;;  %v2656_v54 = vrot.slane %v2651_v32, %v2655_v55 }
 0x485   : > { %2490 = vmatpush1.bf16.msra.mxu0 %v2201_v16 }
 0x486   : > { %v2017_v25 = vpop.permute.xlu1 %2016 }
 0x487   : > { %v2015_v41 = vpop.permute.xlu0 %2014 }
 0x488   : > { %v2206_v51 = vsel %vm2060_vm1, %v2013_v14, %v2015_v41  ;;  %v2207_v29 = vsel %vm2060_vm1, %v2015_v41, %v2017_v25 }
 0x489   : > { %2491 = vmatprep.subr.bf16.mxu0 %v2206_v51 }
 0x48a   : > { %v2011_v47 = vpop.permute.xlu1 %2010 }
 0x48b   : > { %v2019_v22 = vpop.permute.xlu0 %2018  ;;  %v2205_v24 = vsel %vm2060_vm1, %v2011_v47, %v2013_v14  ;;  %v2667_v14 = vsub.s32 3, %v2654_v46 }
 0x48c   : > { %2492 = vmatpush1.bf16.msra.mxu0 %v2205_v24  ;;  %v2208_v57 = vsel %vm2060_vm1, %v2017_v25, %v2019_v22  ;;  %v2664_v22 = vrot.slane %v2651_v32, %v2663_v7 }
 0x48d   : > { %2614 = vmatprep.subr.bf16.mxu1 %v2208_v57 }
 0x48e   : > { %2615 = vmatpush1.bf16.msra.mxu1 %v2207_v29  ;;  %v2025_v60 = vpop.permute.xlu1 %2024 }
 0x48f   : > { %v2023_v53 = vpop.permute.xlu0 %2022 }
 0x490   : > { %v2210_v1 = vsel %vm2060_vm1, %v2023_v53, %v2025_v60 }
 0x491   : > { %2493 = vmatprep.subr.bf16.mxu0 %v2210_v1 }
 0x492   : > { %v2029_v21 = vpop.permute.xlu1 %2028 }
 0x493   : > { %v2027_v34 = vpop.permute.xlu0 %2026 }
 0x494   : > { %v2211_v61 = vsel %vm2060_vm1, %v2025_v60, %v2027_v34  ;;  %v2212_v35 = vsel %vm2060_vm1, %v2027_v34, %v2029_v21  ;;  %v2668_v60 = vrot.slane %v2651_v32, %v2667_v14 }
 0x495   : > { %2616 = vmatprep.subr.bf16.mxu1 %v2212_v35 }
 0x496   : > { %2617 = vmatpush1.bf16.msra.mxu1 %v2211_v61  ;;  %v2033_v48 = vpop.permute.xlu1 %2032 }
 0x497   : > { %v2021_v3 = vpop.permute.xlu0 %2020 }
 0x498   : > { %v2209_v42 = vsel %vm2060_vm1, %v2021_v3, %v2023_v53 }
 0x499   : > { %2494 = vmatpush1.bf16.msra.mxu0 %v2209_v42 }
 0x49a   : > { %v2037_v6 = vpop.permute.xlu1 %2036 }
 0x49b   : > { %v2035_v50 = vpop.permute.xlu0 %2034 }
 0x49c   : > { %v2214_v15 = vsel %vm2060_vm1, %v2033_v48, %v2035_v50  ;;  %v2215_v9 = vsel %vm2060_vm1, %v2035_v50, %v2037_v6 }
 0x49d   : > { %2495 = vmatprep.subr.bf16.mxu0 %v2214_v15 }
 0x49e   : > { %v2031_v39 = vpop.permute.xlu1 %2030 }
 0x49f   : > { %v2039_v37 = vpop.permute.xlu0 %2038  ;;  %v2213_v63 = vsel %vm2060_vm1, %v2031_v39, %v2033_v48 }
 0x4a0   : > { %2496 = vmatpush1.bf16.msra.mxu0 %v2213_v63  ;;  %v2216_v49 = vsel %vm2060_vm1, %v2037_v6, %v2039_v37 }
 0x4a1   : > { %2618 = vmatprep.subr.bf16.mxu1 %v2216_v49 }
 0x4a2   : > { %2619 = vmatpush1.bf16.msra.mxu1 %v2215_v9  ;;  %v2045_v11 = vpop.permute.xlu1 %2044 }
 0x4a3   : > { %v2043_v18 = vpop.permute.xlu0 %2042 }
 0x4a4   : > { %v2218_v38 = vsel %vm2060_vm1, %v2043_v18, %v2045_v11 }
 0x4a5   : > { %2497 = vmatprep.subr.bf16.mxu0 %v2218_v38 }
 0x4a6   : > { %v2049_v26 = vpop.permute.xlu1 %2048 }
 0x4a7   : > { %v2047_v40 = vpop.permute.xlu0 %2046 }
 0x4a8   : > { %v2219_v30 = vsel %vm2060_vm1, %v2045_v11, %v2047_v40  ;;  %v2220_v59 = vsel %vm2060_vm1, %v2047_v40, %v2049_v26 }
 0x4a9   : > { %2620 = vmatprep.subr.bf16.mxu1 %v2220_v59 }
 0x4aa   : > { %2621 = vmatpush1.bf16.msra.mxu1 %v2219_v30  ;;  %v2051_v31 = vpop.permute.xlu1 %2050 }
 0x4ab   : > { %v2041_v8 = vpop.permute.xlu0 %2040 }
 0x4ac   : > { %v2217_v62 = vsel %vm2060_vm1, %v2041_v8, %v2043_v18 }
 0x4ad   : > { %2498 = vmatpush1.bf16.msra.mxu0 %v2217_v62 }
 0x4ae   : > { %v2055_v17 = vpop.permute.xlu1 %2054 }
 0x4af   : > { %v2053_v0 = vpop.permute.xlu0 %2052 }
 0x4b0   : > { %v2221_v56 = vsel %vm2060_vm1, %v2051_v31, %v2053_v0  ;;  %v2222_v23 = vsel %vm2060_vm1, %v2053_v0, %v2055_v17 }
 0x4b1   : > { %v2390_v58 = vsel %vm468_vm0, %v2221_v56, 0  ;;  %2846 = vmatprep.subr.msk.bf16.mxu0 %vm468_vm0, %v2222_v23 }
 0x4b2   : > { %2500 = vmatpush1.bf16.msra.mxu0 %v2390_v58  ;;  %v2059_v19 = vpop.permute.xlu1 %2058 }
 0x4b3   : > { %v2057_v12 = vpop.permute.xlu0 %2056 }
 0x4b4   : > { %v2223_v33 = vsel %vm2060_vm1, %v2055_v17, %v2057_v12  ;;  %v2224_v20 = vsel %vm2060_vm1, %v2057_v12, %v2059_v19 }
 0x4b5   : > { %v2396_v13 = vsel %vm468_vm0, %v2223_v33, 0  ;;  %2516 = vmatmul.mubr.bf16.vlgmr.msra.gmra.mrb[0].mxu0 %v2844_v4  ;;  %2848 = vmatprep.subr.msk.bf16.mxu1 %vm468_vm0, %v2224_v20 }
 0x4b6   : > { %2623 = vmatpush1.bf16.msra.mxu1 %v2396_v13 }
 0x4b9   : > { %2639 = vmatmul.mubr.bf16.vlgmr.msra.gmra.mrb[0].mxu1 %v2844_v4 }
 0x4c4   : > { %v1591_v52 = vpop.permute.xlu0 %1590 }
 0x588   : > { %v2517_v45 = vpop.f32.mrb[0].mxu0 }
 0x589   : > { %v2857_v44 = vadd.f32 %v2517_v45, %v1591_v52  ;;  %v2519_v36 = vpop.f32.mrb[1].mxu0 }
 0x58a   : > { %v2858_v28 = vadd.f32 %v2519_v36, %v1591_v52  ;;  %v2521_v43 = vpop.f32.mrb[2].mxu0 }
 0x58b   : > { %v2647_v10 = vmax.f32 %v2857_v44, 0.0  ;;  %v2522_v16 = vpop.f32.mrb[3].mxu0 }
 0x58c   : > { %v2648_v25 = vmax.f32 %v2858_v28, 0.0  ;;  %v2640_v41 = vpop.f32.mrb[0].mxu1 }
 0x58d   : > { %v2673_v51 = vmul.f32 %v2656_v54, %v2647_v10  ;;  %v2859_v47 = vadd.f32 %v2640_v41, %v1591_v52  ;;  %v2642_v24 = vpop.f32.mrb[1].mxu1 }
 0x58e   : > { %v2674_v57 = vmul.f32 %v2660_v2, %v2648_v25  ;;  %v2860_v29 = vadd.f32 %v2642_v24, %v1591_v52  ;;  %v2644_v53 = vpop.f32.mrb[2].mxu1 }
 0x58f   : > { %v2649_v1 = vmax.f32 %v2859_v47, 0.0  ;;  %v2645_v21 = vpop.f32.mrb[3].mxu1 }
 0x590   : > { %v2855_v34 = vpack.c.bf16 %v2674_v57, %v2673_v51  ;;  %v2650_v61 = vmax.f32 %v2860_v29, 0.0 }
 0x591   : > { %v2675_v35 = vmul.f32 %v2664_v22, %v2649_v1 }
 0x592   : > { %2693 = vst [vmem:[%s411_s12] sm:$0xff] %v2855_v34  ;;  %v2676_v48 = vmul.f32 %v2668_v60, %v2650_v61 }
 0x594   : > { %v2856_v3 = vpack.c.bf16 %v2676_v48, %v2675_v35 }
 0x596   : > { %2694 = vst [vmem:[%s411_s12 + $0x8] sm:$0xff] %v2856_v3 }
 0x597 PF: > { %p13_p1 = scmp.ge.s32.totalorder %s3144_s29, 6   ;;  %s6083_s21 = smov %s3025_s22 }
 0x598   : > { %s6084_s22 = smov %s3181_s19  ;;  %s6085_s23 = smov %s3033_s24 }
 0x599   : > { %s6086_s24 = smov %s3168_s14  ;;  %s6087_s25 = smov %s3041_s26 }
 0x59a   : > { %s6088_s26 = smov %s3154_s9  ;;  %s6089_s27 = smov %s3144_s29 }
 0x59b   :  { %15 = sbr.rel (!%p13_p1) target bundleno = 4 (0x4), region = 167 }

// kernel: autoencoder_forward.9
= control target key start
LH: loop header
LB: loop body
LE: loop exit
PB: predicated region body
PF: predicated region fallthrough
CT: control target
= control target key end

     0   :  { %s2220_s21 = smov 0   ;;  %s2222_s22 = smov 0   ;;  %s3648_s0 = inlined_call_operand.vmem [shape: bf16[4,324], index: 0, kind: input, shape index: {}]   ;;  %s3649_s1 = inlined_call_operand.vmem [shape: f32[4,1], index: 1, kind: input, shape index: {}]   ;;  %s3650_s2 = inlined_call_operand.vmem [shape: f32[1,2048], index: 2, kind: input, shape index: {}]   ;;  %s3651_s3 = inlined_call_operand.vmem [shape: bf16[12,3072], index: 3, kind: input, shape index: {}, may-alias: {3,4,5}]   ;;  %s3652_s4 = inlined_call_operand.vmem [shape: bf16[12,3072], index: 4, kind: input, shape index: {}, may-alias: {3,4,5}]   ;;  %s3653_s5 = inlined_call_operand.vmem [shape: bf16[12,3072], index: 5, kind: input, shape index: {}, may-alias: {3,4,5}]   ;;  %s3654_s6 = inlined_call_operand.vmem [shape: f32[4,2048], index: 6, kind: output, shape index: {}]  }
   0x1   :  { %s2224_s23 = smov 0   ;;  %s2226_s24 = smov 0  }
   0x2   :  { %s2228_s25 = smov 0   ;;  %s2230_s26 = smov 0  }
   0x3   :  { %s2232_s27 = smov 0  }
   0x4 LB: > { %s1960_s28 = sadd.s32 4294967295, %s2157_s27   ;;  %s2257_s29 = sadd.s32 1, %s2157_s27   ;;  %s2157_s27 = sphi %s2232_s27, %s3723_s27   ;;  %s2153_s26 = sphi %s2230_s26, %s3722_s26   ;;  %s2149_s25 = sphi %s2228_s25, %s3721_s25   ;;  %s2145_s24 = sphi %s2226_s24, %s3720_s24   ;;  %s2141_s23 = sphi %s2224_s23, %s3719_s23   ;;  %s2137_s22 = sphi %s2222_s22, %s3718_s22   ;;  %s2133_s21 = sphi %s2220_s21, %s3717_s21  }
   0x5   : > { %s88_s30 = ssub.s32 %s2157_s27, %s2257_s29  ;;  %s91_s7 = sadd.s32 1, %s2153_s26 }
   0x6   : > { %p89_p0 = scmp.eq.s32.totalorder %s88_s30, 0  ;;  %p98_p1 = scmp.ne.s32.totalorder %s2153_s26, %s2149_s25 }
   0x7   : > { %p99_p2 = scmp.eq.s32.totalorder %s2157_s27, 0  ;;  %s115_s8 = sadd.s32 1, %s2257_s29 }
   0x8   : > { %s2267_s9 = scalar_select %p89_p0, %s2153_s26, %s91_s7  }
   0x9   : > { %p2271_p3 = por %p99_p2, %p98_p1  ;;  %s116_s11 = ssub.s32 %s2257_s29, %s115_s8 }
   0xa   : > { %p117_p4 = scmp.eq.s32.totalorder %s116_s11, 0  ;;  %s119_s12 = sadd.s32 1, %s2145_s24 }
   0xb   : > { %p126_p5 = scmp.ne.s32.totalorder %s2145_s24, %s2141_s23  ;;  %s142_s13 = sadd.s32 2, %s2157_s27 }
   0xc   : > { %s2281_s14 = scalar_select %p117_p4, %s2145_s24, %s119_s12  }
   0xd   : > { %p2285_p6 = por %p126_p5, %p99_p2  ;;  %s143_s16 = sadd.s32 2, %s2257_s29 }
   0xe   : > { %s144_s17 = ssub.s32 %s142_s13, %s143_s16  ;;  %s147_s18 = sadd.s32 1, %s2137_s22 }
   0xf   : > { %p145_p7 = scmp.eq.s32.totalorder %s144_s17, 0  ;;  %p154_p8 = scmp.ne.s32.totalorder %s2137_s22, %s2133_s21 }
  0x10   : > { %p1963_p10 = scmp.ge.s32.totalorder %s2157_s27, 4 }
  0x11   : > { %s2294_s19 = scalar_select %p145_p7, %s2137_s22, %s147_s18  }
  0x12   : > { %p2298_p9 = por %p154_p8, %p99_p2  ;;  %212 = sbr.rel (%p1963_p10) target bundleno = 46 (0x2e), region = 24 }
  0x19   : > { %223 = sbr.rel (!%p2271_p3) target bundleno = 32 (0x20), region = 32  ;;  %s225_s30 = sand.u32 (%p2271_p3), 1, %s2153_s26  }
  0x1a   : > { %s1998_s7 = sshll.u32 (%p2271_p3), %s2157_s27, 4  ;;  %s1964_s8 = sshll.u32 (%p2271_p3), %s225_s30, 5 }
  0x1b   : > { %s230_s13 = scalar_lea.vmem (%p2271_p3), %s3651_s3, %s1998_s7  ;;  %s227_s16 = scalar_lea.vmem (%p2271_p3), [#allocation2], %s1964_s8 }
  0x1c   : > { %v243_v0 = vld [vmem:[%s230_s13] sm:$0xff] (%p2271_p3)  ;;  %v245_v1 = vld [vmem:[%s230_s13 + $0x8] sm:$0xff] (%p2271_p3) }
  0x1d   : > { %v247_v2 = vld [vmem:[%s230_s13 + $0x60] sm:$0xff] (%p2271_p3)  ;;  %244 = vst [vmem:[%s227_s16] sm:$0xff] (%p2271_p3), %v243_v0  ;;  %246 = vst [vmem:[%s227_s16 + $0x8] sm:$0xff] (%p2271_p3), %v245_v1  ;;  %v249_v3 = vld [vmem:[%s230_s13 + $0x68] sm:$0xff] (%p2271_p3) }
  0x1e   : > { %248 = vst [vmem:[%s227_s16 + $0x10] sm:$0xff] (%p2271_p3), %v247_v2  ;;  %250 = vst [vmem:[%s227_s16 + $0x18] sm:$0xff] (%p2271_p3), %v249_v3 }
  0x20 PF: > { %256 = sbr.rel (!%p2285_p6) target bundleno = 39 (0x27), region = 55  ;;  %s258_s10 = sand.u32 (%p2285_p6), 1, %s2145_s24  }
  0x21   : > { %s1968_s17 = sshll.u32 (%p2285_p6), %s2157_s27, 4  ;;  %s1967_s18 = sshll.u32 (%p2285_p6), %s258_s10, 5 }
  0x22   : > { %s1881_s11 = scalar_lea.vmem (%p2285_p6), %s3652_s4, %s1968_s17  ;;  %s260_s8 = scalar_lea.vmem (%p2285_p6), [#allocation3], %s1967_s18 }
  0x23   : > { %v1969_v4 = vld [vmem:[%s1881_s11 + $0x10] sm:$0xff] (%p2285_p6)  ;;  %v1970_v5 = vld [vmem:[%s1881_s11 + $0x18] sm:$0xff] (%p2285_p6) }
  0x24   : > { %v1971_v6 = vld [vmem:[%s1881_s11 + $0x70] sm:$0xff] (%p2285_p6)  ;;  %278 = vst [vmem:[%s260_s8] sm:$0xff] (%p2285_p6), %v1969_v4  ;;  %280 = vst [vmem:[%s260_s8 + $0x8] sm:$0xff] (%p2285_p6), %v1970_v5  ;;  %v1972_v7 = vld [vmem:[%s1881_s11 + $0x78] sm:$0xff] (%p2285_p6) }
  0x25   : > { %282 = vst [vmem:[%s260_s8 + $0x10] sm:$0xff] (%p2285_p6), %v1971_v6  ;;  %284 = vst [vmem:[%s260_s8 + $0x18] sm:$0xff] (%p2285_p6), %v1972_v7 }
  0x27 PF: > { %290 = sbr.rel (!%p2298_p9) target bundleno = 46 (0x2e), region = 78  ;;  %s292_s15 = sand.u32 (%p2298_p9), 1, %s2137_s22  }
  0x28   : > { %s1974_s12 = sshll.u32 (%p2298_p9), %s2157_s27, 4  ;;  %s1973_s13 = sshll.u32 (%p2298_p9), %s292_s15, 5 }
  0x29   : > { %s1886_s17 = scalar_lea.vmem (%p2298_p9), %s3653_s5, %s1974_s12  ;;  %s294_s18 = scalar_lea.vmem (%p2298_p9), [#allocation4], %s1973_s13 }
  0x2a   : > { %v1975_v8 = vld [vmem:[%s1886_s17 + $0x20] sm:$0xff] (%p2298_p9)  ;;  %v1976_v9 = vld [vmem:[%s1886_s17 + $0x28] sm:$0xff] (%p2298_p9) }
  0x2b   : > { %v1977_v10 = vld [vmem:[%s1886_s17 + $0x80] sm:$0xff] (%p2298_p9)  ;;  %312 = vst [vmem:[%s294_s18] sm:$0xff] (%p2298_p9), %v1975_v8  ;;  %314 = vst [vmem:[%s294_s18 + $0x8] sm:$0xff] (%p2298_p9), %v1976_v9  ;;  %v1978_v11 = vld [vmem:[%s1886_s17 + $0x88] sm:$0xff] (%p2298_p9) }
  0x2c   : > { %316 = vst [vmem:[%s294_s18 + $0x10] sm:$0xff] (%p2298_p9), %v1977_v10  ;;  %318 = vst [vmem:[%s294_s18 + $0x18] sm:$0xff] (%p2298_p9), %v1978_v11 }
  0x2e PF: > { %p1979_p11 = scmp.ge.s32.totalorder %s2157_s27, 1  ;;  %p323_p12 = scmp.lt.s32.totalorder %s2157_s27, 5 }
  0x30   : > { %p324_p13 = pnand %p1979_p11, %p323_p12 }
  0x32   : > { %327 = sbr.rel (%p324_p13) target bundleno = 926 (0x39e), region = 101 }
  0x39   : > { %s337_s20 = sand.u32 1, %s2141_s23   ;;  %s330_s7 = sand.u32 1, %s2149_s25   ;;  %vm451_vm0 = vcmask 1039360   ;;  %vm675_vm1 = vcmask 1045504   ;;  %vm832_vm2 = vcmask 400384   ;;  %vm691_vm3 = vcmask 1043456  }
  0x3a   : > { %s1981_s30 = sshll.u32 %s337_s20, 5  ;;  %s1980_s11 = sshll.u32 %s330_s7, 5  ;;  %vm847_vm4 = vcmask 392192   ;;  %vm702_vm5 = vcmask 1041408   ;;  %vm877_vm6 = vcmask 318464   ;;  %vm862_vm7 = vcmask 384000  }
  0x3b   : > { %s339_s8 = scalar_lea.vmem [#allocation3], %s1981_s30  ;;  %s332_s15 = scalar_lea.vmem [#allocation2], %s1980_s11  ;;  %vm471_vm8 = vcmask 1031168   ;;  %vm892_vm9 = vcmask 310272   ;;  %vm491_vm10 = vcmask 965632   ;;  %vm907_vm11 = vcmask 302080  }
  0x3c   : > { %v2328_v12 = vld [vmem:[%s339_s8 + $0x4] ss:$16 sps:$4 sm:$0x3f]   ;;  %v2333_v14 = vld [vmem:[%s332_s15 + $0xc] ss:$16 sps:$4 sm:$0x3f]  }
  0x3d   : > { %v2331_v13 = vrot.slane %v2328_v12, 2  ;;  %v2335_v15 = vld [vmem:[%s339_s8 + $0x8] ss:$16 sps:$4 sm:$0x3f]   ;;  %s2159_s12 = smov 127   ;;  %v2342_v17 = vrot.slane %v2333_v14, 2 }
  0x3e   : > { %v2339_v16 = vld [vmem:[%s339_s8] ss:$16 sps:$4 sm:$0x3f]   ;;  %v2345_v18 = vrot.slane %v2335_v15, 2  ;;  %v2357_v21 = vrot.slane %v2333_v14, 4  ;;  %s344_s23 = sand.u32 1, %s2133_s21  }
  0x3f   : > { %445 = vrot.lane.b32.xlu1 %v2331_v13, %s2159_s12  ;;  %441 = vrot.lane.b32.xlu0 %v2342_v17, %s2159_s12  ;;  %v2349_v19 = vld [vmem:[%s339_s8 + $0xc] ss:$16 sps:$4 sm:$0x3f]   ;;  %v2352_v20 = vrot.slane %v2339_v16, 2  ;;  %s2360_s25 = sshll.u32 %s344_s23, 5  ;;  %s2160_s16 = smov 126  }
  0x40   : > { %v2365_v22 = vrot.slane %v2349_v19, 2  ;;  %s346_s13 = scalar_lea.vmem [#allocation4], %s2360_s25  ;;  %v2370_v23 = vrot.slane %v2328_v12, 4  ;;  %v2375_v24 = vrot.slane %v2339_v16, 4  ;;  %v2379_v25 = vrot.slane %v2349_v19, 4  ;;  %s2161_s21 = smov 118  }
  0x41   : > { %v2383_v26 = vrot.slane %v2335_v15, 4  ;;  %v2387_v27 = vrot.slane %v2339_v16, 6  ;;  %v2391_v28 = vrot.slane %v2333_v14, 6  ;;  %v2395_v29 = vrot.slane %v2335_v15, 6  ;;  %s2162_s10 = smov 117   ;;  %s2163_s17 = smov 116  }
  0x42   : > { %v2399_v30 = vrot.slane %v2328_v12, 6  ;;  %v2404_v31 = vrot.slane %v2349_v19, 6  ;;  %s2164_s18 = smov 108   ;;  %s2165_s20 = smov 107   ;;  %vm506_vm12 = vcmask 957440   ;;  %vm521_vm13 = vcmask 949248  }
  0x43   : > { %447 = vrot.lane.b32.xlu1 %v2345_v18, %s2159_s12  ;;  %443 = vrot.lane.b32.xlu0 %v2352_v20, %s2159_s12  ;;  %s2166_s30 = smov 106   ;;  %s2167_s7 = smov 28   ;;  %v2440_v32 = vld [vmem:[%s346_s13] ss:$16 sps:$4 sm:$0x3f]   ;;  %vm922_vm14 = vcmask 236544  }
  0x44   : > { %s2168_s11 = smov 27   ;;  %v2447_v33 = vrot.slane %v2440_v32, 2  ;;  %s2169_s8 = smov 49   ;;  %v2460_v34 = vrot.slane %v2440_v32, 4  ;;  %v2472_v36 = vrot.slane %v2440_v32, 6  ;;  %vm581_vm15 = vcmask 228352  }
  0x45   : > { %s2170_s15 = smov 48   ;;  %s2172_s23 = smov 39  }
  0x46   : > { %s2173_s25 = smov 38   ;;  %s2174_s13 = smov 37  }
  0x47   : > { %461 = vrot.lane.b32.xlu1 %v2357_v21, %s2160_s16  ;;  %449 = vrot.lane.b32.xlu0 %v2365_v22, %s2159_s12 }
  0x4b   : > { %465 = vrot.lane.b32.xlu1 %v2370_v23, %s2160_s16  ;;  %463 = vrot.lane.b32.xlu0 %v2375_v24, %s2160_s16 }
  0x4f   : > { %469 = vrot.lane.b32.xlu1 %v2379_v25, %s2160_s16  ;;  %467 = vrot.lane.b32.xlu0 %v2383_v26, %s2160_s16  ;;  %s2175_s16 = smov 29  }
  0x53   : > { %483 = vrot.lane.b32.xlu1 %v2387_v27, %s2161_s21  ;;  %481 = vrot.lane.b32.xlu0 %v2391_v28, %s2161_s21 }
  0x57   : > { %487 = vrot.lane.b32.xlu1 %v2395_v29, %s2161_s21  ;;  %485 = vrot.lane.b32.xlu0 %v2399_v30, %s2161_s21 }
  0x5b   : > { %496 = vrot.lane.b32.xlu1 %v2333_v14, %s2162_s10  ;;  %489 = vrot.lane.b32.xlu0 %v2404_v31, %s2161_s21  ;;  %s2176_s21 = smov 26  }
  0x5f   : > { %500 = vrot.lane.b32.xlu1 %v2328_v12, %s2162_s10  ;;  %498 = vrot.lane.b32.xlu0 %v2339_v16, %s2162_s10 }
  0x63   : > { %504 = vrot.lane.b32.xlu1 %v2349_v19, %s2162_s10  ;;  %502 = vrot.lane.b32.xlu0 %v2335_v15, %s2162_s10  ;;  %s2177_s10 = smov 18  }
  0x67   : > { %513 = vrot.lane.b32.xlu1 %v2352_v20, %s2163_s17  ;;  %511 = vrot.lane.b32.xlu0 %v2342_v17, %s2163_s17 }
  0x6b   : > { %517 = vrot.lane.b32.xlu1 %v2345_v18, %s2163_s17  ;;  %515 = vrot.lane.b32.xlu0 %v2331_v13, %s2163_s17 }
  0x6f   : > { %526 = vrot.lane.b32.xlu1 %v2357_v21, %s2164_s18  ;;  %519 = vrot.lane.b32.xlu0 %v2365_v22, %s2163_s17  ;;  %s2178_s17 = smov 17  }
  0x73   : > { %530 = vrot.lane.b32.xlu1 %v2370_v23, %s2164_s18  ;;  %528 = vrot.lane.b32.xlu0 %v2375_v24, %s2164_s18 }
  0x77   : > { %534 = vrot.lane.b32.xlu1 %v2379_v25, %s2164_s18  ;;  %532 = vrot.lane.b32.xlu0 %v2383_v26, %s2164_s18  ;;  %s2179_s18 = smov 16  }
  0x7b   : > { %543 = vrot.lane.b32.xlu1 %v2387_v27, %s2165_s20  ;;  %541 = vrot.lane.b32.xlu0 %v2391_v28, %s2165_s20 }
  0x7f   : > { %547 = vrot.lane.b32.xlu1 %v2395_v29, %s2165_s20  ;;  %545 = vrot.lane.b32.xlu0 %v2399_v30, %s2165_s20 }
  0x83   : > { %556 = vrot.lane.b32.xlu1 %v2333_v14, %s2166_s30  ;;  %549 = vrot.lane.b32.xlu0 %v2404_v31, %s2165_s20  ;;  %s2180_s20 = smov 8  }
  0x87   : > { %560 = vrot.lane.b32.xlu1 %v2328_v12, %s2166_s30  ;;  %558 = vrot.lane.b32.xlu0 %v2339_v16, %s2166_s30 }
  0x8b   : > { %564 = vrot.lane.b32.xlu1 %v2349_v19, %s2166_s30  ;;  %562 = vrot.lane.b32.xlu0 %v2335_v15, %s2166_s30  ;;  %s2181_s30 = smov 7  }
  0x8f   : > { %573 = vrot.lane.b32.xlu1 %v2352_v20, %s2167_s7  ;;  %571 = vrot.lane.b32.xlu0 %v2342_v17, %s2167_s7 }
  0x93   : > { %577 = vrot.lane.b32.xlu1 %v2345_v18, %s2167_s7  ;;  %575 = vrot.lane.b32.xlu0 %v2331_v13, %s2167_s7 }
  0x97   : > { %586 = vrot.lane.b32.xlu1 %v2357_v21, %s2168_s11  ;;  %579 = vrot.lane.b32.xlu0 %v2365_v22, %s2167_s7 }
  0x9b   : > { %819 = vrot.lane.b32.xlu1 %v2447_v33, %s2159_s12  ;;  %588 = vrot.lane.b32.xlu0 %v2375_v24, %s2168_s11  ;;  %s2171_s12 = smov 47  }
  0x9f   : > { %822 = vrot.lane.b32.xlu1 %v2375_v24, %s2169_s8  ;;  %590 = vrot.lane.b32.xlu0 %v2370_v23, %s2168_s11 }
  0xa3   : > { %826 = vrot.lane.b32.xlu1 %v2383_v26, %s2169_s8  ;;  %824 = vrot.lane.b32.xlu0 %v2370_v23, %s2169_s8 }
  0xa7   : > { %830 = vrot.lane.b32.xlu1 %v2460_v34, %s2169_s8  ;;  %828 = vrot.lane.b32.xlu0 %v2379_v25, %s2169_s8 }
  0xab   : > { %839 = vrot.lane.b32.xlu1 %v2399_v30, %s2170_s15  ;;  %837 = vrot.lane.b32.xlu0 %v2387_v27, %s2170_s15 }
  0xaf   : > { %843 = vrot.lane.b32.xlu1 %v2404_v31, %s2170_s15  ;;  %841 = vrot.lane.b32.xlu0 %v2395_v29, %s2170_s15 }
  0xb1   : > { %v2468_v35 = vpop.permute.xlu1 %445  ;;  %v2475_v37 = vpop.permute.xlu0 %441 }
  0xb3   : > { %852 = vrot.lane.b32.xlu1 %v2339_v16, %s2171_s12  ;;  %845 = vrot.lane.b32.xlu0 %v2472_v36, %s2170_s15 }
  0xb5   : > { %v2477_v38 = vpop.permute.xlu1 %447  ;;  %v2481_v39 = vpop.permute.xlu0 %443 }
  0xb7   : > { %856 = vrot.lane.b32.xlu1 %v2335_v15, %s2171_s12  ;;  %854 = vrot.lane.b32.xlu0 %v2328_v12, %s2171_s12 }
  0xb9   : > { %v2483_v40 = vpop.permute.xlu1 %461  ;;  %v2487_v41 = vpop.permute.xlu0 %449 }
  0xbb   : > { %860 = vrot.lane.b32.xlu1 %v2440_v32, %s2171_s12  ;;  %858 = vrot.lane.b32.xlu0 %v2349_v19, %s2171_s12 }
  0xbd   : > { %v2489_v42 = vpop.permute.xlu1 %465  ;;  %v2493_v43 = vpop.permute.xlu0 %463 }
  0xbf   : > { %869 = vrot.lane.b32.xlu1 %v2331_v13, %s2172_s23  ;;  %867 = vrot.lane.b32.xlu0 %v2352_v20, %s2172_s23 }
  0xc1   : > { %v2495_v44 = vpop.permute.xlu1 %469  ;;  %v2499_v45 = vpop.permute.xlu0 %467 }
  0xc3   : > { %873 = vrot.lane.b32.xlu1 %v2365_v22, %s2172_s23  ;;  %871 = vrot.lane.b32.xlu0 %v2345_v18, %s2172_s23 }
  0xc5   : > { %v2501_v46 = vpop.permute.xlu1 %483  ;;  %v2505_v47 = vpop.permute.xlu0 %481 }
  0xc7   : > { %882 = vrot.lane.b32.xlu1 %v2375_v24, %s2173_s25  ;;  %875 = vrot.lane.b32.xlu0 %v2447_v33, %s2172_s23  ;;  %s1983_s23 = sshll.u32 %s1960_s28, 2 }
  0xc8   : > { %p386_p0 = scmp.lt.s32.totalorder %s1983_s23, 15 }
  0xc9   : > { %v2507_v48 = vpop.permute.xlu1 %487  ;;  %v2511_v49 = vpop.permute.xlu0 %485 }
  0xca   : > { %s3725_s23 = smov (!%p386_p0, %s1983_s23), 15 }
  0xcb   : > { %886 = vrot.lane.b32.xlu1 %v2383_v26, %s2173_s25  ;;  %884 = vrot.lane.b32.xlu0 %v2370_v23, %s2173_s25  ;;  %s1985_s27 = sshll.u32 %s3725_s23, 2 }
  0xcd   : > { %v2513_v50 = vpop.permute.xlu1 %496  ;;  %v2517_v51 = vpop.permute.xlu0 %489 }
  0xce   : > { %3673 = vst [vmem:[#allocation5_spill] sm:$0xff] %v2513_v50 }
  0xcf   : > { %890 = vrot.lane.b32.xlu1 %v2460_v34, %s2173_s25  ;;  %888 = vrot.lane.b32.xlu0 %v2379_v25, %s2173_s25 }
  0xd1   : > { %v2519_v52 = vpop.permute.xlu1 %500  ;;  %v2523_v53 = vpop.permute.xlu0 %498 }
  0xd3   : > { %899 = vrot.lane.b32.xlu1 %v2399_v30, %s2174_s13  ;;  %897 = vrot.lane.b32.xlu0 %v2387_v27, %s2174_s13 }
  0xd5   : > { %v2525_v54 = vpop.permute.xlu1 %504  ;;  %v2529_v55 = vpop.permute.xlu0 %502 }
  0xd7   : > { %903 = vrot.lane.b32.xlu1 %v2404_v31, %s2174_s13  ;;  %901 = vrot.lane.b32.xlu0 %v2395_v29, %s2174_s13 }
  0xd9   : > { %v2531_v56 = vpop.permute.xlu1 %513  ;;  %v2535_v57 = vpop.permute.xlu0 %511 }
  0xdb   : > { %912 = vrot.lane.b32.xlu1 %v2339_v16, %s2175_s16  ;;  %905 = vrot.lane.b32.xlu0 %v2472_v36, %s2174_s13 }
  0xdd   : > { %v2537_v58 = vpop.permute.xlu1 %517  ;;  %v2541_v59 = vpop.permute.xlu0 %515 }
  0xdf   : > { %916 = vrot.lane.b32.xlu1 %v2335_v15, %s2175_s16  ;;  %914 = vrot.lane.b32.xlu0 %v2328_v12, %s2175_s16 }
  0xe1   : > { %v2543_v60 = vpop.permute.xlu1 %526  ;;  %v2547_v61 = vpop.permute.xlu0 %519 }
  0xe2   : > { %3674 = vst [vmem:[#allocation6_spill] sm:$0xff] %v2543_v60 }
  0xe3   : > { %920 = vrot.lane.b32.xlu1 %v2440_v32, %s2175_s16  ;;  %918 = vrot.lane.b32.xlu0 %v2349_v19, %s2175_s16  ;;  %s388_s16 = scalar_lea.vmem %s3650_s2, %s3725_s23 }
  0xe5   : > { %v2549_v62 = vpop.permute.xlu1 %530  ;;  %v2554_v63 = vpop.permute.xlu0 %528 }
  0xe7   : > { %592 = vrot.lane.b32.xlu1 %v2383_v26, %s2168_s11  ;;  %927 = vrot.lane.b32.xlu0 %v2447_v33, %s2167_s7  ;;  %s2182_s7 = smov 111  }
  0xe9   : > { %v2556_v0 = vpop.permute.xlu1 %534  ;;  %v2562_v1 = vpop.permute.xlu0 %532 }
  0xeb   : > { %930 = vrot.lane.b32.xlu1 %v2460_v34, %s2168_s11  ;;  %594 = vrot.lane.b32.xlu0 %v2379_v25, %s2168_s11 }
  0xed   : > { %v2564_v2 = vpop.permute.xlu1 %543  ;;  %v2569_v3 = vpop.permute.xlu0 %541 }
  0xee   : > { %3675 = vst [vmem:[#allocation7_spill] sm:$0xff] %v2564_v2  ;;  %3676 = vst [vmem:[#allocation8_spill] sm:$0xff] %v2569_v3 }
  0xef   : > { %605 = vrot.lane.b32.xlu1 %v2399_v30, %s2176_s21  ;;  %603 = vrot.lane.b32.xlu0 %v2387_v27, %s2176_s21 }
  0xf1   : > { %v2571_v4 = vpop.permute.xlu1 %547  ;;  %v2575_v5 = vpop.permute.xlu0 %545 }
  0xf2   : > { %3677 = vst [vmem:[#allocation9_spill] sm:$0xff] %v2571_v4  ;;  %3678 = vst [vmem:[#allocation10_spill] sm:$0xff] %v2575_v5 }
  0xf3   : > { %609 = vrot.lane.b32.xlu1 %v2404_v31, %s2176_s21  ;;  %607 = vrot.lane.b32.xlu0 %v2395_v29, %s2176_s21 }
  0xf5   : > { %v2577_v6 = vpop.permute.xlu1 %556  ;;  %v2581_v7 = vpop.permute.xlu0 %549 }
  0xf6   : > { %3679 = vst [vmem:[#allocation11_spill] sm:$0xff] %v2577_v6  ;;  %3680 = vst [vmem:[#allocation12_spill] sm:$0xff] %v2581_v7 }
  0xf7   : > { %618 = vrot.lane.b32.xlu1 %v2339_v16, %s2177_s10  ;;  %601 = vrot.lane.b32.xlu0 %v2391_v28, %s2176_s21 }
  0xf9   : > { %v2583_v8 = vpop.permute.xlu1 %560  ;;  %v2587_v9 = vpop.permute.xlu0 %558 }
  0xfa   : > { %3681 = vst [vmem:[#allocation13_spill] sm:$0xff] %v2583_v8  ;;  %3682 = vst [vmem:[#allocation14_spill] sm:$0xff] %v2587_v9 }
  0xfb   : > { %622 = vrot.lane.b32.xlu1 %v2335_v15, %s2177_s10  ;;  %620 = vrot.lane.b32.xlu0 %v2328_v12, %s2177_s10 }
  0xfd   : > { %v2589_v10 = vpop.permute.xlu1 %564  ;;  %v2593_v11 = vpop.permute.xlu0 %562 }
  0xfe   : > { %3683 = vst [vmem:[#allocation15_spill] sm:$0xff] %v2589_v10  ;;  %3684 = vst [vmem:[#allocation16_spill] sm:$0xff] %v2593_v11 }
  0xff   : > { %631 = vrot.lane.b32.xlu1 %v2352_v20, %s2178_s17  ;;  %624 = vrot.lane.b32.xlu0 %v2349_v19, %s2177_s10 }
 0x101   : > { %v2595_v17 = vpop.permute.xlu1 %573  ;;  %v2599_v21 = vpop.permute.xlu0 %571 }
 0x102   : > { %3685 = vst [vmem:[#allocation17_spill] sm:$0xff] %v2599_v21 }
 0x103   : > { %635 = vrot.lane.b32.xlu1 %v2345_v18, %s2178_s17  ;;  %633 = vrot.lane.b32.xlu0 %v2331_v13, %s2178_s17 }
 0x105   : > { %v2601_v28 = vpop.permute.xlu1 %577  ;;  %v2605_v33 = vpop.permute.xlu0 %575 }
 0x107   : > { %616 = vrot.lane.b32.xlu1 %v2333_v14, %s2177_s10  ;;  %637 = vrot.lane.b32.xlu0 %v2365_v22, %s2178_s17  ;;  %s399_s10 = scalar_lea.vmem %s3654_s6, %s1985_s27 }
 0x109   : > { %v2607_v6 = vpop.permute.xlu1 %586  ;;  %v2611_v20 = vpop.permute.xlu0 %579 }
 0x10a   : > { %3686 = vst [vmem:[#allocation18_spill] sm:$0xff] %v2607_v6 }
 0x10b   : > { %646 = vrot.lane.b32.xlu1 %v2370_v23, %s2179_s18  ;;  %644 = vrot.lane.b32.xlu0 %v2375_v24, %s2179_s18 }
 0x10d   : > { %v820_v18 = vpop.permute.xlu1 %819  ;;  %v2615_v21 = vpop.permute.xlu0 %588 }
 0x10e   : > { %3687 = vst [vmem:[#allocation19_spill] sm:$0xff] %v2615_v21 }
 0x10f   : > { %650 = vrot.lane.b32.xlu1 %v2379_v25, %s2179_s18  ;;  %648 = vrot.lane.b32.xlu0 %v2383_v26, %s2179_s18  ;;  %v2629_v25 = vsel %vm451_vm0, %v2468_v35, %v2477_v38 }
 0x111   : > { %v823_v13 = vpop.permute.xlu1 %822  ;;  %v2619_v6 = vpop.permute.xlu0 %590 }
 0x112   : > { %3688 = vst [vmem:[#allocation20_spill] sm:$0xff] %v2619_v6 }
 0x113   : > { %660 = vrot.lane.b32.xlu1 %v2387_v27, %s2180_s20  ;;  %652 = vrot.lane.b32.xlu0 %v2460_v34, %s2179_s18  ;;  %v821_v34 = vsel %vm451_vm0, %v2487_v41, %v820_v18 }
 0x115   : > { %v827_v22 = vpop.permute.xlu1 %826  ;;  %v825_v23 = vpop.permute.xlu0 %824 }
 0x116   : > { %v833_v10 = vsel %vm832_vm2, %v823_v13, %v825_v23  ;;  %v937_v13 = vsel %vm675_vm1, %v2440_v32, %v820_v18  ;;  %v834_v7 = vsel %vm832_vm2, %v825_v23, %v827_v22 }
 0x117   : > { %664 = vrot.lane.b32.xlu1 %v2395_v29, %s2180_s20  ;;  %662 = vrot.lane.b32.xlu0 %v2399_v30, %s2180_s20  ;;  %v2635_v29 = vsel %vm451_vm0, %v2481_v39, %v2468_v35  ;;  %v2641_v30 = vsel %vm675_vm1, %v2328_v12, %v2629_v25  ;;  %v934_v12 = vsel %vm675_vm1, %v2349_v19, %v821_v34 }
 0x118   : > { %v681_v35 = vsel %vm675_vm1, %v2339_v16, %v2635_v29  ;;  %v939_v8 = vsel %vm691_vm3, %v2635_v29, %v833_v10  ;;  %v941_v2 = vsel %vm691_vm3, %v2629_v25, %v834_v7 }
 0x119   : > { %v2623_v24 = vpop.permute.xlu1 %830  ;;  %v829_v26 = vpop.permute.xlu0 %828 }
 0x11a   : > { %v835_v4 = vsel %vm832_vm2, %v827_v22, %v829_v26  ;;  %v947_v32 = vsel %vm691_vm3, %v820_v18, %v2623_v24 }
 0x11b   : > { %668 = vrot.lane.b32.xlu1 %v2472_v36, %s2180_s20  ;;  %666 = vrot.lane.b32.xlu0 %v2404_v31, %s2180_s20  ;;  %v2656_v31 = vsel %vm451_vm0, %v2477_v38, %v2487_v41 }
 0x11c   : > { %v687_v16 = vsel %vm675_vm1, %v2335_v15, %v2656_v31  ;;  %v943_v15 = vsel %vm691_vm3, %v2656_v31, %v835_v4 }
 0x11d   : > { %v840_v27 = vpop.permute.xlu1 %839  ;;  %v838_v36 = vpop.permute.xlu0 %837 }
 0x11e   : > { %v848_v21 = vsel %vm847_vm4, %v838_v36, %v840_v27 }
 0x11f   : > { %1051 = vrot.lane.b32.xlu1 %v2641_v30, %s2181_s30  ;;  %1049 = vrot.lane.b32.xlu0 %v681_v35, %s2181_s30  ;;  %v949_v6 = vsel %vm702_vm5, %v833_v10, %v848_v21 }
 0x121   : > { %v844_v11 = vpop.permute.xlu1 %843  ;;  %v842_v3 = vpop.permute.xlu0 %841 }
 0x122   : > { %v849_v22 = vsel %vm847_vm4, %v840_v27, %v842_v3 }
 0x123   : > { %1055 = vrot.lane.b32.xlu1 %v934_v12, %s2181_s30  ;;  %1053 = vrot.lane.b32.xlu0 %v687_v16, %s2181_s30 }
 0x125   : > { %v853_v9 = vpop.permute.xlu1 %852  ;;  %v846_v38 = vpop.permute.xlu0 %845 }
 0x127   : > { %1059 = vrot.lane.b32.xlu1 %v939_v8, %s2181_s30  ;;  %1057 = vrot.lane.b32.xlu0 %v937_v13, %s2181_s30  ;;  %v836_v8 = vsel %vm832_vm2, %v829_v26, %v2623_v24  ;;  %v951_v26 = vsel %vm702_vm5, %v834_v7, %v849_v22  ;;  %vm596_vm2 = vcmask 220160  }
 0x128   : > { %v945_v13 = vsel %vm691_vm3, %v821_v34, %v836_v8 }
 0x129   : > { %v857_v12 = vpop.permute.xlu1 %856  ;;  %v855_v60 = vpop.permute.xlu0 %854 }
 0x12a   : > { %v863_v21 = vsel %vm862_vm7, %v853_v9, %v855_v60 }
 0x12b   : > { %1063 = vrot.lane.b32.xlu1 %v943_v15, %s2181_s30  ;;  %1061 = vrot.lane.b32.xlu0 %v941_v2, %s2181_s30  ;;  %v851_v2 = vsel %vm847_vm4, %v844_v11, %v846_v38 }
 0x12c   : > { %v955_v34 = vsel %vm702_vm5, %v836_v8, %v851_v2 }
 0x12d   : > { %v2677_v5 = vpop.permute.xlu1 %860  ;;  %v859_v23 = vpop.permute.xlu0 %858 }
 0x12e   : > { %v865_v22 = vsel %vm862_vm7, %v857_v12, %v859_v23 }
 0x12f   : > { %1067 = vrot.lane.b32.xlu1 %v947_v32, %s2181_s30  ;;  %1065 = vrot.lane.b32.xlu0 %v945_v13, %s2181_s30  ;;  %v850_v32 = vsel %vm847_vm4, %v842_v3, %v844_v11  ;;  %v957_v3 = vsel %vm702_vm5, %v2623_v24, %v846_v38  ;;  %vm551_vm4 = vcmask 875520  }
 0x130   : > { %v953_v36 = vsel %vm702_vm5, %v835_v4, %v850_v32 }
 0x131   : > { %v870_v15 = vpop.permute.xlu1 %869  ;;  %v868_v18 = vpop.permute.xlu0 %867 }
 0x132   : > { %v878_v11 = vsel %vm877_vm6, %v868_v18, %v870_v15 }
 0x133   : > { %1071 = vrot.lane.b32.xlu1 %v951_v26, %s2181_s30  ;;  %1069 = vrot.lane.b32.xlu0 %v949_v6, %s2181_s30  ;;  %v864_v26 = vsel %vm862_vm7, %v855_v60, %v857_v12  ;;  %v866_v60 = vsel %vm862_vm7, %v859_v23, %v2677_v5  ;;  %vm1466_vm7 = vcmask 908288  }
 0x135   : > { %v874_v50 = vpop.permute.xlu1 %873  ;;  %v872_v27 = vpop.permute.xlu0 %871 }
 0x136   : > { %v880_v24 = vsel %vm877_vm6, %v872_v27, %v874_v50  ;;  %v879_v9 = vsel %vm877_vm6, %v870_v15, %v872_v27 }
 0x137   : > { %1075 = vrot.lane.b32.xlu1 %v955_v34, %s2181_s30  ;;  %1073 = vrot.lane.b32.xlu0 %v953_v36, %s2181_s30  ;;  %v963_v18 = vsel %vm675_vm1, %v864_v26, %v879_v9  ;;  %v473_v34 = vsel %vm471_vm8, %v2493_v43, %v2489_v42 }
 0x139   : > { %v883_v7 = vpop.permute.xlu1 %882  ;;  %v2700_v10 = vpop.permute.xlu0 %875 }
 0x13a   : > { %v881_v15 = vsel %vm877_vm6, %v874_v50, %v2700_v10  ;;  %v695_v50 = vsel %vm691_vm3, %v2635_v29, %v473_v34  ;;  %vm566_vm6 = vcmask 867328  }
 0x13b   : > { %1258 = vrot.lane.b32.xlu1 %v681_v35, %s2182_s7  ;;  %1077 = vrot.lane.b32.xlu0 %v957_v3, %s2181_s30  ;;  %v960_v35 = vsel %vm675_vm1, %v863_v21, %v878_v11  ;;  %v969_v27 = vsel %vm675_vm1, %v866_v60, %v881_v15  ;;  %v452_v3 = vsel %vm451_vm0, %v2475_v37, %v2481_v39  ;;  %vm536_vm0 = vcmask 883712  }
 0x13c   : > { %v475_v21 = vsel %vm471_vm8, %v2499_v45, %v2495_v44  ;;  %v678_v23 = vsel %vm675_vm1, %v2333_v14, %v452_v3  ;;  %v474_v37 = vsel %vm471_vm8, %v2489_v42, %v2499_v45 }
 0x13d   : > { %v887_v6 = vpop.permute.xlu1 %886  ;;  %v885_v4 = vpop.permute.xlu0 %884  ;;  %v699_v39 = vsel %vm691_vm3, %v2656_v31, %v475_v21  ;;  %v697_v14 = vsel %vm691_vm3, %v2629_v25, %v474_v37 }
 0x13e   : > { %v893_v29 = vsel %vm892_vm9, %v883_v7, %v885_v4  ;;  %v701_v7 = vsel %vm691_vm3, %v2487_v41, %v2495_v44  ;;  %v894_v25 = vsel %vm892_vm9, %v885_v4, %v887_v6  ;;  %v493_v4 = vsel %vm491_vm10, %v2501_v46, %v2511_v49 }
 0x13f   : > { %1262 = vrot.lane.b32.xlu1 %v687_v16, %s2182_s7  ;;  %1260 = vrot.lane.b32.xlu0 %v2641_v30, %s2182_s7  ;;  %v690_v16 = vsel %vm675_vm1, %v2349_v19, %v2487_v41  ;;  %v966_v30 = vsel %vm675_vm1, %v865_v22, %v880_v24  ;;  %v972_v19 = vsel %vm675_vm1, %v2677_v5, %v2700_v10 }
 0x140   : > { %v974_v42 = vsel %vm691_vm3, %v878_v11, %v893_v29 }
 0x141   : > { %v2708_v8 = vpop.permute.xlu1 %890  ;;  %v889_v38 = vpop.permute.xlu0 %888 }
 0x142   : > { %v895_v45 = vsel %vm892_vm9, %v887_v6, %v889_v38  ;;  %v896_v41 = vsel %vm892_vm9, %v889_v38, %v2708_v8  ;;  %v982_v6 = vsel %vm691_vm3, %v2700_v10, %v2708_v8  ;;  %v472_v38 = vsel %vm471_vm8, %v2483_v40, %v2493_v43 }
 0x143   : > { %1079 = vrot.lane.b32.xlu1 %v960_v35, %s2181_s30  ;;  %1264 = vrot.lane.b32.xlu0 %v690_v16, %s2182_s7  ;;  %v978_v26 = vsel %vm691_vm3, %v880_v24, %v895_v45  ;;  %v706_v10 = vsel %vm702_vm5, %v473_v34, %v493_v4  ;;  %v494_v40 = vsel %vm491_vm10, %v2511_v49, %v2507_v48  ;;  %vm611_vm8 = vcmask 211968  }
 0x144   : > { %vm639_vm9 = vcmask 138240  }
 0x145   : > { %v2719_v13 = vpop.permute.xlu1 %899  ;;  %v2726_v2 = vpop.permute.xlu0 %897 }
 0x146   : > { %v908_v34 = vsel %vm907_vm11, %v2726_v2, %v2719_v13  ;;  %v712_v2 = vsel %vm702_vm5, %v2495_v44, %v2517_v51 }
 0x147   : > { %1083 = vrot.lane.b32.xlu1 %v966_v30, %s2181_s30  ;;  %1081 = vrot.lane.b32.xlu0 %v963_v18, %s2181_s30  ;;  %v976_v18 = vsel %vm691_vm3, %v879_v9, %v894_v25  ;;  %v980_v9 = vsel %vm691_vm3, %v881_v15, %v896_v41  ;;  %v693_v15 = vsel %vm691_vm3, %v452_v3, %v472_v38 }
 0x148   : > { %v708_v3 = vsel %vm702_vm5, %v474_v37, %v494_v40 }
 0x149   : > { %v2729_v32 = vpop.permute.xlu1 %903  ;;  %v2743_v12 = vpop.permute.xlu0 %901 }
 0x14a   : > { %v910_v49 = vsel %vm907_vm11, %v2743_v12, %v2729_v32  ;;  %v909_v37 = vsel %vm907_vm11, %v2719_v13, %v2743_v12  ;;  %v523_v13 = vsel %vm521_vm13, %v2531_v56, %v2541_v59 }
 0x14b   : > { %1087 = vrot.lane.b32.xlu1 %v972_v19, %s2181_s30  ;;  %1085 = vrot.lane.b32.xlu0 %v969_v27, %s2181_s30  ;;  %v495_v27 = vsel %vm491_vm10, %v2507_v48, %v2517_v51  ;;  %v984_v48 = vsel %vm702_vm5, %v893_v29, %v908_v34  ;;  %v988_v29 = vsel %vm702_vm5, %v895_v45, %v910_v49 }
 0x14c   : > { %v710_v43 = vsel %vm702_vm5, %v475_v21, %v495_v27  ;;  %v508_v45 = vsel %vm506_vm12, %v2523_v53, %v2519_v52 }
 0x14d   : > { %v2746_v36 = vpop.permute.xlu1 %912  ;;  %v2758_v5 = vpop.permute.xlu0 %905 }
 0x14e   : > { %v911_v44 = vsel %vm907_vm11, %v2729_v32, %v2758_v5  ;;  %v992_v51 = vsel %vm702_vm5, %v2708_v8, %v2758_v5  ;;  %v492_v8 = vsel %vm491_vm10, %v2505_v47, %v2501_v46  ;;  %v718_v5 = vsel %vm675_vm1, %v508_v45, %v523_v13 }
 0x14f   : > { %1268 = vrot.lane.b32.xlu1 %v695_v50, %s2182_s7  ;;  %1256 = vrot.lane.b32.xlu0 %v678_v23, %s2182_s7  ;;  %v990_v32 = vsel %vm702_vm5, %v896_v41, %v911_v44  ;;  %v510_v41 = vsel %vm506_vm12, %v2529_v55, %v2525_v54  ;;  %v524_v47 = vsel %vm521_vm13, %v2541_v59, %v2537_v58  ;;  %vm626_vm10 = vcmask 146432  }
 0x150   : > { %v522_v45 = vsel %vm521_vm13, %v2535_v57, %v2531_v56  ;;  %v539_v56 = vsel %vm536_vm0, %v2549_v62, %v2562_v1  ;;  %vm654_vm11 = vcmask 130048  }
 0x151   : > { %v2762_v35 = vpop.permute.xlu1 %916  ;;  %v2772_v22 = vpop.permute.xlu0 %914 }
 0x152   : > { %v923_v27 = vsel %vm922_vm14, %v2746_v36, %v2772_v22 }
 0x153   : > { %1272 = vrot.lane.b32.xlu1 %v699_v39, %s2182_s7  ;;  %1270 = vrot.lane.b32.xlu0 %v697_v14, %s2182_s7 }
 0x155   : > { %v2776_v16 = vpop.permute.xlu1 %920  ;;  %v2782_v31 = vpop.permute.xlu0 %918 }
 0x157   : > { %1089 = vrot.lane.b32.xlu1 %v974_v42, %s2181_s30  ;;  %1274 = vrot.lane.b32.xlu0 %v701_v7, %s2182_s7 }
 0x159   : > { %v2787_v30 = vpop.permute.xlu1 %592  ;;  %v2793_v11 = vpop.permute.xlu0 %927 }
 0x15b   : > { %1093 = vrot.lane.b32.xlu1 %v978_v26, %s2181_s30  ;;  %1091 = vrot.lane.b32.xlu0 %v976_v18, %s2181_s30  ;;  %v986_v26 = vsel %vm702_vm5, %v894_v25, %v909_v37 }
 0x15d   : > { %v2796_v19 = vpop.permute.xlu1 %930  ;;  %v2808_v24 = vpop.permute.xlu0 %594 }
 0x15f   : > { %1097 = vrot.lane.b32.xlu1 %v982_v6, %s2181_s30  ;;  %1095 = vrot.lane.b32.xlu0 %v980_v9, %s2181_s30  ;;  %v525_v6 = vsel %vm521_vm13, %v2537_v58, %v2547_v61  ;;  %v704_v9 = vsel %vm702_vm5, %v472_v38, %v492_v8  ;;  %v509_v38 = vsel %vm506_vm12, %v2519_v52, %v2529_v55 }
 0x160   : > { %v2918_v58 = vsel %vm581_vm15, %v2595_v17, %v2605_v33  ;;  %v721_v59 = vsel %vm675_vm1, %v509_v38, %v524_v47  ;;  %v925_v52 = vsel %vm922_vm14, %v2762_v35, %v2782_v31  ;;  %v540_v8 = vsel %vm536_vm0, %v2562_v1, %v2556_v0 }
 0x161   : > { %v2811_v60 = vpop.permute.xlu1 %605  ;;  %v2822_v50 = vpop.permute.xlu0 %603  ;;  %v994_v36 = vsel %vm675_vm1, %v923_v27, %v2918_v58  ;;  %v735_v57 = vsel %vm691_vm3, %v525_v6, %v540_v8  ;;  %v733_v38 = vsel %vm691_vm3, %v524_v47, %v539_v56  ;;  %v3023_v1 = vsel %vm596_vm2, %v2787_v30, %v2808_v24 }
 0x162   : > { %v737_v47 = vsel %vm691_vm3, %v2547_v61, %v2556_v0 }
 0x163   : > { %1278 = vrot.lane.b32.xlu1 %v706_v10, %s2182_s7  ;;  %1266 = vrot.lane.b32.xlu0 %v693_v15, %s2182_s7  ;;  %v724_v10 = vsel %vm675_vm1, %v510_v41, %v525_v6 }
 0x165   : > { %v2825_v23 = vpop.permute.xlu1 %609  ;;  %v2836_v39 = vpop.permute.xlu0 %607 }
 0x167   : > { %1282 = vrot.lane.b32.xlu1 %v710_v43, %s2182_s7  ;;  %1280 = vrot.lane.b32.xlu0 %v708_v3, %s2182_s7  ;;  %v727_v43 = vsel %vm675_vm1, %v2525_v54, %v2547_v61  ;;  %v2940_v3 = vsel %vm581_vm15, %v2601_v28, %v2611_v20  ;;  %v2952_v54 = vsel %vm581_vm15, %v2605_v33, %v2601_v28 }
 0x168   : > { %v998_v49 = vsel %vm675_vm1, %v925_v52, %v2940_v3  ;;  %v538_v28 = vsel %vm536_vm0, %v2554_v63, %v2549_v62  ;;  %v926_v33 = vsel %vm922_vm14, %v2782_v31, %v2776_v16 }
 0x169   : > { %v2839_v14 = vpop.permute.xlu1 %618  ;;  %v2847_v21 = vpop.permute.xlu0 %601 }
 0x16b   : > { %1099 = vrot.lane.b32.xlu1 %v984_v48, %s2181_s30  ;;  %1284 = vrot.lane.b32.xlu0 %v712_v2, %s2182_s7  ;;  %v924_v48 = vsel %vm922_vm14, %v2772_v22, %v2762_v35  ;;  %v1004_v35 = vsel %vm675_vm1, %v2776_v16, %v2793_v11  ;;  %v929_v22 = vsel %vm581_vm15, %v2611_v20, %v2793_v11  ;;  %v3689_v16 = vld [vmem:[#allocation5_spill] sm:$0xff] }
 0x16c   : > { %v996_v37 = vsel %vm675_vm1, %v924_v48, %v2952_v54  ;;  %v1001_v44 = vsel %vm675_vm1, %v926_v33, %v929_v22  ;;  %v507_v31 = vsel %vm506_vm12, %v3689_v16, %v2523_v53  ;;  %v3694_v33 = vld [vmem:[#allocation7_spill] sm:$0xff]  ;;  %vm670_vm12 = vcmask 64512  }
 0x16d   : > { %v2852_v42 = vpop.permute.xlu1 %622  ;;  %v2860_v7 = vpop.permute.xlu0 %620  ;;  %v715_v41 = vsel %vm675_vm1, %v507_v31, %v522_v45 }
 0x16f   : > { %1103 = vrot.lane.b32.xlu1 %v988_v29, %s2181_s30  ;;  %1101 = vrot.lane.b32.xlu0 %v986_v26, %s2181_s30 }
 0x171   : > { %v2863_v18 = vpop.permute.xlu1 %631  ;;  %v2876_v12 = vpop.permute.xlu0 %624 }
 0x173   : > { %1107 = vrot.lane.b32.xlu1 %v992_v51, %s2181_s30  ;;  %1105 = vrot.lane.b32.xlu0 %v990_v32, %s2181_s30  ;;  %v731_v32 = vsel %vm691_vm3, %v523_v13, %v538_v28  ;;  %v3690_v13 = vld [vmem:[#allocation20_spill] sm:$0xff] }
 0x174   : > { %v3035_v52 = vsel %vm596_vm2, %v3690_v13, %v2787_v30  ;;  %v932_v30 = vsel %vm596_vm2, %v2808_v24, %v2796_v19 }
 0x175   : > { %v2882_v25 = vpop.permute.xlu1 %635  ;;  %v2893_v4 = vpop.permute.xlu0 %633  ;;  %v3050_v61 = vsel %vm691_vm3, %v2952_v54, %v3035_v52  ;;  %v1006_v16 = vsel %vm691_vm3, %v929_v22, %v932_v30 }
 0x177   : > { %1288 = vrot.lane.b32.xlu1 %v718_v5, %s2182_s7  ;;  %1276 = vrot.lane.b32.xlu0 %v704_v9, %s2182_s7 }
 0x179   : > { %v2899_v46 = vpop.permute.xlu1 %616  ;;  %v2913_v15 = vpop.permute.xlu0 %637 }
 0x17b   : > { %1292 = vrot.lane.b32.xlu1 %v724_v10, %s2182_s7  ;;  %1290 = vrot.lane.b32.xlu0 %v721_v59, %s2182_s7  ;;  %v3691_v10 = vld [vmem:[#allocation19_spill] sm:$0xff] }
 0x17c   : > { %v3004_v27 = vsel %vm596_vm2, %v3691_v10, %v3690_v13  ;;  %v3696_v13 = vld [vmem:[#allocation12_spill] sm:$0xff] }
 0x17d   : > { %v2921_v40 = vpop.permute.xlu1 %646  ;;  %v2930_v55 = vpop.permute.xlu0 %644  ;;  %v3016_v62 = vsel %vm691_vm3, %v2918_v58, %v3004_v27 }
 0x17f   : > { %1109 = vrot.lane.b32.xlu1 %v994_v36, %s2181_s30  ;;  %1294 = vrot.lane.b32.xlu0 %v727_v43, %s2182_s7  ;;  %v3041_v43 = vsel %vm691_vm3, %v2940_v3, %v3023_v1 }
 0x181   : > { %v2935_v34 = vpop.permute.xlu1 %650  ;;  %v2954_v2 = vpop.permute.xlu0 %648 }
 0x183   : > { %1113 = vrot.lane.b32.xlu1 %v998_v49, %s2181_s30  ;;  %1111 = vrot.lane.b32.xlu0 %v996_v37, %s2181_s30  ;;  %v1008_v37 = vsel %vm691_vm3, %v2793_v11, %v2796_v19 }
 0x185   : > { %v2958_v29 = vpop.permute.xlu1 %660  ;;  %v2974_v26 = vpop.permute.xlu0 %652 }
 0x187   : > { %1117 = vrot.lane.b32.xlu1 %v1004_v35, %s2181_s30  ;;  %1115 = vrot.lane.b32.xlu0 %v1001_v44, %s2181_s30  ;;  %v3693_v35 = vld [vmem:[#allocation10_spill] sm:$0xff] }
 0x188   : > { %v553_v44 = vsel %vm551_vm4, %v3694_v33, %v3693_v35 }
 0x189   : > { %v2977_v51 = vpop.permute.xlu1 %664  ;;  %v2991_v5 = vpop.permute.xlu0 %662  ;;  %v741_v11 = vsel %vm702_vm5, %v538_v28, %v553_v44 }
 0x18b   : > { %1298 = vrot.lane.b32.xlu1 %v731_v32, %s2182_s7  ;;  %1286 = vrot.lane.b32.xlu0 %v715_v41, %s2182_s7  ;;  %v3695_v41 = vld [vmem:[#allocation6_spill] sm:$0xff] }
 0x18d   : > { %v2994_v9 = vpop.permute.xlu1 %668  ;;  %v3007_v53 = vpop.permute.xlu0 %666 }
 0x18f   : > { %1302 = vrot.lane.b32.xlu1 %v735_v57, %s2182_s7  ;;  %1300 = vrot.lane.b32.xlu0 %v733_v38, %s2182_s7  ;;  %v537_v57 = vsel %vm536_vm0, %v3695_v41, %v2554_v63  ;;  %v3697_v38 = vld [vmem:[#allocation9_spill] sm:$0xff] }
 0x190   : > { %v729_v22 = vsel %vm691_vm3, %v522_v45, %v537_v57  ;;  %v554_v63 = vsel %vm551_vm4, %v3693_v35, %v3697_v38  ;;  %v747_v35 = vsel %vm702_vm5, %v2556_v0, %v3696_v13  ;;  %v3703_v0 = vld [vmem:[#allocation13_spill] sm:$0xff] }
 0x191   : > { %v3010_v59 = vpop.permute.xlu1 %1051  ;;  %v3025_v6 = vpop.permute.xlu0 %1049 }
 0x193   : > { %1119 = vrot.lane.b32.xlu1 %v3016_v62, %s2181_s30  ;;  %1304 = vrot.lane.b32.xlu0 %v737_v47, %s2182_s7  ;;  %v555_v47 = vsel %vm551_vm4, %v3697_v38, %v3696_v13  ;;  %v3704_v13 = vld [vmem:[#allocation14_spill] sm:$0xff] }
 0x194   : > { %v745_v28 = vsel %vm702_vm5, %v540_v8, %v555_v47  ;;  %v568_v47 = vsel %vm566_vm6, %v3704_v13, %v3703_v0 }
 0x195   : > { %v3030_v36 = vpop.permute.xlu1 %1055  ;;  %v3045_v48 = vpop.permute.xlu0 %1053 }
 0x197   : > { %1123 = vrot.lane.b32.xlu1 %v3041_v43, %s2181_s30  ;;  %1121 = vrot.lane.b32.xlu0 %v3050_v61, %s2181_s30 }
 0x199   : > { %v3052_v49 = vpop.permute.xlu1 %1059  ;;  %v3066_v32 = vpop.permute.xlu0 %1057 }
 0x19a   : > { %3692 = vst [vmem:[#allocation5_spill] sm:$0xff] %v3052_v49 }
 0x19b   : > { %1127 = vrot.lane.b32.xlu1 %v1008_v37, %s2181_s30  ;;  %1125 = vrot.lane.b32.xlu0 %v1006_v16, %s2181_s30  ;;  %v743_v16 = vsel %vm702_vm5, %v539_v56, %v554_v63  ;;  %v3705_v63 = vld [vmem:[#allocation8_spill] sm:$0xff] }
 0x19d   : > { %v3069_v31 = vpop.permute.xlu1 %1063  ;;  %v3080_v37 = vpop.permute.xlu0 %1061 }
 0x19f   : > { %1308 = vrot.lane.b32.xlu1 %v741_v11, %s2182_s7  ;;  %1296 = vrot.lane.b32.xlu0 %v729_v22, %s2182_s7 }
 0x1a1   : > { %v3083_v49 = vpop.permute.xlu1 %1067  ;;  %v3091_v44 = vpop.permute.xlu0 %1065 }
 0x1a3   : > { %1312 = vrot.lane.b32.xlu1 %v745_v28, %s2182_s7  ;;  %1310 = vrot.lane.b32.xlu0 %v743_v16, %s2182_s7  ;;  %v552_v28 = vsel %vm551_vm4, %v3705_v63, %v3694_v33  ;;  %v753_v16 = vsel %vm675_vm1, %v568_v47, %v2918_v58  ;;  %v3709_v63 = vld [vmem:[#allocation11_spill] sm:$0xff] }
 0x1a5   : > { %v3094_v41 = vpop.permute.xlu1 %1071  ;;  %v3099_v45 = vpop.permute.xlu0 %1069 }
 0x1a6   : > { %3698 = vst [vmem:[#allocation20_spill] sm:$0xff] %v3094_v41  ;;  %3699 = vst [vmem:[#allocation19_spill] sm:$0xff] %v3099_v45 }
 0x1a7   : > { %1129 = vrot.lane.b32.xlu1 %v3004_v27, %s2181_s30  ;;  %1314 = vrot.lane.b32.xlu0 %v747_v35, %s2182_s7  ;;  %v3706_v35 = vld [vmem:[#allocation15_spill] sm:$0xff] }
 0x1a9   : > { %v3104_v8 = vpop.permute.xlu1 %1075  ;;  %v3109_v56 = vpop.permute.xlu0 %1073 }
 0x1aa   : > { %3700 = vst [vmem:[#allocation10_spill] sm:$0xff] %v3104_v8  ;;  %3701 = vst [vmem:[#allocation7_spill] sm:$0xff] %v3109_v56  ;;  %v739_v8 = vsel %vm702_vm5, %v537_v57, %v552_v28  ;;  %v567_v28 = vsel %vm566_vm6, %v3709_v63, %v3704_v13 }
 0x1ab   : > { %1133 = vrot.lane.b32.xlu1 %v3023_v1, %s2181_s30  ;;  %1131 = vrot.lane.b32.xlu0 %v3035_v52, %s2181_s30 }
 0x1ad   : > { %v1259_v11 = vpop.permute.xlu1 %1258  ;;  %v3115_v38 = vpop.permute.xlu0 %1077 }
 0x1ae   : > { %3702 = vst [vmem:[#allocation6_spill] sm:$0xff] %v3115_v38  ;;  %v3707_v38 = vld [vmem:[#allocation16_spill] sm:$0xff] }
 0x1af   : > { %1137 = vrot.lane.b32.xlu1 %v2796_v19, %s2181_s30  ;;  %1135 = vrot.lane.b32.xlu0 %v932_v30, %s2181_s30  ;;  %v570_v56 = vsel %vm566_vm6, %v3707_v38, %v3706_v35  ;;  %v3708_v30 = vld [vmem:[#allocation17_spill] sm:$0xff]  ;;  %v569_v57 = vsel %vm566_vm6, %v3703_v0, %v3707_v38 }
 0x1b0   : > { %v759_v58 = vsel %vm675_vm1, %v570_v56, %v2940_v3  ;;  %v582_v33 = vsel %vm581_vm15, %v3708_v30, %v2595_v17  ;;  %v3710_v30 = vld [vmem:[#allocation18_spill] sm:$0xff] }
 0x1b1   : > { %v1263_v22 = vpop.permute.xlu1 %1262  ;;  %v1261_v19 = vpop.permute.xlu0 %1260  ;;  %v750_v56 = vsel %vm675_vm1, %v567_v28, %v582_v33 }
 0x1b2   : > { %v1468_v45 = vsel %vm1466_vm7, %v1259_v11, %v1261_v19  ;;  %v1469_v17 = vsel %vm1466_vm7, %v1261_v19, %v1263_v22  ;;  %v613_v19 = vsel %vm611_vm8, %v2822_v50, %v2811_v60 }
 0x1b3   : > { %1318 = vrot.lane.b32.xlu1 %v753_v16, %s2182_s7  ;;  %1306 = vrot.lane.b32.xlu0 %v739_v8, %s2182_s7  ;;  %v772_v16 = vsel %vm691_vm3, %v2611_v20, %v2808_v24 }
 0x1b4   : > { %1647 = vmatprep.subr.bf16.mxu0 %v1468_v45  ;;  %v756_v45 = vsel %vm675_vm1, %v569_v57, %v2952_v54  ;;  %v762_v54 = vsel %vm675_vm1, %v3706_v35, %v2611_v20  ;;  %v597_v57 = vsel %vm596_vm2, %v3710_v30, %v3691_v10  ;;  %v776_v20 = vsel %vm702_vm5, %v3004_v27, %v613_v19 }
 0x1b5   : > { %v3132_v41 = vpop.permute.xlu1 %1079  ;;  %v1265_v47 = vpop.permute.xlu0 %1264  ;;  %v614_v10 = vsel %vm611_vm8, %v2811_v60, %v2836_v39  ;;  %v628_v19 = vsel %vm626_vm10, %v2839_v14, %v2860_v7 }
 0x1b6   : > { %v1470_v3 = vsel %vm1466_vm7, %v1263_v22, %v1265_v47 }
 0x1b7   : > { %1322 = vrot.lane.b32.xlu1 %v759_v58, %s2182_s7  ;;  %1320 = vrot.lane.b32.xlu0 %v756_v45, %s2182_s7  ;;  %v778_v45 = vsel %vm702_vm5, %v3035_v52, %v614_v10  ;;  %v629_v52 = vsel %vm626_vm10, %v2860_v7, %v2852_v42  ;;  %v655_v7 = vsel %vm654_vm11, %v2930_v55, %v2921_v40 }
 0x1b8   : > { %1729 = vmatprep.subr.bf16.mxu1 %v1470_v3 }
 0x1b9   : > { %v3150_v8 = vpop.permute.xlu1 %1083  ;;  %1730 = vmatpush1.bf16.msra.mxu1 %v1469_v17  ;;  %v3156_v38 = vpop.permute.xlu0 %1081  ;;  %v782_v17 = vsel %vm702_vm5, %v2808_v24, %v2825_v23 }
 0x1bb   : > { %1316 = vrot.lane.b32.xlu1 %v750_v56, %s2182_s7  ;;  %1324 = vrot.lane.b32.xlu0 %v762_v54, %s2182_s7  ;;  %v640_v54 = vsel %vm639_vm9, %v2863_v18, %v2893_v4 }
 0x1bc   : > { %v788_v24 = vsel %vm675_vm1, %v628_v19, %v640_v54 }
 0x1bd   : > { %v3161_v0 = vpop.permute.xlu1 %1087  ;;  %v3166_v13 = vpop.permute.xlu0 %1085 }
 0x1bf   : > { %1330 = vrot.lane.b32.xlu1 %v3050_v61, %s2182_s7  ;;  %1328 = vrot.lane.b32.xlu0 %v3016_v62, %s2182_s7  ;;  %v615_v62 = vsel %vm611_vm8, %v2836_v39, %v2825_v23 }
 0x1c0   : > { %v780_v27 = vsel %vm702_vm5, %v3023_v1, %v615_v62 }
 0x1c1   : > { %v1269_v22 = vpop.permute.xlu1 %1268  ;;  %v1257_v35 = vpop.permute.xlu0 %1256 }
 0x1c2   : > { %v1467_v61 = vsel %vm1466_vm7, %v1257_v35, %v1259_v11  ;;  %v764_v11 = vsel %vm691_vm3, %v582_v33, %v597_v57 }
 0x1c3   : > { %1334 = vrot.lane.b32.xlu1 %v772_v16, %s2182_s7  ;;  %1332 = vrot.lane.b32.xlu0 %v3041_v43, %s2182_s7  ;;  %v612_v43 = vsel %vm611_vm8, %v2847_v21, %v2822_v50  ;;  %v641_v50 = vsel %vm639_vm9, %v2893_v4, %v2882_v25  ;;  %v797_v4 = vsel %vm675_vm1, %v2876_v12, %v2913_v15 }
 0x1c4   : > { %1648 = vmatpush1.bf16.msra.mxu0 %v1467_v61  ;;  %v774_v1 = vsel %vm702_vm5, %v597_v57, %v612_v43  ;;  %v791_v16 = vsel %vm675_vm1, %v629_v52, %v641_v50  ;;  %v642_v61 = vsel %vm639_vm9, %v2882_v25, %v2913_v15  ;;  %v627_v25 = vsel %vm626_vm10, %v2899_v46, %v2839_v14 }
 0x1c5   : > { %v1273_v58 = vpop.permute.xlu1 %1272  ;;  %v1271_v47 = vpop.permute.xlu0 %1270  ;;  %v656_v14 = vsel %vm654_vm11, %v2921_v40, %v2954_v2 }
 0x1c6   : > { %v1472_v63 = vsel %vm1466_vm7, %v1269_v22, %v1271_v47  ;;  %v1473_v39 = vsel %vm1466_vm7, %v1271_v47, %v1273_v58  ;;  %v801_v47 = vsel %vm691_vm3, %v640_v54, %v655_v7  ;;  %v673_v54 = vsel %vm670_vm12, %v2977_v51, %v3007_v53 }
 0x1c7   : > { %1338 = vrot.lane.b32.xlu1 %v776_v20, %s2182_s7  ;;  %1326 = vrot.lane.b32.xlu0 %v764_v11, %s2182_s7  ;;  %v657_v11 = vsel %vm654_vm11, %v2954_v2, %v2935_v34  ;;  %v799_v2 = vsel %vm691_vm3, %v2863_v18, %v2930_v55 }
 0x1c8   : > { %1649 = vmatprep.subr.bf16.mxu0 %v1472_v63  ;;  %v805_v46 = vsel %vm691_vm3, %v642_v61, %v657_v11 }
 0x1c9   : > { %v3191_v28 = vpop.permute.xlu1 %1089  ;;  %v1275_v33 = vpop.permute.xlu0 %1274 }
 0x1ca   : > { %v1474_v3 = vsel %vm1466_vm7, %v1273_v58, %v1275_v33  ;;  %v630_v58 = vsel %vm626_vm10, %v2852_v42, %v2876_v12  ;;  %v785_v12 = vsel %vm675_vm1, %v627_v25, %v2863_v18 }
 0x1cb   : > { %1342 = vrot.lane.b32.xlu1 %v780_v27, %s2182_s7  ;;  %1340 = vrot.lane.b32.xlu0 %v778_v45, %s2182_s7  ;;  %v794_v57 = vsel %vm675_vm1, %v630_v58, %v642_v61  ;;  %v803_v27 = vsel %vm691_vm3, %v641_v50, %v656_v14  ;;  %v658_v45 = vsel %vm654_vm11, %v2935_v34, %v2974_v26  ;;  %vm1139_vm1 = vcmask 56320  }
 0x1cc   : > { %1731 = vmatprep.subr.bf16.mxu1 %v1474_v3  ;;  %v672_v3 = vsel %vm670_vm12, %v2991_v5, %v2977_v51  ;;  %v807_v34 = vsel %vm691_vm3, %v2913_v15, %v658_v45  ;;  %v674_v50 = vsel %vm670_vm12, %v3007_v53, %v2994_v9  ;;  %v815_v9 = vsel %vm702_vm5, %v657_v11, %v673_v54 }
 0x1cd   : > { %v3206_v60 = vpop.permute.xlu1 %1093  ;;  %1732 = vmatpush1.bf16.msra.mxu1 %v1473_v39  ;;  %v3215_v21 = vpop.permute.xlu0 %1091  ;;  %v813_v18 = vsel %vm702_vm5, %v656_v14, %v672_v3  ;;  %v1140_v51 = vsel %vm1139_vm1, %v3025_v6, %v3010_v59  ;;  %v3713_v14 = vld [vmem:[#allocation19_spill] sm:$0xff]  ;;  %vm1631_vm3 = vcmask 556032  }
 0x1cf   : > { %1336 = vrot.lane.b32.xlu1 %v774_v1, %s2182_s7  ;;  %1344 = vrot.lane.b32.xlu0 %v782_v17, %s2182_s7  ;;  %v671_v1 = vsel %vm670_vm12, %v2958_v29, %v2991_v5  ;;  %v817_v5 = vsel %vm702_vm5, %v658_v45, %v674_v50  ;;  %v1188_v50 = vlaneseq }
 0x1d0   : > { %v811_v15 = vsel %vm702_vm5, %v655_v7, %v671_v1  ;;  %v2183_v1 = vmov 1983009808  }
 0x1d1   : > { %v3223_v56 = vpop.permute.xlu1 %1097  ;;  %v3234_v35 = vpop.permute.xlu0 %1095 }
 0x1d3   : > { %1350 = vrot.lane.b32.xlu1 %v791_v16, %s2182_s7  ;;  %1348 = vrot.lane.b32.xlu0 %v788_v24, %s2182_s7 }
 0x1d5   : > { %v1279_v23 = vpop.permute.xlu1 %1278  ;;  %v1267_v30 = vpop.permute.xlu0 %1266 }
 0x1d6   : > { %v1471_v20 = vsel %vm1466_vm7, %v1267_v30, %v1269_v22  ;;  %v1141_v30 = vsel %vm1139_vm1, %v3010_v59, %v3045_v48 }
 0x1d7   : > { %1354 = vrot.lane.b32.xlu1 %v797_v4, %s2182_s7  ;;  %1352 = vrot.lane.b32.xlu0 %v794_v57, %s2182_s7  ;;  %v809_v4 = vsel %vm702_vm5, %v2930_v55, %v2958_v29 }
 0x1d8   : > { %1650 = vmatpush1.bf16.msra.mxu0 %v1471_v20 }
 0x1d9   : > { %v1283_v62 = vpop.permute.xlu1 %1282  ;;  %v1281_v42 = vpop.permute.xlu0 %1280 }
 0x1da   : > { %v1476_v22 = vsel %vm1466_vm7, %v1279_v23, %v1281_v42  ;;  %v1477_v40 = vsel %vm1466_vm7, %v1281_v42, %v1283_v62  ;;  %v1146_v42 = vsel %vm1139_vm1, %v3069_v31, %v3091_v44 }
 0x1db   : > { %1358 = vrot.lane.b32.xlu1 %v801_v47, %s2182_s7  ;;  %1346 = vrot.lane.b32.xlu0 %v785_v12, %s2182_s7 }
 0x1dc   : > { %1651 = vmatprep.subr.bf16.mxu0 %v1476_v22 }
 0x1dd   : > { %v3265_v63 = vpop.permute.xlu1 %1099  ;;  %v1285_v10 = vpop.permute.xlu0 %1284 }
 0x1de   : > { %v1478_v43 = vsel %vm1466_vm7, %v1283_v62, %v1285_v10  ;;  %v1143_v62 = vsel %vm1139_vm1, %v3030_v36, %v3066_v32 }
 0x1df   : > { %1362 = vrot.lane.b32.xlu1 %v805_v46, %s2182_s7  ;;  %1360 = vrot.lane.b32.xlu0 %v803_v27, %s2182_s7 }
 0x1e0   : > { %1733 = vmatprep.subr.bf16.mxu1 %v1478_v43 }
 0x1e1   : > { %v3275_v33 = vpop.permute.xlu1 %1103  ;;  %1734 = vmatpush1.bf16.msra.mxu1 %v1477_v40  ;;  %v3289_v39 = vpop.permute.xlu0 %1101 }
 0x1e3   : > { %1356 = vrot.lane.b32.xlu1 %v799_v2, %s2182_s7  ;;  %1364 = vrot.lane.b32.xlu0 %v807_v34, %s2182_s7 }
 0x1e5   : > { %v3293_v26 = vpop.permute.xlu1 %1107  ;;  %v3304_v52 = vpop.permute.xlu0 %1105 }
 0x1e7   : > { %1370 = vrot.lane.b32.xlu1 %v813_v18, %s2182_s7  ;;  %1368 = vrot.lane.b32.xlu0 %v811_v15, %s2182_s7  ;;  %v1186_v18 = vunpack.c.l.s4 %v2183_v1 }
 0x1e9   : > { %v1289_v17 = vpop.permute.xlu1 %1288  ;;  %v1277_v16 = vpop.permute.xlu0 %1276 }
 0x1ea   : > { %v1475_v19 = vsel %vm1466_vm7, %v1277_v16, %v1279_v23  ;;  %v1142_v23 = vsel %vm1139_vm1, %v3045_v48, %v3030_v36  ;;  %v1145_v48 = vsel %vm1139_vm1, %v3080_v37, %v3069_v31  ;;  %v1147_v36 = vsel %vm1139_vm1, %v3091_v44, %v3083_v49  ;;  %v3714_v31 = vld [vmem:[#allocation10_spill] sm:$0xff]  ;;  %v3715_v44 = vld [vmem:[#allocation7_spill] sm:$0xff] }
 0x1eb   : > { %1374 = vrot.lane.b32.xlu1 %v817_v5, %s2182_s7  ;;  %1372 = vrot.lane.b32.xlu0 %v815_v9, %s2182_s7  ;;  %v1150_v43 = vsel %vm1139_vm1, %v3715_v44, %v3714_v31  ;;  %v1187_v16 = vunpack.c.0.s8 %v1186_v18  ;;  %v3398_v9 = vshrl.u32 %v1188_v50, 7 }
 0x1ec   : > { %1652 = vmatpush1.bf16.msra.mxu0 %v1475_v19  ;;  %v1153_v19 = vsel %vm1139_vm1, %v3156_v38, %v3150_v8 }
 0x1ed   : > { %v1293_v24 = vpop.permute.xlu1 %1292  ;;  %v1291_v53 = vpop.permute.xlu0 %1290 }
 0x1ee   : > { %v1480_v61 = vsel %vm1466_vm7, %v1289_v17, %v1291_v53  ;;  %v1481_v57 = vsel %vm1466_vm7, %v1291_v53, %v1293_v24  ;;  %v1176_v53 = vld [vmem:[%s3648_s0] sm:$0x3f] }
 0x1ef   : > { %1378 = vrot.lane.b32.xlu1 %v1140_v51, %s2182_s7  ;;  %1366 = vrot.lane.b32.xlu0 %v809_v4, %s2182_s7  ;;  %v1152_v4 = vsel %vm1139_vm1, %v3132_v41, %v3156_v38  ;;  %v1154_v38 = vsel %vm1139_vm1, %v3150_v8, %v3166_v13 }
 0x1f0   : > { %1653 = vmatprep.subr.bf16.mxu0 %v1480_v61 }
 0x1f1   : > { %v3324_v7 = vpop.permute.xlu1 %1109  ;;  %v1295_v58 = vpop.permute.xlu0 %1294 }
 0x1f2   : > { %v1482_v55 = vsel %vm1466_vm7, %v1293_v24, %v1295_v58  ;;  %v1190_v24 = vsub.s32 %v1187_v16, %v3398_v9  ;;  %v1155_v58 = vsel %vm1139_vm1, %v3166_v13, %v3161_v0  ;;  %v1156_v0 = vsel %vm1139_vm1, %v3191_v28, %v3215_v21 }
 0x1f3   : > { %1382 = vrot.lane.b32.xlu1 %v1142_v23, %s2182_s7  ;;  %1380 = vrot.lane.b32.xlu0 %v1141_v30, %s2182_s7  ;;  %v1158_v13 = vsel %vm1139_vm1, %v3206_v60, %v3234_v35 }
 0x1f4   : > { %1735 = vmatprep.subr.bf16.mxu1 %v1482_v55  ;;  %v3414_v23 = vrot.slane %v1176_v53, %v1190_v24 }
 0x1f5   : > { %v3335_v29 = vpop.permute.xlu1 %1113  ;;  %1736 = vmatpush1.bf16.msra.mxu1 %v1481_v57  ;;  %v3341_v20 = vpop.permute.xlu0 %1111  ;;  %v1184_v57 = vcombine.high %v1176_v53, %v1176_v53 }
 0x1f6   : > { %v1199_v30 = vcombine.high %v3414_v23, %v3414_v23 }
 0x1f7   : > { %1376 = vrot.lane.b32.xlu1 %v3025_v6, %s2182_s7  ;;  %1384 = vrot.lane.b32.xlu0 %v1143_v62, %s2182_s7  ;;  %v3711_v6 = vld [vmem:[#allocation5_spill] sm:$0xff] }
 0x1f8   : > { %v1144_v47 = vsel %vm1139_vm1, %v3711_v6, %v3080_v37  ;;  %v3712_v37 = vld [vmem:[#allocation20_spill] sm:$0xff]  ;;  %1679 = vmatprep.mubr.bf16.mxu0 %v1199_v30  ;;  %1761 = vmatprep.mubr.bf16.mxu1 %v1199_v30 }
 0x1f9   : > { %v3346_v59 = vpop.permute.xlu1 %1117  ;;  %v3353_v25 = vpop.permute.xlu0 %1115  ;;  %v1148_v46 = vsel %vm1139_vm1, %v3713_v14, %v3712_v37  ;;  %v1149_v40 = vsel %vm1139_vm1, %v3712_v37, %v3715_v44  ;;  %v1159_v37 = vsel %vm1139_vm1, %v3234_v35, %v3223_v56  ;;  %v1163_v56 = vsel %vm1139_vm1, %v3304_v52, %v3293_v26 }
 0x1fa   : > { %v1167_v18 = vsel %vm1139_vm1, %v3353_v25, %v3346_v59 }
 0x1fb   : > { %1390 = vrot.lane.b32.xlu1 %v1145_v48, %s2182_s7  ;;  %1388 = vrot.lane.b32.xlu0 %v1144_v47, %s2182_s7 }
 0x1fd   : > { %v1299_v11 = vpop.permute.xlu1 %1298  ;;  %v1287_v32 = vpop.permute.xlu0 %1286 }
 0x1fe   : > { %v1479_v12 = vsel %vm1466_vm7, %v1287_v32, %v1289_v17  ;;  %v3716_v17 = vld [vmem:[#allocation6_spill] sm:$0xff]  ;;  %v1157_v32 = vsel %vm1139_vm1, %v3215_v21, %v3206_v60  ;;  %v1161_v21 = vsel %vm1139_vm1, %v3289_v39, %v3275_v33 }
 0x1ff   : > { %1394 = vrot.lane.b32.xlu1 %v1147_v36, %s2182_s7  ;;  %1392 = vrot.lane.b32.xlu0 %v1146_v42, %s2182_s7  ;;  %v1151_v54 = vsel %vm1139_vm1, %v3714_v31, %v3716_v17 }
 0x200   : > { %1654 = vmatpush1.bf16.msra.mxu0 %v1479_v12 }
 0x201   : > { %v1303_v22 = vpop.permute.xlu1 %1302  ;;  %v1301_v49 = vpop.permute.xlu0 %1300 }
 0x202   : > { %v1484_v10 = vsel %vm1466_vm7, %v1299_v11, %v1301_v49  ;;  %v1485_v34 = vsel %vm1466_vm7, %v1301_v49, %v1303_v22  ;;  %v1162_v49 = vsel %vm1139_vm1, %v3275_v33, %v3304_v52  ;;  %v1166_v33 = vsel %vm1139_vm1, %v3335_v29, %v3353_v25 }
 0x203   : > { %1398 = vrot.lane.b32.xlu1 %v1148_v46, %s2182_s7  ;;  %1386 = vrot.lane.b32.xlu0 %v3711_v6, %s2182_s7  ;;  %v3431_v6 = vrot.slane %v1184_v57, %v1190_v24 }
 0x204   : > { %1655 = vmatprep.subr.bf16.mxu0 %v1484_v10 }
 0x205   : > { %v3373_v27 = vpop.permute.xlu1 %1119  ;;  %v1305_v45 = vpop.permute.xlu0 %1304 }
 0x206   : > { %v1486_v2 = vsel %vm1466_vm7, %v1303_v22, %v1305_v45 }
 0x207   : > { %1402 = vrot.lane.b32.xlu1 %v1150_v43, %s2182_s7  ;;  %1400 = vrot.lane.b32.xlu0 %v1149_v40, %s2182_s7  ;;  %v1165_v40 = vsel %vm1139_vm1, %v3341_v20, %v3335_v29 }
 0x208   : > { %1737 = vmatprep.subr.bf16.mxu1 %v1486_v2 }
 0x209   : > { %v3385_v3 = vpop.permute.xlu1 %1123  ;;  %1738 = vmatpush1.bf16.msra.mxu1 %v1485_v34  ;;  %v3391_v15 = vpop.permute.xlu0 %1121 }
 0x20b   : > { %1396 = vrot.lane.b32.xlu1 %v3713_v14, %s2182_s7  ;;  %1404 = vrot.lane.b32.xlu0 %v1151_v54, %s2182_s7 }
 0x20d   : > { %v3396_v5 = vpop.permute.xlu1 %1127  ;;  %v3406_v51 = vpop.permute.xlu0 %1125 }
 0x20e   : > { %v1171_v16 = vsel %vm1139_vm1, %v3406_v51, %v3396_v5 }
 0x20f   : > { %1410 = vrot.lane.b32.xlu1 %v1153_v19, %s2182_s7  ;;  %1408 = vrot.lane.b32.xlu0 %v1152_v4, %s2182_s7  ;;  %v2184_v4 = vmov 0  }
 0x210   : > { %2093 = vset.pattern.permute.xlu0 %v2184_v4 }
 0x211   : > { %v1309_v61 = vpop.permute.xlu1 %1308  ;;  %v1297_v55 = vpop.permute.xlu0 %1296 }
 0x212   : > { %v1483_v62 = vsel %vm1466_vm7, %v1297_v55, %v1299_v11 }
 0x213   : > { %1414 = vrot.lane.b32.xlu1 %v1155_v58, %s2182_s7  ;;  %1412 = vrot.lane.b32.xlu0 %v1154_v38, %s2182_s7 }
 0x214   : > { %1656 = vmatpush1.bf16.msra.mxu0 %v1483_v62 }
 0x215   : > { %v1313_v48 = vpop.permute.xlu1 %1312  ;;  %v1311_v47 = vpop.permute.xlu0 %1310 }
 0x216   : > { %v1488_v36 = vsel %vm1466_vm7, %v1309_v61, %v1311_v47 }
 0x217   : > { %1418 = vrot.lane.b32.xlu1 %v1156_v0, %s2182_s7  ;;  %1406 = vrot.lane.b32.xlu0 %v3132_v41, %s2182_s7  ;;  %v1489_v41 = vsel %vm1466_vm7, %v1311_v47, %v1313_v48 }
 0x218   : > { %1657 = vmatprep.subr.bf16.mxu0 %v1488_v36 }
 0x219   : > { %v3435_v8 = vpop.permute.xlu1 %1129  ;;  %v1315_v11 = vpop.permute.xlu0 %1314 }
 0x21a   : > { %v1490_v42 = vsel %vm1466_vm7, %v1313_v48, %v1315_v11 }
 0x21b   : > { %1422 = vrot.lane.b32.xlu1 %v1158_v13, %s2182_s7  ;;  %1420 = vrot.lane.b32.xlu0 %v1157_v32, %s2182_s7 }
 0x21c   : > { %1739 = vmatprep.subr.bf16.mxu1 %v1490_v42 }
 0x21d   : > { %v3447_v12 = vpop.permute.xlu1 %1133  ;;  %1740 = vmatpush1.bf16.msra.mxu1 %v1489_v41  ;;  %v3453_v22 = vpop.permute.xlu0 %1131 }
 0x21e   : > { %v1172_v55 = vsel %vm1139_vm1, %v3435_v8, %v3453_v22 }
 0x21f   : > { %1416 = vrot.lane.b32.xlu1 %v3191_v28, %s2182_s7  ;;  %1424 = vrot.lane.b32.xlu0 %v1159_v37, %s2182_s7  ;;  %v1160_v28 = vsel %vm1139_vm1, %v3265_v63, %v3289_v39  ;;  %v1164_v39 = vsel %vm1139_vm1, %v3324_v7, %v3341_v20  ;;  %v1169_v20 = vsel %vm1139_vm1, %v3391_v15, %v3385_v3 }
 0x221   : > { %v3458_v60 = vpop.permute.xlu1 %1137  ;;  %v3465_v14 = vpop.permute.xlu0 %1135 }
 0x222   : > { %v1175_v62 = vsel %vm1139_vm1, %v3465_v14, %v3458_v60  ;;  %v1174_v0 = vsel %vm1139_vm1, %v3447_v12, %v3465_v14 }
 0x223   : > { %1430 = vrot.lane.b32.xlu1 %v1161_v21, %s2182_s7  ;;  %1428 = vrot.lane.b32.xlu0 %v1160_v28, %s2182_s7 }
 0x225   : > { %v1319_v46 = vpop.permute.xlu1 %1318  ;;  %v1307_v35 = vpop.permute.xlu0 %1306 }
 0x226   : > { %v1487_v10 = vsel %vm1466_vm7, %v1307_v35, %v1309_v61 }
 0x227   : > { %1434 = vrot.lane.b32.xlu1 %v1163_v56, %s2182_s7  ;;  %1432 = vrot.lane.b32.xlu0 %v1162_v49, %s2182_s7 }
 0x228   : > { %1658 = vmatpush1.bf16.msra.mxu0 %v1487_v10 }
 0x229   : > { %v1323_v31 = vpop.permute.xlu1 %1322  ;;  %v1321_v26 = vpop.permute.xlu0 %1320 }
 0x22a   : > { %v1492_v44 = vsel %vm1466_vm7, %v1319_v46, %v1321_v26 }
 0x22b   : > { %1438 = vrot.lane.b32.xlu1 %v1164_v39, %s2182_s7  ;;  %1426 = vrot.lane.b32.xlu0 %v3265_v63, %s2182_s7  ;;  %v1493_v63 = vsel %vm1466_vm7, %v1321_v26, %v1323_v31 }
 0x22c   : > { %1659 = vmatprep.subr.bf16.mxu0 %v1492_v44 }
 0x22d   : > { %v1317_v43 = vpop.permute.xlu1 %1316  ;;  %v1325_v45 = vpop.permute.xlu0 %1324 }
 0x22e   : > { %v1491_v52 = vsel %vm1466_vm7, %v1317_v43, %v1319_v46  ;;  %v1494_v2 = vsel %vm1466_vm7, %v1323_v31, %v1325_v45 }
 0x22f   : > { %1442 = vrot.lane.b32.xlu1 %v1166_v33, %s2182_s7  ;;  %1660 = vmatpush1.bf16.msra.mxu0 %v1491_v52 }
 0x230   : > { %1440 = vrot.lane.b32.xlu0 %v1165_v40, %s2182_s7  ;;  %1741 = vmatprep.subr.bf16.mxu1 %v1494_v2 }
 0x231   : > { %v1331_v34 = vpop.permute.xlu1 %1330  ;;  %1742 = vmatpush1.bf16.msra.mxu1 %v1493_v63  ;;  %v1329_v1 = vpop.permute.xlu0 %1328 }
 0x232   : > { %v1496_v50 = vsel %vm1466_vm7, %v1329_v1, %v1331_v34 }
 0x233   : > { %1436 = vrot.lane.b32.xlu1 %v3324_v7, %s2182_s7  ;;  %1661 = vmatprep.subr.bf16.mxu0 %v1496_v50  ;;  %v1168_v7 = vsel %vm1139_vm1, %v3373_v27, %v3391_v15  ;;  %v1170_v15 = vsel %vm1139_vm1, %v3385_v3, %v3406_v51  ;;  %v1173_v3 = vsel %vm1139_vm1, %v3453_v22, %v3447_v12 }
 0x234   : > { %1444 = vrot.lane.b32.xlu0 %v1167_v18, %s2182_s7 }
 0x235   : > { %v1335_v29 = vpop.permute.xlu1 %1334  ;;  %v1333_v17 = vpop.permute.xlu0 %1332 }
 0x236   : > { %v1498_v54 = vsel %vm1466_vm7, %v1333_v17, %v1335_v29  ;;  %v1497_v59 = vsel %vm1466_vm7, %v1331_v34, %v1333_v17 }
 0x237   : > { %1450 = vrot.lane.b32.xlu1 %v1169_v20, %s2182_s7  ;;  %1743 = vmatprep.subr.bf16.mxu1 %v1498_v54 }
 0x238   : > { %1448 = vrot.lane.b32.xlu0 %v1168_v7, %s2182_s7  ;;  %1744 = vmatpush1.bf16.msra.mxu1 %v1497_v59 }
 0x239   : > { %v1339_v25 = vpop.permute.xlu1 %1338  ;;  %v1327_v19 = vpop.permute.xlu0 %1326 }
 0x23a   : > { %v1495_v24 = vsel %vm1466_vm7, %v1327_v19, %v1329_v1 }
 0x23b   : > { %1454 = vrot.lane.b32.xlu1 %v1171_v16, %s2182_s7  ;;  %1662 = vmatpush1.bf16.msra.mxu0 %v1495_v24 }
 0x23c   : > { %1452 = vrot.lane.b32.xlu0 %v1170_v15, %s2182_s7 }
 0x23d   : > { %v1343_v53 = vpop.permute.xlu1 %1342  ;;  %v1341_v5 = vpop.permute.xlu0 %1340 }
 0x23e   : > { %v1500_v61 = vsel %vm1466_vm7, %v1339_v25, %v1341_v5 }
 0x23f   : > { %1456 = vrot.lane.b32.xlu1 %v3435_v8, %s2182_s7  ;;  %1663 = vmatprep.subr.bf16.mxu0 %v1500_v61  ;;  %v1177_v8 = vld [vmem:[%s3649_s1] sm:$0xf] }
 0x240   : > { %1446 = vrot.lane.b32.xlu0 %v3373_v27, %s2182_s7  ;;  %v1501_v27 = vsel %vm1466_vm7, %v1341_v5, %v1343_v53 }
 0x241   : > { %v1337_v58 = vpop.permute.xlu1 %1336  ;;  %v1345_v30 = vpop.permute.xlu0 %1344 }
 0x242   : > { %v1499_v51 = vsel %vm1466_vm7, %v1337_v58, %v1339_v25  ;;  %v1502_v57 = vsel %vm1466_vm7, %v1343_v53, %v1345_v30 }
 0x243   : > { %1460 = vrot.lane.b32.xlu1 %v1173_v3, %s2182_s7  ;;  %1664 = vmatpush1.bf16.msra.mxu0 %v1499_v51 }
 0x244   : > { %1458 = vrot.lane.b32.xlu0 %v1172_v55, %s2182_s7  ;;  %1745 = vmatprep.subr.bf16.mxu1 %v1502_v57 }
 0x245   : > { %v1351_v38 = vpop.permute.xlu1 %1350  ;;  %1746 = vmatpush1.bf16.msra.mxu1 %v1501_v27  ;;  %v1349_v48 = vpop.permute.xlu0 %1348 }
 0x246   : > { %v1504_v47 = vsel %vm1466_vm7, %v1349_v48, %v1351_v38 }
 0x247   : > { %1464 = vrot.lane.b32.xlu1 %v1175_v62, %s2182_s7  ;;  %1665 = vmatprep.subr.bf16.mxu0 %v1504_v47 }
 0x248   : > { %1462 = vrot.lane.b32.xlu0 %v1174_v0, %s2182_s7 }
 0x249   : > { %v1355_v36 = vpop.permute.xlu1 %1354  ;;  %v1353_v13 = vpop.permute.xlu0 %1352 }
 0x24a   : > { %v1506_v11 = vsel %vm1466_vm7, %v1353_v13, %v1355_v36  ;;  %v1505_v32 = vsel %vm1466_vm7, %v1351_v38, %v1353_v13 }
 0x24b   : > { %1747 = vmatprep.subr.bf16.mxu1 %v1506_v11 }
 0x24c   : > { %1180 = vperm.xlu0 %2093, %v1177_v8   ;;  %1748 = vmatpush1.bf16.msra.mxu1 %v1505_v32 }
 0x24d   : > { %v1359_v42 = vpop.permute.xlu1 %1358  ;;  %v1347_v12 = vpop.permute.xlu0 %1346 }
 0x24e   : > { %v1503_v41 = vsel %vm1466_vm7, %v1347_v12, %v1349_v48 }
 0x24f   : > { %1666 = vmatpush1.bf16.msra.mxu0 %v1503_v41 }
 0x251   : > { %v1363_v22 = vpop.permute.xlu1 %1362  ;;  %v1361_v37 = vpop.permute.xlu0 %1360 }
 0x252   : > { %v1508_v60 = vsel %vm1466_vm7, %v1359_v42, %v1361_v37  ;;  %v1509_v35 = vsel %vm1466_vm7, %v1361_v37, %v1363_v22 }
 0x253   : > { %1667 = vmatprep.subr.bf16.mxu0 %v1508_v60 }
 0x255   : > { %v1357_v21 = vpop.permute.xlu1 %1356  ;;  %v1365_v28 = vpop.permute.xlu0 %1364 }
 0x256   : > { %v1507_v14 = vsel %vm1466_vm7, %v1357_v21, %v1359_v42  ;;  %v1510_v46 = vsel %vm1466_vm7, %v1363_v22, %v1365_v28 }
 0x257   : > { %1668 = vmatpush1.bf16.msra.mxu0 %v1507_v14  ;;  %1749 = vmatprep.subr.bf16.mxu1 %v1510_v46 }
 0x258   : > { %1750 = vmatpush1.bf16.msra.mxu1 %v1509_v35 }
 0x259   : > { %v1371_v56 = vpop.permute.xlu1 %1370  ;;  %v1369_v49 = vpop.permute.xlu0 %1368 }
 0x25a   : > { %v1512_v10 = vsel %vm1466_vm7, %v1369_v49, %v1371_v56 }
 0x25b   : > { %1669 = vmatprep.subr.bf16.mxu0 %v1512_v10 }
 0x25d   : > { %v1375_v31 = vpop.permute.xlu1 %1374  ;;  %v1373_v39 = vpop.permute.xlu0 %1372 }
 0x25e   : > { %v1514_v26 = vsel %vm1466_vm7, %v1373_v39, %v1375_v31  ;;  %v1513_v44 = vsel %vm1466_vm7, %v1371_v56, %v1373_v39 }
 0x25f   : > { %1751 = vmatprep.subr.bf16.mxu1 %v1514_v26 }
 0x260   : > { %1752 = vmatpush1.bf16.msra.mxu1 %v1513_v44 }
 0x261   : > { %v1379_v43 = vpop.permute.xlu1 %1378  ;;  %v1367_v33 = vpop.permute.xlu0 %1366 }
 0x262   : > { %v1511_v52 = vsel %vm1466_vm7, %v1367_v33, %v1369_v49 }
 0x263   : > { %1670 = vmatpush1.bf16.msra.mxu0 %v1511_v52 }
 0x265   : > { %v1383_v45 = vpop.permute.xlu1 %1382  ;;  %v1381_v40 = vpop.permute.xlu0 %1380 }
 0x266   : > { %v1516_v2 = vsel %vm1466_vm7, %v1379_v43, %v1381_v40  ;;  %v1517_v29 = vsel %vm1466_vm7, %v1381_v40, %v1383_v45 }
 0x267   : > { %1671 = vmatprep.subr.bf16.mxu0 %v1516_v2 }
 0x269   : > { %v1377_v34 = vpop.permute.xlu1 %1376  ;;  %v1385_v1 = vpop.permute.xlu0 %1384 }
 0x26a   : > { %v1515_v63 = vsel %vm1466_vm7, %v1377_v34, %v1379_v43  ;;  %v1518_v18 = vsel %vm1466_vm7, %v1383_v45, %v1385_v1 }
 0x26b   : > { %1672 = vmatpush1.bf16.msra.mxu0 %v1515_v63  ;;  %1753 = vmatprep.subr.bf16.mxu1 %v1518_v18 }
 0x26c   : > { %1754 = vmatpush1.bf16.msra.mxu1 %v1517_v29 }
 0x26d   : > { %v1391_v50 = vpop.permute.xlu1 %1390  ;;  %v1389_v20 = vpop.permute.xlu0 %1388 }
 0x26e   : > { %v1520_v17 = vsel %vm1466_vm7, %v1389_v20, %v1391_v50 }
 0x26f   : > { %1673 = vmatprep.subr.bf16.mxu0 %v1520_v17 }
 0x271   : > { %v1395_v7 = vpop.permute.xlu1 %1394  ;;  %v1393_v54 = vpop.permute.xlu0 %1392 }
 0x272   : > { %v1522_v59 = vsel %vm1466_vm7, %v1393_v54, %v1395_v7  ;;  %v1521_v25 = vsel %vm1466_vm7, %v1391_v50, %v1393_v54 }
 0x273   : > { %1755 = vmatprep.subr.bf16.mxu1 %v1522_v59 }
 0x274   : > { %1756 = vmatpush1.bf16.msra.mxu1 %v1521_v25 }
 0x275   : > { %v1399_v16 = vpop.permute.xlu1 %1398  ;;  %v1387_v19 = vpop.permute.xlu0 %1386 }
 0x276   : > { %v1519_v15 = vsel %vm1466_vm7, %v1387_v19, %v1389_v20 }
 0x277   : > { %1674 = vmatpush1.bf16.msra.mxu0 %v1519_v15 }
 0x279   : > { %v1403_v24 = vpop.permute.xlu1 %1402  ;;  %v1401_v53 = vpop.permute.xlu0 %1400 }
 0x27a   : > { %v1524_v5 = vsel %vm1466_vm7, %v1399_v16, %v1401_v53  ;;  %v1525_v55 = vsel %vm1466_vm7, %v1401_v53, %v1403_v24 }
 0x27b   : > { %1675 = vmatprep.subr.bf16.mxu0 %v1524_v5  ;;  %v1819_v5 = vsub.s32 0, %v3398_v9 }
 0x27d   : > { %v1397_v61 = vpop.permute.xlu1 %1396  ;;  %v1405_v3 = vpop.permute.xlu0 %1404 }
 0x27e   : > { %v1523_v58 = vsel %vm1466_vm7, %v1397_v61, %v1399_v16  ;;  %v1526_v51 = vsel %vm1466_vm7, %v1403_v24, %v1405_v3  ;;  %v1815_v61 = vld [vmem:[%s388_s16] sm:$0xf]  ;;  %v1823_v3 = vsub.s32 1, %v3398_v9 }
 0x27f   : > { %1676 = vmatpush1.bf16.msra.mxu0 %v1523_v58  ;;  %1757 = vmatprep.subr.bf16.mxu1 %v1526_v51 }
 0x280   : > { %1758 = vmatpush1.bf16.msra.mxu1 %v1525_v55 }
 0x281   : > { %v1411_v30 = vpop.permute.xlu1 %1410  ;;  %v1409_v57 = vpop.permute.xlu0 %1408 }
 0x282   : > { %v1528_v38 = vsel %vm1466_vm7, %v1409_v57, %v1411_v30 }
 0x283   : > { %1677 = vmatprep.subr.bf16.mxu0 %v1528_v38 }
 0x285   : > { %v1415_v62 = vpop.permute.xlu1 %1414  ;;  %v1413_v27 = vpop.permute.xlu0 %1412 }
 0x286   : > { %v1530_v48 = vsel %vm1466_vm7, %v1413_v27, %v1415_v62  ;;  %v1529_v0 = vsel %vm1466_vm7, %v1411_v30, %v1413_v27  ;;  %v1820_v30 = vrot.slane %v1815_v61, %v1819_v5  ;;  %v1824_v62 = vrot.slane %v1815_v61, %v1823_v3 }
 0x287   : > { %1759 = vmatprep.subr.bf16.mxu1 %v1530_v48  ;;  %v1831_v48 = vsub.s32 3, %v3398_v9 }
 0x288   : > { %1760 = vmatpush1.bf16.msra.mxu1 %v1529_v0 }
 0x289   : > { %v1419_v47 = vpop.permute.xlu1 %1418  ;;  %v1407_v36 = vpop.permute.xlu0 %1406 }
 0x28a   : > { %v1527_v8 = vsel %vm1466_vm7, %v1407_v36, %v1409_v57  ;;  %v1827_v57 = vsub.s32 2, %v3398_v9 }
 0x28b   : > { %1678 = vmatpush1.bf16.msra.mxu0 %v1527_v8  ;;  %1762 = vmatmul.mubr.bf16.vlgmr.msra.gmra.mrb[0].mxu1 %v3414_v23 }
 0x28c   : > { %1802 = vmatprep.mubr.bf16.mxu1 %v2184_v4 }
 0x28d   : > { %v1423_v13 = vpop.permute.xlu1 %1422  ;;  %v1421_v11 = vpop.permute.xlu0 %1420 }
 0x28e   : > { %v1532_v32 = vsel %vm1466_vm7, %v1419_v47, %v1421_v11  ;;  %1680 = vmatmul.mubr.bf16.vlgmr.msra.gmra.mrb[0].mxu0 %v3414_v23  ;;  %v1533_v60 = vsel %vm1466_vm7, %v1421_v11, %v1423_v13 }
 0x28f   : > { %1688 = vmatprep.subr.bf16.mxu0 %v1532_v32  ;;  %1720 = vmatprep.mubr.bf16.mxu0 %v2184_v4  ;;  %v1828_v32 = vrot.slane %v1815_v61, %v1827_v57 }
 0x291   : > { %v1417_v42 = vpop.permute.xlu1 %1416  ;;  %v1425_v41 = vpop.permute.xlu0 %1424 }
 0x292   : > { %v1531_v12 = vsel %vm1466_vm7, %v1417_v42, %v1419_v47  ;;  %v1534_v22 = vsel %vm1466_vm7, %v1423_v13, %v1425_v41 }
 0x293   : > { %1689 = vmatpush1.bf16.msra.mxu0 %v1531_v12  ;;  %1770 = vmatprep.subr.bf16.mxu1 %v1534_v22  ;;  %v1832_v22 = vrot.slane %v1815_v61, %v1831_v48 }
 0x294   : > { %1771 = vmatpush1.bf16.msra.mxu1 %v1533_v60 }
 0x295   : > { %v1431_v37 = vpop.permute.xlu1 %1430  ;;  %v1429_v21 = vpop.permute.xlu0 %1428 }
 0x296   : > { %v1536_v14 = vsel %vm1466_vm7, %v1429_v21, %v1431_v37 }
 0x297   : > { %1690 = vmatprep.subr.bf16.mxu0 %v1536_v14 }
 0x299   : > { %v1435_v28 = vpop.permute.xlu1 %1434  ;;  %v1433_v23 = vpop.permute.xlu0 %1432 }
 0x29a   : > { %v1537_v46 = vsel %vm1466_vm7, %v1431_v37, %v1433_v23  ;;  %v1538_v56 = vsel %vm1466_vm7, %v1433_v23, %v1435_v28 }
 0x29b   : > { %1772 = vmatprep.subr.bf16.mxu1 %v1538_v56 }
 0x29c   : > { %1773 = vmatpush1.bf16.msra.mxu1 %v1537_v46 }
 0x29d   : > { %v1439_v4 = vpop.permute.xlu1 %1438  ;;  %v1427_v35 = vpop.permute.xlu0 %1426 }
 0x29e   : > { %v1535_v49 = vsel %vm1466_vm7, %v1427_v35, %v1429_v21 }
 0x29f   : > { %1691 = vmatpush1.bf16.msra.mxu0 %v1535_v49 }
 0x2a1   : > { %v1443_v10 = vpop.permute.xlu1 %1442 }
 0x2a2   : > { %v1441_v31 = vpop.permute.xlu0 %1440 }
 0x2a3   : > { %v1540_v39 = vsel %vm1466_vm7, %v1439_v4, %v1441_v31  ;;  %v1541_v45 = vsel %vm1466_vm7, %v1441_v31, %v1443_v10 }
 0x2a4   : > { %1692 = vmatprep.subr.bf16.mxu0 %v1540_v39 }
 0x2a5   : > { %v1437_v26 = vpop.permute.xlu1 %1436 }
 0x2a6   : > { %v1539_v44 = vsel %vm1466_vm7, %v1437_v26, %v1439_v4  ;;  %v1445_v43 = vpop.permute.xlu0 %1444 }
 0x2a7   : > { %1693 = vmatpush1.bf16.msra.mxu0 %v1539_v44  ;;  %v1542_v33 = vsel %vm1466_vm7, %v1443_v10, %v1445_v43 }
 0x2a8   : > { %1774 = vmatprep.subr.bf16.mxu1 %v1542_v33 }
 0x2a9   : > { %v1451_v52 = vpop.permute.xlu1 %1450  ;;  %1775 = vmatpush1.bf16.msra.mxu1 %v1541_v45 }
 0x2aa   : > { %v1449_v40 = vpop.permute.xlu0 %1448 }
 0x2ab   : > { %v1544_v2 = vsel %vm1466_vm7, %v1449_v40, %v1451_v52 }
 0x2ac   : > { %1694 = vmatprep.subr.bf16.mxu0 %v1544_v2 }
 0x2ad   : > { %v1455_v34 = vpop.permute.xlu1 %1454 }
 0x2ae   : > { %v1453_v63 = vpop.permute.xlu0 %1452 }
 0x2af   : > { %v1545_v1 = vsel %vm1466_vm7, %v1451_v52, %v1453_v63  ;;  %v1546_v18 = vsel %vm1466_vm7, %v1453_v63, %v1455_v34 }
 0x2b0   : > { %1776 = vmatprep.subr.bf16.mxu1 %v1546_v18 }
 0x2b1   : > { %v1457_v50 = vpop.permute.xlu1 %1456  ;;  %1777 = vmatpush1.bf16.msra.mxu1 %v1545_v1 }
 0x2b2   : > { %v1447_v29 = vpop.permute.xlu0 %1446 }
 0x2b3   : > { %v1543_v20 = vsel %vm1466_vm7, %v1447_v29, %v1449_v40 }
 0x2b4   : > { %1695 = vmatpush1.bf16.msra.mxu0 %v1543_v20 }
 0x2b5   : > { %v1461_v17 = vpop.permute.xlu1 %1460 }
 0x2b6   : > { %v1459_v7 = vpop.permute.xlu0 %1458 }
 0x2b7   : > { %v1547_v54 = vsel %vm1466_vm7, %v1457_v50, %v1459_v7  ;;  %v1548_v59 = vsel %vm1466_vm7, %v1459_v7, %v1461_v17 }
 0x2b8   : > { %v1636_v25 = vsel %vm702_vm5, %v1547_v54, 0  ;;  %1992 = vmatprep.subr.msk.bf16.mxu0 %vm702_vm5, %v1548_v59 }
 0x2b9   : > { %v1465_v16 = vpop.permute.xlu1 %1464  ;;  %1697 = vmatpush1.bf16.msra.mxu0 %v1636_v25 }
 0x2ba   : > { %v1463_v19 = vpop.permute.xlu0 %1462 }
 0x2bb   : > { %v1549_v15 = vsel %vm1466_vm7, %v1461_v17, %v1463_v19  ;;  %v1550_v24 = vsel %vm1466_vm7, %v1463_v19, %v1465_v16 }
 0x2bc   : > { %v1642_v53 = vsel %vm702_vm5, %v1549_v15, 0  ;;  %1993 = vmatmul.mubr.msk.bf16.vlgmr.msra.gmra.mrb[0].mxu0 %vm1631_vm3, %v3431_v6  ;;  %1994 = vmatprep.subr.msk.bf16.mxu1 %vm702_vm5, %v1550_v24 }
 0x2bd   : > { %1779 = vmatpush1.bf16.msra.mxu1 %v1642_v53 }
 0x2c0   : > { %1995 = vmatmul.mubr.msk.bf16.vlgmr.msra.gmra.mrb[0].mxu1 %vm1631_vm3, %v3431_v6 }
 0x2cb   : > { %v1181_v58 = vpop.permute.xlu0 %1180 }
 0x38f   : > { %v1722_v51 = vpop.f32.mrb[0].mxu0 }
 0x390   : > { %v1999_v6 = vadd.f32 %v1722_v51, %v1181_v58  ;;  %v1724_v55 = vpop.f32.mrb[1].mxu0 }
 0x391   : > { %v2000_v38 = vadd.f32 %v1724_v55, %v1181_v58  ;;  %v1726_v27 = vpop.f32.mrb[2].mxu0 }
 0x392   : > { %v1811_v0 = vmax.f32 %v1999_v6, 0.0  ;;  %v1727_v47 = vpop.f32.mrb[3].mxu0 }
 0x393   : > { %v1812_v36 = vmax.f32 %v2000_v38, 0.0  ;;  %v1804_v8 = vpop.f32.mrb[0].mxu1 }
 0x394   : > { %v1837_v13 = vmul.f32 %v1820_v30, %v1811_v0  ;;  %v2001_v11 = vadd.f32 %v1804_v8, %v1181_v58  ;;  %v1806_v42 = vpop.f32.mrb[1].mxu1 }
 0x395   : > { %v1838_v12 = vmul.f32 %v1824_v62, %v1812_v36  ;;  %v2002_v41 = vadd.f32 %v1806_v42, %v1181_v58  ;;  %v1808_v37 = vpop.f32.mrb[2].mxu1 }
 0x396   : > { %v1813_v60 = vmax.f32 %v2001_v11, 0.0  ;;  %v1809_v21 = vpop.f32.mrb[3].mxu1 }
 0x397   : > { %v1845_v9 = vcombine.low %v1837_v13, %v1838_v12  ;;  %v1814_v14 = vmax.f32 %v2002_v41, 0.0 }
 0x398   : > { %v1839_v28 = vmul.f32 %v1828_v32, %v1813_v60 }
 0x399   : > { %1849 = vst [vmem:[%s399_s10] sm:$0xff] %v1845_v9  ;;  %v1840_v23 = vmul.f32 %v1832_v22, %v1814_v14 }
 0x39b   : > { %v1846_v46 = vcombine.low %v1839_v28, %v1840_v23 }
 0x39d   : > { %1850 = vst [vmem:[%s399_s10 + $0x8] sm:$0xff] %v1846_v46 }
 0x39e PF: > { %p13_p1 = scmp.ge.s32.totalorder %s2257_s29, 6   ;;  %s3717_s21 = smov %s2137_s22 }
 0x39f   : > { %s3718_s22 = smov %s2294_s19  ;;  %s3719_s23 = smov %s2145_s24 }
 0x3a0   : > { %s3720_s24 = smov %s2281_s14  ;;  %s3721_s25 = smov %s2153_s26 }
 0x3a1   : > { %s3722_s26 = smov %s2267_s9  ;;  %s3723_s27 = smov %s2257_s29 }
 0x3a2   :  { %15 = sbr.rel (!%p13_p1) target bundleno = 4 (0x4), region = 167 }

</bundles_post_ra>
